<compile_context>
chip_gen: v7x
topology: tpu7x:2x2x1
jax: 0.10.0
libtpu: 0.0.40
codegen_flags: <defaults>
</compile_context>

<pallas_src>
import jax
import jax.numpy as jnp
from jax.experimental import pallas as pl
from jax.experimental.pallas import tpu as pltpu


# ---------------------------------------------------------------------------
# Reference math (exact PyTorch semantics) — used for validation only.
# ---------------------------------------------------------------------------
def _softplus_ref(x):
    # PyTorch Softplus(beta=1, threshold=20): x if x > 20 else log(1 + exp(x))
    safe = jnp.minimum(x, 20.0)
    return jnp.where(x > 20.0, x, jnp.log1p(jnp.exp(safe)))


def _mish_ref(x):
    # This module's Mish == tanh(softplus(x))  (NOT x * tanh(softplus(x)))
    return jnp.tanh(_softplus_ref(x))


# ---------------------------------------------------------------------------
# VPU-only mish (no EUP transcendentals).
#   tanh(softplus(x)) = ((1+e^x)^2 - 1)/((1+e^x)^2 + 1) = u/(u+2),
#   u = e^x (e^x + 2).  For x >= 20 this is 1.0 to f32 precision; for
#   x <= -30 it is < 1e-13, so clamping x to [-30, 20] is exact in f32.
# ---------------------------------------------------------------------------
_LOG2E = 1.4426950408889634
# Taylor coefficients of 2**f = exp(f*ln2); |f| <= 0.5 -> rel err < 4e-6.
_EXP2_C = (1.0,
           0.6931471805599453,
           0.2402265069591007,
           0.05550410866482158,
           0.009618129107628477,
           0.0013333558146428443)


def _exp_vpu(x):
    """e**x for x in [-30, 21] using only VPU ops (mul/add/floor/int/bitcast)."""
    z = x * _LOG2E
    n = jnp.floor(z + 0.5)                 # round to nearest integer
    f = z - n                              # |f| <= 0.5
    p = _EXP2_C[5]
    for c in _EXP2_C[4::-1]:               # Horner: c4, c3, c2, c1, c0
        p = p * f + c
    # 2**n via exponent-field construction; n in [-44, 31] here -> always normal.
    scale = pltpu.bitcast((n.astype(jnp.int32) + 127) << 23, jnp.float32)
    return p * scale


def _recip_vpu(d):
    """1/d for finite d >= 2, VPU-only: bit-trick seed (<=12.5% rel err) + 3 Newton."""
    r = pltpu.bitcast(jnp.int32(0x7F000000) - pltpu.bitcast(d, jnp.int32),
                      jnp.float32)
    for _ in range(3):                     # 0.125 -> 1.6e-2 -> 2.4e-4 -> 6e-8
        r = r * (2.0 - d * r)
    return r


def _mish_vpu(x):
    xc = jnp.clip(x, -30.0, 20.0)          # 20 == PyTorch softplus threshold
    t = _exp_vpu(xc)
    u = t * (t + 2.0)
    return u * _recip_vpu(u + 2.0)


# ---------------------------------------------------------------------------
# Kernel
# ---------------------------------------------------------------------------
def actor_kernel(x_ref, w_in_ref, b_in_ref,
                 rwa_ref, rba_ref, rwb_ref, rbb_ref,
                 w_out_ref, b_out_ref, o_ref):
    # Input Linear (no activation — matches the nn.Sequential order).
    h = jnp.dot(x_ref[...], w_in_ref[...],
                preferred_element_type=jnp.float32) + b_in_ref[...]

    # Three residual blocks (static unroll; stacked weights stay VMEM-resident).
    for i in range(3):
        t = jnp.dot(h, rwa_ref[i], preferred_element_type=jnp.float32) + rba_ref[i]
        t = _mish_vpu(t)
        t = jnp.dot(t, rwb_ref[i], preferred_element_type=jnp.float32) + rbb_ref[i]
        h = _mish_vpu(t + h)

    # Output Linear (H -> 1): VPU multiply, XLU transpose + sublane reduction,
    # producing a lane-dense (1, bt) row so the final store is unmasked.
    wh = h * w_out_ref[...]                                        # (bt, H)
    pre = jnp.sum(wh.T, axis=0, keepdims=True) + b_out_ref[...]    # (1, bt)
    o_ref[...] = jnp.tanh(pre).reshape(o_ref.shape)


def _round_up(n, m):
    return ((n + m - 1) // m) * m


def actor_forward(x, params, *, num_batch_tiles=2, max_block_batch=1024):
    (w_in, b_in, rwa, rba, rwb, rbb, w_out, b_out) = params
    B, S = x.shape
    H = w_in.shape[1]

    # Batch tile:
    #  * B <= 128: one full-array tile (no grid overhead; blocks == array dims).
    #  * otherwise: aim for `num_batch_tiles` tiles (keeps both v7x TensorCores
    #    busy), bt a multiple of 128 (lane-dense output row), capped at 1024 so
    #    the few live (bt,128) f32 intermediates fit scoped VMEM everywhere.
    if B <= 128:
        bt = B
    else:
        bt = _round_up(pl.cdiv(B, num_batch_tiles), 128)
        bt = max(128, min(bt, max_block_batch))
    grid = pl.cdiv(B, bt)      # ragged last tile handled by Pallas; no host pad

    # Weights/biases: full-array blocks with constant index_map -> copied to
    # VMEM once and kept resident across all batch tiles (~0.4 MiB total).
    def const2(i):
        return (0, 0)

    def const3(i):
        return (0, 0, 0)

    in_specs = [
        pl.BlockSpec((bt, S), lambda i: (i, 0)),   # x: batch-tiled, auto-pipelined
        pl.BlockSpec((S, H), const2),              # w_in
        pl.BlockSpec((1, H), const2),              # b_in
        pl.BlockSpec((3, H, H), const3),           # rwa
        pl.BlockSpec((3, 1, H), const3),           # rba
        pl.BlockSpec((3, H, H), const3),           # rwb
        pl.BlockSpec((3, 1, H), const3),           # rbb
        pl.BlockSpec((1, H), const2),              # w_out (stored as a row)
        pl.BlockSpec((1, 1), const2),              # b_out
    ]
    # Lane-dense output slab: one (1, bt) row per batch tile.
    out_specs = pl.BlockSpec((1, 1, bt), lambda i: (i, 0, 0))

    # Advisory cost estimate for the XLA scheduler.
    flops = 2 * grid * bt * (S * H + 6 * H * H + H)
    transcendentals = grid * bt                      # only the final tanh
    weight_bytes = sum(int(a.size) * 4 for a in
                       (w_in, b_in, rwa, rba, rwb, rbb, w_out, b_out))
    bytes_accessed = B * S * 4 + grid * bt * 4 + weight_bytes

    out = pl.pallas_call(
        actor_kernel,
        out_shape=jax.ShapeDtypeStruct((grid, 1, bt), jnp.float32),
        grid=(grid,),
        in_specs=in_specs,
        out_specs=out_specs,
        compiler_params=pltpu.CompilerParams(
            dimension_semantics=("parallel",),       # batch tiles shard across TCs (v7x)
        ),
        cost_estimate=pl.CostEstimate(
            flops=flops,
            transcendentals=transcendentals,
            bytes_accessed=bytes_accessed,
        ),
    )(x, w_in, b_in, rwa, rba, rwb, rbb, w_out, b_out)

    # Tiny lane-dense slab -> (B, 1) column.  x itself was never padded.
    return out.reshape(grid * bt, 1)[:B]


def init_params(key, state_dim, hidden_dim):
    ks = jax.random.split(key, 16)

    def uinit(k, shape, fan_in):
        bound = 1.0 / jnp.sqrt(jnp.float32(fan_in))
        return jax.random.uniform(k, shape, jnp.float32, -bound, bound)

    # Input linear: weight stored as (state_dim, hidden)
    w_in = uinit(ks[0], (state_dim, hidden_dim), state_dim)
    b_in = uinit(ks[1], (1, hidden_dim), state_dim)

    # Residual blocks: stacked (3, H, H) / (3, 1, H)
    rwa = jnp.stack([uinit(ks[2 + i], (hidden_dim, hidden_dim), hidden_dim) for i in range(3)])
    rba = jnp.stack([uinit(ks[5 + i], (1, hidden_dim), hidden_dim) for i in range(3)])
    rwb = jnp.stack([uinit(ks[8 + i], (hidden_dim, hidden_dim), hidden_dim) for i in range(3)])
    rbb = jnp.stack([uinit(ks[11 + i], (1, hidden_dim), hidden_dim) for i in range(3)])

    # Output linear stored as a (1, hidden) row; bias (1, 1)
    w_out = uinit(ks[14], (1, hidden_dim), hidden_dim)
    b_out = uinit(ks[15], (1, 1), hidden_dim)

    return (w_in, b_in, rwa, rba, rwb, rbb, w_out, b_out)


def actor_ref(x, params):
    # Pure-JAX reference mirroring the PyTorch graph exactly.
    (w_in, b_in, rwa, rba, rwb, rbb, w_out, b_out) = params
    h = x @ w_in + b_in
    for i in range(3):
        t = _mish_ref(h @ rwa[i] + rba[i])
        t = t @ rwb[i] + rbb[i]
        h = _mish_ref(t + h)
    return jnp.tanh(h @ w_out.T + b_out)


if __name__ == "__main__":
    key = jax.random.PRNGKey(0)
    k_param, k_x = jax.random.split(key)

    batch, state_dim, hidden_dim = 200, 16, 128
    params = init_params(k_param, state_dim, hidden_dim)
    x = jax.random.normal(k_x, (batch, state_dim), dtype=jnp.float32)

    # batch=200 -> bt=128, grid=(2,): two batch tiles (both v7x TCs), ragged
    # last tile handled by Pallas, lane-dense (2,1,128) output slab.
    out = actor_forward(x, params)
    out = jax.block_until_ready(out)

    ref = actor_ref(x, params)
    assert out.shape == (batch, 1)
    err = float(jnp.max(jnp.abs(out - ref)))
    assert jnp.allclose(out, ref, atol=5e-3, rtol=5e-3), err

    print("KERNEL_OK")
</pallas_src>

<mosaic_0001>
module attributes {stable_mosaic.version = 11 : i64} {
  func.func @actor_kernel(%arg0: i32, %arg1: memref<128x16xf32, #tpu.memory_space<vmem>>, %arg2: memref<16x128xf32, #tpu.memory_space<vmem>>, %arg3: memref<1x128xf32, #tpu.memory_space<vmem>>, %arg4: memref<3x128x128xf32, #tpu.memory_space<vmem>>, %arg5: memref<3x1x128xf32, #tpu.memory_space<vmem>>, %arg6: memref<3x128x128xf32, #tpu.memory_space<vmem>>, %arg7: memref<3x1x128xf32, #tpu.memory_space<vmem>>, %arg8: memref<1x128xf32, #tpu.memory_space<vmem>>, %arg9: memref<1x1xf32, #tpu.memory_space<vmem>>, %arg10: memref<1x1x128xf32, #tpu.memory_space<vmem>>) attributes {dimension_semantics = [#tpu.dimension_semantics<parallel>], iteration_bounds = array<i64: 2>, scalar_prefetch = 0 : i64, scratch_operands = 0 : i64, tpu.core_type = #tpu.core_type<tc>, window_params = [{transform_indices = @transform_0, window_bounds = array<i64: 128, 16>}, {pipeline_mode = #tpu.pipeline_mode<synchronous>, transform_indices = @transform_1, window_bounds = array<i64: 16, 128>}, {pipeline_mode = #tpu.pipeline_mode<synchronous>, transform_indices = @transform_2, window_bounds = array<i64: 1, 128>}, {pipeline_mode = #tpu.pipeline_mode<synchronous>, transform_indices = @transform_3, window_bounds = array<i64: 3, 128, 128>}, {pipeline_mode = #tpu.pipeline_mode<synchronous>, transform_indices = @transform_4, window_bounds = array<i64: 3, 1, 128>}, {pipeline_mode = #tpu.pipeline_mode<synchronous>, transform_indices = @transform_5, window_bounds = array<i64: 3, 128, 128>}, {pipeline_mode = #tpu.pipeline_mode<synchronous>, transform_indices = @transform_6, window_bounds = array<i64: 3, 1, 128>}, {pipeline_mode = #tpu.pipeline_mode<synchronous>, transform_indices = @transform_7, window_bounds = array<i64: 1, 128>}, {pipeline_mode = #tpu.pipeline_mode<synchronous>, transform_indices = @transform_8, window_bounds = array<i64: 1, 1>}, {transform_indices = @transform_9, window_bounds = array<i64: 1, 1, 128>}]} {
    %c0 = arith.constant 0 : index
    %c0_0 = arith.constant 0 : index
    %0 = vector.load %arg1[%c0, %c0_0] : memref<128x16xf32, #tpu.memory_space<vmem>>, vector<128x16xf32>
    %c0_1 = arith.constant 0 : index
    %c0_2 = arith.constant 0 : index
    %1 = vector.load %arg2[%c0_1, %c0_2] : memref<16x128xf32, #tpu.memory_space<vmem>>, vector<16x128xf32>
    %cst = arith.constant dense<0.000000e+00> : vector<128x128xf32>
    %2 = tpu.matmul %0, %1, %cst {dimension_numbers = #tpu.dot_dimension_numbers<[1], [0], [0], [1], [0, 0, 1, 1], [], []>} : vector<128x16xf32>, vector<16x128xf32>, vector<128x128xf32> -> vector<128x128xf32>
    %c0_3 = arith.constant 0 : index
    %c0_4 = arith.constant 0 : index
    %3 = vector.load %arg3[%c0_3, %c0_4] : memref<1x128xf32, #tpu.memory_space<vmem>>, vector<1x128xf32>
    %4 = vector.broadcast %3 : vector<1x128xf32> to vector<128x128xf32>
    %5 = arith.addf %2, %4 : vector<128x128xf32>
    %c0_5 = arith.constant 0 : index
    %c0_6 = arith.constant 0 : index
    %c0_7 = arith.constant 0 : index
    %6 = vector.load %arg4[%c0_5, %c0_6, %c0_7] : memref<3x128x128xf32, #tpu.memory_space<vmem>>, vector<1x128x128xf32>
    %7 = vector.shape_cast %6 : vector<1x128x128xf32> to vector<128x128xf32>
    %cst_8 = arith.constant dense<0.000000e+00> : vector<128x128xf32>
    %8 = tpu.matmul %5, %7, %cst_8 {dimension_numbers = #tpu.dot_dimension_numbers<[1], [0], [0], [1], [0, 0, 1, 1], [], []>} : vector<128x128xf32>, vector<128x128xf32>, vector<128x128xf32> -> vector<128x128xf32>
    %c0_9 = arith.constant 0 : index
    %c0_10 = arith.constant 0 : index
    %c0_11 = arith.constant 0 : index
    %9 = vector.load %arg5[%c0_9, %c0_10, %c0_11] : memref<3x1x128xf32, #tpu.memory_space<vmem>>, vector<1x1x128xf32>
    %10 = vector.shape_cast %9 : vector<1x1x128xf32> to vector<1x128xf32>
    %11 = vector.broadcast %10 : vector<1x128xf32> to vector<128x128xf32>
    %12 = arith.addf %8, %11 : vector<128x128xf32>
    %cst_12 = arith.constant -3.000000e+01 : f32
    %cst_13 = arith.constant 2.000000e+01 : f32
    %13 = vector.broadcast %cst_12 : f32 to vector<128x128xf32>
    %14 = arith.maximumf %13, %12 : vector<128x128xf32>
    %15 = vector.broadcast %cst_13 : f32 to vector<128x128xf32>
    %16 = arith.minimumf %15, %14 : vector<128x128xf32>
    %cst_14 = arith.constant 1.44269502 : f32
    %17 = vector.broadcast %cst_14 : f32 to vector<128x128xf32>
    %18 = arith.mulf %16, %17 : vector<128x128xf32>
    %cst_15 = arith.constant 5.000000e-01 : f32
    %19 = vector.broadcast %cst_15 : f32 to vector<128x128xf32>
    %20 = arith.addf %18, %19 : vector<128x128xf32>
    %21 = math.floor %20 : vector<128x128xf32>
    %22 = arith.subf %18, %21 : vector<128x128xf32>
    %cst_16 = arith.constant 0.00133335579 : f32
    %23 = vector.broadcast %cst_16 : f32 to vector<128x128xf32>
    %24 = arith.mulf %23, %22 : vector<128x128xf32>
    %cst_17 = arith.constant 0.00961812865 : f32
    %25 = vector.broadcast %cst_17 : f32 to vector<128x128xf32>
    %26 = arith.addf %24, %25 : vector<128x128xf32>
    %27 = arith.mulf %26, %22 : vector<128x128xf32>
    %cst_18 = arith.constant 0.0555041097 : f32
    %28 = vector.broadcast %cst_18 : f32 to vector<128x128xf32>
    %29 = arith.addf %27, %28 : vector<128x128xf32>
    %30 = arith.mulf %29, %22 : vector<128x128xf32>
    %cst_19 = arith.constant 0.240226507 : f32
    %31 = vector.broadcast %cst_19 : f32 to vector<128x128xf32>
    %32 = arith.addf %30, %31 : vector<128x128xf32>
    %33 = arith.mulf %32, %22 : vector<128x128xf32>
    %cst_20 = arith.constant 0.693147182 : f32
    %34 = vector.broadcast %cst_20 : f32 to vector<128x128xf32>
    %35 = arith.addf %33, %34 : vector<128x128xf32>
    %36 = arith.mulf %35, %22 : vector<128x128xf32>
    %cst_21 = arith.constant 1.000000e+00 : f32
    %37 = vector.broadcast %cst_21 : f32 to vector<128x128xf32>
    %38 = arith.addf %36, %37 : vector<128x128xf32>
    %39 = arith.fptosi %21 : vector<128x128xf32> to vector<128x128xi32>
    %c127_i32 = arith.constant 127 : i32
    %40 = vector.broadcast %c127_i32 : i32 to vector<128x128xi32>
    %41 = arith.addi %39, %40 : vector<128x128xi32>
    %c23_i32 = arith.constant 23 : i32
    %42 = vector.broadcast %c23_i32 : i32 to vector<128x128xi32>
    %43 = arith.shli %41, %42 : vector<128x128xi32>
    %44 = tpu.bitcast %43 : vector<128x128xi32> -> vector<128x128xf32>
    %45 = arith.mulf %38, %44 : vector<128x128xf32>
    %cst_22 = arith.constant 2.000000e+00 : f32
    %46 = vector.broadcast %cst_22 : f32 to vector<128x128xf32>
    %47 = arith.addf %45, %46 : vector<128x128xf32>
    %48 = arith.mulf %45, %47 : vector<128x128xf32>
    %cst_23 = arith.constant 2.000000e+00 : f32
    %49 = vector.broadcast %cst_23 : f32 to vector<128x128xf32>
    %50 = arith.addf %48, %49 : vector<128x128xf32>
    %51 = tpu.bitcast %50 : vector<128x128xf32> -> vector<128x128xi32>
    %c2130706432_i32 = arith.constant 2130706432 : i32
    %52 = vector.broadcast %c2130706432_i32 : i32 to vector<128x128xi32>
    %53 = arith.subi %52, %51 : vector<128x128xi32>
    %54 = tpu.bitcast %53 : vector<128x128xi32> -> vector<128x128xf32>
    %55 = arith.mulf %50, %54 : vector<128x128xf32>
    %cst_24 = arith.constant 2.000000e+00 : f32
    %56 = vector.broadcast %cst_24 : f32 to vector<128x128xf32>
    %57 = arith.subf %56, %55 : vector<128x128xf32>
    %58 = arith.mulf %54, %57 : vector<128x128xf32>
    %59 = arith.mulf %50, %58 : vector<128x128xf32>
    %cst_25 = arith.constant 2.000000e+00 : f32
    %60 = vector.broadcast %cst_25 : f32 to vector<128x128xf32>
    %61 = arith.subf %60, %59 : vector<128x128xf32>
    %62 = arith.mulf %58, %61 : vector<128x128xf32>
    %63 = arith.mulf %50, %62 : vector<128x128xf32>
    %cst_26 = arith.constant 2.000000e+00 : f32
    %64 = vector.broadcast %cst_26 : f32 to vector<128x128xf32>
    %65 = arith.subf %64, %63 : vector<128x128xf32>
    %66 = arith.mulf %62, %65 : vector<128x128xf32>
    %67 = arith.mulf %48, %66 : vector<128x128xf32>
    %c0_27 = arith.constant 0 : index
    %c0_28 = arith.constant 0 : index
    %c0_29 = arith.constant 0 : index
    %68 = vector.load %arg6[%c0_27, %c0_28, %c0_29] : memref<3x128x128xf32, #tpu.memory_space<vmem>>, vector<1x128x128xf32>
    %69 = vector.shape_cast %68 : vector<1x128x128xf32> to vector<128x128xf32>
    %cst_30 = arith.constant dense<0.000000e+00> : vector<128x128xf32>
    %70 = tpu.matmul %67, %69, %cst_30 {dimension_numbers = #tpu.dot_dimension_numbers<[1], [0], [0], [1], [0, 0, 1, 1], [], []>} : vector<128x128xf32>, vector<128x128xf32>, vector<128x128xf32> -> vector<128x128xf32>
    %c0_31 = arith.constant 0 : index
    %c0_32 = arith.constant 0 : index
    %c0_33 = arith.constant 0 : index
    %71 = vector.load %arg7[%c0_31, %c0_32, %c0_33] : memref<3x1x128xf32, #tpu.memory_space<vmem>>, vector<1x1x128xf32>
    %72 = vector.shape_cast %71 : vector<1x1x128xf32> to vector<1x128xf32>
    %73 = vector.broadcast %72 : vector<1x128xf32> to vector<128x128xf32>
    %74 = arith.addf %70, %73 : vector<128x128xf32>
    %75 = arith.addf %74, %5 : vector<128x128xf32>
    %cst_34 = arith.constant -3.000000e+01 : f32
    %cst_35 = arith.constant 2.000000e+01 : f32
    %76 = vector.broadcast %cst_34 : f32 to vector<128x128xf32>
    %77 = arith.maximumf %76, %75 : vector<128x128xf32>
    %78 = vector.broadcast %cst_35 : f32 to vector<128x128xf32>
    %79 = arith.minimumf %78, %77 : vector<128x128xf32>
    %cst_36 = arith.constant 1.44269502 : f32
    %80 = vector.broadcast %cst_36 : f32 to vector<128x128xf32>
    %81 = arith.mulf %79, %80 : vector<128x128xf32>
    %cst_37 = arith.constant 5.000000e-01 : f32
    %82 = vector.broadcast %cst_37 : f32 to vector<128x128xf32>
    %83 = arith.addf %81, %82 : vector<128x128xf32>
    %84 = math.floor %83 : vector<128x128xf32>
    %85 = arith.subf %81, %84 : vector<128x128xf32>
    %cst_38 = arith.constant 0.00133335579 : f32
    %86 = vector.broadcast %cst_38 : f32 to vector<128x128xf32>
    %87 = arith.mulf %86, %85 : vector<128x128xf32>
    %cst_39 = arith.constant 0.00961812865 : f32
    %88 = vector.broadcast %cst_39 : f32 to vector<128x128xf32>
    %89 = arith.addf %87, %88 : vector<128x128xf32>
    %90 = arith.mulf %89, %85 : vector<128x128xf32>
    %cst_40 = arith.constant 0.0555041097 : f32
    %91 = vector.broadcast %cst_40 : f32 to vector<128x128xf32>
    %92 = arith.addf %90, %91 : vector<128x128xf32>
    %93 = arith.mulf %92, %85 : vector<128x128xf32>
    %cst_41 = arith.constant 0.240226507 : f32
    %94 = vector.broadcast %cst_41 : f32 to vector<128x128xf32>
    %95 = arith.addf %93, %94 : vector<128x128xf32>
    %96 = arith.mulf %95, %85 : vector<128x128xf32>
    %cst_42 = arith.constant 0.693147182 : f32
    %97 = vector.broadcast %cst_42 : f32 to vector<128x128xf32>
    %98 = arith.addf %96, %97 : vector<128x128xf32>
    %99 = arith.mulf %98, %85 : vector<128x128xf32>
    %cst_43 = arith.constant 1.000000e+00 : f32
    %100 = vector.broadcast %cst_43 : f32 to vector<128x128xf32>
    %101 = arith.addf %99, %100 : vector<128x128xf32>
    %102 = arith.fptosi %84 : vector<128x128xf32> to vector<128x128xi32>
    %c127_i32_44 = arith.constant 127 : i32
    %103 = vector.broadcast %c127_i32_44 : i32 to vector<128x128xi32>
    %104 = arith.addi %102, %103 : vector<128x128xi32>
    %c23_i32_45 = arith.constant 23 : i32
    %105 = vector.broadcast %c23_i32_45 : i32 to vector<128x128xi32>
    %106 = arith.shli %104, %105 : vector<128x128xi32>
    %107 = tpu.bitcast %106 : vector<128x128xi32> -> vector<128x128xf32>
    %108 = arith.mulf %101, %107 : vector<128x128xf32>
    %cst_46 = arith.constant 2.000000e+00 : f32
    %109 = vector.broadcast %cst_46 : f32 to vector<128x128xf32>
    %110 = arith.addf %108, %109 : vector<128x128xf32>
    %111 = arith.mulf %108, %110 : vector<128x128xf32>
    %cst_47 = arith.constant 2.000000e+00 : f32
    %112 = vector.broadcast %cst_47 : f32 to vector<128x128xf32>
    %113 = arith.addf %111, %112 : vector<128x128xf32>
    %114 = tpu.bitcast %113 : vector<128x128xf32> -> vector<128x128xi32>
    %c2130706432_i32_48 = arith.constant 2130706432 : i32
    %115 = vector.broadcast %c2130706432_i32_48 : i32 to vector<128x128xi32>
    %116 = arith.subi %115, %114 : vector<128x128xi32>
    %117 = tpu.bitcast %116 : vector<128x128xi32> -> vector<128x128xf32>
    %118 = arith.mulf %113, %117 : vector<128x128xf32>
    %cst_49 = arith.constant 2.000000e+00 : f32
    %119 = vector.broadcast %cst_49 : f32 to vector<128x128xf32>
    %120 = arith.subf %119, %118 : vector<128x128xf32>
    %121 = arith.mulf %117, %120 : vector<128x128xf32>
    %122 = arith.mulf %113, %121 : vector<128x128xf32>
    %cst_50 = arith.constant 2.000000e+00 : f32
    %123 = vector.broadcast %cst_50 : f32 to vector<128x128xf32>
    %124 = arith.subf %123, %122 : vector<128x128xf32>
    %125 = arith.mulf %121, %124 : vector<128x128xf32>
    %126 = arith.mulf %113, %125 : vector<128x128xf32>
    %cst_51 = arith.constant 2.000000e+00 : f32
    %127 = vector.broadcast %cst_51 : f32 to vector<128x128xf32>
    %128 = arith.subf %127, %126 : vector<128x128xf32>
    %129 = arith.mulf %125, %128 : vector<128x128xf32>
    %130 = arith.mulf %111, %129 : vector<128x128xf32>
    %c1 = arith.constant 1 : index
    %c0_52 = arith.constant 0 : index
    %c0_53 = arith.constant 0 : index
    %131 = vector.load %arg4[%c1, %c0_52, %c0_53] : memref<3x128x128xf32, #tpu.memory_space<vmem>>, vector<1x128x128xf32>
    %132 = vector.shape_cast %131 : vector<1x128x128xf32> to vector<128x128xf32>
    %cst_54 = arith.constant dense<0.000000e+00> : vector<128x128xf32>
    %133 = tpu.matmul %130, %132, %cst_54 {dimension_numbers = #tpu.dot_dimension_numbers<[1], [0], [0], [1], [0, 0, 1, 1], [], []>} : vector<128x128xf32>, vector<128x128xf32>, vector<128x128xf32> -> vector<128x128xf32>
    %c1_55 = arith.constant 1 : index
    %c0_56 = arith.constant 0 : index
    %c0_57 = arith.constant 0 : index
    %134 = vector.load %arg5[%c1_55, %c0_56, %c0_57] : memref<3x1x128xf32, #tpu.memory_space<vmem>>, vector<1x1x128xf32>
    %135 = vector.shape_cast %134 : vector<1x1x128xf32> to vector<1x128xf32>
    %136 = vector.broadcast %135 : vector<1x128xf32> to vector<128x128xf32>
    %137 = arith.addf %133, %136 : vector<128x128xf32>
    %cst_58 = arith.constant -3.000000e+01 : f32
    %cst_59 = arith.constant 2.000000e+01 : f32
    %138 = vector.broadcast %cst_58 : f32 to vector<128x128xf32>
    %139 = arith.maximumf %138, %137 : vector<128x128xf32>
    %140 = vector.broadcast %cst_59 : f32 to vector<128x128xf32>
    %141 = arith.minimumf %140, %139 : vector<128x128xf32>
    %cst_60 = arith.constant 1.44269502 : f32
    %142 = vector.broadcast %cst_60 : f32 to vector<128x128xf32>
    %143 = arith.mulf %141, %142 : vector<128x128xf32>
    %cst_61 = arith.constant 5.000000e-01 : f32
    %144 = vector.broadcast %cst_61 : f32 to vector<128x128xf32>
    %145 = arith.addf %143, %144 : vector<128x128xf32>
    %146 = math.floor %145 : vector<128x128xf32>
    %147 = arith.subf %143, %146 : vector<128x128xf32>
    %cst_62 = arith.constant 0.00133335579 : f32
    %148 = vector.broadcast %cst_62 : f32 to vector<128x128xf32>
    %149 = arith.mulf %148, %147 : vector<128x128xf32>
    %cst_63 = arith.constant 0.00961812865 : f32
    %150 = vector.broadcast %cst_63 : f32 to vector<128x128xf32>
    %151 = arith.addf %149, %150 : vector<128x128xf32>
    %152 = arith.mulf %151, %147 : vector<128x128xf32>
    %cst_64 = arith.constant 0.0555041097 : f32
    %153 = vector.broadcast %cst_64 : f32 to vector<128x128xf32>
    %154 = arith.addf %152, %153 : vector<128x128xf32>
    %155 = arith.mulf %154, %147 : vector<128x128xf32>
    %cst_65 = arith.constant 0.240226507 : f32
    %156 = vector.broadcast %cst_65 : f32 to vector<128x128xf32>
    %157 = arith.addf %155, %156 : vector<128x128xf32>
    %158 = arith.mulf %157, %147 : vector<128x128xf32>
    %cst_66 = arith.constant 0.693147182 : f32
    %159 = vector.broadcast %cst_66 : f32 to vector<128x128xf32>
    %160 = arith.addf %158, %159 : vector<128x128xf32>
    %161 = arith.mulf %160, %147 : vector<128x128xf32>
    %cst_67 = arith.constant 1.000000e+00 : f32
    %162 = vector.broadcast %cst_67 : f32 to vector<128x128xf32>
    %163 = arith.addf %161, %162 : vector<128x128xf32>
    %164 = arith.fptosi %146 : vector<128x128xf32> to vector<128x128xi32>
    %c127_i32_68 = arith.constant 127 : i32
    %165 = vector.broadcast %c127_i32_68 : i32 to vector<128x128xi32>
    %166 = arith.addi %164, %165 : vector<128x128xi32>
    %c23_i32_69 = arith.constant 23 : i32
    %167 = vector.broadcast %c23_i32_69 : i32 to vector<128x128xi32>
    %168 = arith.shli %166, %167 : vector<128x128xi32>
    %169 = tpu.bitcast %168 : vector<128x128xi32> -> vector<128x128xf32>
    %170 = arith.mulf %163, %169 : vector<128x128xf32>
    %cst_70 = arith.constant 2.000000e+00 : f32
    %171 = vector.broadcast %cst_70 : f32 to vector<128x128xf32>
    %172 = arith.addf %170, %171 : vector<128x128xf32>
    %173 = arith.mulf %170, %172 : vector<128x128xf32>
    %cst_71 = arith.constant 2.000000e+00 : f32
    %174 = vector.broadcast %cst_71 : f32 to vector<128x128xf32>
    %175 = arith.addf %173, %174 : vector<128x128xf32>
    %176 = tpu.bitcast %175 : vector<128x128xf32> -> vector<128x128xi32>
    %c2130706432_i32_72 = arith.constant 2130706432 : i32
    %177 = vector.broadcast %c2130706432_i32_72 : i32 to vector<128x128xi32>
    %178 = arith.subi %177, %176 : vector<128x128xi32>
    %179 = tpu.bitcast %178 : vector<128x128xi32> -> vector<128x128xf32>
    %180 = arith.mulf %175, %179 : vector<128x128xf32>
    %cst_73 = arith.constant 2.000000e+00 : f32
    %181 = vector.broadcast %cst_73 : f32 to vector<128x128xf32>
    %182 = arith.subf %181, %180 : vector<128x128xf32>
    %183 = arith.mulf %179, %182 : vector<128x128xf32>
    %184 = arith.mulf %175, %183 : vector<128x128xf32>
    %cst_74 = arith.constant 2.000000e+00 : f32
    %185 = vector.broadcast %cst_74 : f32 to vector<128x128xf32>
    %186 = arith.subf %185, %184 : vector<128x128xf32>
    %187 = arith.mulf %183, %186 : vector<128x128xf32>
    %188 = arith.mulf %175, %187 : vector<128x128xf32>
    %cst_75 = arith.constant 2.000000e+00 : f32
    %189 = vector.broadcast %cst_75 : f32 to vector<128x128xf32>
    %190 = arith.subf %189, %188 : vector<128x128xf32>
    %191 = arith.mulf %187, %190 : vector<128x128xf32>
    %192 = arith.mulf %173, %191 : vector<128x128xf32>
    %c1_76 = arith.constant 1 : index
    %c0_77 = arith.constant 0 : index
    %c0_78 = arith.constant 0 : index
    %193 = vector.load %arg6[%c1_76, %c0_77, %c0_78] : memref<3x128x128xf32, #tpu.memory_space<vmem>>, vector<1x128x128xf32>
    %194 = vector.shape_cast %193 : vector<1x128x128xf32> to vector<128x128xf32>
    %cst_79 = arith.constant dense<0.000000e+00> : vector<128x128xf32>
    %195 = tpu.matmul %192, %194, %cst_79 {dimension_numbers = #tpu.dot_dimension_numbers<[1], [0], [0], [1], [0, 0, 1, 1], [], []>} : vector<128x128xf32>, vector<128x128xf32>, vector<128x128xf32> -> vector<128x128xf32>
    %c1_80 = arith.constant 1 : index
    %c0_81 = arith.constant 0 : index
    %c0_82 = arith.constant 0 : index
    %196 = vector.load %arg7[%c1_80, %c0_81, %c0_82] : memref<3x1x128xf32, #tpu.memory_space<vmem>>, vector<1x1x128xf32>
    %197 = vector.shape_cast %196 : vector<1x1x128xf32> to vector<1x128xf32>
    %198 = vector.broadcast %197 : vector<1x128xf32> to vector<128x128xf32>
    %199 = arith.addf %195, %198 : vector<128x128xf32>
    %200 = arith.addf %199, %130 : vector<128x128xf32>
    %cst_83 = arith.constant -3.000000e+01 : f32
    %cst_84 = arith.constant 2.000000e+01 : f32
    %201 = vector.broadcast %cst_83 : f32 to vector<128x128xf32>
    %202 = arith.maximumf %201, %200 : vector<128x128xf32>
    %203 = vector.broadcast %cst_84 : f32 to vector<128x128xf32>
    %204 = arith.minimumf %203, %202 : vector<128x128xf32>
    %cst_85 = arith.constant 1.44269502 : f32
    %205 = vector.broadcast %cst_85 : f32 to vector<128x128xf32>
    %206 = arith.mulf %204, %205 : vector<128x128xf32>
    %cst_86 = arith.constant 5.000000e-01 : f32
    %207 = vector.broadcast %cst_86 : f32 to vector<128x128xf32>
    %208 = arith.addf %206, %207 : vector<128x128xf32>
    %209 = math.floor %208 : vector<128x128xf32>
    %210 = arith.subf %206, %209 : vector<128x128xf32>
    %cst_87 = arith.constant 0.00133335579 : f32
    %211 = vector.broadcast %cst_87 : f32 to vector<128x128xf32>
    %212 = arith.mulf %211, %210 : vector<128x128xf32>
    %cst_88 = arith.constant 0.00961812865 : f32
    %213 = vector.broadcast %cst_88 : f32 to vector<128x128xf32>
    %214 = arith.addf %212, %213 : vector<128x128xf32>
    %215 = arith.mulf %214, %210 : vector<128x128xf32>
    %cst_89 = arith.constant 0.0555041097 : f32
    %216 = vector.broadcast %cst_89 : f32 to vector<128x128xf32>
    %217 = arith.addf %215, %216 : vector<128x128xf32>
    %218 = arith.mulf %217, %210 : vector<128x128xf32>
    %cst_90 = arith.constant 0.240226507 : f32
    %219 = vector.broadcast %cst_90 : f32 to vector<128x128xf32>
    %220 = arith.addf %218, %219 : vector<128x128xf32>
    %221 = arith.mulf %220, %210 : vector<128x128xf32>
    %cst_91 = arith.constant 0.693147182 : f32
    %222 = vector.broadcast %cst_91 : f32 to vector<128x128xf32>
    %223 = arith.addf %221, %222 : vector<128x128xf32>
    %224 = arith.mulf %223, %210 : vector<128x128xf32>
    %cst_92 = arith.constant 1.000000e+00 : f32
    %225 = vector.broadcast %cst_92 : f32 to vector<128x128xf32>
    %226 = arith.addf %224, %225 : vector<128x128xf32>
    %227 = arith.fptosi %209 : vector<128x128xf32> to vector<128x128xi32>
    %c127_i32_93 = arith.constant 127 : i32
    %228 = vector.broadcast %c127_i32_93 : i32 to vector<128x128xi32>
    %229 = arith.addi %227, %228 : vector<128x128xi32>
    %c23_i32_94 = arith.constant 23 : i32
    %230 = vector.broadcast %c23_i32_94 : i32 to vector<128x128xi32>
    %231 = arith.shli %229, %230 : vector<128x128xi32>
    %232 = tpu.bitcast %231 : vector<128x128xi32> -> vector<128x128xf32>
    %233 = arith.mulf %226, %232 : vector<128x128xf32>
    %cst_95 = arith.constant 2.000000e+00 : f32
    %234 = vector.broadcast %cst_95 : f32 to vector<128x128xf32>
    %235 = arith.addf %233, %234 : vector<128x128xf32>
    %236 = arith.mulf %233, %235 : vector<128x128xf32>
    %cst_96 = arith.constant 2.000000e+00 : f32
    %237 = vector.broadcast %cst_96 : f32 to vector<128x128xf32>
    %238 = arith.addf %236, %237 : vector<128x128xf32>
    %239 = tpu.bitcast %238 : vector<128x128xf32> -> vector<128x128xi32>
    %c2130706432_i32_97 = arith.constant 2130706432 : i32
    %240 = vector.broadcast %c2130706432_i32_97 : i32 to vector<128x128xi32>
    %241 = arith.subi %240, %239 : vector<128x128xi32>
    %242 = tpu.bitcast %241 : vector<128x128xi32> -> vector<128x128xf32>
    %243 = arith.mulf %238, %242 : vector<128x128xf32>
    %cst_98 = arith.constant 2.000000e+00 : f32
    %244 = vector.broadcast %cst_98 : f32 to vector<128x128xf32>
    %245 = arith.subf %244, %243 : vector<128x128xf32>
    %246 = arith.mulf %242, %245 : vector<128x128xf32>
    %247 = arith.mulf %238, %246 : vector<128x128xf32>
    %cst_99 = arith.constant 2.000000e+00 : f32
    %248 = vector.broadcast %cst_99 : f32 to vector<128x128xf32>
    %249 = arith.subf %248, %247 : vector<128x128xf32>
    %250 = arith.mulf %246, %249 : vector<128x128xf32>
    %251 = arith.mulf %238, %250 : vector<128x128xf32>
    %cst_100 = arith.constant 2.000000e+00 : f32
    %252 = vector.broadcast %cst_100 : f32 to vector<128x128xf32>
    %253 = arith.subf %252, %251 : vector<128x128xf32>
    %254 = arith.mulf %250, %253 : vector<128x128xf32>
    %255 = arith.mulf %236, %254 : vector<128x128xf32>
    %c2 = arith.constant 2 : index
    %c0_101 = arith.constant 0 : index
    %c0_102 = arith.constant 0 : index
    %256 = vector.load %arg4[%c2, %c0_101, %c0_102] : memref<3x128x128xf32, #tpu.memory_space<vmem>>, vector<1x128x128xf32>
    %257 = vector.shape_cast %256 : vector<1x128x128xf32> to vector<128x128xf32>
    %cst_103 = arith.constant dense<0.000000e+00> : vector<128x128xf32>
    %258 = tpu.matmul %255, %257, %cst_103 {dimension_numbers = #tpu.dot_dimension_numbers<[1], [0], [0], [1], [0, 0, 1, 1], [], []>} : vector<128x128xf32>, vector<128x128xf32>, vector<128x128xf32> -> vector<128x128xf32>
    %c2_104 = arith.constant 2 : index
    %c0_105 = arith.constant 0 : index
    %c0_106 = arith.constant 0 : index
    %259 = vector.load %arg5[%c2_104, %c0_105, %c0_106] : memref<3x1x128xf32, #tpu.memory_space<vmem>>, vector<1x1x128xf32>
    %260 = vector.shape_cast %259 : vector<1x1x128xf32> to vector<1x128xf32>
    %261 = vector.broadcast %260 : vector<1x128xf32> to vector<128x128xf32>
    %262 = arith.addf %258, %261 : vector<128x128xf32>
    %cst_107 = arith.constant -3.000000e+01 : f32
    %cst_108 = arith.constant 2.000000e+01 : f32
    %263 = vector.broadcast %cst_107 : f32 to vector<128x128xf32>
    %264 = arith.maximumf %263, %262 : vector<128x128xf32>
    %265 = vector.broadcast %cst_108 : f32 to vector<128x128xf32>
    %266 = arith.minimumf %265, %264 : vector<128x128xf32>
    %cst_109 = arith.constant 1.44269502 : f32
    %267 = vector.broadcast %cst_109 : f32 to vector<128x128xf32>
    %268 = arith.mulf %266, %267 : vector<128x128xf32>
    %cst_110 = arith.constant 5.000000e-01 : f32
    %269 = vector.broadcast %cst_110 : f32 to vector<128x128xf32>
    %270 = arith.addf %268, %269 : vector<128x128xf32>
    %271 = math.floor %270 : vector<128x128xf32>
    %272 = arith.subf %268, %271 : vector<128x128xf32>
    %cst_111 = arith.constant 0.00133335579 : f32
    %273 = vector.broadcast %cst_111 : f32 to vector<128x128xf32>
    %274 = arith.mulf %273, %272 : vector<128x128xf32>
    %cst_112 = arith.constant 0.00961812865 : f32
    %275 = vector.broadcast %cst_112 : f32 to vector<128x128xf32>
    %276 = arith.addf %274, %275 : vector<128x128xf32>
    %277 = arith.mulf %276, %272 : vector<128x128xf32>
    %cst_113 = arith.constant 0.0555041097 : f32
    %278 = vector.broadcast %cst_113 : f32 to vector<128x128xf32>
    %279 = arith.addf %277, %278 : vector<128x128xf32>
    %280 = arith.mulf %279, %272 : vector<128x128xf32>
    %cst_114 = arith.constant 0.240226507 : f32
    %281 = vector.broadcast %cst_114 : f32 to vector<128x128xf32>
    %282 = arith.addf %280, %281 : vector<128x128xf32>
    %283 = arith.mulf %282, %272 : vector<128x128xf32>
    %cst_115 = arith.constant 0.693147182 : f32
    %284 = vector.broadcast %cst_115 : f32 to vector<128x128xf32>
    %285 = arith.addf %283, %284 : vector<128x128xf32>
    %286 = arith.mulf %285, %272 : vector<128x128xf32>
    %cst_116 = arith.constant 1.000000e+00 : f32
    %287 = vector.broadcast %cst_116 : f32 to vector<128x128xf32>
    %288 = arith.addf %286, %287 : vector<128x128xf32>
    %289 = arith.fptosi %271 : vector<128x128xf32> to vector<128x128xi32>
    %c127_i32_117 = arith.constant 127 : i32
    %290 = vector.broadcast %c127_i32_117 : i32 to vector<128x128xi32>
    %291 = arith.addi %289, %290 : vector<128x128xi32>
    %c23_i32_118 = arith.constant 23 : i32
    %292 = vector.broadcast %c23_i32_118 : i32 to vector<128x128xi32>
    %293 = arith.shli %291, %292 : vector<128x128xi32>
    %294 = tpu.bitcast %293 : vector<128x128xi32> -> vector<128x128xf32>
    %295 = arith.mulf %288, %294 : vector<128x128xf32>
    %cst_119 = arith.constant 2.000000e+00 : f32
    %296 = vector.broadcast %cst_119 : f32 to vector<128x128xf32>
    %297 = arith.addf %295, %296 : vector<128x128xf32>
    %298 = arith.mulf %295, %297 : vector<128x128xf32>
    %cst_120 = arith.constant 2.000000e+00 : f32
    %299 = vector.broadcast %cst_120 : f32 to vector<128x128xf32>
    %300 = arith.addf %298, %299 : vector<128x128xf32>
    %301 = tpu.bitcast %300 : vector<128x128xf32> -> vector<128x128xi32>
    %c2130706432_i32_121 = arith.constant 2130706432 : i32
    %302 = vector.broadcast %c2130706432_i32_121 : i32 to vector<128x128xi32>
    %303 = arith.subi %302, %301 : vector<128x128xi32>
    %304 = tpu.bitcast %303 : vector<128x128xi32> -> vector<128x128xf32>
    %305 = arith.mulf %300, %304 : vector<128x128xf32>
    %cst_122 = arith.constant 2.000000e+00 : f32
    %306 = vector.broadcast %cst_122 : f32 to vector<128x128xf32>
    %307 = arith.subf %306, %305 : vector<128x128xf32>
    %308 = arith.mulf %304, %307 : vector<128x128xf32>
    %309 = arith.mulf %300, %308 : vector<128x128xf32>
    %cst_123 = arith.constant 2.000000e+00 : f32
    %310 = vector.broadcast %cst_123 : f32 to vector<128x128xf32>
    %311 = arith.subf %310, %309 : vector<128x128xf32>
    %312 = arith.mulf %308, %311 : vector<128x128xf32>
    %313 = arith.mulf %300, %312 : vector<128x128xf32>
    %cst_124 = arith.constant 2.000000e+00 : f32
    %314 = vector.broadcast %cst_124 : f32 to vector<128x128xf32>
    %315 = arith.subf %314, %313 : vector<128x128xf32>
    %316 = arith.mulf %312, %315 : vector<128x128xf32>
    %317 = arith.mulf %298, %316 : vector<128x128xf32>
    %c2_125 = arith.constant 2 : index
    %c0_126 = arith.constant 0 : index
    %c0_127 = arith.constant 0 : index
    %318 = vector.load %arg6[%c2_125, %c0_126, %c0_127] : memref<3x128x128xf32, #tpu.memory_space<vmem>>, vector<1x128x128xf32>
    %319 = vector.shape_cast %318 : vector<1x128x128xf32> to vector<128x128xf32>
    %cst_128 = arith.constant dense<0.000000e+00> : vector<128x128xf32>
    %320 = tpu.matmul %317, %319, %cst_128 {dimension_numbers = #tpu.dot_dimension_numbers<[1], [0], [0], [1], [0, 0, 1, 1], [], []>} : vector<128x128xf32>, vector<128x128xf32>, vector<128x128xf32> -> vector<128x128xf32>
    %c2_129 = arith.constant 2 : index
    %c0_130 = arith.constant 0 : index
    %c0_131 = arith.constant 0 : index
    %321 = vector.load %arg7[%c2_129, %c0_130, %c0_131] : memref<3x1x128xf32, #tpu.memory_space<vmem>>, vector<1x1x128xf32>
    %322 = vector.shape_cast %321 : vector<1x1x128xf32> to vector<1x128xf32>
    %323 = vector.broadcast %322 : vector<1x128xf32> to vector<128x128xf32>
    %324 = arith.addf %320, %323 : vector<128x128xf32>
    %325 = arith.addf %324, %255 : vector<128x128xf32>
    %cst_132 = arith.constant -3.000000e+01 : f32
    %cst_133 = arith.constant 2.000000e+01 : f32
    %326 = vector.broadcast %cst_132 : f32 to vector<128x128xf32>
    %327 = arith.maximumf %326, %325 : vector<128x128xf32>
    %328 = vector.broadcast %cst_133 : f32 to vector<128x128xf32>
    %329 = arith.minimumf %328, %327 : vector<128x128xf32>
    %cst_134 = arith.constant 1.44269502 : f32
    %330 = vector.broadcast %cst_134 : f32 to vector<128x128xf32>
    %331 = arith.mulf %329, %330 : vector<128x128xf32>
    %cst_135 = arith.constant 5.000000e-01 : f32
    %332 = vector.broadcast %cst_135 : f32 to vector<128x128xf32>
    %333 = arith.addf %331, %332 : vector<128x128xf32>
    %334 = math.floor %333 : vector<128x128xf32>
    %335 = arith.subf %331, %334 : vector<128x128xf32>
    %cst_136 = arith.constant 0.00133335579 : f32
    %336 = vector.broadcast %cst_136 : f32 to vector<128x128xf32>
    %337 = arith.mulf %336, %335 : vector<128x128xf32>
    %cst_137 = arith.constant 0.00961812865 : f32
    %338 = vector.broadcast %cst_137 : f32 to vector<128x128xf32>
    %339 = arith.addf %337, %338 : vector<128x128xf32>
    %340 = arith.mulf %339, %335 : vector<128x128xf32>
    %cst_138 = arith.constant 0.0555041097 : f32
    %341 = vector.broadcast %cst_138 : f32 to vector<128x128xf32>
    %342 = arith.addf %340, %341 : vector<128x128xf32>
    %343 = arith.mulf %342, %335 : vector<128x128xf32>
    %cst_139 = arith.constant 0.240226507 : f32
    %344 = vector.broadcast %cst_139 : f32 to vector<128x128xf32>
    %345 = arith.addf %343, %344 : vector<128x128xf32>
    %346 = arith.mulf %345, %335 : vector<128x128xf32>
    %cst_140 = arith.constant 0.693147182 : f32
    %347 = vector.broadcast %cst_140 : f32 to vector<128x128xf32>
    %348 = arith.addf %346, %347 : vector<128x128xf32>
    %349 = arith.mulf %348, %335 : vector<128x128xf32>
    %cst_141 = arith.constant 1.000000e+00 : f32
    %350 = vector.broadcast %cst_141 : f32 to vector<128x128xf32>
    %351 = arith.addf %349, %350 : vector<128x128xf32>
    %352 = arith.fptosi %334 : vector<128x128xf32> to vector<128x128xi32>
    %c127_i32_142 = arith.constant 127 : i32
    %353 = vector.broadcast %c127_i32_142 : i32 to vector<128x128xi32>
    %354 = arith.addi %352, %353 : vector<128x128xi32>
    %c23_i32_143 = arith.constant 23 : i32
    %355 = vector.broadcast %c23_i32_143 : i32 to vector<128x128xi32>
    %356 = arith.shli %354, %355 : vector<128x128xi32>
    %357 = tpu.bitcast %356 : vector<128x128xi32> -> vector<128x128xf32>
    %358 = arith.mulf %351, %357 : vector<128x128xf32>
    %cst_144 = arith.constant 2.000000e+00 : f32
    %359 = vector.broadcast %cst_144 : f32 to vector<128x128xf32>
    %360 = arith.addf %358, %359 : vector<128x128xf32>
    %361 = arith.mulf %358, %360 : vector<128x128xf32>
    %cst_145 = arith.constant 2.000000e+00 : f32
    %362 = vector.broadcast %cst_145 : f32 to vector<128x128xf32>
    %363 = arith.addf %361, %362 : vector<128x128xf32>
    %364 = tpu.bitcast %363 : vector<128x128xf32> -> vector<128x128xi32>
    %c2130706432_i32_146 = arith.constant 2130706432 : i32
    %365 = vector.broadcast %c2130706432_i32_146 : i32 to vector<128x128xi32>
    %366 = arith.subi %365, %364 : vector<128x128xi32>
    %367 = tpu.bitcast %366 : vector<128x128xi32> -> vector<128x128xf32>
    %368 = arith.mulf %363, %367 : vector<128x128xf32>
    %cst_147 = arith.constant 2.000000e+00 : f32
    %369 = vector.broadcast %cst_147 : f32 to vector<128x128xf32>
    %370 = arith.subf %369, %368 : vector<128x128xf32>
    %371 = arith.mulf %367, %370 : vector<128x128xf32>
    %372 = arith.mulf %363, %371 : vector<128x128xf32>
    %cst_148 = arith.constant 2.000000e+00 : f32
    %373 = vector.broadcast %cst_148 : f32 to vector<128x128xf32>
    %374 = arith.subf %373, %372 : vector<128x128xf32>
    %375 = arith.mulf %371, %374 : vector<128x128xf32>
    %376 = arith.mulf %363, %375 : vector<128x128xf32>
    %cst_149 = arith.constant 2.000000e+00 : f32
    %377 = vector.broadcast %cst_149 : f32 to vector<128x128xf32>
    %378 = arith.subf %377, %376 : vector<128x128xf32>
    %379 = arith.mulf %375, %378 : vector<128x128xf32>
    %380 = arith.mulf %361, %379 : vector<128x128xf32>
    %c0_150 = arith.constant 0 : index
    %c0_151 = arith.constant 0 : index
    %381 = vector.load %arg8[%c0_150, %c0_151] : memref<1x128xf32, #tpu.memory_space<vmem>>, vector<1x128xf32>
    %382 = vector.broadcast %381 : vector<1x128xf32> to vector<128x128xf32>
    %383 = arith.mulf %380, %382 : vector<128x128xf32>
    %384 = tpu.transpose %383, [1, 0] : vector<128x128xf32> -> vector<128x128xf32>
    %cst_152 = arith.constant dense<0.000000e+00> : vector<128xf32>
    %385 = vector.multi_reduction <add>, %384, %cst_152 [0] : vector<128x128xf32> to vector<128xf32>
    %386 = vector.shape_cast %385 : vector<128xf32> to vector<1x128xf32>
    %c0_153 = arith.constant 0 : index
    %c0_154 = arith.constant 0 : index
    %387 = vector.load %arg9[%c0_153, %c0_154] : memref<1x1xf32, #tpu.memory_space<vmem>>, vector<1x1xf32>
    %388 = vector.broadcast %387 : vector<1x1xf32> to vector<1x128xf32>
    %389 = arith.addf %386, %388 : vector<1x128xf32>
    %390 = math.tanh %389 : vector<1x128xf32>
    %391 = vector.shape_cast %390 : vector<1x128xf32> to vector<1x1x128xf32>
    %c0_155 = arith.constant 0 : index
    %c0_156 = arith.constant 0 : index
    %c0_157 = arith.constant 0 : index
    %392 = vector.load %arg10[%c0_155, %c0_156, %c0_157] : memref<1x1x128xf32, #tpu.memory_space<vmem>>, vector<1x1x128xf32>
    tpu.vector_store %arg10[%c0_155, %c0_156, %c0_157], %391 {strides = array<i32>} : memref<1x1x128xf32, #tpu.memory_space<vmem>>, vector<1x1x128xf32>,
    return
  }
  func.func @transform_0(%arg0: i32) -> (i32, i32) {
    %c0_i32 = arith.constant 0 : i32
    %c0_i32_0 = arith.constant 0 : i32
    return %arg0, %c0_i32 : i32, i32
  }
  func.func @transform_1(%arg0: i32) -> (i32, i32) {
    %c0_i32 = arith.constant 0 : i32
    %c0_i32_0 = arith.constant 0 : i32
    %c0_i32_1 = arith.constant 0 : i32
    return %c0_i32, %c0_i32_0 : i32, i32
  }
  func.func @transform_2(%arg0: i32) -> (i32, i32) {
    %c0_i32 = arith.constant 0 : i32
    %c0_i32_0 = arith.constant 0 : i32
    %c0_i32_1 = arith.constant 0 : i32
    return %c0_i32, %c0_i32_0 : i32, i32
  }
  func.func @transform_3(%arg0: i32) -> (i32, i32, i32) {
    %c0_i32 = arith.constant 0 : i32
    %c0_i32_0 = arith.constant 0 : i32
    %c0_i32_1 = arith.constant 0 : i32
    %c0_i32_2 = arith.constant 0 : i32
    return %c0_i32, %c0_i32_0, %c0_i32_1 : i32, i32, i32
  }
  func.func @transform_4(%arg0: i32) -> (i32, i32, i32) {
    %c0_i32 = arith.constant 0 : i32
    %c0_i32_0 = arith.constant 0 : i32
    %c0_i32_1 = arith.constant 0 : i32
    %c0_i32_2 = arith.constant 0 : i32
    return %c0_i32, %c0_i32_0, %c0_i32_1 : i32, i32, i32
  }
  func.func @transform_5(%arg0: i32) -> (i32, i32, i32) {
    %c0_i32 = arith.constant 0 : i32
    %c0_i32_0 = arith.constant 0 : i32
    %c0_i32_1 = arith.constant 0 : i32
    %c0_i32_2 = arith.constant 0 : i32
    return %c0_i32, %c0_i32_0, %c0_i32_1 : i32, i32, i32
  }
  func.func @transform_6(%arg0: i32) -> (i32, i32, i32) {
    %c0_i32 = arith.constant 0 : i32
    %c0_i32_0 = arith.constant 0 : i32
    %c0_i32_1 = arith.constant 0 : i32
    %c0_i32_2 = arith.constant 0 : i32
    return %c0_i32, %c0_i32_0, %c0_i32_1 : i32, i32, i32
  }
  func.func @transform_7(%arg0: i32) -> (i32, i32) {
    %c0_i32 = arith.constant 0 : i32
    %c0_i32_0 = arith.constant 0 : i32
    %c0_i32_1 = arith.constant 0 : i32
    return %c0_i32, %c0_i32_0 : i32, i32
  }
  func.func @transform_8(%arg0: i32) -> (i32, i32) {
    %c0_i32 = arith.constant 0 : i32
    %c0_i32_0 = arith.constant 0 : i32
    %c0_i32_1 = arith.constant 0 : i32
    return %c0_i32, %c0_i32_0 : i32, i32
  }
  func.func @transform_9(%arg0: i32) -> (i32, i32, i32) {
    %c0_i32 = arith.constant 0 : i32
    %c0_i32_0 = arith.constant 0 : i32
    %c0_i32_1 = arith.constant 0 : i32
    return %arg0, %c0_i32, %c0_i32_0 : i32, i32, i32
  }
}

</mosaic_0001>

<bundles_post_ra>
// kernel: tpu_custom_call.1
= control target key start
LH: loop header
LB: loop body
LE: loop exit
PB: predicated region body
PF: predicated region fallthrough
CT: control target
= control target key end

     0   :  { %s8974_s0 = inlined_call_operand.vmem [shape: f32[200,16], index: 0, kind: input, shape index: {}]   ;;  %s8975_s1 = inlined_call_operand.vmem [shape: f32[16,128], index: 1, kind: input, shape index: {}]   ;;  %s8976_s2 = inlined_call_operand.vmem [shape: f32[1,128], index: 2, kind: input, shape index: {}]   ;;  %s8977_s3 = inlined_call_operand.hbm [shape: f32[3,128,128], index: 3, kind: input, shape index: {}]   ;;  %s8978_s4 = inlined_call_operand.vmem [shape: f32[3,1,128], index: 4, kind: input, shape index: {}]   ;;  %s8979_s5 = inlined_call_operand.hbm [shape: f32[3,128,128], index: 5, kind: input, shape index: {}]   ;;  %s8980_s6 = inlined_call_operand.vmem [shape: f32[3,1,128], index: 6, kind: input, shape index: {}]   ;;  %s8981_s7 = inlined_call_operand.vmem [shape: f32[1,128], index: 7, kind: input, shape index: {}]   ;;  %s8982_s8 = inlined_call_operand.<no memory space> [shape: f32[1,1], index: 8, kind: input, shape index: {}]   ;;  %s8983_s9 = inlined_call_operand.hbm [shape: f32[2,1,128], index: 9, kind: output, shape index: {}]  }
   0x1   :  { %v14_v0 = vstv %s8982_s8 }
   0x2   :  { %15 = vst [vmem:[#allocation2] sm:$0x1] %v14_v0 }
   0x3   :  { %16 = vsyncpa [#allocation4], 0 }
   0x4   :  { %17 = vsyncpa [#allocation7], 0 }
   0x5   :  { %18 = vsyncpa [#allocation5], 0 }
   0x6   :  { %20 = vsyncpa [#allocation5 + $0x1], 0  ;;  %s6656_s11 = smov 0   ;;  %s6658_s12 = smov 0  }
   0x7   :  { %s6660_s13 = smov 0   ;;  %s6662_s14 = smov 0  }
   0x8 LB: > { %9004 = sst [smem:[#allocation12_spill]] %s6591_s13  ;;  %s6677_s8 = sadd.s32 4294967295, %s6595_s14   ;;  %s6595_s14 = sphi %s6662_s14, %s9083_s14   ;;  %s6591_s13 = sphi %s6660_s13, %s9080_s13   ;;  %s6587_s12 = sphi %s6658_s12, %s9082_s12   ;;  %s6583_s11 = sphi %s6656_s11, %s9081_s11  }
   0x9   : > { %s5398_s15 = sadd.s32 4294967294, %s6595_s14   ;;  %s6681_s16 = sadd.s32 1, %s6595_s14  }
   0xa   : > { %s227_s17 = sadd.s32 1, %s6591_s13  ;;  %s224_s18 = ssub.s32 %s6595_s14, %s6681_s16 }
   0xb   : > { %p237_p0 = scmp.ne.s32.totalorder %s6591_s13, %s6587_s12  ;;  %p225_p1 = scmp.eq.s32.totalorder %s224_s18, 0 }
   0xc   : > { %p238_p2 = scmp.eq.s32.totalorder %s6677_s8, 1  ;;  %p243_p3 = scmp.ne.s32.totalorder %s6587_s12, %s6583_s11 }
   0xd   : > { %p244_p4 = scmp.eq.s32.totalorder %s5398_s15, 1  ;;  %p5399_p7 = scmp.ge.s32.totalorder %s6595_s14, 1 }
   0xe   : > { %s6692_s19 = scalar_select %p225_p1, %s6591_s13, %s227_s17  }
   0xf   : > { %p6694_p5 = por %p238_p2, %p237_p0  ;;  %p6698_p6 = por %p244_p4, %p243_p3 }
  0x10   : > { %9005 = sst [smem:[#allocation13_spill]] %s6692_s19  ;;  %p251_p8 = scmp.lt.s32.totalorder %s6595_s14, 3 }
  0x11   : > { %s9006_s20 = scalar_select %p6694_p5, 1, 0 }
  0x12   : > { %s9007_s21 = scalar_select %p6698_p6, 1, 0 }
  0x13   : > { %p8984_p9 = scmp.eq.s32.totalorder %s6677_s8, 0  ;;  %p6705_p10 = pnand %p5399_p7, %p251_p8 }
  0x14   : > { %s6597_s23 = smov [#allocation3]   ;;  %s6598_s26 = smov [#allocation6]  }
  0x15   : > { %s9008_s22 = scalar_select %p6705_p10, 1, 0 }
  0x16   : > { %s269_s24 = sshll.u32 %s6597_s23, 4  ;;  %p6411_p11 = pneg %p6705_p10  ;;  %s270_s24 = int_to_ptr.vmem [resolvable:$true] %s269_s24 }
  0x17   : > { %s285_s27 = sshll.u32 %s6598_s26, 4  ;;  %s6469_s30 = scalar_lea.hbm %s8977_s3, 6144  ;;  %s6717_s27 = int_to_ptr.vmem [resolvable:$true] %s285_s27 }
  0x18   : > { %p6713_p12 = pnand %p8984_p9, %p6411_p11  ;;  %p6470_p13 = scmp.ne.s32.totalorder %s8977_s3, %s6469_s30 }
  0x19   : > { %p6476_p3 = scmp.lt.u32.totalorder %s6469_s30, %s8977_s3 }
  0x1a   : > { %p6471_p0 = pneg %p6713_p12 }
  0x1c   : > { %p6472_p1 = pnand %p6471_p0, %p6470_p13 }
  0x1e   : > { %p6473_p2 = pneg %p6472_p1 }
  0x20   : > { %p6478_p4 = pnand %p6476_p3, %p6473_p2 }
  0x22   : > { %6481 = shalt.err (!%p6478_p4)
}
  0x23   : > { %s6482_s23 = scalar_lea.vmem %s270_s24, 6144  ;;  %p6490_p9 = scmp.lt.s32.totalorder %s270_s24, %s270_s24 }
  0x24   : > { %p6483_p7 = scmp.ne.s32.totalorder %s270_s24, %s6482_s23  ;;  %p6491_p6 = scmp.lt.s32.totalorder %s6482_s23, %s6482_s23 }
  0x26   : > { %p6485_p8 = pnand %p6483_p7, %p6471_p0  ;;  %p6492_p5 = por %p6491_p6, %p6490_p9 }
  0x28   : > { %p6486_p11 = pneg %p6485_p8 }
  0x2a   : > { %p6493_p10 = pnand %p6492_p5, %p6486_p11 }
  0x2c   : > { %6496 = shalt.err (!%p6493_p10)
}
  0x2d   : > { %s6599_s26 = smov 128   ;;  %s6600_s28 = smov 8  }
  0x2e   : > { %6414 = dma.hbm_to_vmem [thread:$0]  (!%p6713_p12), %s8977_s3, 6144, %s270_s24, [#allocation4], %s6599_s26, %s6599_s26, %s6600_s28  }
  0x2f   : > { %s6497_s17 = scalar_lea.hbm %s8979_s5, 6144 }
  0x30   : > { %p6498_p13 = scmp.ne.s32.totalorder %s8979_s5, %s6497_s17  ;;  %p6504_p9 = scmp.lt.u32.totalorder %s6497_s17, %s8979_s5 }
  0x32   : > { %p6500_p5 = pnand %p6498_p13, %p6471_p0 }
  0x34   : > { %p6501_p6 = pneg %p6500_p5 }
  0x36   : > { %p6506_p10 = pnand %p6504_p9, %p6501_p6 }
  0x38   : > { %6509 = shalt.err (!%p6506_p10)
}
  0x39   : > { %s6510_s24 = scalar_lea.vmem %s6717_s27, 6144  ;;  %p6518_p4 = scmp.lt.s32.totalorder %s6717_s27, %s6717_s27 }
  0x3a   : > { %p6511_p1 = scmp.ne.s32.totalorder %s6717_s27, %s6510_s24  ;;  %p6519_p7 = scmp.lt.s32.totalorder %s6510_s24, %s6510_s24 }
  0x3c   : > { %p6513_p2 = pnand %p6511_p1, %p6471_p0  ;;  %p6520_p8 = por %p6519_p7, %p6518_p4 }
  0x3e   : > { %p6514_p3 = pneg %p6513_p2 }
  0x40   : > { %p6521_p11 = pnand %p6520_p8, %p6514_p3 }
  0x42   : > { %6524 = shalt.err (!%p6521_p11)
}
  0x43   : > { %6417 = dma.hbm_to_vmem [thread:$0]  (!%p6713_p12), %s8979_s5, 6144, %s6717_s27, [#allocation7], %s6599_s26, %s6599_s26, %s6600_s28  }
  0x44   : > { %p9010_p13 = scmp.ne.s32.totalorder %s9008_s22, 0 }
  0x46   : > { %327 = sbr.rel (%p9010_p13) target bundleno = 2393 (0x959), region = 56 }
  0x4d   : > { %p9011_p5 = scmp.eq.s32.totalorder %s6677_s8, 0 }
  0x4f   : > { %6570 = dma.done.wait (%p9011_p5), [#allocation4], 6144   ;;  %p9012_p0 = pmov %p9011_p5 }
  0x51   : > { %6572 = vsyncadd (%p9012_p0), [#allocation4], 4294961152  ;;  %p9013_p6 = pmov %p9012_p0 }
  0x52   : > { %p9014_p9 = pmov %p9012_p0 }
  0x53   : > { %6574 = dma.done.wait (%p9013_p6), [#allocation7], 6144  }
  0x54   : > { %6576 = vsyncadd (%p9014_p9), [#allocation7], 4294961152  ;;  %s6777_s25 = sshll.u32 %s6677_s8, 4  ;;  %vm409_vm0 = vcmask 130048   ;;  %v400_v1 = vld [vmem:[%s8975_s1] sm:$0xff]  ;;  %v401_v2 = vld [vmem:[%s8975_s1 + $0x8] sm:$0xff] }
  0x55   : > { %p375_p12 = scmp.lt.s32.totalorder %s6777_s25, 24  ;;  %v6013_v4 = vpack.c.bf16 %v401_v2, %v400_v1  ;;  %v603_v7 = vld [vmem:[#allocation3] sm:$0xff]  ;;  %v604_v8 = vld [vmem:[#allocation3 + $0x8] sm:$0xff]  ;;  %v605_v9 = vld [vmem:[#allocation3 + $0x10] sm:$0xff]  ;;  %s368_s24 = sand.u32 1, %s6587_s12  }
  0x56   : > { %v6017_v10 = vpack.c.bf16 %v604_v8, %v603_v7  ;;  %v606_v11 = vld [vmem:[#allocation3 + $0x18] sm:$0xff]  ;;  %v607_v14 = vld [vmem:[#allocation3 + $0x20] sm:$0xff]  ;;  %v608_v15 = vld [vmem:[#allocation3 + $0x28] sm:$0xff]  ;;  %s369_s13 = scalar_lea.vmem [#allocation8], %s368_s24  ;;  %s8932_s26 = scalar_lea.hbm %s8983_s9, %s6777_s25 }
  0x57   : > { %s376_s22 = scalar_select %p375_p12, %s6777_s25, 24  ;;  %6014 = vmatprep.subr.bf16.mxu0 %v6013_v4  ;;  %v6021_v13 = vpack.c.bf16 %v606_v11, %v605_v9  ;;  %v6025_v17 = vpack.c.bf16 %v608_v15, %v607_v14  ;;  %v609_v19 = vld [vmem:[#allocation3 + $0x30] sm:$0xff]  ;;  %v610_v20 = vld [vmem:[#allocation3 + $0x38] sm:$0xff]  ;;  %v611_v24 = vld [vmem:[#allocation3 + $0x40] sm:$0xff] }
  0x58   : > { %6016 = vmatpush3.bf16.msra.mxu0 %v6013_v4  ;;  %6018 = vmatprep.subr.bf16.mxu1 %v6017_v10  ;;  %v6029_v22 = vpack.c.bf16 %v610_v20, %v609_v19  ;;  %v612_v25 = vld [vmem:[#allocation3 + $0x48] sm:$0xff]  ;;  %v613_v29 = vld [vmem:[#allocation3 + $0x50] sm:$0xff]  ;;  %v614_v30 = vld [vmem:[#allocation3 + $0x58] sm:$0xff]  ;;  %s5321_s19 = sshll.u32 %s369_s13, 4  ;;  %s5309_s28 = scalar_lea.sflag [#allocation5], %s368_s24  ;;  %s8934_s19 = int_to_ptr.vmem [resolvable:$true] %s5321_s19 }
  0x59   : > { %s5407_s27 = sshll.u32 %s376_s22, 3  ;;  %6020 = vmatpush3.bf16.msra.mxu1 %v6017_v10  ;;  %v6033_v27 = vpack.c.bf16 %v612_v25, %v611_v24  ;;  %v6037_v32 = vpack.c.bf16 %v614_v30, %v613_v29  ;;  %v615_v34 = vld [vmem:[#allocation3 + $0x60] sm:$0xff]  ;;  %v616_v35 = vld [vmem:[#allocation3 + $0x68] sm:$0xff]  ;;  %v617_v41 = vld [vmem:[#allocation3 + $0x70] sm:$0xff]  ;;  %p9077_p1 = scmp.ne.s32.totalorder %s9006_s20, 0 }
  0x5a   : > { %s6784_s29 = scalar_lea.vmem %s8974_s0, %s5407_s27  ;;  %6022 = vmatprep.subr.bf16.mxu1 %v6021_v13  ;;  %v6041_v37 = vpack.c.bf16 %v616_v35, %v615_v34  ;;  %v618_v42 = vld [vmem:[#allocation3 + $0x78] sm:$0xff]  ;;  %v1364_v14 = vld [vmem:[#allocation6 + $0x8] sm:$0xff]  ;;  %v1367_v19 = vld [vmem:[#allocation6 + $0x20] sm:$0xff]  ;;  %s6602_s30 = smov [#allocation8]  }
  0x5b   : > { %v384_v3 = vld [vmem:[%s6784_s29] sm:$0xff]  ;;  %v385_v5 = vld [vmem:[%s6784_s29 + $0x8] sm:$0xff]  ;;  %v386_v6 = vld [vmem:[%s6784_s29 + $0x10] sm:$0xff]  ;;  %v6045_v43 = vpack.c.bf16 %v618_v42, %v617_v41  ;;  %s6529_s10 = sshll.u32 %s6602_s30, 4  ;;  %s6530_s10 = int_to_ptr.vmem [resolvable:$false] %s6529_s10 }
  0x5c   : > { %5653 = vmatprep.mubr.msk.f32.mxu0 %vm409_vm0, %v384_v3  ;;  %v387_v12 = vld [vmem:[%s6784_s29 + $0x18] sm:$0xff]  ;;  %v388_v16 = vld [vmem:[%s6784_s29 + $0x20] sm:$0xff]  ;;  %v389_v18 = vld [vmem:[%s6784_s29 + $0x28] sm:$0xff]  ;;  %s6531_s8 = scalar_lea.vmem %s6530_s10, 32  ;;  %p6532_p4 = scmp.lt.s32.totalorder %s8934_s19, %s6530_s10 }
  0x5d   : > { %5654 = vmatmul.mubr.msk.f32.vlgmr.msra.gmra.mrb[0].mxu0 %vm409_vm0, %v385_v5  ;;  %v390_v21 = vld [vmem:[%s6784_s29 + $0x30] sm:$0xff]  ;;  %6024 = vmatpush3.bf16.msra.mxu1 %v6021_v13  ;;  %v391_v23 = vld [vmem:[%s6784_s29 + $0x38] sm:$0xff]  ;;  %v392_v26 = vld [vmem:[%s6784_s29 + $0x40] sm:$0xff] }
  0x5e   : > { %5656 = vmatprep.mubr.msk.f32.mxu0 %vm409_vm0, %v386_v6  ;;  %6026 = vmatprep.subr.bf16.mxu1 %v6025_v17  ;;  %v393_v28 = vld [vmem:[%s6784_s29 + $0x48] sm:$0xff]  ;;  %v394_v31 = vld [vmem:[%s6784_s29 + $0x50] sm:$0xff]  ;;  %v395_v33 = vld [vmem:[%s6784_s29 + $0x58] sm:$0xff] }
  0x5f   : > { %v396_v36 = vld [vmem:[%s6784_s29 + $0x60] sm:$0xff]  ;;  %v397_v38 = vld [vmem:[%s6784_s29 + $0x68] sm:$0xff]  ;;  %v398_v39 = vld [vmem:[%s6784_s29 + $0x70] sm:$0xff] }
  0x60   : > { %v399_v40 = vld [vmem:[%s6784_s29 + $0x78] sm:$0xff]  ;;  %v5408_v44 = vld [vmem:[%s8976_s2] ss:$0 sm:$0xff]  ;;  %v1363_v13 = vld [vmem:[#allocation6] sm:$0xff]  ;;  %s6525_s29 = scalar_lea.vmem %s8934_s19, 16 }
  0x61   : > { %5657 = vmatmul.mubr.msk.f32.gmra.mrb[2].mxu0 %vm409_vm0, %v387_v12  ;;  %6028 = vmatpush3.bf16.msra.mxu1 %v6025_v17  ;;  %v6049_v15 = vpack.c.bf16 %v1364_v14, %v1363_v13  ;;  %v1366_v17 = vld [vmem:[#allocation6 + $0x18] sm:$0xff]  ;;  %v1368_v20 = vld [vmem:[#allocation6 + $0x28] sm:$0xff]  ;;  %v1371_v25 = vld [vmem:[#allocation6 + $0x40] sm:$0xff]  ;;  %p6526_p10 = scmp.ne.s32.totalorder %s8934_s19, %s6525_s29  ;;  %p6533_p7 = scmp.lt.s32.totalorder %s6531_s8, %s6525_s29 }
  0x62   : > { %5659 = vmatprep.mubr.msk.f32.mxu0 %vm409_vm0, %v388_v16  ;;  %6030 = vmatprep.subr.bf16.mxu1 %v6029_v22  ;;  %v1365_v16 = vld [vmem:[#allocation6 + $0x10] sm:$0xff]  ;;  %v1374_v29 = vld [vmem:[#allocation6 + $0x58] sm:$0xff]  ;;  %v1375_v30 = vld [vmem:[#allocation6 + $0x60] sm:$0xff] }
  0x63   : > { %6050 = vmatprep.subr.bf16.mxu0 %v6049_v15  ;;  %v1377_v34 = vld [vmem:[#allocation6 + $0x70] sm:$0xff]  ;;  %v1378_v35 = vld [vmem:[#allocation6 + $0x78] sm:$0xff]  ;;  %p6527_p2 = pnand %p6526_p10, %p9077_p1  ;;  %p6534_p8 = por %p6533_p7, %p6532_p4 }
  0x64   : > { %6052 = vmatpush3.bf16.msra.mxu0 %v6049_v15 }
  0x65   : > { %5660 = vmatmul.mubr.msk.f32.gmra.mrb[4].mxu0 %vm409_vm0, %v389_v18  ;;  %6032 = vmatpush3.bf16.msra.mxu1 %v6029_v22  ;;  %v6053_v18 = vpack.c.bf16 %v1366_v17, %v1365_v16  ;;  %v1369_v22 = vld [vmem:[#allocation6 + $0x30] sm:$0xff]  ;;  %p6528_p3 = pneg %p6527_p2 }
  0x66   : > { %5662 = vmatprep.mubr.msk.f32.mxu0 %vm409_vm0, %v390_v21  ;;  %6034 = vmatprep.subr.bf16.mxu1 %v6033_v27  ;;  %v6057_v21 = vpack.c.bf16 %v1368_v20, %v1367_v19 }
  0x67   : > { %6054 = vmatprep.subr.bf16.mxu0 %v6053_v18  ;;  %p6535_p11 = pnand %p6534_p8, %p6528_p3 }
  0x68   : > { %6056 = vmatpush3.bf16.msra.mxu0 %v6053_v18 }
  0x69   : > { %5663 = vmatmul.mubr.msk.f32.gmra.mrb[6].mxu0 %vm409_vm0, %v391_v23  ;;  %6036 = vmatpush3.bf16.msra.mxu1 %v6033_v27  ;;  %v1370_v23 = vld [vmem:[#allocation6 + $0x38] sm:$0xff] }
  0x6a   : > { %5665 = vmatprep.mubr.msk.f32.mxu0 %vm409_vm0, %v392_v26  ;;  %6038 = vmatprep.subr.bf16.mxu1 %v6037_v32  ;;  %v6061_v24 = vpack.c.bf16 %v1370_v23, %v1369_v22  ;;  %v1372_v26 = vld [vmem:[#allocation6 + $0x48] sm:$0xff] }
  0x6b   : > { %6058 = vmatprep.subr.bf16.mxu0 %v6057_v21  ;;  %v6065_v27 = vpack.c.bf16 %v1372_v26, %v1371_v25 }
  0x6c   : > { %6060 = vmatpush3.bf16.msra.mxu0 %v6057_v21 }
  0x6d   : > { %5666 = vmatmul.mubr.msk.f32.gmra.mrb[8].mxu0 %vm409_vm0, %v393_v28  ;;  %6040 = vmatpush3.bf16.msra.mxu1 %v6037_v32  ;;  %v1373_v28 = vld [vmem:[#allocation6 + $0x50] sm:$0xff]  ;;  %v1376_v32 = vld [vmem:[#allocation6 + $0x68] sm:$0xff] }
  0x6e   : > { %5668 = vmatprep.mubr.msk.f32.mxu0 %vm409_vm0, %v394_v31  ;;  %6042 = vmatprep.subr.bf16.mxu1 %v6041_v37  ;;  %v6069_v31 = vpack.c.bf16 %v1374_v29, %v1373_v28 }
  0x6f   : > { %6062 = vmatprep.subr.bf16.mxu0 %v6061_v24 }
  0x70   : > { %6064 = vmatpush3.bf16.msra.mxu0 %v6061_v24 }
  0x71   : > { %5669 = vmatmul.mubr.msk.f32.gmra.mrb[10].mxu0 %vm409_vm0, %v395_v33  ;;  %6044 = vmatpush3.bf16.msra.mxu1 %v6041_v37  ;;  %v6073_v33 = vpack.c.bf16 %v1376_v32, %v1375_v30  ;;  %v6878_v37 = vld [vmem:[%s8978_s4] ss:$0 sm:$0xff] }
  0x72   : > { %5671 = vmatprep.mubr.msk.f32.mxu0 %vm409_vm0, %v396_v36  ;;  %6046 = vmatprep.subr.bf16.mxu1 %v6045_v43  ;;  %v6077_v36 = vpack.c.bf16 %v1378_v35, %v1377_v34 }
  0x73   : > { %6066 = vmatprep.subr.bf16.mxu0 %v6065_v27 }
  0x74   : > { %6068 = vmatpush3.bf16.msra.mxu0 %v6065_v27 }
  0x75   : > { %5672 = vmatmul.mubr.msk.f32.gmra.mrb[12].mxu0 %vm409_vm0, %v397_v38  ;;  %6048 = vmatpush3.bf16.msra.mxu1 %v6045_v43 }
  0x76   : > { %5674 = vmatprep.mubr.msk.f32.mxu0 %vm409_vm0, %v398_v39  ;;  %6070 = vmatprep.subr.bf16.mxu0 %v6069_v31 }
  0x78   : > { %6072 = vmatpush3.bf16.msra.mxu0 %v6069_v31 }
  0x79   : > { %5675 = vmatmul.mubr.msk.f32.gmra.mrb[14].mxu0 %vm409_vm0, %v399_v40  ;;  %6074 = vmatprep.subr.bf16.mxu0 %v6073_v33 }
  0x7c   : > { %6076 = vmatpush3.bf16.msra.mxu0 %v6073_v33 }
  0x7d   : > { %6078 = vmatprep.subr.bf16.mxu0 %v6077_v36 }
  0x80   : > { %6080 = vmatpush3.bf16.msra.mxu0 %v6077_v36 }
 0x130   : > { %v5655_v45 = vpop.f32.mrb[0].mxu0 }
 0x131   : > { %v524_v46 = vpop.f32.mrb[1].mxu0  ;;  %v6829_v48 = vadd.f32 %v5655_v45, %v5408_v44 }
 0x132   : > { %v6827_v47 = vadd.f32 %v5408_v44, %v524_v46 }
 0x134   : > { %v5658_v49 = vpop.f32.mrb[2].mxu0  ;;  %5709 = vmatprep.mubr.f32.mxu1 %v6827_v47 }
 0x135   : > { %v6832_v50 = vadd.f32 %v5658_v49, %v5408_v44  ;;  %v534_v51 = vpop.f32.mrb[3].mxu0  ;;  %5710 = vmatmul.mubr.f32.vlgmr.msra.gmra.mrb[0].mxu1 %v6829_v48 }
 0x136   : > { %v6835_v52 = vadd.f32 %v5408_v44, %v534_v51 }
 0x138   : > { %9015 = vst [vmem:[#allocation14_spill] sm:$0xff] %v6835_v52  ;;  %v5661_v53 = vpop.f32.mrb[4].mxu0  ;;  %5712 = vmatprep.mubr.f32.mxu1 %v6835_v52 }
 0x139   : > { %v6838_v54 = vadd.f32 %v5661_v53, %v5408_v44  ;;  %v544_v55 = vpop.f32.mrb[5].mxu0  ;;  %5713 = vmatmul.mubr.f32.gmra.mrb[2].mxu1 %v6832_v50 }
 0x13a   : > { %v6841_v56 = vadd.f32 %v5408_v44, %v544_v55 }
 0x13b   : > { %9016 = vst [vmem:[#allocation15_spill] sm:$0xff] %v6838_v54 }
 0x13c   : > { %9017 = vst [vmem:[#allocation16_spill] sm:$0xff] %v6841_v56  ;;  %v5664_v57 = vpop.f32.mrb[6].mxu0  ;;  %5715 = vmatprep.mubr.f32.mxu1 %v6841_v56 }
 0x13d   : > { %v6844_v58 = vadd.f32 %v5664_v57, %v5408_v44  ;;  %v554_v59 = vpop.f32.mrb[7].mxu0  ;;  %5716 = vmatmul.mubr.f32.gmra.mrb[4].mxu1 %v6838_v54 }
 0x13e   : > { %v6847_v60 = vadd.f32 %v5408_v44, %v554_v59 }
 0x13f   : > { %9018 = vst [vmem:[#allocation17_spill] sm:$0xff] %v6844_v58 }
 0x140   : > { %9019 = vst [vmem:[#allocation18_spill] sm:$0xff] %v6847_v60  ;;  %v5667_v61 = vpop.f32.mrb[8].mxu0  ;;  %5718 = vmatprep.mubr.f32.mxu1 %v6847_v60 }
 0x141   : > { %v6850_v62 = vadd.f32 %v5667_v61, %v5408_v44  ;;  %v564_v63 = vpop.f32.mrb[9].mxu0  ;;  %5719 = vmatmul.mubr.f32.gmra.mrb[6].mxu1 %v6844_v58 }
 0x142   : > { %v6853_v0 = vadd.f32 %v5408_v44, %v564_v63 }
 0x143   : > { %9020 = vst [vmem:[#allocation19_spill] sm:$0xff] %v6850_v62 }
 0x144   : > { %9021 = vst [vmem:[#allocation20_spill] sm:$0xff] %v6853_v0  ;;  %v5670_v1 = vpop.f32.mrb[10].mxu0  ;;  %5721 = vmatprep.mubr.f32.mxu1 %v6853_v0 }
 0x145   : > { %v6856_v2 = vadd.f32 %v5670_v1, %v5408_v44  ;;  %v574_v3 = vpop.f32.mrb[11].mxu0  ;;  %5722 = vmatmul.mubr.f32.gmra.mrb[8].mxu1 %v6850_v62 }
 0x146   : > { %v6859_v4 = vadd.f32 %v5408_v44, %v574_v3 }
 0x147   : > { %9022 = vst [vmem:[#allocation21_spill] sm:$0xff] %v6856_v2 }
 0x148   : > { %9023 = vst [vmem:[#allocation22_spill] sm:$0xff] %v6859_v4  ;;  %v5673_v5 = vpop.f32.mrb[12].mxu0  ;;  %5724 = vmatprep.mubr.f32.mxu1 %v6859_v4 }
 0x149   : > { %v6862_v6 = vadd.f32 %v5673_v5, %v5408_v44  ;;  %v584_v7 = vpop.f32.mrb[13].mxu0  ;;  %5725 = vmatmul.mubr.f32.gmra.mrb[10].mxu1 %v6856_v2 }
 0x14a   : > { %v6865_v8 = vadd.f32 %v5408_v44, %v584_v7 }
 0x14b   : > { %9024 = vst [vmem:[#allocation23_spill] sm:$0xff] %v6862_v6 }
 0x14c   : > { %9025 = vst [vmem:[#allocation24_spill] sm:$0xff] %v6865_v8  ;;  %v5676_v9 = vpop.f32.mrb[14].mxu0  ;;  %5727 = vmatprep.mubr.f32.mxu1 %v6865_v8 }
 0x14d   : > { %v6868_v10 = vadd.f32 %v5676_v9, %v5408_v44  ;;  %v594_v11 = vpop.f32.mrb[15].mxu0  ;;  %5728 = vmatmul.mubr.f32.gmra.mrb[12].mxu1 %v6862_v6 }
 0x14e   : > { %v6871_v12 = vadd.f32 %v5408_v44, %v594_v11 }
 0x14f   : > { %9026 = vst [vmem:[#allocation25_spill] sm:$0xff] %v6868_v10 }
 0x150   : > { %9027 = vst [vmem:[#allocation26_spill] sm:$0xff] %v6871_v12  ;;  %5730 = vmatprep.mubr.f32.mxu1 %v6871_v12 }
 0x151   : > { %5731 = vmatmul.mubr.f32.gmra.mrb[14].mxu1 %v6868_v10 }
 0x208   : > { %v5711_v38 = vpop.f32.mrb[0].mxu1 }
 0x209   : > { %v698_v39 = vadd.f32 %v5711_v38, %v6878_v37  ;;  %v692_v40 = vpop.f32.mrb[1].mxu1 }
 0x20a   : > { %v693_v41 = vadd.f32 %v6878_v37, %v692_v40 }
 0x20b   : > { %v772_v42 = vmax.f32 %v698_v39, -30.0 }
 0x20c   : > { %v771_v43 = vmax.f32 %v693_v41, -30.0  ;;  %v5714_v44 = vpop.f32.mrb[2].mxu1 }
 0x20d   : > { %v788_v45 = vmin.f32 %v772_v42, 20.0  ;;  %v708_v46 = vadd.f32 %v5714_v44, %v6878_v37  ;;  %v702_v49 = vpop.f32.mrb[3].mxu1 }
 0x20e   : > { %v787_v51 = vmin.f32 %v771_v43, 20.0  ;;  %v703_v53 = vadd.f32 %v6878_v37, %v702_v49 }
 0x20f   : > { %v804_v55 = vmul.f32 1.442695, %v788_v45  ;;  %v774_v57 = vmax.f32 %v708_v46, -30.0 }
 0x210   : > { %v803_v59 = vmul.f32 1.442695, %v787_v51  ;;  %v773_v61 = vmax.f32 %v703_v53, -30.0  ;;  %v5717_v63 = vpop.f32.mrb[4].mxu1 }
 0x211   : > { %v820_v1 = vadd.f32 0.5, %v804_v55  ;;  %v790_v3 = vmin.f32 %v774_v57, 20.0  ;;  %v718_v5 = vadd.f32 %v5717_v63, %v6878_v37  ;;  %v712_v7 = vpop.f32.mrb[5].mxu1 }
 0x212   : > { %v819_v9 = vadd.f32 0.5, %v803_v59  ;;  %v789_v11 = vmin.f32 %v773_v61, 20.0  ;;  %v713_v13 = vadd.f32 %v6878_v37, %v712_v7 }
 0x213   : > { %v836_v14 = vfloor.f32 %v820_v1  ;;  %v806_v15 = vmul.f32 1.442695, %v790_v3  ;;  %v776_v16 = vmax.f32 %v718_v5, -30.0 }
 0x214   : > { %v835_v17 = vfloor.f32 %v819_v9  ;;  %v805_v18 = vmul.f32 1.442695, %v789_v11  ;;  %v775_v19 = vmax.f32 %v713_v13, -30.0  ;;  %v5720_v20 = vpop.f32.mrb[6].mxu1 }
 0x215   : > { %v6886_v21 = vsub.f32 %v804_v55, %v836_v14  ;;  %v6211_v22 = vtrunc.f32 %v836_v14  ;;  %v822_v23 = vadd.f32 0.5, %v806_v15  ;;  %v792_v24 = vmin.f32 %v776_v16, 20.0  ;;  %v722_v25 = vpop.f32.mrb[7].mxu1 }
 0x216   : > { %v6888_v26 = vsub.f32 %v803_v59, %v835_v17  ;;  %v6209_v27 = vtrunc.f32 %v835_v17  ;;  %v821_v28 = vadd.f32 0.5, %v805_v18  ;;  %v791_v29 = vmin.f32 %v775_v19, 20.0 }
 0x217   : > { %v868_v30 = vmul.f32 0.0013333558, %v6886_v21  ;;  %v6212_v31 = vcvt.f32.s32 %v6211_v22  ;;  %v838_v32 = vfloor.f32 %v822_v23  ;;  %v808_v33 = vmul.f32 1.442695, %v792_v24 }
 0x218   : > { %v867_v34 = vmul.f32 0.0013333558, %v6888_v26  ;;  %v6210_v35 = vcvt.f32.s32 %v6209_v27  ;;  %v837_v36 = vfloor.f32 %v821_v28  ;;  %v807_v38 = vmul.f32 1.442695, %v791_v29  ;;  %v5723_v39 = vpop.f32.mrb[8].mxu1 }
 0x219   : > { %v884_v40 = vadd.f32 0.009618129, %v868_v30  ;;  %v6892_v41 = vadd.s32 127, %v6212_v31  ;;  %v6894_v42 = vsub.f32 %v806_v15, %v838_v32  ;;  %v6215_v43 = vtrunc.f32 %v838_v32  ;;  %v6896_v44 = vpop.f32.mrb[9].mxu1 }
 0x21a   : > { %v883_v45 = vadd.f32 0.009618129, %v867_v34  ;;  %v6898_v46 = vadd.s32 127, %v6210_v35  ;;  %v6900_v49 = vsub.f32 %v805_v18, %v837_v36  ;;  %v6213_v51 = vtrunc.f32 %v837_v36 }
 0x21b   : > { %v900_v53 = vmul.f32 %v884_v40, %v6886_v21  ;;  %v1060_v55 = vshll.u32 %v6892_v41, 23  ;;  %v870_v57 = vmul.f32 0.0013333558, %v6894_v42  ;;  %v6216_v59 = vcvt.f32.s32 %v6215_v43 }
 0x21c   : > { %v899_v61 = vmul.f32 %v883_v45, %v6888_v26  ;;  %v869_v1 = vmul.f32 0.0013333558, %v6900_v49  ;;  %v6214_v3 = vcvt.f32.s32 %v6213_v51  ;;  %v5726_v5 = vpop.f32.mrb[10].mxu1  ;;  %v824_v13 = vadd.f32 0.5, %v808_v33 }
 0x21d   : > { %v916_v7 = vadd.f32 0.05550411, %v900_v53  ;;  %v886_v9 = vadd.f32 0.009618129, %v870_v57  ;;  %v6908_v11 = vadd.s32 127, %v6216_v59  ;;  %v823_v17 = vadd.f32 0.5, %v807_v38 }
 0x21e   : > { %v6910_v14 = vadd.f32 0.05550411, %v899_v61  ;;  %v885_v15 = vadd.f32 0.009618129, %v869_v1  ;;  %v6912_v16 = vadd.s32 127, %v6214_v3  ;;  %v840_v23 = vfloor.f32 %v824_v13  ;;  %v742_v24 = vpop.f32.mrb[11].mxu1 }
 0x21f   : > { %v932_v18 = vmul.f32 %v916_v7, %v6886_v21  ;;  %v902_v19 = vmul.f32 %v886_v9, %v6894_v42  ;;  %v839_v29 = vfloor.f32 %v823_v17  ;;  %v728_v30 = vadd.f32 %v5720_v20, %v6878_v37 }
 0x220   : > { %v901_v27 = vmul.f32 %v885_v15, %v6900_v49  ;;  %v6920_v31 = vpop.f32.mrb[12].mxu1  ;;  %v6924_v35 = vsub.f32 %v808_v33, %v840_v23  ;;  %v6219_v36 = vtrunc.f32 %v840_v23  ;;  %v723_v61 = vadd.f32 %v6878_v37, %v722_v25 }
 0x221   : > { %v948_v32 = vadd.f32 0.2402265, %v932_v18  ;;  %v6922_v34 = vadd.f32 0.05550411, %v902_v19  ;;  %v6926_v40 = vpop.f32.mrb[13].mxu1  ;;  %v6930_v45 = vsub.f32 %v807_v38, %v839_v29  ;;  %v6217_v51 = vtrunc.f32 %v839_v29 }
 0x222   : > { %v6928_v43 = vadd.f32 0.05550411, %v901_v27  ;;  %v778_v53 = vmax.f32 %v728_v30, -30.0  ;;  %v872_v20 = vmul.f32 0.0013333558, %v6924_v35  ;;  %v6220_v59 = vcvt.f32.s32 %v6219_v36 }
 0x223   : > { %v964_v57 = vmul.f32 %v948_v32, %v6886_v21  ;;  %v871_v1 = vmul.f32 0.0013333558, %v6930_v45  ;;  %v6218_v33 = vcvt.f32.s32 %v6217_v51  ;;  %v738_v7 = vadd.f32 %v5723_v39, %v6878_v37 }
 0x224   : > { %v794_v3 = vmin.f32 %v778_v53, 20.0  ;;  %v6937_v9 = vpop.f32.mrb[14].mxu1  ;;  %v888_v38 = vadd.f32 0.009618129, %v872_v20  ;;  %v6939_v15 = vadd.s32 127, %v6220_v59  ;;  %v777_v17 = vmax.f32 %v723_v61, -30.0 }
 0x225   : > { %v980_v13 = vadd.f32 0.6931472, %v964_v57  ;;  %v887_v18 = vadd.f32 0.009618129, %v871_v1  ;;  %v6941_v19 = vadd.s32 127, %v6218_v33  ;;  %v780_v27 = vmax.f32 %v738_v7, -30.0 }
 0x226   : > { %v810_v23 = vmul.f32 1.442695, %v794_v3  ;;  %v904_v29 = vmul.f32 %v888_v38, %v6924_v35  ;;  %v793_v32 = vmin.f32 %v777_v17, 20.0  ;;  %v6946_v39 = vpop.f32.mrb[15].mxu1  ;;  %v748_v7 = vadd.f32 %v5726_v5, %v6878_v37 }
 0x227   : > { %v996_v25 = vmul.f32 %v980_v13, %v6886_v21  ;;  %v903_v36 = vmul.f32 %v887_v18, %v6930_v45  ;;  %v796_v57 = vmin.f32 %v780_v27, 20.0  ;;  %v733_v21 = vadd.f32 %v6878_v37, %v6896_v44 }
 0x228   : > { %v826_v53 = vadd.f32 0.5, %v810_v23  ;;  %v6950_v59 = vadd.f32 0.05550411, %v904_v29  ;;  %v809_v61 = vmul.f32 1.442695, %v793_v32  ;;  %v743_v18 = vadd.f32 %v6878_v37, %v742_v24 }
 0x229   : > { %v1012_v20 = vadd.f32 1.0, %v996_v25  ;;  %v6954_v1 = vadd.f32 0.05550411, %v903_v36  ;;  %v812_v3 = vmul.f32 1.442695, %v796_v57  ;;  %v779_v17 = vmax.f32 %v733_v21, -30.0 }
 0x22a   : > { %v842_v33 = vfloor.f32 %v826_v53  ;;  %v825_v38 = vadd.f32 0.5, %v809_v61  ;;  %v782_v32 = vmax.f32 %v748_v7, -30.0  ;;  %v781_v51 = vmax.f32 %v743_v18, -30.0 }
 0x22b   : > { %v1092_v13 = vmul.f32 %v1060_v55, %v1012_v20  ;;  %v828_v29 = vadd.f32 0.5, %v812_v3  ;;  %v795_v36 = vmin.f32 %v779_v17, 20.0 }
 0x22c   : > { %v6960_v27 = vsub.f32 %v810_v23, %v842_v33  ;;  %v6223_v25 = vtrunc.f32 %v842_v33  ;;  %v841_v44 = vfloor.f32 %v825_v38  ;;  %v798_v22 = vmin.f32 %v782_v32, 20.0 }
 0x22d   : > { %v1108_v30 = vadd.f32 2.0, %v1092_v13  ;;  %v844_v5 = vfloor.f32 %v828_v29  ;;  %v811_v24 = vmul.f32 1.442695, %v795_v36  ;;  %v797_v28 = vmin.f32 %v781_v51, 20.0 }
 0x22e   : > { %v874_v53 = vmul.f32 0.0013333558, %v6960_v27  ;;  %v6224_v57 = vcvt.f32.s32 %v6223_v25  ;;  %v6965_v55 = vsub.f32 %v809_v61, %v841_v44  ;;  %v6221_v20 = vtrunc.f32 %v841_v44 }
 0x22f   : > { %v6963_v41 = vmul.f32 %v1108_v30, %v1092_v13  ;;  %v6969_v33 = vsub.f32 %v812_v3, %v844_v5  ;;  %v6227_v7 = vtrunc.f32 %v844_v5  ;;  %v827_v25 = vadd.f32 0.5, %v811_v24 }
 0x230   : > { %v890_v23 = vadd.f32 0.009618129, %v874_v53  ;;  %v6967_v21 = vadd.s32 127, %v6224_v57  ;;  %v873_v17 = vmul.f32 0.0013333558, %v6965_v55  ;;  %v6222_v18 = vcvt.f32.s32 %v6221_v20 }
 0x231   : > { %v6972_v38 = vadd.f32 2.0, %v6963_v41  ;;  %v876_v13 = vmul.f32 0.0013333558, %v6969_v33  ;;  %v6228_v29 = vcvt.f32.s32 %v6227_v7  ;;  %v843_v3 = vfloor.f32 %v827_v25 }
 0x232   : > { %v906_v30 = vmul.f32 %v890_v23, %v6960_v27  ;;  %v889_v32 = vadd.f32 0.009618129, %v873_v17  ;;  %v6978_v44 = vadd.s32 127, %v6222_v18  ;;  %v814_v36 = vmul.f32 1.442695, %v798_v22 }
 0x233   : > { %v892_v57 = vadd.f32 0.009618129, %v876_v13  ;;  %v6982_v5 = vadd.s32 127, %v6228_v29  ;;  %v6986_v63 = vsub.f32 %v811_v24, %v843_v3  ;;  %v6225_v61 = vtrunc.f32 %v843_v3 }
 0x234   : > { %v6980_v53 = vadd.f32 0.05550411, %v906_v30  ;;  %v905_v20 = vmul.f32 %v889_v32, %v6965_v55  ;;  %v830_v18 = vadd.f32 0.5, %v814_v36  ;;  %v813_v25 = vmul.f32 1.442695, %v797_v28 }
 0x235   : > { %v908_v7 = vmul.f32 %v892_v57, %v6969_v33  ;;  %v875_v30 = vmul.f32 0.0013333558, %v6986_v63  ;;  %v6226_v13 = vcvt.f32.s32 %v6225_v61  ;;  %v758_v51 = vadd.f32 %v6920_v31, %v6878_v37 }
 0x236   : > { %v6990_v22 = vadd.f32 0.05550411, %v905_v20  ;;  %v846_v32 = vfloor.f32 %v830_v18  ;;  %v829_v24 = vadd.f32 0.5, %v813_v25  ;;  %v753_v3 = vadd.f32 %v6878_v37, %v6926_v40 }
 0x237   : > { %v6995_v29 = vadd.f32 0.05550411, %v908_v7  ;;  %v891_v57 = vadd.f32 0.009618129, %v875_v30  ;;  %v6999_v23 = vadd.s32 127, %v6226_v13  ;;  %v784_v17 = vmax.f32 %v758_v51, -30.0 }
 0x238   : > { %v768_v28 = vadd.f32 %v6937_v9, %v6878_v37  ;;  %v7003_v20 = vsub.f32 %v814_v36, %v846_v32  ;;  %v6231_v61 = vtrunc.f32 %v846_v32  ;;  %v845_v12 = vfloor.f32 %v829_v24 }
 0x239   : > { %v783_v10 = vmax.f32 %v753_v3, -30.0  ;;  %v907_v31 = vmul.f32 %v891_v57, %v6986_v63  ;;  %v800_v18 = vmin.f32 %v784_v17, 20.0 }
 0x23a   : > { %v786_v8 = vmax.f32 %v768_v28, -30.0  ;;  %v878_v40 = vmul.f32 0.0013333558, %v7003_v20  ;;  %v6232_v30 = vcvt.f32.s32 %v6231_v61  ;;  %v7008_v13 = vsub.f32 %v813_v25, %v845_v12 }
 0x23b   : > { %v6229_v51 = vtrunc.f32 %v845_v12  ;;  %v7010_v6 = vadd.f32 0.05550411, %v907_v31  ;;  %v816_v9 = vmul.f32 1.442695, %v800_v18  ;;  %v799_v36 = vmin.f32 %v783_v10, 20.0 }
 0x23c   : > { %v802_v4 = vmin.f32 %v786_v8, 20.0  ;;  %v894_v32 = vadd.f32 0.009618129, %v878_v40  ;;  %v7012_v24 = vadd.s32 127, %v6232_v30  ;;  %v877_v3 = vmul.f32 0.0013333558, %v7008_v13 }
 0x23d   : > { %v6230_v57 = vcvt.f32.s32 %v6229_v51  ;;  %v832_v7 = vadd.f32 0.5, %v816_v9  ;;  %v815_v17 = vmul.f32 1.442695, %v799_v36  ;;  %v763_v61 = vadd.f32 %v6878_v37, %v6946_v39 }
 0x23e   : > { %v818_v28 = vmul.f32 1.442695, %v802_v4  ;;  %v910_v25 = vmul.f32 %v894_v32, %v7003_v20  ;;  %v893_v31 = vadd.f32 0.009618129, %v877_v3  ;;  %v931_v37 = vmul.f32 %v6910_v14, %v6888_v26 }
 0x23f   : > { %v7019_v18 = vadd.s32 127, %v6230_v57  ;;  %v848_v8 = vfloor.f32 %v832_v7  ;;  %v831_v10 = vadd.f32 0.5, %v815_v17  ;;  %v785_v30 = vmax.f32 %v763_v61, -30.0 }
 0x240   : > { %v834_v40 = vadd.f32 0.5, %v818_v28  ;;  %v7021_v2 = vadd.f32 0.05550411, %v910_v25  ;;  %v909_v51 = vmul.f32 %v893_v31, %v7008_v13  ;;  %v947_v12 = vadd.f32 0.2402265, %v931_v37 }
 0x241   : > { %v7027_v39 = vsub.f32 %v816_v9, %v848_v8  ;;  %v6235_v36 = vtrunc.f32 %v848_v8  ;;  %v847_v32 = vfloor.f32 %v831_v10  ;;  %v801_v7 = vmin.f32 %v785_v30, 20.0 }
 0x242   : > { %v850_v3 = vfloor.f32 %v834_v40  ;;  %v7029_v57 = vadd.f32 0.05550411, %v909_v51  ;;  %v1172_v61 = vsub.s32 2130706432, %v6972_v38  ;;  %v963_v8 = vmul.f32 %v947_v12, %v6888_v26 }
 0x243   : > { %v880_v25 = vmul.f32 0.0013333558, %v7027_v39  ;;  %v6236_v0 = vcvt.f32.s32 %v6235_v36  ;;  %v7033_v31 = vsub.f32 %v815_v17, %v847_v32  ;;  %v6233_v4 = vtrunc.f32 %v847_v32 }
 0x244   : > { %v7035_v62 = vsub.f32 %v818_v28, %v850_v3  ;;  %v6239_v14 = vtrunc.f32 %v850_v3  ;;  %v817_v9 = vmul.f32 1.442695, %v801_v7  ;;  %v979_v36 = vadd.f32 0.6931472, %v963_v8 }
 0x245   : > { %v896_v10 = vadd.f32 0.009618129, %v880_v25  ;;  %v7038_v40 = vadd.s32 127, %v6236_v0  ;;  %v879_v30 = vmul.f32 0.0013333558, %v7033_v31  ;;  %v6234_v51 = vcvt.f32.s32 %v6233_v4 }
 0x246   : > { %v882_v37 = vmul.f32 0.0013333558, %v7035_v62  ;;  %v6240_v60 = vcvt.f32.s32 %v6239_v14  ;;  %v833_v58 = vadd.f32 0.5, %v817_v9  ;;  %v995_v25 = vmul.f32 %v979_v36, %v6888_v26 }
 0x247   : > { %v912_v17 = vmul.f32 %v896_v10, %v7027_v39  ;;  %v895_v32 = vadd.f32 0.009618129, %v879_v30  ;;  %v7044_v3 = vadd.s32 127, %v6234_v51  ;;  %v1204_v8 = vmul.f32 %v1172_v61, %v6972_v38 }
 0x248   : > { %v898_v7 = vadd.f32 0.009618129, %v882_v37  ;;  %v7046_v12 = vadd.s32 127, %v6240_v60  ;;  %v849_v0 = vfloor.f32 %v833_v58  ;;  %v1011_v58 = vadd.f32 1.0, %v995_v25 }
 0x249   : > { %v7049_v56 = vadd.f32 0.05550411, %v912_v17  ;;  %v911_v4 = vmul.f32 %v895_v32, %v7033_v31  ;;  %v1220_v28 = vsub.f32 2.0, %v1204_v8  ;;  %v933_v26 = vmul.f32 %v6928_v43, %v6900_v49 }
 0x24a   : > { %v914_v10 = vmul.f32 %v898_v7, %v7035_v62  ;;  %v7056_v51 = vsub.f32 %v817_v9, %v849_v0  ;;  %v6237_v37 = vtrunc.f32 %v849_v0  ;;  %v934_v7 = vmul.f32 %v6922_v34, %v6894_v42 }
 0x24b   : > { %v7058_v60 = vadd.f32 0.05550411, %v911_v4  ;;  %v9028_v30 = vshll.u32 %v6898_v46, 23  ;;  %v1236_v14 = vmul.f32 %v1220_v28, %v1172_v61  ;;  %v949_v0 = vadd.f32 0.2402265, %v933_v26 }
 0x24c   : > { %v7062_v36 = vadd.f32 0.05550411, %v914_v10  ;;  %v881_v17 = vmul.f32 0.0013333558, %v7056_v51  ;;  %v6238_v32 = vcvt.f32.s32 %v6237_v37  ;;  %v935_v25 = vmul.f32 %v6954_v1, %v6930_v45 }
 0x24d   : > { %v1091_v9 = vmul.f32 %v9028_v30, %v1011_v58  ;;  %v950_v43 = vadd.f32 0.2402265, %v934_v7  ;;  %v936_v10 = vmul.f32 %v6950_v59, %v6924_v35  ;;  %v1252_v37 = vmul.f32 %v1236_v14, %v6972_v38 }
 0x24e   : > { %v897_v4 = vadd.f32 0.009618129, %v881_v17  ;;  %v7071_v8 = vadd.s32 127, %v6238_v32  ;;  %v965_v34 = vmul.f32 %v949_v0, %v6900_v49  ;;  %v951_v52 = vadd.f32 0.2402265, %v935_v25 }
 0x24f   : > { %v1107_v54 = vadd.f32 2.0, %v1091_v9  ;;  %v966_v28 = vmul.f32 %v950_v43, %v6894_v42  ;;  %v952_v1 = vadd.f32 0.2402265, %v936_v10  ;;  %v1268_v58 = vsub.f32 2.0, %v1252_v37 }
 0x250   : > { %v913_v46 = vmul.f32 %v897_v4, %v7056_v51  ;;  %v981_v26 = vadd.f32 0.6931472, %v965_v34  ;;  %v967_v17 = vmul.f32 %v951_v52, %v6930_v45  ;;  %v937_v0 = vmul.f32 %v6990_v22, %v6965_v55 }
 0x251   : > { %v7080_v30 = vmul.f32 %v1107_v54, %v1091_v9  ;;  %v982_v32 = vadd.f32 0.6931472, %v966_v28  ;;  %v968_v7 = vmul.f32 %v952_v1, %v6924_v35  ;;  %v1284_v4 = vmul.f32 %v1268_v58, %v1236_v14 }
 0x252   : > { %v7083_v59 = vadd.f32 0.05550411, %v913_v46  ;;  %v997_v43 = vmul.f32 %v981_v26, %v6900_v49  ;;  %v983_v54 = vadd.f32 0.6931472, %v967_v17  ;;  %v953_v37 = vadd.f32 0.2402265, %v937_v0 }
 0x253   : > { %v7089_v25 = vadd.f32 2.0, %v7080_v30  ;;  %v998_v9 = vmul.f32 %v982_v32, %v6894_v42  ;;  %v984_v10 = vadd.f32 0.6931472, %v968_v7  ;;  %v938_v52 = vmul.f32 %v6980_v53, %v6960_v27 }
 0x254   : > { %v1300_v46 = vmul.f32 %v1284_v4, %v6972_v38  ;;  %v1013_v28 = vadd.f32 1.0, %v997_v43  ;;  %v999_v22 = vmul.f32 %v983_v54, %v6930_v45  ;;  %v969_v49 = vmul.f32 %v953_v37, %v6965_v55 }
 0x255   : > { %v1171_v34 = vsub.s32 2130706432, %v7089_v25  ;;  %v1014_v1 = vadd.f32 1.0, %v998_v9  ;;  %v1000_v14 = vmul.f32 %v984_v10, %v6924_v35  ;;  %v954_v58 = vadd.f32 0.2402265, %v938_v52 }
 0x256   : > { %v1316_v26 = vsub.f32 2.0, %v1300_v46  ;;  %v9029_v17 = vshll.u32 %v6912_v16, 23  ;;  %v1015_v53 = vadd.f32 1.0, %v999_v22  ;;  %v9030_v7 = vshll.u32 %v6908_v11, 23 }
 0x257   : > { %v1203_v42 = vmul.f32 %v1171_v34, %v7089_v25  ;;  %v1016_v38 = vadd.f32 1.0, %v1000_v14  ;;  %v985_v43 = vadd.f32 0.6931472, %v969_v49  ;;  %v970_v45 = vmul.f32 %v954_v58, %v6960_v27 }
 0x258   : > { %v1093_v32 = vmul.f32 %v9029_v17, %v1013_v28  ;;  %v1094_v0 = vmul.f32 %v9030_v7, %v1014_v1  ;;  %v1332_v9 = vmul.f32 %v1316_v26, %v1284_v4  ;;  %v9031_v10 = vshll.u32 %v6941_v19, 23 }
 0x259   : > { %v1219_v54 = vsub.f32 2.0, %v1203_v42  ;;  %v9032_v46 = vshll.u32 %v6939_v15, 23  ;;  %v1001_v16 = vmul.f32 %v985_v43, %v6965_v55  ;;  %v986_v28 = vadd.f32 0.6931472, %v970_v45 }
 0x25a   : > { %v1109_v35 = vadd.f32 2.0, %v1093_v32  ;;  %v1095_v37 = vmul.f32 %v9031_v10, %v1015_v53  ;;  %v1110_v52 = vadd.f32 2.0, %v1094_v0  ;;  %v7112_v11 = vmul.f32 %v1332_v9, %v6963_v41 }
 0x25b   : > { %v1096_v61 = vmul.f32 %v9032_v46, %v1016_v38  ;;  %v1235_v22 = vmul.f32 %v1219_v54, %v1171_v34  ;;  %v1017_v58 = vadd.f32 1.0, %v1001_v16  ;;  %v1002_v19 = vmul.f32 %v986_v28, %v6960_v27 }
 0x25c   : > { %v7114_v1 = vmul.f32 %v1109_v35, %v1093_v32  ;;  %v1111_v14 = vadd.f32 2.0, %v1095_v37  ;;  %v7116_v49 = vmul.f32 %v1110_v52, %v1094_v0  ;;  %v939_v41 = vmul.f32 %v7010_v6, %v6986_v63 }
 0x25d   : > { %v1112_v4 = vadd.f32 2.0, %v1096_v61  ;;  %v1251_v42 = vmul.f32 %v1235_v22, %v7089_v25  ;;  %v9033_v17 = vshll.u32 %v6978_v44, 23  ;;  %v1018_v53 = vadd.f32 1.0, %v1002_v19 }
 0x25e   : > { %v7121_v15 = vadd.f32 2.0, %v7114_v1  ;;  %v7123_v55 = vmul.f32 %v1111_v14, %v1095_v37  ;;  %v7128_v34 = vadd.f32 2.0, %v7116_v49  ;;  %v955_v38 = vadd.f32 0.2402265, %v939_v41 }
 0x25f   : > { %v7130_v26 = vmul.f32 %v1112_v4, %v1096_v61  ;;  %v1097_v32 = vmul.f32 %v9033_v17, %v1017_v58  ;;  %v1267_v27 = vsub.f32 2.0, %v1251_v42  ;;  %v9034_v61 = vshll.u32 %v6967_v21, 23 }
 0x260   : > { %v1173_v7 = vsub.s32 2130706432, %v7121_v15  ;;  %v7136_v0 = vadd.f32 2.0, %v7123_v55  ;;  %v1174_v43 = vsub.s32 2130706432, %v7128_v34  ;;  %v971_v10 = vmul.f32 %v955_v38, %v6986_v63 }
 0x261   : > { %v7140_v6 = vadd.f32 2.0, %v7130_v26  ;;  %v1113_v45 = vadd.f32 2.0, %v1097_v32  ;;  %v1098_v54 = vmul.f32 %v9034_v61, %v1018_v53  ;;  %v1283_v9 = vmul.f32 %v1267_v27, %v1235_v22 }
 0x262   : > { %v1205_v44 = vmul.f32 %v1173_v7, %v7121_v15  ;;  %v1175_v35 = vsub.s32 2130706432, %v7136_v0  ;;  %v1206_v37 = vmul.f32 %v1174_v43, %v7128_v34  ;;  %v987_v4 = vadd.f32 0.6931472, %v971_v10 }
 0x263   : > { %v1176_v52 = vsub.s32 2130706432, %v7140_v6  ;;  %v7149_v46 = vmul.f32 %v1113_v45, %v1097_v32  ;;  %v1114_v16 = vadd.f32 2.0, %v1098_v54  ;;  %v1299_v28 = vmul.f32 %v1283_v9, %v7089_v25 }
 0x264   : > { %v1221_v14 = vsub.f32 2.0, %v1205_v44  ;;  %v1207_v21 = vmul.f32 %v1175_v35, %v7136_v0  ;;  %v1222_v22 = vsub.f32 2.0, %v1206_v37  ;;  %v1003_v32 = vmul.f32 %v987_v4, %v6986_v63 }
 0x265   : > { %v1208_v58 = vmul.f32 %v1176_v52, %v7140_v6  ;;  %v7155_v19 = vadd.f32 2.0, %v7149_v46  ;;  %v7157_v42 = vmul.f32 %v1114_v16, %v1098_v54  ;;  %v1315_v41 = vsub.f32 2.0, %v1299_v28 }
 0x266   : > { %v1237_v17 = vmul.f32 %v1221_v14, %v1173_v7  ;;  %v1223_v53 = vsub.f32 2.0, %v1207_v21  ;;  %v1238_v27 = vmul.f32 %v1222_v22, %v1174_v43  ;;  %v1019_v37 = vadd.f32 1.0, %v1003_v32 }
 0x267   : > { %v1224_v38 = vsub.f32 2.0, %v1208_v58  ;;  %v1177_v25 = vsub.s32 2130706432, %v7155_v19  ;;  %v7162_v45 = vadd.f32 2.0, %v7157_v42  ;;  %v1331_v61 = vmul.f32 %v1315_v41, %v1283_v9 }
 0x268   : > { %v1253_v44 = vmul.f32 %v1237_v17, %v7121_v15  ;;  %v1239_v10 = vmul.f32 %v1223_v53, %v1175_v35  ;;  %v1254_v54 = vmul.f32 %v1238_v27, %v7128_v34  ;;  %v9035_v21 = vshll.u32 %v6999_v23, 23 }
 0x269   : > { %v1240_v16 = vmul.f32 %v1224_v38, %v1176_v52  ;;  %v1209_v7 = vmul.f32 %v1177_v25, %v7155_v19  ;;  %v1178_v28 = vsub.s32 2130706432, %v7162_v45  ;;  %v1347_v63 = vmul.f32 %v1331_v61, %v7080_v30 }
 0x26a   : > { %v1269_v43 = vsub.f32 2.0, %v1253_v44  ;;  %v1255_v14 = vmul.f32 %v1239_v10, %v7136_v0  ;;  %v1099_v4 = vmul.f32 %v9035_v21, %v1019_v37  ;;  %v1270_v9 = vsub.f32 2.0, %v1254_v54 }
 0x26b   : > { %v1256_v22 = vmul.f32 %v1240_v16, %v7140_v6  ;;  %v1225_v35 = vsub.f32 2.0, %v1209_v7  ;;  %v1210_v58 = vmul.f32 %v1178_v28, %v7162_v45  ;;  %5765 = vmatprep.mubr.f32.mxu0 %v1347_v63  ;;  %v940_v32 = vmul.f32 %v6995_v29, %v6969_v33 }
 0x26c   : > { %v1285_v52 = vmul.f32 %v1269_v43, %v1237_v17  ;;  %v1271_v41 = vsub.f32 2.0, %v1255_v14  ;;  %v1115_v53 = vadd.f32 2.0, %v1099_v4  ;;  %5766 = vmatmul.mubr.f32.vlgmr.msra.gmra.mrb[16].mxu0 %v7112_v11  ;;  %v1286_v30 = vmul.f32 %v1270_v9, %v1238_v27 }
 0x26d   : > { %v1272_v38 = vsub.f32 2.0, %v1256_v22  ;;  %v1241_v61 = vmul.f32 %v1225_v35, %v1177_v25  ;;  %v1226_v23 = vsub.f32 2.0, %v1210_v58  ;;  %v956_v7 = vadd.f32 0.2402265, %v940_v32 }
 0x26e   : > { %v1301_v44 = vmul.f32 %v1285_v52, %v7121_v15  ;;  %v1287_v37 = vmul.f32 %v1271_v41, %v1239_v10  ;;  %v7178_v54 = vmul.f32 %v1115_v53, %v1099_v4  ;;  %v1302_v63 = vmul.f32 %v1286_v30, %v7128_v34 }
 0x26f   : > { %v1288_v17 = vmul.f32 %v1272_v38, %v1240_v16  ;;  %v1257_v43 = vmul.f32 %v1241_v61, %v7155_v19  ;;  %v1242_v14 = vmul.f32 %v1226_v23, %v1178_v28  ;;  %v972_v27 = vmul.f32 %v956_v7, %v6969_v33 }
 0x270   : > { %v1317_v21 = vsub.f32 2.0, %v1301_v44  ;;  %v1303_v29 = vmul.f32 %v1287_v37, %v7136_v0  ;;  %v7184_v11 = vadd.f32 2.0, %v7178_v54  ;;  %v1318_v25 = vsub.f32 2.0, %v1302_v63 }
 0x271   : > { %v1304_v15 = vmul.f32 %v1288_v17, %v7140_v6  ;;  %v1273_v10 = vsub.f32 2.0, %v1257_v43  ;;  %v1258_v4 = vmul.f32 %v1242_v14, %v7162_v45  ;;  %v988_v22 = vadd.f32 0.6931472, %v972_v27 }
 0x272   : > { %v1333_v9 = vmul.f32 %v1317_v21, %v1285_v52  ;;  %v1319_v34 = vsub.f32 2.0, %v1303_v29  ;;  %v1179_v16 = vsub.s32 2130706432, %v7184_v11  ;;  %v1334_v28 = vmul.f32 %v1318_v25, %v1286_v30 }
 0x273   : > { %v1320_v35 = vsub.f32 2.0, %v1304_v15  ;;  %v1289_v58 = vmul.f32 %v1273_v10, %v1241_v61  ;;  %v1274_v0 = vsub.f32 2.0, %v1258_v4  ;;  %v1004_v38 = vmul.f32 %v988_v22, %v6969_v33 }
 0x274   : > { %v1349_v41 = vmul.f32 %v1333_v9, %v7114_v1  ;;  %v1335_v53 = vmul.f32 %v1319_v34, %v1287_v37  ;;  %v1211_v32 = vmul.f32 %v1179_v16, %v7184_v11  ;;  %v1350_v6 = vmul.f32 %v1334_v28, %v7116_v49 }
 0x275   : > { %v1336_v23 = vmul.f32 %v1320_v35, %v1288_v17  ;;  %v1305_v52 = vmul.f32 %v1289_v58, %v7155_v19  ;;  %v1290_v44 = vmul.f32 %v1274_v0, %v1242_v14  ;;  %v1020_v63 = vadd.f32 1.0, %v1004_v38 }
 0x276   : > { %5768 = vmatprep.mubr.f32.mxu0 %v1349_v41  ;;  %v1351_v7 = vmul.f32 %v1335_v53, %v7123_v55  ;;  %v1227_v30 = vsub.f32 2.0, %v1211_v32  ;;  %v941_v61 = vmul.f32 %v7029_v57, %v7008_v13  ;;  %v942_v49 = vmul.f32 %v7021_v2, %v7003_v20 }
 0x277   : > { %5769 = vmatmul.mubr.f32.gmra.mrb[18].mxu0 %v1350_v6  ;;  %v1352_v1 = vmul.f32 %v1336_v23, %v7130_v26  ;;  %v1321_v37 = vsub.f32 2.0, %v1305_v52  ;;  %v1306_v33 = vmul.f32 %v1290_v44, %v7162_v45  ;;  %v9036_v17 = vshll.u32 %v6982_v5, 23 }
 0x278   : > { %5771 = vmatprep.mubr.f32.mxu0 %v1351_v7  ;;  %v1243_v19 = vmul.f32 %v1227_v30, %v1179_v16  ;;  %v957_v55 = vadd.f32 0.2402265, %v941_v61  ;;  %v943_v14 = vmul.f32 %v7058_v60, %v7033_v31  ;;  %v958_v29 = vadd.f32 0.2402265, %v942_v49 }
 0x279   : > { %v1100_v43 = vmul.f32 %v9036_v17, %v1020_v63  ;;  %v1337_v21 = vmul.f32 %v1321_v37, %v1289_v58  ;;  %v1322_v57 = vsub.f32 2.0, %v1306_v33  ;;  %v944_v26 = vmul.f32 %v7049_v56, %v7027_v39 }
 0x27a   : > { %v1259_v45 = vmul.f32 %v1243_v19, %v7184_v11  ;;  %v973_v2 = vmul.f32 %v957_v55, %v7008_v13  ;;  %v959_v25 = vadd.f32 0.2402265, %v943_v14  ;;  %v974_v10 = vmul.f32 %v958_v29, %v7003_v20 }
 0x27b   : > { %v1116_v27 = vadd.f32 2.0, %v1100_v43  ;;  %5772 = vmatmul.mubr.f32.gmra.mrb[20].mxu0 %v1352_v1  ;;  %v1353_v5 = vmul.f32 %v1337_v21, %v7149_v46  ;;  %v1338_v15 = vmul.f32 %v1322_v57, %v1290_v44  ;;  %v960_v4 = vadd.f32 0.2402265, %v944_v26 }
 0x27c   : > { %v1275_v60 = vsub.f32 2.0, %v1259_v45  ;;  %v989_v34 = vadd.f32 0.6931472, %v973_v2  ;;  %v975_v16 = vmul.f32 %v959_v25, %v7033_v31  ;;  %v990_v22 = vadd.f32 0.6931472, %v974_v10 }
 0x27d   : > { %v7212_v9 = vmul.f32 %v1116_v27, %v1100_v43  ;;  %5774 = vmatprep.mubr.f32.mxu0 %v1353_v5  ;;  %v1354_v56 = vmul.f32 %v1338_v15, %v7157_v42  ;;  %v976_v28 = vmul.f32 %v960_v4, %v7027_v39  ;;  %v945_v35 = vmul.f32 %v7083_v59, %v7056_v51 }
 0x27e   : > { %v1291_v46 = vmul.f32 %v1275_v60, %v1243_v19  ;;  %v1005_v0 = vmul.f32 %v989_v34, %v7008_v13  ;;  %v991_v41 = vadd.f32 0.6931472, %v975_v16  ;;  %v1006_v53 = vmul.f32 %v990_v22, %v7003_v20 }
 0x27f   : > { %v1148_v58 = vadd.f32 2.0, %v7212_v9  ;;  %5775 = vmatmul.mubr.f32.gmra.mrb[22].mxu0 %v1354_v56  ;;  %v992_v32 = vadd.f32 0.6931472, %v976_v28  ;;  %v961_v38 = vadd.f32 0.2402265, %v945_v35  ;;  %v946_v42 = vmul.f32 %v7062_v36, %v7035_v62 }
 0x280   : > { %v1307_v6 = vmul.f32 %v1291_v46, %v7184_v11  ;;  %v1021_v52 = vadd.f32 1.0, %v1005_v0  ;;  %v1007_v59 = vmul.f32 %v991_v41, %v7033_v31  ;;  %v1022_v44 = vadd.f32 1.0, %v1006_v53 }
 0x281   : > { %v1180_v23 = vsub.s32 2130706432, %v1148_v58  ;;  %v1008_v7 = vmul.f32 %v992_v32, %v7027_v39  ;;  %v977_v13 = vmul.f32 %v961_v38, %v7056_v51  ;;  %v962_v30 = vadd.f32 0.2402265, %v946_v42 }
 0x282   : > { %v1323_v63 = vsub.f32 2.0, %v1307_v6  ;;  %v9037_v20 = vshll.u32 %v7019_v18, 23  ;;  %v1023_v37 = vadd.f32 1.0, %v1007_v59  ;;  %v9038_v36 = vshll.u32 %v7012_v24, 23 }
 0x283   : > { %v1212_v61 = vmul.f32 %v1180_v23, %v1148_v58  ;;  %v1024_v11 = vadd.f32 1.0, %v1008_v7  ;;  %v993_v49 = vadd.f32 0.6931472, %v977_v13  ;;  %v978_v19 = vmul.f32 %v962_v30, %v7035_v62 }
 0x284   : > { %v1101_v1 = vmul.f32 %v9037_v20, %v1021_v52  ;;  %v1102_v33 = vmul.f32 %v9038_v36, %v1022_v44  ;;  %v1339_v31 = vmul.f32 %v1323_v63, %v1291_v46  ;;  %v9039_v39 = vshll.u32 %v7044_v3, 23 }
 0x285   : > { %v1228_v17 = vsub.f32 2.0, %v1212_v61  ;;  %v9040_v21 = vshll.u32 %v7038_v40, 23  ;;  %v1009_v18 = vmul.f32 %v993_v49, %v7056_v51  ;;  %v994_v29 = vadd.f32 0.6931472, %v978_v19 }
 0x286   : > { %v1117_v43 = vadd.f32 2.0, %v1101_v1  ;;  %v1103_v55 = vmul.f32 %v9039_v39, %v1023_v37  ;;  %v1118_v14 = vadd.f32 2.0, %v1102_v33  ;;  %v1355_v24 = vmul.f32 %v1339_v31, %v7178_v54 }
 0x287   : > { %v1104_v57 = vmul.f32 %v9040_v21, %v1024_v11  ;;  %v1244_v26 = vmul.f32 %v1228_v17, %v1180_v23  ;;  %v1025_v5 = vadd.f32 1.0, %v1009_v18  ;;  %v1010_v3 = vmul.f32 %v994_v29, %v7035_v62 }
 0x288   : > { %v7239_v45 = vmul.f32 %v1117_v43, %v1101_v1  ;;  %v1119_v27 = vadd.f32 2.0, %v1103_v55  ;;  %v7241_v2 = vmul.f32 %v1118_v14, %v1102_v33  ;;  %5777 = vmatprep.mubr.f32.mxu0 %v1355_v24  ;;  %v9041_v54 = vshll.u32 %v7071_v8, 23 }
 0x289   : > { %v1120_v25 = vadd.f32 2.0, %v1104_v57  ;;  %v1260_v15 = vmul.f32 %v1244_v26, %v1148_v58  ;;  %v1026_v34 = vadd.f32 1.0, %v1010_v3  ;;  %v9042_v46 = vshll.u32 %v7046_v12, 23 }
 0x28a   : > { %v1149_v40 = vadd.f32 2.0, %v7239_v45  ;;  %v7245_v10 = vmul.f32 %v1119_v27, %v1103_v55  ;;  %v1150_v51 = vadd.f32 2.0, %v7241_v2  ;;  %v1105_v60 = vmul.f32 %v9041_v54, %v1025_v5 }
 0x28b   : > { %v7248_v4 = vmul.f32 %v1120_v25, %v1104_v57  ;;  %v1276_v16 = vsub.f32 2.0, %v1260_v15  ;;  %v1106_v0 = vmul.f32 %v9042_v46, %v1026_v34 }
 0x28c   : > { %v1181_v56 = vsub.s32 2130706432, %v1149_v40  ;;  %v1151_v22 = vadd.f32 2.0, %v7245_v10  ;;  %v1182_v28 = vsub.s32 2130706432, %v1150_v51  ;;  %v1121_v35 = vadd.f32 2.0, %v1105_v60 }
 0x28d   : > { %v1152_v62 = vadd.f32 2.0, %v7248_v4  ;;  %v1292_v41 = vmul.f32 %v1276_v16, %v1244_v26  ;;  %v1122_v8 = vadd.f32 2.0, %v1106_v0 }
 0x28e   : > { %v1213_v53 = vmul.f32 %v1181_v56, %v1149_v40  ;;  %v1183_v32 = vsub.s32 2130706432, %v1151_v22  ;;  %v1214_v38 = vmul.f32 %v1182_v28, %v1150_v51  ;;  %v7256_v6 = vmul.f32 %v1121_v35, %v1105_v60 }
 0x28f   : > { %v1184_v42 = vsub.s32 2130706432, %v1152_v62  ;;  %v1308_v23 = vmul.f32 %v1292_v41, %v1148_v58  ;;  %v7259_v30 = vmul.f32 %v1122_v8, %v1106_v0 }
 0x290   : > { %v1229_v52 = vsub.f32 2.0, %v1213_v53  ;;  %v1215_v59 = vmul.f32 %v1183_v32, %v1151_v22  ;;  %v1230_v44 = vsub.f32 2.0, %v1214_v38  ;;  %v1153_v13 = vadd.f32 2.0, %v7256_v6 }
 0x291   : > { %v1216_v7 = vmul.f32 %v1184_v42, %v1152_v62  ;;  %v1324_v63 = vsub.f32 2.0, %v1308_v23  ;;  %v1154_v36 = vadd.f32 2.0, %v7259_v30 }
 0x292   : > { %v1245_v12 = vmul.f32 %v1229_v52, %v1181_v56  ;;  %v1231_v61 = vsub.f32 2.0, %v1215_v59  ;;  %v1246_v20 = vmul.f32 %v1230_v44, %v1182_v28  ;;  %v1185_v37 = vsub.s32 2130706432, %v1153_v13 }
 0x293   : > { %v1232_v1 = vsub.f32 2.0, %v1216_v7  ;;  %v1340_v33 = vmul.f32 %v1324_v63, %v1292_v41  ;;  %v1186_v17 = vsub.s32 2130706432, %v1154_v36 }
 0x294   : > { %v1261_v11 = vmul.f32 %v1245_v12, %v1149_v40  ;;  %v1247_v49 = vmul.f32 %v1231_v61, %v1183_v32  ;;  %v1262_v58 = vmul.f32 %v1246_v20, %v1150_v51  ;;  %v1217_v31 = vmul.f32 %v1185_v37, %v1153_v13 }
 0x295   : > { %v1248_v19 = vmul.f32 %v1232_v1, %v1184_v42  ;;  %v1356_v43 = vmul.f32 %v1340_v33, %v7212_v9  ;;  %v1218_v18 = vmul.f32 %v1186_v17, %v1154_v36  ;;  %v2141_v1 = vld [vmem:[#allocation3 + $0x88] sm:$0xff] }
 0x296   : > { %v1277_v39 = vsub.f32 2.0, %v1261_v11  ;;  %v1263_v55 = vmul.f32 %v1247_v49, %v1151_v22  ;;  %v1278_v14 = vsub.f32 2.0, %v1262_v58  ;;  %v1233_v57 = vsub.f32 2.0, %v1217_v31  ;;  %v2145_v11 = vld [vmem:[#allocation3 + $0xa8] sm:$0xff]  ;;  %v2147_v58 = vld [vmem:[#allocation3 + $0xb8] sm:$0xff] }
 0x297   : > { %v1264_v21 = vmul.f32 %v1248_v19, %v1152_v62  ;;  %5778 = vmatmul.mubr.f32.gmra.mrb[24].mxu0 %v1356_v43  ;;  %v1234_v5 = vsub.f32 2.0, %v1218_v18  ;;  %v2149_v31 = vld [vmem:[#allocation3 + $0xc8] sm:$0xff]  ;;  %v2154_v18 = vld [vmem:[#allocation3 + $0xf0] sm:$0xff] }
 0x298   : > { %v1293_v29 = vmul.f32 %v1277_v39, %v1245_v12  ;;  %v1279_v24 = vsub.f32 2.0, %v1263_v55  ;;  %v1294_v26 = vmul.f32 %v1278_v14, %v1246_v20  ;;  %v1249_v25 = vmul.f32 %v1233_v57, %v1185_v37  ;;  %v2151_v39 = vld [vmem:[#allocation3 + $0xd8] sm:$0xff]  ;;  %v2152_v14 = vld [vmem:[#allocation3 + $0xe0] sm:$0xff] }
 0x299   : > { %v1280_v27 = vsub.f32 2.0, %v1264_v21  ;;  %v1250_v16 = vmul.f32 %v1234_v5, %v1186_v17  ;;  %v2150_v17 = vld [vmem:[#allocation3 + $0xd0] sm:$0xff]  ;;  %v2153_v21 = vld [vmem:[#allocation3 + $0xe8] sm:$0xff] }
 0x29a   : > { %v1309_v3 = vmul.f32 %v1293_v29, %v1149_v40  ;;  %v1295_v15 = vmul.f32 %v1279_v24, %v1247_v49  ;;  %v1310_v54 = vmul.f32 %v1294_v26, %v1150_v51  ;;  %v1265_v34 = vmul.f32 %v1249_v25, %v1153_v13 }
 0x29b   : > { %v1296_v60 = vmul.f32 %v1280_v27, %v1248_v19  ;;  %v1266_v0 = vmul.f32 %v1250_v16, %v1154_v36  ;;  %v6101_v55 = vpack.c.bf16 %v2151_v39, %v2150_v17  ;;  %v6105_v57 = vpack.c.bf16 %v2153_v21, %v2152_v14 }
 0x29c   : > { %v1325_v9 = vsub.f32 2.0, %v1309_v3  ;;  %v1311_v56 = vmul.f32 %v1295_v15, %v1151_v22  ;;  %v1326_v28 = vsub.f32 2.0, %v1310_v54  ;;  %v1281_v46 = vsub.f32 2.0, %v1265_v34 }
 0x29d   : > { %v1312_v35 = vmul.f32 %v1296_v60, %v1152_v62  ;;  %v1282_v8 = vsub.f32 2.0, %v1266_v0 }
 0x29e   : > { %v1341_v41 = vmul.f32 %v1325_v9, %v1293_v29  ;;  %v1327_v53 = vsub.f32 2.0, %v1311_v56  ;;  %v1342_v32 = vmul.f32 %v1326_v28, %v1294_v26  ;;  %v1297_v42 = vmul.f32 %v1281_v46, %v1249_v25  ;;  %v2155_v29 = vld [vmem:[#allocation3 + $0xf8] sm:$0xff] }
 0x29f   : > { %v1328_v38 = vsub.f32 2.0, %v1312_v35  ;;  %v1298_v44 = vmul.f32 %v1282_v8, %v1250_v16  ;;  %v6109_v24 = vpack.c.bf16 %v2155_v29, %v2154_v18  ;;  %v7272_v26 = vld [vmem:[%s8980_s6] ss:$0 sm:$0xff]  ;;  %v9043_v8 = vld [vmem:[#allocation14_spill] sm:$0xff] }
 0x2a0   : > { %v1357_v23 = vmul.f32 %v1341_v41, %v7239_v45  ;;  %v1343_v40 = vmul.f32 %v1327_v53, %v1295_v15  ;;  %v1358_v51 = vmul.f32 %v1342_v32, %v7241_v2  ;;  %v1313_v59 = vmul.f32 %v1297_v42, %v1153_v13  ;;  %v2140_v13 = vld [vmem:[#allocation3 + $0x80] sm:$0xff] }
 0x2a1   : > { %v1344_v52 = vmul.f32 %v1328_v38, %v1296_v60  ;;  %v1314_v7 = vmul.f32 %v1298_v44, %v1154_v36  ;;  %v6081_v37 = vpack.c.bf16 %v2141_v1, %v2140_v13  ;;  %v2143_v36 = vld [vmem:[#allocation3 + $0x98] sm:$0xff] }
 0x2a2   : > { %5780 = vmatprep.mubr.f32.mxu0 %v1357_v23  ;;  %v1359_v22 = vmul.f32 %v1343_v40, %v7245_v10  ;;  %v1329_v62 = vsub.f32 2.0, %v1313_v59  ;;  %v2142_v10 = vld [vmem:[#allocation3 + $0x90] sm:$0xff]  ;;  %v9046_v29 = vld [vmem:[#allocation17_spill] sm:$0xff] }
 0x2a3   : > { %5781 = vmatmul.mubr.f32.gmra.mrb[26].mxu0 %v1358_v51  ;;  %v1360_v63 = vmul.f32 %v1344_v52, %v7248_v4  ;;  %v1330_v61 = vsub.f32 2.0, %v1314_v7  ;;  %6082 = vmatprep.subr.bf16.mxu1 %v6081_v37  ;;  %v6085_v33 = vpack.c.bf16 %v2143_v36, %v2142_v10  ;;  %v2144_v4 = vld [vmem:[#allocation3 + $0xa0] sm:$0xff] }
 0x2a4   : > { %5783 = vmatprep.mubr.f32.mxu0 %v1359_v22  ;;  %v1345_v12 = vmul.f32 %v1329_v62, %v1297_v42  ;;  %6084 = vmatpush3.bf16.msra.mxu1 %v6081_v37  ;;  %v6089_v49 = vpack.c.bf16 %v2145_v11, %v2144_v4 }
 0x2a5   : > { %v1346_v20 = vmul.f32 %v1330_v61, %v1298_v44  ;;  %6086 = vmatprep.subr.bf16.mxu1 %v6085_v33 }
 0x2a6   : > { %v1361_v45 = vmul.f32 %v1345_v12, %v7256_v6  ;;  %v2146_v6 = vld [vmem:[#allocation3 + $0xb0] sm:$0xff] }
 0x2a7   : > { %5784 = vmatmul.mubr.f32.gmra.mrb[28].mxu0 %v1360_v63  ;;  %v1362_v2 = vmul.f32 %v1346_v20, %v7259_v30  ;;  %v6093_v19 = vpack.c.bf16 %v2147_v58, %v2146_v6  ;;  %v2148_v30 = vld [vmem:[#allocation3 + $0xc0] sm:$0xff]  ;;  %v9044_v12 = vld [vmem:[#allocation15_spill] sm:$0xff] }
 0x2a8   : > { %5786 = vmatprep.mubr.f32.mxu0 %v1361_v45  ;;  %6088 = vmatpush3.bf16.msra.mxu1 %v6085_v33  ;;  %v6097_v43 = vpack.c.bf16 %v2149_v31, %v2148_v30 }
 0x2a9   : > { %6090 = vmatprep.subr.bf16.mxu1 %v6089_v49 }
 0x2ab   : > { %5787 = vmatmul.mubr.f32.gmra.mrb[30].mxu0 %v1362_v2  ;;  %v9045_v2 = vld [vmem:[#allocation16_spill] sm:$0xff] }
 0x2ac   : > { %6092 = vmatpush3.bf16.msra.mxu1 %v6089_v49 }
 0x2ad   : > { %6094 = vmatprep.subr.bf16.mxu1 %v6093_v19 }
 0x2b0   : > { %6096 = vmatpush3.bf16.msra.mxu1 %v6093_v19 }
 0x2b1   : > { %6098 = vmatprep.subr.bf16.mxu1 %v6097_v43 }
 0x2b4   : > { %6100 = vmatpush3.bf16.msra.mxu1 %v6097_v43 }
 0x2b5   : > { %6102 = vmatprep.subr.bf16.mxu1 %v6101_v55 }
 0x2b8   : > { %6104 = vmatpush3.bf16.msra.mxu1 %v6101_v55 }
 0x2b9   : > { %6106 = vmatprep.subr.bf16.mxu1 %v6105_v57 }
 0x2bc   : > { %6108 = vmatpush3.bf16.msra.mxu1 %v6105_v57 }
 0x2bd   : > { %6110 = vmatprep.subr.bf16.mxu1 %v6109_v24 }
 0x2c0   : > { %6112 = vmatpush3.bf16.msra.mxu1 %v6109_v24 }
 0x33f   : > { %v5767_v27 = vpop.f32.mrb[16].mxu0 }
 0x340   : > { %v1458_v25 = vadd.f32 %v5767_v27, %v7272_v26  ;;  %v1452_v5 = vpop.f32.mrb[17].mxu0 }
 0x341   : > { %v1453_v3 = vadd.f32 %v7272_v26, %v1452_v5 }
 0x342   : > { %v1532_v15 = vadd.f32 %v1458_v25, %v6829_v48 }
 0x343   : > { %v1531_v54 = vadd.f32 %v1453_v3, %v6827_v47 }
 0x344   : > { %v1548_v60 = vmax.f32 %v1532_v15, -30.0 }
 0x345   : > { %v1547_v34 = vmax.f32 %v1531_v54, -30.0 }
 0x346   : > { %v1564_v16 = vmin.f32 %v1548_v60, 20.0 }
 0x347   : > { %v1563_v9 = vmin.f32 %v1547_v34, 20.0 }
 0x348   : > { %v1580_v56 = vmul.f32 1.442695, %v1564_v16 }
 0x349   : > { %v1579_v28 = vmul.f32 1.442695, %v1563_v9 }
 0x34a   : > { %v5770_v35 = vpop.f32.mrb[18].mxu0  ;;  %v1596_v46 = vadd.f32 0.5, %v1580_v56 }
 0x34b   : > { %v1468_v0 = vadd.f32 %v5770_v35, %v7272_v26  ;;  %v1462_v41 = vpop.f32.mrb[19].mxu0  ;;  %v1595_v53 = vadd.f32 0.5, %v1579_v28 }
 0x34c   : > { %v1463_v32 = vadd.f32 %v7272_v26, %v1462_v41  ;;  %v1612_v38 = vfloor.f32 %v1596_v46  ;;  %v9047_v41 = vld [vmem:[#allocation18_spill] sm:$0xff] }
 0x34d   : > { %v1534_v42 = vadd.f32 %v1468_v0, %v6832_v50  ;;  %v1611_v48 = vfloor.f32 %v1595_v53 }
 0x34e   : > { %v1533_v47 = vadd.f32 %v1463_v32, %v9043_v8  ;;  %v5773_v23 = vpop.f32.mrb[20].mxu0  ;;  %v7282_v40 = vsub.f32 %v1580_v56, %v1612_v38  ;;  %v6243_v61 = vtrunc.f32 %v1612_v38 }
 0x34f   : > { %v1550_v51 = vmax.f32 %v1534_v42, -30.0  ;;  %v1478_v52 = vadd.f32 %v5773_v23, %v7272_v26  ;;  %v1472_v59 = vpop.f32.mrb[21].mxu0  ;;  %v7285_v44 = vsub.f32 %v1579_v28, %v1611_v48  ;;  %v6241_v49 = vtrunc.f32 %v1611_v48 }
 0x350   : > { %v1549_v22 = vmax.f32 %v1533_v47, -30.0  ;;  %v1473_v62 = vadd.f32 %v7272_v26, %v1472_v59  ;;  %v1644_v7 = vmul.f32 0.0013333558, %v7282_v40  ;;  %v6244_v30 = vcvt.f32.s32 %v6243_v61 }
 0x351   : > { %v1566_v63 = vmin.f32 %v1550_v51, 20.0  ;;  %v1536_v50 = vadd.f32 %v1478_v52, %v9044_v12  ;;  %v1643_v45 = vmul.f32 0.0013333558, %v7285_v44  ;;  %v6242_v5 = vcvt.f32.s32 %v6241_v49 }
 0x352   : > { %v1565_v20 = vmin.f32 %v1549_v22, 20.0  ;;  %v1535_v13 = vadd.f32 %v1473_v62, %v9045_v2  ;;  %v5776_v1 = vpop.f32.mrb[22].mxu0  ;;  %v1660_v37 = vadd.f32 0.009618129, %v1644_v7  ;;  %v1820_v48 = vadd.s32 127, %v6244_v30 }
 0x353   : > { %v1582_v10 = vmul.f32 1.442695, %v1566_v63  ;;  %v1552_v36 = vmax.f32 %v1536_v50, -30.0  ;;  %v1482_v19 = vpop.f32.mrb[23].mxu0  ;;  %v1488_v43 = vadd.f32 %v5776_v1, %v7272_v26  ;;  %v1659_v55 = vadd.f32 0.009618129, %v1643_v45 }
 0x354   : > { %v1581_v33 = vmul.f32 1.442695, %v1565_v20  ;;  %v1551_v4 = vmax.f32 %v1535_v13, -30.0  ;;  %v1676_v11 = vmul.f32 %v1660_v37, %v7282_v40  ;;  %v1483_v27 = vadd.f32 %v7272_v26, %v1482_v19 }
 0x355   : > { %v1598_v6 = vadd.f32 0.5, %v1582_v10  ;;  %v1568_v58 = vmin.f32 %v1552_v36, 20.0  ;;  %v1538_v24 = vadd.f32 %v1488_v43, %v9046_v29  ;;  %v1675_v28 = vmul.f32 %v1659_v55, %v7285_v44 }
 0x356   : > { %v1597_v31 = vadd.f32 0.5, %v1581_v33  ;;  %v1567_v17 = vmin.f32 %v1551_v4, 20.0  ;;  %v1692_v39 = vadd.f32 0.05550411, %v1676_v11  ;;  %v1537_v53 = vadd.f32 %v1483_v27, %v9047_v41 }
 0x357   : > { %v1614_v14 = vfloor.f32 %v1598_v6  ;;  %v1584_v21 = vmul.f32 1.442695, %v1568_v58  ;;  %v1554_v16 = vmax.f32 %v1538_v24, -30.0  ;;  %v7306_v8 = vadd.s32 127, %v6242_v5 }
 0x358   : > { %v1613_v57 = vfloor.f32 %v1597_v31  ;;  %v1583_v18 = vmul.f32 1.442695, %v1567_v17  ;;  %v1708_v25 = vmul.f32 %v1692_v39, %v7282_v40  ;;  %v1553_v7 = vmax.f32 %v1537_v53, -30.0 }
 0x359   : > { %v7297_v3 = vsub.f32 %v1582_v10, %v1614_v14  ;;  %v1600_v15 = vadd.f32 0.5, %v1584_v21  ;;  %v6247_v54 = vtrunc.f32 %v1614_v14  ;;  %v1570_v0 = vmin.f32 %v1554_v16, 20.0 }
 0x35a   : > { %v7299_v60 = vsub.f32 %v1581_v33, %v1613_v57  ;;  %v1599_v34 = vadd.f32 0.5, %v1583_v18  ;;  %v1724_v9 = vadd.f32 0.2402265, %v1708_v25  ;;  %v6245_v42 = vtrunc.f32 %v1613_v57 }
 0x35b   : > { %v1616_v56 = vfloor.f32 %v1600_v15  ;;  %v1646_v38 = vmul.f32 0.0013333558, %v7297_v3  ;;  %v6248_v47 = vcvt.f32.s32 %v6247_v54  ;;  %v1586_v59 = vmul.f32 1.442695, %v1570_v0 }
 0x35c   : > { %v1645_v35 = vmul.f32 0.0013333558, %v7299_v60  ;;  %v1615_v46 = vfloor.f32 %v1599_v34  ;;  %v1740_v32 = vmul.f32 %v1724_v9, %v7282_v40  ;;  %v1691_v63 = vadd.f32 0.05550411, %v1675_v28 }
 0x35d   : > { %v7308_v51 = vsub.f32 %v1584_v21, %v1616_v56  ;;  %v6251_v52 = vtrunc.f32 %v1616_v56  ;;  %v1662_v50 = vadd.f32 0.009618129, %v1646_v38  ;;  %v6246_v61 = vcvt.f32.s32 %v6245_v42  ;;  %v9048_v38 = vld [vmem:[#allocation19_spill] sm:$0xff] }
 0x35e   : > { %v1756_v23 = vadd.f32 0.6931472, %v1740_v32  ;;  %v1661_v22 = vadd.f32 0.009618129, %v1645_v35  ;;  %v7310_v62 = vsub.f32 %v1583_v18, %v1615_v46  ;;  %v6249_v45 = vtrunc.f32 %v1615_v46 }
 0x35f   : > { %v1836_v20 = vshll.u32 %v1820_v48, 23  ;;  %v1602_v2 = vadd.f32 0.5, %v1586_v59  ;;  %v1569_v13 = vmin.f32 %v1553_v7, 20.0  ;;  %v1707_v1 = vmul.f32 %v1691_v63, %v7285_v44 }
 0x360   : > { %v1772_v12 = vmul.f32 %v1756_v23, %v7282_v40  ;;  %v7314_v10 = vadd.s32 127, %v6248_v47  ;;  %v1648_v36 = vmul.f32 0.0013333558, %v7308_v51  ;;  %v6252_v33 = vcvt.f32.s32 %v6251_v52  ;;  %v9049_v47 = vld [vmem:[#allocation20_spill] sm:$0xff] }
 0x361   : > { %v1647_v4 = vmul.f32 0.0013333558, %v7310_v62  ;;  %v1585_v11 = vmul.f32 1.442695, %v1569_v13  ;;  %v1723_v49 = vadd.f32 0.2402265, %v1707_v1  ;;  %v1677_v40 = vmul.f32 %v1661_v22, %v7299_v60 }
 0x362   : > { %v1788_v37 = vadd.f32 1.0, %v1772_v12  ;;  %v7319_v58 = vadd.s32 127, %v6246_v61  ;;  %v6250_v19 = vcvt.f32.s32 %v6249_v45  ;;  %v1678_v30 = vmul.f32 %v1662_v50, %v7297_v3 }
 0x363   : > { %v1618_v31 = vfloor.f32 %v1602_v2  ;;  %v1601_v17 = vadd.f32 0.5, %v1585_v11  ;;  %v1739_v43 = vmul.f32 %v1723_v49, %v7285_v44  ;;  %v1693_v39 = vadd.f32 0.05550411, %v1677_v40 }
 0x364   : > { %v1868_v6 = vmul.f32 %v1836_v20, %v1788_v37  ;;  %v7323_v14 = vadd.f32 0.009618129, %v1648_v36  ;;  %v7325_v21 = vadd.s32 127, %v6252_v33  ;;  %v1694_v57 = vadd.f32 0.05550411, %v1678_v30 }
 0x365   : > { %v1663_v18 = vadd.f32 0.009618129, %v1647_v4  ;;  %v1617_v29 = vfloor.f32 %v1601_v17  ;;  %v1755_v24 = vadd.f32 0.6931472, %v1739_v43  ;;  %v1709_v27 = vmul.f32 %v1693_v39, %v7299_v60 }
 0x366   : > { %v1884_v55 = vadd.f32 2.0, %v1868_v6  ;;  %v7328_v25 = vadd.s32 127, %v6250_v19  ;;  %v1835_v15 = vshll.u32 %v7306_v8, 23  ;;  %v1710_v34 = vmul.f32 %v1694_v57, %v7297_v3 }
 0x367   : > { %v7334_v16 = vsub.f32 %v1586_v59, %v1618_v31  ;;  %v6255_v9 = vtrunc.f32 %v1618_v31  ;;  %v1771_v35 = vmul.f32 %v1755_v24, %v7285_v44  ;;  %v1725_v41 = vadd.f32 0.2402265, %v1709_v27 }
 0x368   : > { %v7331_v54 = vmul.f32 %v1884_v55, %v1868_v6  ;;  %v1726_v53 = vadd.f32 0.2402265, %v1710_v34  ;;  %v7342_v32 = vsub.f32 %v1585_v11, %v1617_v29  ;;  %v1679_v8 = vmul.f32 %v1663_v18, %v7310_v62 }
 0x369   : > { %v1787_v48 = vadd.f32 1.0, %v1771_v35  ;;  %v1741_v44 = vmul.f32 %v1725_v41, %v7299_v60  ;;  %v1650_v22 = vmul.f32 0.0013333558, %v7334_v16  ;;  %v6253_v7 = vtrunc.f32 %v1617_v29  ;;  %v9051_v41 = vld [vmem:[#allocation22_spill] sm:$0xff] }
 0x36a   : > { %v5779_v5 = vpop.f32.mrb[24].mxu0  ;;  %v7340_v0 = vadd.f32 2.0, %v7331_v54  ;;  %v1742_v59 = vmul.f32 %v1726_v53, %v7297_v3  ;;  %v1837_v1 = vshll.u32 %v7319_v58, 23  ;;  %v1695_v37 = vadd.f32 0.05550411, %v1679_v8 }
 0x36b   : > { %v1498_v56 = vadd.f32 %v5779_v5, %v7272_v26  ;;  %v1492_v28 = vpop.f32.mrb[25].mxu0  ;;  %v1867_v12 = vmul.f32 %v1835_v15, %v1787_v48  ;;  %v1757_v45 = vadd.f32 0.6931472, %v1741_v44  ;;  %v6256_v36 = vcvt.f32.s32 %v6255_v9 }
 0x36c   : > { %v1493_v46 = vadd.f32 %v7272_v26, %v1492_v28  ;;  %v1948_v52 = vsub.s32 2130706432, %v7340_v0  ;;  %v1758_v20 = vadd.f32 0.6931472, %v1742_v59  ;;  %v1649_v33 = vmul.f32 0.0013333558, %v7342_v32 }
 0x36d   : > { %v1540_v42 = vadd.f32 %v1498_v56, %v9048_v38  ;;  %v1883_v13 = vadd.f32 2.0, %v1867_v12  ;;  %v6254_v49 = vcvt.f32.s32 %v6253_v7  ;;  %v1773_v19 = vmul.f32 %v1757_v45, %v7299_v60  ;;  %v9050_v56 = vld [vmem:[#allocation21_spill] sm:$0xff]  ;;  %v9052_v45 = vld [vmem:[#allocation23_spill] sm:$0xff] }
 0x36e   : > { %v1539_v23 = vadd.f32 %v1493_v46, %v9049_v47  ;;  %v1980_v61 = vmul.f32 %v1948_v52, %v7340_v0  ;;  %v7357_v30 = vadd.f32 0.009618129, %v1650_v22  ;;  %v1774_v17 = vmul.f32 %v1758_v20, %v7297_v3 }
 0x36f   : > { %v1556_v63 = vmax.f32 %v1540_v42, -30.0  ;;  %v7354_v6 = vmul.f32 %v1883_v13, %v1867_v12  ;;  %v1838_v43 = vshll.u32 %v7314_v10, 23  ;;  %v1711_v18 = vmul.f32 %v1695_v37, %v7310_v62  ;;  %v9053_v37 = vld [vmem:[#allocation24_spill] sm:$0xff] }
 0x370   : > { %v1555_v50 = vmax.f32 %v1539_v23, -30.0  ;;  %v1996_v11 = vsub.f32 2.0, %v1980_v61  ;;  %v7365_v29 = vadd.s32 127, %v6256_v36  ;;  %v7367_v24 = vadd.f32 0.009618129, %v1649_v33 }
 0x371   : > { %v1572_v2 = vmin.f32 %v1556_v63, 20.0  ;;  %v7362_v55 = vadd.f32 2.0, %v7354_v6  ;;  %v7370_v15 = vadd.s32 127, %v6254_v49  ;;  %v1789_v34 = vadd.f32 1.0, %v1773_v19 }
 0x372   : > { %v1571_v4 = vmin.f32 %v1555_v50, 20.0  ;;  %v2012_v57 = vmul.f32 %v1996_v11, %v1948_v52  ;;  %v1790_v35 = vadd.f32 1.0, %v1774_v17  ;;  %v1839_v46 = vshll.u32 %v7328_v25, 23 }
 0x373   : > { %v1588_v40 = vmul.f32 1.442695, %v1572_v2  ;;  %v1947_v10 = vsub.s32 2130706432, %v7362_v55  ;;  %v7378_v48 = vadd.f32 0.2402265, %v1711_v18  ;;  %v7382_v8 = vmul.f32 %v7323_v14, %v7308_v51 }
 0x374   : > { %v1587_v31 = vmul.f32 1.442695, %v1571_v4  ;;  %v2028_v42 = vmul.f32 %v2012_v57, %v7340_v0  ;;  %v1840_v59 = vshll.u32 %v7325_v21, 23  ;;  %v7388_v12 = vmul.f32 %v1837_v1, %v1789_v34 }
 0x375   : > { %v1604_v58 = vadd.f32 0.5, %v1588_v40  ;;  %v1979_v63 = vmul.f32 %v1947_v10, %v7362_v55  ;;  %v7393_v20 = vmul.f32 %v1838_v43, %v1790_v35 }
 0x376   : > { %v5782_v39 = vpop.f32.mrb[26].mxu0  ;;  %v1603_v60 = vadd.f32 0.5, %v1587_v31  ;;  %v2044_v4 = vsub.f32 2.0, %v2028_v42 }
 0x377   : > { %v1508_v27 = vadd.f32 %v5782_v39, %v7272_v26  ;;  %v1502_v5 = vpop.f32.mrb[27].mxu0  ;;  %v1620_v9 = vfloor.f32 %v1604_v58  ;;  %v1995_v18 = vsub.f32 2.0, %v1979_v63 }
 0x378   : > { %v1503_v3 = vadd.f32 %v7272_v26, %v1502_v5  ;;  %v1619_v47 = vfloor.f32 %v1603_v60 }
 0x379   : > { %v1542_v28 = vadd.f32 %v1508_v27, %v9050_v56  ;;  %v7390_v50 = vsub.f32 %v1588_v40, %v1620_v9  ;;  %v6259_v2 = vtrunc.f32 %v1620_v9  ;;  %v9054_v9 = vld [vmem:[#allocation25_spill] sm:$0xff]  ;;  %v2060_v56 = vmul.f32 %v2044_v4, %v2012_v57 }
 0x37a   : > { %v1541_v53 = vadd.f32 %v1503_v3, %v9051_v41  ;;  %v5785_v38 = vpop.f32.mrb[28].mxu0  ;;  %v7396_v11 = vsub.f32 %v1587_v31, %v1619_v47  ;;  %v6257_v49 = vtrunc.f32 %v1619_v47  ;;  %v9055_v41 = vld [vmem:[#allocation26_spill] sm:$0xff] }
 0x37b   : > { %v1558_v23 = vmax.f32 %v1542_v28, -30.0  ;;  %v1518_v52 = vadd.f32 %v5785_v38, %v7272_v26  ;;  %v1512_v44 = vpop.f32.mrb[29].mxu0  ;;  %v1652_v43 = vmul.f32 0.0013333558, %v7390_v50  ;;  %v2011_v38 = vmul.f32 %v1995_v18, %v1947_v10 }
 0x37c   : > { %v1557_v22 = vmax.f32 %v1541_v53, -30.0  ;;  %v1513_v7 = vadd.f32 %v7272_v26, %v1512_v44  ;;  %v6260_v42 = vcvt.f32.s32 %v6259_v2  ;;  %v1651_v44 = vmul.f32 0.0013333558, %v7396_v11 }
 0x37d   : > { %v1574_v61 = vmin.f32 %v1558_v23, 20.0  ;;  %v1544_v14 = vadd.f32 %v1518_v52, %v9052_v45  ;;  %v6258_v63 = vcvt.f32.s32 %v6257_v49  ;;  %v2076_v10 = vmul.f32 %v2060_v56, %v7340_v0 }
 0x37e   : > { %v1573_v13 = vmin.f32 %v1557_v22, 20.0  ;;  %v1543_v36 = vadd.f32 %v1513_v7, %v9053_v37  ;;  %v5788_v33 = vpop.f32.mrb[30].mxu0  ;;  %v2027_v37 = vmul.f32 %v2011_v38, %v7362_v55  ;;  %v1885_v49 = vadd.f32 2.0, %v7388_v12 }
 0x37f   : > { %v1590_v19 = vmul.f32 1.442695, %v1574_v61  ;;  %v1560_v17 = vmax.f32 %v1544_v14, -30.0  ;;  %v1528_v40 = vadd.f32 %v5788_v33, %v7272_v26  ;;  %v1522_v39 = vpop.f32.mrb[31].mxu0  ;;  %v7422_v0 = vadd.s32 127, %v6258_v63 }
 0x380   : > { %v1589_v1 = vmul.f32 1.442695, %v1573_v13  ;;  %v1559_v58 = vmax.f32 %v1543_v36, -30.0  ;;  %v1523_v5 = vadd.f32 %v7272_v26, %v1522_v39  ;;  %v7418_v39 = vadd.f32 0.009618129, %v1651_v44 }
 0x381   : > { %v1606_v60 = vadd.f32 0.5, %v1590_v19  ;;  %v1576_v27 = vmin.f32 %v1560_v17, 20.0  ;;  %v1546_v31 = vadd.f32 %v1528_v40, %v9054_v9  ;;  %v7410_v17 = vadd.f32 0.009618129, %v1652_v43 }
 0x382   : > { %v1605_v3 = vadd.f32 0.5, %v1589_v1  ;;  %v1575_v34 = vmin.f32 %v1559_v58, 20.0  ;;  %v1545_v53 = vadd.f32 %v1523_v5, %v9055_v41  ;;  %v7416_v40 = vadd.s32 127, %v6260_v42 }
 0x383   : > { %v1622_v28 = vfloor.f32 %v1606_v60  ;;  %v1592_v35 = vmul.f32 1.442695, %v1576_v27  ;;  %v1562_v52 = vmax.f32 %v1546_v31, -30.0  ;;  %v2092_v9 = vsub.f32 2.0, %v2076_v10 }
 0x384   : > { %v1621_v47 = vfloor.f32 %v1605_v3  ;;  %v1591_v23 = vmul.f32 1.442695, %v1575_v34  ;;  %v1561_v26 = vmax.f32 %v1545_v53, -30.0  ;;  %v2043_v34 = vsub.f32 2.0, %v2027_v37 }
 0x385   : > { %v7404_v22 = vsub.f32 %v1590_v19, %v1622_v28  ;;  %v1608_v7 = vadd.f32 0.5, %v1592_v35  ;;  %v6263_v61 = vtrunc.f32 %v1622_v28  ;;  %v1578_v14 = vmin.f32 %v1562_v52, 20.0 }
 0x386   : > { %v1607_v45 = vadd.f32 0.5, %v1591_v23  ;;  %v1577_v13 = vmin.f32 %v1561_v26, 20.0  ;;  %v7408_v2 = vsub.f32 %v1589_v1, %v1621_v47  ;;  %v6261_v36 = vtrunc.f32 %v1621_v47 }
 0x387   : > { %v1624_v57 = vfloor.f32 %v1608_v7  ;;  %v1594_v4 = vmul.f32 1.442695, %v1578_v14  ;;  %v1654_v19 = vmul.f32 0.0013333558, %v7404_v22  ;;  %v6264_v18 = vcvt.f32.s32 %v6263_v61 }
 0x388   : > { %v1623_v33 = vfloor.f32 %v1607_v45  ;;  %v1593_v5 = vmul.f32 1.442695, %v1577_v13  ;;  %v1653_v43 = vmul.f32 0.0013333558, %v7408_v2  ;;  %v6262_v3 = vcvt.f32.s32 %v6261_v36 }
 0x389   : > { %v7413_v58 = vsub.f32 %v1592_v35, %v1624_v57  ;;  %v1610_v27 = vadd.f32 0.5, %v1594_v4  ;;  %v7425_v31 = vadd.f32 0.009618129, %v1654_v19  ;;  %v7430_v53 = vadd.s32 127, %v6264_v18 }
 0x38a   : > { %v7420_v60 = vsub.f32 %v1591_v23, %v1623_v33  ;;  %v6265_v1 = vtrunc.f32 %v1623_v33  ;;  %v7428_v41 = vadd.f32 0.5, %v1593_v5  ;;  %v7432_v42 = vtrunc.f32 %v1624_v57 }
 0x38b   : > { %v1656_v28 = vmul.f32 0.0013333558, %v7413_v58  ;;  %v1626_v35 = vfloor.f32 %v1610_v27  ;;  %v2059_v23 = vmul.f32 %v2043_v34, %v2011_v38  ;;  %v2108_v7 = vmul.f32 %v2092_v9, %v2060_v56 }
 0x38c   : > { %v1655_v47 = vmul.f32 0.0013333558, %v7420_v60  ;;  %v6266_v52 = vcvt.f32.s32 %v6265_v1  ;;  %v1625_v44 = vfloor.f32 %v7428_v41  ;;  %v7437_v26 = vmul.f32 %v1885_v49, %v7388_v12 }
 0x38d   : > { %v7439_v63 = vadd.f32 0.009618129, %v1653_v43  ;;  %v2075_v61 = vmul.f32 %v2059_v23, %v7362_v55  ;;  %v1886_v45 = vadd.f32 2.0, %v7393_v20  ;;  %v1743_v14 = vmul.f32 %v7378_v48, %v7310_v62 }
 0x38e   : > { %v7445_v57 = vadd.s32 127, %v6262_v3  ;;  %v7447_v13 = vadd.f32 0.009618129, %v1656_v28  ;;  %v7449_v38 = vsub.f32 %v1594_v4, %v1626_v35  ;;  %v7453_v56 = vsub.f32 %v1593_v5, %v1625_v44 }
 0x38f   : > { %v2091_v12 = vsub.f32 2.0, %v2075_v61  ;;  %v7456_v37 = vadd.f32 2.0, %v7437_v26  ;;  %v7459_v55 = vmul.f32 %v1886_v45, %v7393_v20  ;;  %v1759_v10 = vadd.f32 0.6931472, %v1743_v14 }
 0x390   : > { %v7461_v36 = vadd.f32 0.009618129, %v1655_v47  ;;  %v7463_v48 = vadd.s32 127, %v6266_v52  ;;  %v7465_v33 = vtrunc.f32 %v1626_v35  ;;  %v7468_v4 = vmul.f32 %v2108_v7, %v7331_v54 }
 0x391   : > { %v2107_v19 = vmul.f32 %v2091_v12, %v2059_v23  ;;  %v1949_v49 = vsub.s32 2130706432, %v7456_v37  ;;  %v7472_v18 = vadd.f32 2.0, %v7459_v55  ;;  %v1775_v1 = vmul.f32 %v1759_v10, %v7310_v62 }
 0x392   : > { %v7476_v20 = vmul.f32 0.0013333558, %v7449_v38  ;;  %v7479_v27 = vmul.f32 0.0013333558, %v7453_v56  ;;  %v1696_v5 = vadd.f32 0.05550411, %v7382_v8  ;;  %v1681_v54 = vmul.f32 %v7367_v24, %v7342_v32 }
 0x393   : > { %v7485_v43 = vmul.f32 %v2107_v19, %v7354_v6  ;;  %v1981_v3 = vmul.f32 %v1949_v49, %v7456_v37  ;;  %v1950_v34 = vsub.s32 2130706432, %v7472_v18  ;;  %v1791_v9 = vadd.f32 1.0, %v1775_v1 }
 0x394   : > { %v1712_v62 = vmul.f32 %v1696_v5, %v7308_v51  ;;  %v1697_v28 = vadd.f32 0.05550411, %v1681_v54  ;;  %v1841_v35 = vshll.u32 %v7370_v15, 23  ;;  %v1682_v47 = vmul.f32 %v7357_v30, %v7334_v16 }
 0x395   : > { %5821 = vmatprep.mubr.f32.mxu1 %v7485_v43  ;;  %v1997_v8 = vsub.f32 2.0, %v1981_v3  ;;  %v1982_v24 = vmul.f32 %v1950_v34, %v7472_v18  ;;  %v1871_v6 = vmul.f32 %v1839_v46, %v1791_v9  ;;  %v1842_v23 = vshll.u32 %v7365_v29, 23 }
 0x396   : > { %5822 = vmatmul.mubr.f32.vlgmr.msra.gmra.mrb[16].mxu1 %v7468_v4  ;;  %v1728_v52 = vadd.f32 0.2402265, %v1712_v62  ;;  %v1713_v7 = vmul.f32 %v1697_v28, %v7342_v32  ;;  %v1698_v61 = vadd.f32 0.05550411, %v1682_v47  ;;  %v1683_v15 = vmul.f32 %v7418_v39, %v7396_v11 }
 0x397   : > { %v2013_v30 = vmul.f32 %v1997_v8, %v1949_v49  ;;  %v1998_v45 = vsub.f32 2.0, %v1982_v24  ;;  %v1887_v14 = vadd.f32 2.0, %v1871_v6  ;;  %v1843_v12 = vshll.u32 %v7422_v0, 23 }
 0x398   : > { %v1744_v10 = vmul.f32 %v1728_v52, %v7308_v51  ;;  %v1729_v25 = vadd.f32 0.2402265, %v1713_v7  ;;  %v1714_v46 = vmul.f32 %v1698_v61, %v7334_v16  ;;  %v1699_v29 = vadd.f32 0.05550411, %v1683_v15 }
 0x399   : > { %v2029_v19 = vmul.f32 %v2013_v30, %v7456_v37  ;;  %v2014_v1 = vmul.f32 %v1998_v45, %v1950_v34  ;;  %v7506_v5 = vmul.f32 %v1887_v14, %v1871_v6  ;;  %v1684_v54 = vmul.f32 %v7410_v17, %v7390_v50 }
 0x39a   : > { %v1760_v39 = vadd.f32 0.6931472, %v1744_v10  ;;  %v1745_v49 = vmul.f32 %v1729_v25, %v7342_v32  ;;  %v1730_v3 = vadd.f32 0.2402265, %v1714_v46  ;;  %v1715_v0 = vmul.f32 %v1699_v29, %v7396_v11 }
 0x39b   : > { %v2045_v9 = vsub.f32 2.0, %v2029_v19  ;;  %v2030_v62 = vmul.f32 %v2014_v1, %v7472_v18  ;;  %v7514_v28 = vadd.f32 2.0, %v7506_v5  ;;  %v1700_v47 = vadd.f32 0.05550411, %v1684_v54 }
 0x39c   : > { %v1776_v34 = vmul.f32 %v1760_v39, %v7308_v51  ;;  %v1761_v8 = vadd.f32 0.6931472, %v1745_v49  ;;  %v1746_v24 = vmul.f32 %v1730_v3, %v7334_v16  ;;  %v1731_v6 = vadd.f32 0.2402265, %v1715_v0 }
 0x39d   : > { %v2061_v17 = vmul.f32 %v2045_v9, %v2013_v30  ;;  %v2046_v52 = vsub.f32 2.0, %v2030_v62  ;;  %v1951_v7 = vsub.s32 2130706432, %v7514_v28  ;;  %v1716_v61 = vmul.f32 %v1700_v47, %v7390_v50 }
 0x39e   : > { %v1792_v15 = vadd.f32 1.0, %v1776_v34  ;;  %v1777_v45 = vmul.f32 %v1761_v8, %v7342_v32  ;;  %v1762_v14 = vadd.f32 0.6931472, %v1746_v24  ;;  %v1747_v10 = vmul.f32 %v1731_v6, %v7396_v11 }
 0x39f   : > { %v2077_v25 = vmul.f32 %v2061_v17, %v7456_v37  ;;  %v2062_v46 = vmul.f32 %v2046_v52, %v2014_v1  ;;  %v1983_v51 = vmul.f32 %v1951_v7, %v7514_v28  ;;  %v1732_v29 = vadd.f32 0.2402265, %v1716_v61 }
 0x3a0   : > { %v1872_v30 = vmul.f32 %v1840_v59, %v1792_v15  ;;  %v1793_v19 = vadd.f32 1.0, %v1777_v45  ;;  %v1778_v54 = vmul.f32 %v1762_v14, %v7334_v16  ;;  %v1763_v39 = vadd.f32 0.6931472, %v1747_v10 }
 0x3a1   : > { %v2093_v49 = vsub.f32 2.0, %v2077_v25  ;;  %v2078_v3 = vmul.f32 %v2062_v46, %v7472_v18  ;;  %v1999_v32 = vsub.f32 2.0, %v1983_v51  ;;  %v1748_v0 = vmul.f32 %v1732_v29, %v7390_v50 }
 0x3a2   : > { %v1888_v9 = vadd.f32 2.0, %v1872_v30  ;;  %v1873_v62 = vmul.f32 %v1841_v35, %v1793_v19  ;;  %v1794_v37 = vadd.f32 1.0, %v1778_v54  ;;  %v1779_v1 = vmul.f32 %v1763_v39, %v7396_v11 }
 0x3a3   : > { %v2109_v47 = vmul.f32 %v2093_v49, %v2061_v17  ;;  %v2094_v34 = vsub.f32 2.0, %v2078_v3  ;;  %v2015_v8 = vmul.f32 %v1999_v32, %v1951_v7  ;;  %v1764_v21 = vadd.f32 0.6931472, %v1748_v0 }
 0x3a4   : > { %v7530_v59 = vmul.f32 %v1888_v9, %v1872_v30  ;;  %v1889_v24 = vadd.f32 2.0, %v1873_v62  ;;  %v1874_v16 = vmul.f32 %v1842_v23, %v1794_v37  ;;  %v1795_v6 = vadd.f32 1.0, %v1779_v1 }
 0x3a5   : > { %v7533_v52 = vmul.f32 %v2109_v47, %v7437_v26  ;;  %v2110_v18 = vmul.f32 %v2094_v34, %v2062_v46  ;;  %v2031_v61 = vmul.f32 %v2015_v8, %v7514_v28  ;;  %v1780_v35 = vmul.f32 %v1764_v21, %v7390_v50 }
 0x3a6   : > { %v7538_v15 = vadd.f32 2.0, %v7530_v59  ;;  %v7540_v11 = vmul.f32 %v1889_v24, %v1873_v62  ;;  %v1890_v17 = vadd.f32 2.0, %v1874_v16  ;;  %v1875_v7 = vmul.f32 %v1843_v12, %v1795_v6 }
 0x3a7   : > { %5824 = vmatprep.mubr.f32.mxu1 %v7533_v52  ;;  %v7544_v23 = vmul.f32 %v2110_v18, %v7459_v55  ;;  %v2047_v45 = vsub.f32 2.0, %v2031_v61  ;;  %v1796_v26 = vadd.f32 1.0, %v1780_v35  ;;  %v1844_v14 = vshll.u32 %v7416_v40, 23 }
 0x3a8   : > { %v1952_v10 = vsub.s32 2130706432, %v7538_v15  ;;  %v7549_v50 = vadd.f32 2.0, %v7540_v11  ;;  %v7551_v25 = vmul.f32 %v1890_v17, %v1874_v16  ;;  %v1891_v46 = vadd.f32 2.0, %v1875_v7 }
 0x3a9   : > { %5825 = vmatmul.mubr.f32.gmra.mrb[18].mxu1 %v7544_v23  ;;  %v2063_v12 = vmul.f32 %v2047_v45, %v2015_v8  ;;  %v1876_v51 = vmul.f32 %v1844_v14, %v1796_v26  ;;  %v1685_v55 = vmul.f32 %v7439_v63, %v7408_v2  ;;  %v1845_v29 = vshll.u32 %v7445_v57, 23 }
 0x3aa   : > { %v1984_v30 = vmul.f32 %v1952_v10, %v7538_v15  ;;  %v1953_v40 = vsub.s32 2130706432, %v7549_v50  ;;  %v7560_v19 = vadd.f32 2.0, %v7551_v25  ;;  %v7562_v54 = vmul.f32 %v1891_v46, %v1875_v7 }
 0x3ab   : > { %v2079_v39 = vmul.f32 %v2063_v12, %v7514_v28  ;;  %v1892_v49 = vadd.f32 2.0, %v1876_v51  ;;  %v1701_v3 = vadd.f32 0.05550411, %v1685_v55  ;;  %v1686_v32 = vmul.f32 %v7425_v31, %v7404_v22 }
 0x3ac   : > { %v2000_v0 = vsub.f32 2.0, %v1984_v30  ;;  %v1985_v63 = vmul.f32 %v1953_v40, %v7549_v50  ;;  %v1954_v9 = vsub.s32 2130706432, %v7560_v19  ;;  %v7570_v62 = vadd.f32 2.0, %v7562_v54 }
 0x3ad   : > { %v2095_v37 = vsub.f32 2.0, %v2079_v39  ;;  %v7572_v1 = vmul.f32 %v1892_v49, %v1876_v51  ;;  %v1717_v47 = vmul.f32 %v1701_v3, %v7408_v2  ;;  %v1702_v34 = vadd.f32 0.05550411, %v1686_v32 }
 0x3ae   : > { %v2016_v28 = vmul.f32 %v2000_v0, %v1952_v10  ;;  %v2001_v8 = vsub.f32 2.0, %v1985_v63  ;;  %v1986_v21 = vmul.f32 %v1954_v9, %v7560_v19  ;;  %v1955_v31 = vsub.s32 2130706432, %v7570_v62 }
 0x3af   : > { %v2111_v24 = vmul.f32 %v2095_v37, %v2063_v12  ;;  %v7578_v16 = vadd.f32 2.0, %v7572_v1  ;;  %v1733_v6 = vadd.f32 0.2402265, %v1717_v47  ;;  %v1718_v18 = vmul.f32 %v1702_v34, %v7404_v22 }
 0x3b0   : > { %v2032_v61 = vmul.f32 %v2016_v28, %v7538_v15  ;;  %v2017_v35 = vmul.f32 %v2001_v8, %v1953_v40  ;;  %v2002_v17 = vsub.f32 2.0, %v1986_v21  ;;  %v1987_v7 = vmul.f32 %v1955_v31, %v7570_v62 }
 0x3b1   : > { %v7584_v45 = vmul.f32 %v2111_v24, %v7506_v5  ;;  %v1956_v26 = vsub.s32 2130706432, %v7578_v16  ;;  %v1749_v14 = vmul.f32 %v1733_v6, %v7408_v2  ;;  %v1734_v10 = vadd.f32 0.2402265, %v1718_v18 }
 0x3b2   : > { %v2048_v46 = vsub.f32 2.0, %v2032_v61  ;;  %v2033_v12 = vmul.f32 %v2017_v35, %v7549_v50  ;;  %v2018_v51 = vmul.f32 %v2002_v17, %v1954_v9  ;;  %v2003_v55 = vsub.f32 2.0, %v1987_v7 }
 0x3b3   : > { %5827 = vmatprep.mubr.f32.mxu1 %v7584_v45  ;;  %v1988_v30 = vmul.f32 %v1956_v26, %v7578_v16  ;;  %v1765_v40 = vadd.f32 0.6931472, %v1749_v14  ;;  %v1750_v39 = vmul.f32 %v1734_v10, %v7404_v22  ;;  %v1846_v5 = vshll.u32 %v7430_v53, 23 }
 0x3b4   : > { %v2064_v49 = vmul.f32 %v2048_v46, %v2016_v28  ;;  %v2049_v3 = vsub.f32 2.0, %v2033_v12  ;;  %v2034_v32 = vmul.f32 %v2018_v51, %v7560_v19  ;;  %v2019_v0 = vmul.f32 %v2003_v55, %v1955_v31 }
 0x3b5   : > { %v2004_v63 = vsub.f32 2.0, %v1988_v30  ;;  %v1781_v37 = vmul.f32 %v1765_v40, %v7408_v2  ;;  %v1766_v47 = vadd.f32 0.6931472, %v1750_v39  ;;  %v1687_v9 = vmul.f32 %v7461_v36, %v7420_v60 }
 0x3b6   : > { %v2080_v34 = vmul.f32 %v2064_v49, %v7538_v15  ;;  %v2065_v8 = vmul.f32 %v2049_v3, %v2017_v35  ;;  %v2050_v21 = vsub.f32 2.0, %v2034_v32  ;;  %v2035_v24 = vmul.f32 %v2019_v0, %v7570_v62 }
 0x3b7   : > { %v2020_v6 = vmul.f32 %v2004_v63, %v1956_v26  ;;  %v1797_v53 = vadd.f32 1.0, %v1781_v37  ;;  %v1782_v28 = vmul.f32 %v1766_v47, %v7404_v22  ;;  %v1703_v18 = vadd.f32 0.05550411, %v1687_v9 }
 0x3b8   : > { %v2096_v61 = vsub.f32 2.0, %v2080_v34  ;;  %v2081_v31 = vmul.f32 %v2065_v8, %v7549_v50  ;;  %v2066_v17 = vmul.f32 %v2050_v21, %v2018_v51  ;;  %v2051_v2 = vsub.f32 2.0, %v2035_v24 }
 0x3b9   : > { %v2036_v7 = vmul.f32 %v2020_v6, %v7578_v16  ;;  %v1877_v36 = vmul.f32 %v1845_v29, %v1797_v53  ;;  %v1798_v15 = vadd.f32 1.0, %v1782_v28  ;;  %v1719_v35 = vmul.f32 %v1703_v18, %v7420_v60 }
 0x3ba   : > { %v2112_v14 = vmul.f32 %v2096_v61, %v2064_v49  ;;  %v2097_v10 = vsub.f32 2.0, %v2081_v31  ;;  %v2082_v26 = vmul.f32 %v2066_v17, %v7560_v19  ;;  %v2067_v46 = vmul.f32 %v2051_v2, %v2019_v0 }
 0x3bb   : > { %v2052_v22 = vsub.f32 2.0, %v2036_v7  ;;  %v1893_v12 = vadd.f32 2.0, %v1877_v36  ;;  %v1878_v55 = vmul.f32 %v1846_v5, %v1798_v15  ;;  %v1735_v30 = vadd.f32 0.2402265, %v1719_v35 }
 0x3bc   : > { %v7607_v50 = vmul.f32 %v2112_v14, %v7530_v59  ;;  %v2113_v51 = vmul.f32 %v2097_v10, %v2065_v8  ;;  %v2098_v40 = vsub.f32 2.0, %v2082_v26  ;;  %v2083_v57 = vmul.f32 %v2067_v46, %v7570_v62 }
 0x3bd   : > { %v2068_v29 = vmul.f32 %v2052_v22, %v2020_v6  ;;  %v7610_v39 = vmul.f32 %v1893_v12, %v1877_v36  ;;  %v1894_v3 = vadd.f32 2.0, %v1878_v55  ;;  %v1751_v49 = vmul.f32 %v1735_v30, %v7420_v60 }
 0x3be   : > { %v1673_v19 = vadd.f32 0.009618129, %v7479_v27  ;;  %5828 = vmatmul.mubr.f32.gmra.mrb[20].mxu1 %v7607_v50  ;;  %v7616_v5 = vmul.f32 %v2113_v51, %v7540_v11  ;;  %v2114_v32 = vmul.f32 %v2098_v40, %v2066_v17  ;;  %v2099_v59 = vsub.f32 2.0, %v2083_v57 }
 0x3bf   : > { %v2084_v0 = vmul.f32 %v2068_v29, %v7578_v16  ;;  %v7620_v63 = vadd.f32 2.0, %v7610_v39  ;;  %v7622_v62 = vmul.f32 %v1894_v3, %v1878_v55  ;;  %v1767_v37 = vadd.f32 0.6931472, %v1751_v49 }
 0x3c0   : > { %v1674_v47 = vadd.f32 0.009618129, %v7476_v20  ;;  %5830 = vmatprep.mubr.f32.mxu1 %v7616_v5  ;;  %v7627_v27 = vmul.f32 %v2114_v32, %v7551_v25  ;;  %v2115_v9 = vmul.f32 %v2099_v59, %v2067_v46  ;;  %v1688_v11 = vmul.f32 %v7447_v13, %v7413_v58 }
 0x3c1   : > { %v2100_v34 = vsub.f32 2.0, %v2084_v0  ;;  %v1957_v16 = vsub.s32 2130706432, %v7620_v63  ;;  %v7633_v8 = vadd.f32 2.0, %v7622_v62  ;;  %v1783_v21 = vmul.f32 %v1767_v37, %v7420_v60 }
 0x3c2   : > { %5831 = vmatmul.mubr.f32.gmra.mrb[22].mxu1 %v7627_v27  ;;  %v7638_v20 = vmul.f32 %v2115_v9, %v7562_v54  ;;  %v1847_v25 = vshll.u32 %v7463_v48, 23  ;;  %v1704_v24 = vadd.f32 0.05550411, %v1688_v11  ;;  %v1689_v6 = vmul.f32 %v1673_v19, %v7453_v56 }
 0x3c3   : > { %v2116_v53 = vmul.f32 %v2100_v34, %v2068_v29  ;;  %v1989_v13 = vmul.f32 %v1957_v16, %v7620_v63  ;;  %v1958_v28 = vsub.s32 2130706432, %v7633_v8  ;;  %v1799_v18 = vadd.f32 1.0, %v1783_v21 }
 0x3c4   : > { %v6269_v61 = vtrunc.f32 %v1625_v44  ;;  %5833 = vmatprep.mubr.f32.mxu1 %v7638_v20  ;;  %v1720_v60 = vmul.f32 %v1704_v24, %v7413_v58  ;;  %v1705_v54 = vadd.f32 0.05550411, %v1689_v6  ;;  %v1690_v31 = vmul.f32 %v1674_v47, %v7449_v38 }
 0x3c5   : > { %v7650_v48 = vmul.f32 %v2116_v53, %v7572_v1  ;;  %v2005_v17 = vsub.f32 2.0, %v1989_v13  ;;  %v1990_v2 = vmul.f32 %v1958_v28, %v7633_v8  ;;  %v1879_v7 = vmul.f32 %v1847_v25, %v1799_v18 }
 0x3c6   : > { %v6268_v36 = vcvt.f32.s32 %v7432_v42  ;;  %v1736_v15 = vadd.f32 0.2402265, %v1720_v60  ;;  %v1721_v41 = vmul.f32 %v1705_v54, %v7453_v56  ;;  %v1706_v44 = vadd.f32 0.05550411, %v1690_v31 }
 0x3c7   : > { %5834 = vmatmul.mubr.f32.gmra.mrb[24].mxu1 %v7650_v48  ;;  %v2021_v35 = vmul.f32 %v2005_v17, %v1957_v16  ;;  %v2006_v14 = vsub.f32 2.0, %v1990_v2  ;;  %v1895_v10 = vadd.f32 2.0, %v1879_v7  ;;  %v6270_v26 = vcvt.f32.s32 %v6269_v61 }
 0x3c8   : > { %v1752_v46 = vmul.f32 %v1736_v15, %v7413_v58  ;;  %v1737_v1 = vadd.f32 0.2402265, %v1721_v41  ;;  %v1722_v22 = vmul.f32 %v1706_v44, %v7449_v38  ;;  %v6272_v12 = vcvt.f32.s32 %v7465_v33 }
 0x3c9   : > { %v2037_v55 = vmul.f32 %v2021_v35, %v7620_v63  ;;  %v2022_v42 = vmul.f32 %v2006_v14, %v1958_v28  ;;  %v7660_v30 = vmul.f32 %v1895_v10, %v1879_v7  ;;  %v1832_v51 = vadd.s32 127, %v6268_v36 }
 0x3ca   : > { %v1768_v40 = vadd.f32 0.6931472, %v1752_v46  ;;  %v1753_v57 = vmul.f32 %v1737_v1, %v7453_v56  ;;  %v1738_v29 = vadd.f32 0.2402265, %v1722_v22  ;;  %v1833_v32 = vadd.s32 127, %v6270_v26 }
 0x3cb   : > { %v2053_v3 = vsub.f32 2.0, %v2037_v55  ;;  %v2038_v49 = vmul.f32 %v2022_v42, %v7633_v8  ;;  %v1927_v19 = vadd.f32 2.0, %v7660_v30  ;;  %v1834_v37 = vadd.s32 127, %v6272_v12 }
 0x3cc   : > { %v1784_v59 = vmul.f32 %v1768_v40, %v7413_v58  ;;  %v1769_v0 = vadd.f32 0.6931472, %v1753_v57  ;;  %v1754_v33 = vmul.f32 %v1738_v29, %v7449_v38  ;;  %v1848_v16 = vshll.u32 %v1832_v51, 23 }
 0x3cd   : > { %v2069_v47 = vmul.f32 %v2053_v3, %v2021_v35  ;;  %v2054_v9 = vsub.f32 2.0, %v2038_v49  ;;  %v1959_v11 = vsub.s32 2130706432, %v1927_v19  ;;  %v1849_v18 = vshll.u32 %v1833_v32, 23 }
 0x3ce   : > { %v1800_v34 = vadd.f32 1.0, %v1784_v59  ;;  %v1785_v21 = vmul.f32 %v1769_v0, %v7453_v56  ;;  %v1770_v25 = vadd.f32 0.6931472, %v1754_v33  ;;  %v1850_v7 = vshll.u32 %v1834_v37, 23 }
 0x3cf   : > { %v2085_v24 = vmul.f32 %v2069_v47, %v7620_v63  ;;  %v2070_v6 = vmul.f32 %v2054_v9, %v2022_v42  ;;  %v1991_v53 = vmul.f32 %v1959_v11, %v1927_v19 }
 0x3d0   : > { %v1880_v13 = vmul.f32 %v1848_v16, %v1800_v34  ;;  %v1801_v28 = vadd.f32 1.0, %v1785_v21  ;;  %v1786_v58 = vmul.f32 %v1770_v25, %v7449_v38 }
 0x3d1   : > { %v2101_v61 = vsub.f32 2.0, %v2085_v24  ;;  %v2086_v60 = vmul.f32 %v2070_v6, %v7633_v8  ;;  %v2007_v54 = vsub.f32 2.0, %v1991_v53 }
 0x3d2   : > { %v1896_v31 = vadd.f32 2.0, %v1880_v13  ;;  %v1881_v17 = vmul.f32 %v1849_v18, %v1801_v28  ;;  %v1802_v2 = vadd.f32 1.0, %v1786_v58 }
 0x3d3   : > { %v2117_v36 = vmul.f32 %v2101_v61, %v2069_v47  ;;  %v2102_v56 = vsub.f32 2.0, %v2086_v60  ;;  %v2023_v15 = vmul.f32 %v2007_v54, %v1959_v11 }
 0x3d4   : > { %v1912_v41 = vmul.f32 %v1896_v31, %v1880_v13  ;;  %v1897_v63 = vadd.f32 2.0, %v1881_v17  ;;  %v1882_v44 = vmul.f32 %v1850_v7, %v1802_v2 }
 0x3d5   : > { %v7672_v35 = vmul.f32 %v2117_v36, %v7610_v39  ;;  %v2118_v14 = vmul.f32 %v2102_v56, %v2070_v6  ;;  %v2039_v10 = vmul.f32 %v2023_v15, %v1927_v19  ;;  %v2902_v56 = vld [vmem:[#allocation6 + $0x80] sm:$0xff] }
 0x3d6   : > { %v1928_v38 = vadd.f32 2.0, %v1912_v41  ;;  %v1913_v26 = vmul.f32 %v1897_v63, %v1881_v17  ;;  %v1898_v46 = vadd.f32 2.0, %v1882_v44 }
 0x3d7   : > { %5836 = vmatprep.mubr.f32.mxu1 %v7672_v35  ;;  %v7676_v8 = vmul.f32 %v2118_v14, %v7622_v62  ;;  %v2055_v1 = vsub.f32 2.0, %v2039_v10  ;;  %v2906_v10 = vld [vmem:[#allocation6 + $0xa0] sm:$0xff] }
 0x3d8   : > { %v1960_v22 = vsub.s32 2130706432, %v1928_v38  ;;  %v1929_v12 = vadd.f32 2.0, %v1913_v26  ;;  %v1914_v55 = vmul.f32 %v1898_v46, %v1882_v44  ;;  %v2905_v44 = vld [vmem:[#allocation6 + $0x98] sm:$0xff]  ;;  %v2908_v46 = vld [vmem:[#allocation6 + $0xb0] sm:$0xff] }
 0x3d9   : > { %5837 = vmatmul.mubr.f32.gmra.mrb[26].mxu1 %v7676_v8  ;;  %v2071_v42 = vmul.f32 %v2055_v1, %v2023_v15  ;;  %v2903_v15 = vld [vmem:[#allocation6 + $0x88] sm:$0xff]  ;;  %v2909_v1 = vld [vmem:[#allocation6 + $0xb8] sm:$0xff] }
 0x3da   : > { %v1992_v51 = vmul.f32 %v1960_v22, %v1928_v38  ;;  %v1961_v39 = vsub.s32 2130706432, %v1929_v12  ;;  %v1930_v40 = vadd.f32 2.0, %v1914_v55  ;;  %v6113_v63 = vpack.c.bf16 %v2903_v15, %v2902_v56 }
 0x3db   : > { %v2087_v57 = vmul.f32 %v2071_v42, %v1927_v19 }
 0x3dc   : > { %v2008_v29 = vsub.f32 2.0, %v1992_v51  ;;  %v1993_v3 = vmul.f32 %v1961_v39, %v1929_v12  ;;  %v1962_v49 = vsub.s32 2130706432, %v1930_v40  ;;  %6114 = vmatprep.subr.bf16.mxu0 %v6113_v63 }
 0x3dd   : > { %v2103_v32 = vsub.f32 2.0, %v2087_v57  ;;  %6116 = vmatpush3.bf16.msra.mxu0 %v6113_v63  ;;  %v2914_v57 = vld [vmem:[#allocation6 + $0xe0] sm:$0xff] }
 0x3de   : > { %v2024_v59 = vmul.f32 %v2008_v29, %v1960_v22  ;;  %v2009_v0 = vsub.f32 2.0, %v1993_v3  ;;  %v1994_v33 = vmul.f32 %v1962_v49, %v1930_v40  ;;  %v6125_v22 = vpack.c.bf16 %v2909_v1, %v2908_v46  ;;  %v2915_v29 = vld [vmem:[#allocation6 + $0xe8] sm:$0xff] }
 0x3df   : > { %v2119_v62 = vmul.f32 %v2103_v32, %v2071_v42  ;;  %v2912_v42 = vld [vmem:[#allocation6 + $0xd0] sm:$0xff]  ;;  %v6137_v3 = vpack.c.bf16 %v2915_v29, %v2914_v57  ;;  %v2917_v32 = vld [vmem:[#allocation6 + $0xf8] sm:$0xff] }
 0x3e0   : > { %v2040_v37 = vmul.f32 %v2024_v59, %v1928_v38  ;;  %v2025_v47 = vmul.f32 %v2009_v0, %v1961_v39  ;;  %v2010_v9 = vsub.f32 2.0, %v1994_v33  ;;  %v2913_v39 = vld [vmem:[#allocation6 + $0xd8] sm:$0xff]  ;;  %v7695_v0 = vld [vmem:[%s8978_s4 + $0x1] ss:$0 sm:$0xff] }
 0x3e1   : > { %v7680_v11 = vmul.f32 %v2119_v62, %v7660_v30 }
 0x3e2   : > { %v2056_v34 = vsub.f32 2.0, %v2040_v37  ;;  %v2041_v16 = vmul.f32 %v2025_v47, %v1929_v12  ;;  %v2026_v21 = vmul.f32 %v2010_v9, %v1962_v49  ;;  %v2916_v49 = vld [vmem:[#allocation6 + $0xf0] sm:$0xff] }
 0x3e3   : > { %9056 = vst [vmem:[#allocation14_spill] sm:$0xff] %v7680_v11  ;;  %5839 = vmatprep.mubr.f32.mxu1 %v7680_v11 }
 0x3e4   : > { %v2072_v19 = vmul.f32 %v2056_v34, %v2024_v59  ;;  %v2057_v25 = vsub.f32 2.0, %v2041_v16  ;;  %v2042_v24 = vmul.f32 %v2026_v21, %v1930_v40  ;;  %v6141_v59 = vpack.c.bf16 %v2917_v32, %v2916_v49 }
 0x3e6   : > { %v2088_v6 = vmul.f32 %v2072_v19, %v1928_v38  ;;  %v2073_v53 = vmul.f32 %v2057_v25, %v2025_v47  ;;  %v2058_v13 = vsub.f32 2.0, %v2042_v24  ;;  %v2907_v38 = vld [vmem:[#allocation6 + $0xa8] sm:$0xff] }
 0x3e8   : > { %v2104_v28 = vsub.f32 2.0, %v2088_v6  ;;  %v2089_v18 = vmul.f32 %v2073_v53, %v1929_v12  ;;  %v2074_v58 = vmul.f32 %v2058_v13, %v2026_v21  ;;  %v2910_v12 = vld [vmem:[#allocation6 + $0xc0] sm:$0xff] }
 0x3ea   : > { %v2120_v61 = vmul.f32 %v2104_v28, %v2072_v19  ;;  %v2105_v60 = vsub.f32 2.0, %v2089_v18  ;;  %v2090_v54 = vmul.f32 %v2074_v58, %v1930_v40  ;;  %v6133_v40 = vpack.c.bf16 %v2913_v39, %v2912_v42 }
 0x3ec   : > { %v7683_v31 = vmul.f32 %v2120_v61, %v1912_v41  ;;  %v2121_v30 = vmul.f32 %v2105_v60, %v2073_v53  ;;  %v2106_v17 = vsub.f32 2.0, %v2090_v54  ;;  %v2904_v41 = vld [vmem:[#allocation6 + $0x90] sm:$0xff] }
 0x3ed   : > { %v6117_v14 = vpack.c.bf16 %v2905_v44, %v2904_v41 }
 0x3ee   : > { %5840 = vmatmul.mubr.f32.gmra.mrb[28].mxu1 %v7683_v31  ;;  %v7686_v2 = vmul.f32 %v2121_v30, %v1913_v26  ;;  %v2122_v7 = vmul.f32 %v2106_v17, %v2074_v58  ;;  %v6121_v26 = vpack.c.bf16 %v2907_v38, %v2906_v10 }
 0x3ef   : > { %6118 = vmatprep.subr.bf16.mxu0 %v6117_v14 }
 0x3f0   : > { %9057 = vst [vmem:[#allocation15_spill] sm:$0xff] %v7686_v2  ;;  %5842 = vmatprep.mubr.f32.mxu1 %v7686_v2  ;;  %v7689_v36 = vmul.f32 %v2122_v7, %v1914_v55  ;;  %6120 = vmatpush3.bf16.msra.mxu0 %v6117_v14  ;;  %v2911_v55 = vld [vmem:[#allocation6 + $0xc8] sm:$0xff] }
 0x3f1   : > { %6122 = vmatprep.subr.bf16.mxu0 %v6121_v26  ;;  %v6129_v51 = vpack.c.bf16 %v2911_v55, %v2910_v12 }
 0x3f2   : > { %9058 = vst [vmem:[#allocation16_spill] sm:$0xff] %v7689_v36  ;;  %5843 = vmatmul.mubr.f32.gmra.mrb[30].mxu1 %v7689_v36 }
 0x3f4   : > { %6124 = vmatpush3.bf16.msra.mxu0 %v6121_v26 }
 0x3f5   : > { %6126 = vmatprep.subr.bf16.mxu0 %v6125_v22 }
 0x3f8   : > { %6128 = vmatpush3.bf16.msra.mxu0 %v6125_v22 }
 0x3f9   : > { %6130 = vmatprep.subr.bf16.mxu0 %v6129_v51 }
 0x3fc   : > { %6132 = vmatpush3.bf16.msra.mxu0 %v6129_v51 }
 0x3fd   : > { %6134 = vmatprep.subr.bf16.mxu0 %v6133_v40 }
 0x400   : > { %6136 = vmatpush3.bf16.msra.mxu0 %v6133_v40 }
 0x401   : > { %6138 = vmatprep.subr.bf16.mxu0 %v6137_v3 }
 0x404   : > { %6140 = vmatpush3.bf16.msra.mxu0 %v6137_v3 }
 0x405   : > { %6142 = vmatprep.subr.bf16.mxu0 %v6141_v59 }
 0x408   : > { %6144 = vmatpush3.bf16.msra.mxu0 %v6141_v59 }
 0x469   : > { %v5823_v33 = vpop.f32.mrb[16].mxu1 }
 0x46a   : > { %v2236_v62 = vadd.f32 %v5823_v33, %v7695_v0  ;;  %v2230_v37 = vpop.f32.mrb[17].mxu1 }
 0x46b   : > { %v2231_v47 = vadd.f32 %v7695_v0, %v2230_v37 }
 0x46c   : > { %v2310_v9 = vmax.f32 %v2236_v62, -30.0 }
 0x46d   : > { %v2309_v34 = vmax.f32 %v2231_v47, -30.0 }
 0x46e   : > { %v2326_v16 = vmin.f32 %v2310_v9, 20.0 }
 0x46f   : > { %v2325_v21 = vmin.f32 %v2309_v34, 20.0 }
 0x470   : > { %v2342_v19 = vmul.f32 1.442695, %v2326_v16 }
 0x471   : > { %v2341_v25 = vmul.f32 1.442695, %v2325_v21 }
 0x472   : > { %v2358_v24 = vadd.f32 0.5, %v2342_v19 }
 0x473   : > { %v2357_v6 = vadd.f32 0.5, %v2341_v25 }
 0x474   : > { %v2374_v53 = vfloor.f32 %v2358_v24 }
 0x475   : > { %v2373_v13 = vfloor.f32 %v2357_v6 }
 0x476   : > { %v2390_v28 = vsub.f32 %v2342_v19, %v2374_v53  ;;  %v6275_v41 = vtrunc.f32 %v2374_v53 }
 0x477   : > { %v2389_v18 = vsub.f32 %v2341_v25, %v2373_v13  ;;  %v6273_v10 = vtrunc.f32 %v2373_v13 }
 0x478   : > { %v2406_v58 = vmul.f32 0.0013333558, %v2390_v28  ;;  %v6276_v55 = vcvt.f32.s32 %v6275_v41 }
 0x479   : > { %v2405_v61 = vmul.f32 0.0013333558, %v2389_v18  ;;  %v6274_v51 = vcvt.f32.s32 %v6273_v10 }
 0x47a   : > { %v2422_v60 = vadd.f32 0.009618129, %v2406_v58  ;;  %v2582_v59 = vadd.s32 127, %v6276_v55 }
 0x47b   : > { %v2421_v54 = vadd.f32 0.009618129, %v2405_v61  ;;  %v2581_v62 = vadd.s32 127, %v6274_v51 }
 0x47c   : > { %v2438_v30 = vmul.f32 %v2422_v60, %v2390_v28  ;;  %v5826_v17 = vpop.f32.mrb[18].mxu1  ;;  %v2598_v25 = vshll.u32 %v2582_v59, 23 }
 0x47d   : > { %v2437_v7 = vmul.f32 %v2421_v54, %v2389_v18  ;;  %v2246_v56 = vadd.f32 %v5826_v17, %v7695_v0  ;;  %v2240_v15 = vpop.f32.mrb[19].mxu1  ;;  %v2597_v6 = vshll.u32 %v2581_v62, 23 }
 0x47e   : > { %v2454_v63 = vadd.f32 0.05550411, %v2438_v30  ;;  %v2241_v44 = vadd.f32 %v7695_v0, %v2240_v15 }
 0x47f   : > { %v2453_v14 = vadd.f32 0.05550411, %v2437_v7  ;;  %v2312_v38 = vmax.f32 %v2246_v56, -30.0 }
 0x480   : > { %v2470_v26 = vmul.f32 %v2454_v63, %v2390_v28  ;;  %v2311_v46 = vmax.f32 %v2241_v44, -30.0 }
 0x481   : > { %v2328_v1 = vmin.f32 %v2312_v38, 20.0  ;;  %v2469_v22 = vmul.f32 %v2453_v14, %v2389_v18 }
 0x482   : > { %v2486_v12 = vadd.f32 0.2402265, %v2470_v26  ;;  %v2327_v42 = vmin.f32 %v2311_v46, 20.0 }
 0x483   : > { %v2344_v39 = vmul.f32 1.442695, %v2328_v1  ;;  %v2485_v40 = vadd.f32 0.2402265, %v2469_v22 }
 0x484   : > { %v2502_v57 = vmul.f32 %v2486_v12, %v2390_v28  ;;  %v2343_v29 = vmul.f32 1.442695, %v2327_v42 }
 0x485   : > { %v2360_v3 = vadd.f32 0.5, %v2344_v39  ;;  %v2501_v49 = vmul.f32 %v2485_v40, %v2389_v18 }
 0x486   : > { %v2518_v32 = vadd.f32 0.6931472, %v2502_v57  ;;  %v2359_v33 = vadd.f32 0.5, %v2343_v29 }
 0x487   : > { %v2376_v37 = vfloor.f32 %v2360_v3  ;;  %v2517_v47 = vadd.f32 0.6931472, %v2501_v49 }
 0x488   : > { %v2534_v9 = vmul.f32 %v2518_v32, %v2390_v28  ;;  %v2375_v34 = vfloor.f32 %v2359_v33 }
 0x489   : > { %v7701_v16 = vsub.f32 %v2344_v39, %v2376_v37  ;;  %v2533_v21 = vmul.f32 %v2517_v47, %v2389_v18  ;;  %v6279_v61 = vtrunc.f32 %v2376_v37 }
 0x48a   : > { %v2550_v19 = vadd.f32 1.0, %v2534_v9  ;;  %v7703_v24 = vsub.f32 %v2343_v29, %v2375_v34  ;;  %v6277_v30 = vtrunc.f32 %v2375_v34 }
 0x48b   : > { %v2408_v53 = vmul.f32 0.0013333558, %v7701_v16  ;;  %v2549_v13 = vadd.f32 1.0, %v2533_v21  ;;  %v6280_v63 = vcvt.f32.s32 %v6279_v61 }
 0x48c   : > { %v2630_v58 = vmul.f32 %v2598_v25, %v2550_v19  ;;  %v2407_v60 = vmul.f32 0.0013333558, %v7703_v24  ;;  %v6278_v14 = vcvt.f32.s32 %v6277_v30 }
 0x48d   : > { %v2424_v54 = vadd.f32 0.009618129, %v2408_v53  ;;  %v2629_v17 = vmul.f32 %v2597_v6, %v2549_v13  ;;  %v7722_v51 = vadd.s32 127, %v6280_v63 }
 0x48e   : > { %v2646_v28 = vadd.f32 2.0, %v2630_v58  ;;  %v2423_v7 = vadd.f32 0.009618129, %v2407_v60  ;;  %v7726_v29 = vadd.s32 127, %v6278_v14 }
 0x48f   : > { %v2440_v56 = vmul.f32 %v2424_v54, %v7701_v16  ;;  %v2645_v18 = vadd.f32 2.0, %v2629_v17  ;;  %v2600_v6 = vshll.u32 %v7722_v51, 23 }
 0x490   : > { %v7708_v15 = vmul.f32 %v2646_v28, %v2630_v58  ;;  %v2439_v41 = vmul.f32 %v2423_v7, %v7703_v24 }
 0x491   : > { %v2456_v44 = vadd.f32 0.05550411, %v2440_v56  ;;  %v5829_v10 = vpop.f32.mrb[20].mxu1  ;;  %v7711_v38 = vmul.f32 %v2645_v18, %v2629_v17  ;;  %v2599_v17 = vshll.u32 %v7726_v29, 23 }
 0x492   : > { %v7714_v26 = vadd.f32 2.0, %v7708_v15  ;;  %v2455_v46 = vadd.f32 0.05550411, %v2439_v41  ;;  %v2256_v1 = vadd.f32 %v5829_v10, %v7695_v0  ;;  %v2250_v22 = vpop.f32.mrb[21].mxu1 }
 0x493   : > { %v2251_v12 = vadd.f32 %v7695_v0, %v2250_v22  ;;  %v7719_v55 = vadd.f32 2.0, %v7711_v38  ;;  %v2472_v42 = vmul.f32 %v2456_v44, %v7701_v16 }
 0x494   : > { %v2314_v39 = vmax.f32 %v2256_v1, -30.0  ;;  %v2710_v40 = vsub.s32 2130706432, %v7714_v26  ;;  %v2471_v57 = vmul.f32 %v2455_v46, %v7703_v24 }
 0x495   : > { %v2313_v3 = vmax.f32 %v2251_v12, -30.0  ;;  %v5832_v49 = vpop.f32.mrb[22].mxu1  ;;  %v2709_v32 = vsub.s32 2130706432, %v7719_v55  ;;  %v2488_v59 = vadd.f32 0.2402265, %v2472_v42 }
 0x496   : > { %v2330_v33 = vmin.f32 %v2314_v39, 20.0  ;;  %v2266_v62 = vadd.f32 %v5832_v49, %v7695_v0  ;;  %v2260_v37 = vpop.f32.mrb[23].mxu1  ;;  %v2742_v47 = vmul.f32 %v2710_v40, %v7714_v26  ;;  %v2487_v9 = vadd.f32 0.2402265, %v2471_v57 }
 0x497   : > { %v2329_v34 = vmin.f32 %v2313_v3, 20.0  ;;  %v2261_v21 = vadd.f32 %v7695_v0, %v2260_v37  ;;  %v2741_v19 = vmul.f32 %v2709_v32, %v7719_v55  ;;  %v2504_v25 = vmul.f32 %v2488_v59, %v7701_v16 }
 0x498   : > { %v2346_v53 = vmul.f32 1.442695, %v2330_v33  ;;  %v2316_v13 = vmax.f32 %v2266_v62, -30.0  ;;  %v2758_v58 = vsub.f32 2.0, %v2742_v47  ;;  %v2503_v30 = vmul.f32 %v2487_v9, %v7703_v24 }
 0x499   : > { %v2345_v61 = vmul.f32 1.442695, %v2329_v34  ;;  %v2315_v60 = vmax.f32 %v2261_v21, -30.0  ;;  %v2757_v54 = vsub.f32 2.0, %v2741_v19  ;;  %v7737_v18 = vadd.f32 0.6931472, %v2504_v25 }
 0x49a   : > { %v2362_v28 = vadd.f32 0.5, %v2346_v53  ;;  %v2332_v7 = vmin.f32 %v2316_v13, 20.0  ;;  %v5835_v56 = vpop.f32.mrb[24].mxu1  ;;  %v2774_v12 = vmul.f32 %v2758_v58, %v2710_v40  ;;  %v2519_v3 = vadd.f32 0.6931472, %v2503_v30 }
 0x49b   : > { %v2361_v63 = vadd.f32 0.5, %v2345_v61  ;;  %v2331_v41 = vmin.f32 %v2315_v60, 20.0  ;;  %v2276_v44 = vadd.f32 %v5835_v56, %v7695_v0  ;;  %v2270_v14 = vpop.f32.mrb[25].mxu1  ;;  %v2773_v10 = vmul.f32 %v2757_v54, %v2709_v32 }
 0x49c   : > { %v2378_v46 = vfloor.f32 %v2362_v28  ;;  %v2348_v1 = vmul.f32 1.442695, %v2332_v7  ;;  %v2271_v22 = vadd.f32 %v7695_v0, %v2270_v14 }
 0x49d   : > { %v2377_v42 = vfloor.f32 %v2361_v63  ;;  %v2347_v39 = vmul.f32 1.442695, %v2331_v41  ;;  %v2318_v57 = vmax.f32 %v2276_v44, -30.0  ;;  %v2789_v62 = vmul.f32 %v2773_v10, %v7719_v55 }
 0x49e   : > { %v7741_v49 = vsub.f32 %v2346_v53, %v2378_v46  ;;  %v6283_v59 = vtrunc.f32 %v2378_v46  ;;  %v2364_v33 = vadd.f32 0.5, %v2348_v1  ;;  %v2317_v40 = vmax.f32 %v2271_v22, -30.0 }
 0x49f   : > { %v7744_v37 = vsub.f32 %v2345_v61, %v2377_v42  ;;  %v6281_v47 = vtrunc.f32 %v2377_v42  ;;  %v2363_v9 = vadd.f32 0.5, %v2347_v39  ;;  %v2334_v32 = vmin.f32 %v2318_v57, 20.0 }
 0x4a0   : > { %v2410_v34 = vmul.f32 0.0013333558, %v7741_v49  ;;  %v6284_v21 = vcvt.f32.s32 %v6283_v59  ;;  %v2380_v19 = vfloor.f32 %v2364_v33  ;;  %v2333_v46 = vmin.f32 %v2317_v40, 20.0 }
 0x4a1   : > { %v2409_v25 = vmul.f32 0.0013333558, %v7744_v37  ;;  %v6282_v13 = vcvt.f32.s32 %v6281_v47  ;;  %v2379_v58 = vfloor.f32 %v2363_v9  ;;  %v2350_v53 = vmul.f32 1.442695, %v2334_v32 }
 0x4a2   : > { %v2426_v60 = vadd.f32 0.009618129, %v2410_v34  ;;  %v7748_v54 = vadd.s32 127, %v6284_v21  ;;  %v7750_v30 = vsub.f32 %v2348_v1, %v2380_v19  ;;  %v6287_v61 = vtrunc.f32 %v2380_v19 }
 0x4a3   : > { %v2425_v28 = vadd.f32 0.009618129, %v2409_v25  ;;  %v7752_v7 = vadd.s32 127, %v6282_v13  ;;  %v7754_v56 = vsub.f32 %v2347_v39, %v2379_v58  ;;  %v6285_v63 = vtrunc.f32 %v2379_v58 }
 0x4a4   : > { %v2442_v41 = vmul.f32 %v2426_v60, %v7741_v49  ;;  %v2412_v44 = vmul.f32 0.0013333558, %v7750_v30  ;;  %v6288_v14 = vcvt.f32.s32 %v6287_v61  ;;  %v2790_v1 = vmul.f32 %v2774_v12, %v7714_v26 }
 0x4a5   : > { %v2441_v22 = vmul.f32 %v2425_v28, %v7744_v37  ;;  %v2411_v42 = vmul.f32 0.0013333558, %v7754_v56  ;;  %v6286_v57 = vcvt.f32.s32 %v6285_v63  ;;  %v2366_v39 = vadd.f32 0.5, %v2350_v53 }
 0x4a6   : > { %v2428_v33 = vadd.f32 0.009618129, %v2412_v44  ;;  %v7762_v47 = vadd.s32 127, %v6288_v14  ;;  %v2601_v9 = vshll.u32 %v7752_v7, 23  ;;  %v2805_v21 = vsub.f32 2.0, %v2789_v62 }
 0x4a7   : > { %v2427_v32 = vadd.f32 0.009618129, %v2411_v42  ;;  %v7765_v34 = vadd.s32 127, %v6286_v57  ;;  %v2458_v19 = vadd.f32 0.05550411, %v2442_v41  ;;  %v2382_v25 = vfloor.f32 %v2366_v39 }
 0x4a8   : > { %v2457_v40 = vadd.f32 0.05550411, %v2441_v22  ;;  %v2349_v13 = vmul.f32 1.442695, %v2333_v46  ;;  %v2444_v58 = vmul.f32 %v2428_v33, %v7750_v30  ;;  %v2821_v61 = vmul.f32 %v2805_v21, %v2773_v10 }
 0x4a9   : > { %v2806_v28 = vsub.f32 2.0, %v2790_v1  ;;  %v2443_v63 = vmul.f32 %v2427_v32, %v7754_v56  ;;  %v7770_v44 = vsub.f32 %v2350_v53, %v2382_v25  ;;  %v6291_v14 = vtrunc.f32 %v2382_v25 }
 0x4aa   : > { %v2365_v59 = vadd.f32 0.5, %v2349_v13  ;;  %v2837_v62 = vmul.f32 %v2821_v61, %v7719_v55  ;;  %v2535_v22 = vmul.f32 %v2519_v3, %v7703_v24  ;;  %v2536_v10 = vmul.f32 %v7737_v18, %v7701_v16 }
 0x4ab   : > { %v2822_v41 = vmul.f32 %v2806_v28, %v2774_v12  ;;  %v2414_v46 = vmul.f32 0.0013333558, %v7770_v44  ;;  %v6292_v57 = vcvt.f32.s32 %v6291_v14  ;;  %v7785_v42 = vadd.f32 0.05550411, %v2444_v58 }
 0x4ac   : > { %v2381_v33 = vfloor.f32 %v2365_v59  ;;  %v5838_v39 = vpop.f32.mrb[26].mxu1  ;;  %v2853_v32 = vsub.f32 2.0, %v2837_v62  ;;  %v2551_v25 = vadd.f32 1.0, %v2535_v22 }
 0x4ad   : > { %v2286_v53 = vadd.f32 %v5838_v39, %v7695_v0  ;;  %v2280_v1 = vpop.f32.mrb[27].mxu1  ;;  %v2838_v21 = vmul.f32 %v2822_v41, %v7714_v26  ;;  %v2430_v60 = vadd.f32 0.009618129, %v2414_v46  ;;  %v7780_v55 = vadd.s32 127, %v6292_v57 }
 0x4ae   : > { %v7782_v12 = vsub.f32 %v2349_v13, %v2381_v33  ;;  %v6289_v24 = vtrunc.f32 %v2381_v33  ;;  %v2281_v59 = vadd.f32 %v7695_v0, %v2280_v1  ;;  %v2869_v28 = vmul.f32 %v2853_v32, %v2821_v61 }
 0x4af   : > { %v2320_v3 = vmax.f32 %v2286_v53, -30.0  ;;  %v2854_v14 = vsub.f32 2.0, %v2838_v21  ;;  %v2446_v16 = vmul.f32 %v2430_v60, %v7770_v44  ;;  %v2459_v13 = vadd.f32 0.05550411, %v2443_v63 }
 0x4b0   : > { %v2413_v18 = vmul.f32 0.0013333558, %v7782_v12  ;;  %v6290_v62 = vcvt.f32.s32 %v6289_v24  ;;  %v2319_v22 = vmax.f32 %v2281_v59, -30.0  ;;  %v2885_v46 = vmul.f32 %v2869_v28, %v7711_v38 }
 0x4b1   : > { %v2336_v26 = vmin.f32 %v2320_v3, 20.0  ;;  %v2870_v57 = vmul.f32 %v2854_v14, %v2822_v41  ;;  %v2631_v61 = vmul.f32 %v2599_v17, %v2551_v25  ;;  %v2552_v1 = vadd.f32 1.0, %v2536_v10 }
 0x4b2   : > { %v2429_v39 = vadd.f32 0.009618129, %v2413_v18  ;;  %v2335_v58 = vmin.f32 %v2319_v22, 20.0  ;;  %5877 = vmatprep.mubr.f32.mxu0 %v2885_v46  ;;  %v7794_v32 = vadd.f32 0.05550411, %v2446_v16  ;;  %v7796_v21 = vadd.s32 127, %v6290_v62 }
 0x4b3   : > { %v2352_v53 = vmul.f32 1.442695, %v2336_v26  ;;  %v2886_v60 = vmul.f32 %v2870_v57, %v7708_v15  ;;  %v2647_v24 = vadd.f32 2.0, %v2631_v61  ;;  %v2473_v38 = vmul.f32 %v2457_v40, %v7744_v37 }
 0x4b4   : > { %v2351_v41 = vmul.f32 1.442695, %v2335_v58  ;;  %v2632_v29 = vmul.f32 %v2600_v6, %v2552_v1  ;;  %v2474_v17 = vmul.f32 %v2458_v19, %v7741_v49  ;;  %v2445_v25 = vmul.f32 %v2429_v39, %v7782_v12 }
 0x4b5   : > { %v2368_v63 = vadd.f32 0.5, %v2352_v53  ;;  %5878 = vmatmul.mubr.f32.vlgmr.msra.gmra.mrb[32].mxu0 %v2886_v60  ;;  %v7803_v3 = vmul.f32 %v2647_v24, %v2631_v61  ;;  %v2489_v15 = vadd.f32 0.2402265, %v2473_v38  ;;  %v2475_v10 = vmul.f32 %v2459_v13, %v7754_v56 }
 0x4b6   : > { %v2367_v28 = vadd.f32 0.5, %v2351_v41  ;;  %v2648_v14 = vadd.f32 2.0, %v2632_v29  ;;  %v2490_v16 = vadd.f32 0.2402265, %v2474_v17 }
 0x4b7   : > { %v2384_v59 = vfloor.f32 %v2368_v63  ;;  %v7808_v18 = vadd.f32 2.0, %v7803_v3  ;;  %v2505_v51 = vmul.f32 %v2489_v15, %v7744_v37  ;;  %v2491_v6 = vadd.f32 0.2402265, %v2475_v10 }
 0x4b8   : > { %v2383_v26 = vfloor.f32 %v2367_v28  ;;  %v7813_v22 = vmul.f32 %v2648_v14, %v2632_v29  ;;  %v2506_v13 = vmul.f32 %v2490_v16, %v7741_v49  ;;  %v7831_v16 = vadd.f32 0.05550411, %v2445_v25 }
 0x4b9   : > { %v7811_v19 = vsub.f32 %v2352_v53, %v2384_v59  ;;  %v6295_v62 = vtrunc.f32 %v2384_v59  ;;  %v2711_v46 = vsub.s32 2130706432, %v7808_v18  ;;  %v2521_v57 = vadd.f32 0.6931472, %v2505_v51 }
 0x4ba   : > { %v2507_v39 = vmul.f32 %v2491_v6, %v7754_v56  ;;  %v7819_v60 = vsub.f32 %v2351_v41, %v2383_v26  ;;  %v6293_v1 = vtrunc.f32 %v2383_v26  ;;  %v7823_v24 = vadd.f32 2.0, %v7813_v22 }
 0x4bb   : > { %v2416_v61 = vmul.f32 0.0013333558, %v7811_v19  ;;  %v6296_v58 = vcvt.f32.s32 %v6295_v62  ;;  %v2743_v53 = vmul.f32 %v2711_v46, %v7808_v18  ;;  %v2537_v38 = vmul.f32 %v2521_v57, %v7744_v37 }
 0x4bc   : > { %v2522_v63 = vadd.f32 0.6931472, %v2506_v13  ;;  %v2415_v15 = vmul.f32 0.0013333558, %v7819_v60  ;;  %v6294_v10 = vcvt.f32.s32 %v6293_v1  ;;  %v2712_v28 = vsub.s32 2130706432, %v7823_v24 }
 0x4bd   : > { %v2432_v29 = vadd.f32 0.009618129, %v2416_v61  ;;  %v7826_v17 = vadd.s32 127, %v6296_v58  ;;  %v2759_v59 = vsub.f32 2.0, %v2743_v53  ;;  %v2553_v41 = vadd.f32 1.0, %v2537_v38 }
 0x4be   : > { %v2538_v14 = vmul.f32 %v2522_v63, %v7741_v49  ;;  %v2431_v6 = vadd.f32 0.009618129, %v2415_v15  ;;  %v7834_v62 = vadd.s32 127, %v6294_v10  ;;  %v2744_v26 = vmul.f32 %v2712_v28, %v7823_v24 }
 0x4bf   : > { %v2448_v51 = vmul.f32 %v2432_v29, %v7811_v19  ;;  %v2775_v37 = vmul.f32 %v2759_v59, %v2711_v46  ;;  %v2633_v57 = vmul.f32 %v2601_v9, %v2553_v41  ;;  %v2523_v49 = vadd.f32 0.6931472, %v2507_v39 }
 0x4c0   : > { %v2554_v13 = vadd.f32 1.0, %v2538_v14  ;;  %v2447_v58 = vmul.f32 %v2431_v6, %v7819_v60  ;;  %v7843_v25 = vmul.f32 %v7785_v42, %v7750_v30  ;;  %v2760_v63 = vsub.f32 2.0, %v2744_v26 }
 0x4c1   : > { %v5841_v1 = vpop.f32.mrb[28].mxu1  ;;  %v2791_v46 = vmul.f32 %v2775_v37, %v7808_v18  ;;  %v2649_v29 = vadd.f32 2.0, %v2633_v57  ;;  %v7847_v7 = vadd.f32 0.05550411, %v2448_v51  ;;  %v9059_v10 = vshll.u32 %v7748_v54, 23 }
 0x4c2   : > { %v2296_v53 = vadd.f32 %v5841_v1, %v7695_v0  ;;  %v2290_v38 = vpop.f32.mrb[29].mxu1  ;;  %v2776_v42 = vmul.f32 %v2760_v63, %v2712_v28  ;;  %v7855_v6 = vadd.f32 0.05550411, %v2447_v58  ;;  %v2539_v51 = vmul.f32 %v2523_v49, %v7754_v56 }
 0x4c3   : > { %v2291_v15 = vadd.f32 %v7695_v0, %v2290_v38  ;;  %v2634_v39 = vmul.f32 %v9059_v10, %v2554_v13  ;;  %v2807_v41 = vsub.f32 2.0, %v2791_v46  ;;  %v7853_v14 = vmul.f32 %v2649_v29, %v2633_v57 }
 0x4c4   : > { %v2322_v59 = vmax.f32 %v2296_v53, -30.0  ;;  %v2792_v54 = vmul.f32 %v2776_v42, %v7823_v24 }
 0x4c5   : > { %v2321_v1 = vmax.f32 %v2291_v15, -30.0  ;;  %v5844_v61 = vpop.f32.mrb[30].mxu1  ;;  %v2650_v26 = vadd.f32 2.0, %v2634_v39  ;;  %v2823_v38 = vmul.f32 %v2807_v41, %v2775_v37  ;;  %v7862_v28 = vadd.f32 2.0, %v7853_v14 }
 0x4c6   : > { %v2338_v33 = vmin.f32 %v2322_v59, 20.0  ;;  %v2306_v9 = vadd.f32 %v5844_v61, %v7695_v0  ;;  %v2300_v40 = vpop.f32.mrb[31].mxu1  ;;  %v2808_v56 = vsub.f32 2.0, %v2792_v54 }
 0x4c7   : > { %v2337_v13 = vmin.f32 %v2321_v1, 20.0  ;;  %v2301_v53 = vadd.f32 %v7695_v0, %v2300_v40  ;;  %v7864_v57 = vmul.f32 %v2650_v26, %v2634_v39  ;;  %v2839_v63 = vmul.f32 %v2823_v38, %v7808_v18 }
 0x4c8   : > { %v2354_v58 = vmul.f32 1.442695, %v2338_v33  ;;  %v2324_v46 = vmax.f32 %v2306_v9, -30.0  ;;  %v2713_v61 = vsub.s32 2130706432, %v7862_v28  ;;  %v2824_v40 = vmul.f32 %v2808_v56, %v2776_v42 }
 0x4c9   : > { %v2353_v49 = vmul.f32 1.442695, %v2337_v13  ;;  %v2323_v29 = vmax.f32 %v2301_v53, -30.0  ;;  %v7869_v37 = vadd.f32 2.0, %v7864_v57  ;;  %v2855_v0 = vsub.f32 2.0, %v2839_v63 }
 0x4ca   : > { %v2370_v15 = vadd.f32 0.5, %v2354_v58  ;;  %v2340_v10 = vmin.f32 %v2324_v46, 20.0  ;;  %v2745_v39 = vmul.f32 %v2713_v61, %v7862_v28  ;;  %v2555_v33 = vadd.f32 1.0, %v2539_v51 }
 0x4cb   : > { %v2369_v59 = vadd.f32 0.5, %v2353_v49  ;;  %v2339_v41 = vmin.f32 %v2323_v29, 20.0  ;;  %v2871_v18 = vmul.f32 %v2855_v0, %v2823_v38  ;;  %v2840_v26 = vmul.f32 %v2824_v40, %v7823_v24 }
 0x4cc   : > { %v2386_v9 = vfloor.f32 %v2370_v15  ;;  %v2356_v1 = vmul.f32 1.442695, %v2340_v10  ;;  %v2761_v53 = vsub.f32 2.0, %v2745_v39  ;;  %v2714_v2 = vsub.s32 2130706432, %v7869_v37 }
 0x4cd   : > { %v2385_v54 = vfloor.f32 %v2369_v59  ;;  %v2355_v13 = vmul.f32 1.442695, %v2339_v41  ;;  %v2887_v42 = vmul.f32 %v2871_v18, %v7803_v3  ;;  %v2856_v15 = vsub.f32 2.0, %v2840_v26 }
 0x4ce   : > { %v7874_v36 = vsub.f32 %v2354_v58, %v2386_v9  ;;  %v6299_v46 = vtrunc.f32 %v2386_v9  ;;  %v2372_v63 = vadd.f32 0.5, %v2356_v1  ;;  %v2777_v0 = vmul.f32 %v2761_v53, %v2713_v61 }
 0x4cf   : > { %v7877_v56 = vsub.f32 %v2353_v49, %v2385_v54  ;;  %v6297_v29 = vtrunc.f32 %v2385_v54  ;;  %v2371_v51 = vadd.f32 0.5, %v2355_v13  ;;  %5880 = vmatprep.mubr.f32.mxu0 %v2887_v42  ;;  %v2872_v39 = vmul.f32 %v2856_v15, %v2824_v40 }
 0x4d0   : > { %v2418_v38 = vmul.f32 0.0013333558, %v7874_v36  ;;  %v6300_v10 = vcvt.f32.s32 %v6299_v46  ;;  %v2388_v24 = vfloor.f32 %v2372_v63  ;;  %v2746_v63 = vmul.f32 %v2714_v2, %v7869_v37 }
 0x4d1   : > { %v2417_v59 = vmul.f32 0.0013333558, %v7877_v56  ;;  %v6298_v41 = vcvt.f32.s32 %v6297_v29  ;;  %v2387_v58 = vfloor.f32 %v2371_v51  ;;  %v2492_v40 = vadd.f32 0.2402265, %v7843_v25 }
 0x4d2   : > { %v2434_v9 = vadd.f32 0.009618129, %v2418_v38  ;;  %v7881_v11 = vadd.s32 127, %v6300_v10  ;;  %v7883_v3 = vsub.f32 %v2356_v1, %v2388_v24  ;;  %v7885_v49 = vtrunc.f32 %v2388_v24 }
 0x4d3   : > { %v2433_v18 = vadd.f32 0.009618129, %v2417_v59  ;;  %v7887_v26 = vadd.s32 127, %v6298_v41  ;;  %v7889_v54 = vsub.f32 %v2355_v13, %v2387_v58  ;;  %v6301_v46 = vtrunc.f32 %v2387_v58 }
 0x4d4   : > { %v2450_v61 = vmul.f32 %v2434_v9, %v7874_v36  ;;  %v2420_v53 = vmul.f32 0.0013333558, %v7883_v3  ;;  %v2888_v10 = vmul.f32 %v2872_v39, %v7813_v22  ;;  %v2793_v25 = vmul.f32 %v2777_v0, %v7862_v28 }
 0x4d5   : > { %v2449_v1 = vmul.f32 %v2433_v18, %v7877_v56  ;;  %v2419_v29 = vmul.f32 0.0013333558, %v7889_v54  ;;  %v6302_v51 = vcvt.f32.s32 %v6301_v46  ;;  %v2609_v15 = vshll.u32 %v7887_v26, 23 }
 0x4d6   : > { %v2436_v13 = vadd.f32 0.009618129, %v2420_v53  ;;  %v7901_v24 = vadd.f32 0.05550411, %v2450_v61  ;;  %5881 = vmatmul.mubr.f32.gmra.mrb[34].mxu0 %v2888_v10  ;;  %v2762_v18 = vsub.f32 2.0, %v2746_v63  ;;  %v9060_v46 = vshll.u32 %v7765_v34, 23 }
 0x4d7   : > { %v2435_v59 = vadd.f32 0.009618129, %v2419_v29  ;;  %v7903_v41 = vadd.s32 127, %v6302_v51  ;;  %v2465_v58 = vadd.f32 0.05550411, %v2449_v1  ;;  %v2809_v22 = vsub.f32 2.0, %v2793_v25 }
 0x4d8   : > { %v2452_v9 = vmul.f32 %v2436_v13, %v7883_v3  ;;  %v2635_v42 = vmul.f32 %v9060_v46, %v2555_v33  ;;  %v2508_v39 = vmul.f32 %v2492_v40, %v7750_v30  ;;  %v2778_v29 = vmul.f32 %v2762_v18, %v2714_v2 }
 0x4d9   : > { %v2451_v53 = vmul.f32 %v2435_v59, %v7889_v54  ;;  %v2477_v1 = vmul.f32 %v7831_v16, %v7782_v12  ;;  %v2825_v63 = vmul.f32 %v2809_v22, %v2777_v0  ;;  %v2478_v34 = vmul.f32 %v7794_v32, %v7770_v44 }
 0x4da   : > { %v7912_v61 = vadd.f32 0.05550411, %v2452_v9  ;;  %v2651_v51 = vadd.f32 2.0, %v2635_v42  ;;  %v2524_v10 = vadd.f32 0.6931472, %v2508_v39  ;;  %v2794_v33 = vmul.f32 %v2778_v29, %v7869_v37 }
 0x4db   : > { %v7916_v13 = vadd.f32 0.05550411, %v2451_v53  ;;  %v2493_v25 = vadd.f32 0.2402265, %v2477_v1  ;;  %v2479_v40 = vmul.f32 %v7855_v6, %v7819_v60  ;;  %v2841_v2 = vmul.f32 %v2825_v63, %v7862_v28 }
 0x4dc   : > { %v7921_v59 = vmul.f32 %v2651_v51, %v2635_v42  ;;  %v2540_v9 = vmul.f32 %v2524_v10, %v7750_v30  ;;  %v2494_v16 = vadd.f32 0.2402265, %v2478_v34  ;;  %v2480_v0 = vmul.f32 %v7847_v7, %v7811_v19 }
 0x4dd   : > { %v2810_v18 = vsub.f32 2.0, %v2794_v33  ;;  %v2509_v32 = vmul.f32 %v2493_v25, %v7782_v12  ;;  %v2495_v42 = vadd.f32 0.2402265, %v2479_v40  ;;  %v2857_v53 = vsub.f32 2.0, %v2841_v2 }
 0x4de   : > { %v7930_v46 = vadd.f32 2.0, %v7921_v59  ;;  %v2556_v22 = vadd.f32 1.0, %v2540_v9  ;;  %v2510_v39 = vmul.f32 %v2494_v16, %v7770_v44  ;;  %v2496_v6 = vadd.f32 0.2402265, %v2480_v0 }
 0x4df   : > { %v2826_v51 = vmul.f32 %v2810_v18, %v2778_v29  ;;  %v2525_v30 = vadd.f32 0.6931472, %v2509_v32  ;;  %v2511_v1 = vmul.f32 %v2495_v42, %v7819_v60  ;;  %v2873_v10 = vmul.f32 %v2857_v53, %v2825_v63 }
 0x4e0   : > { %v2715_v28 = vsub.s32 2130706432, %v7930_v46  ;;  %v9061_v7 = vshll.u32 %v7762_v47, 23  ;;  %v2526_v33 = vadd.f32 0.6931472, %v2510_v39  ;;  %v2512_v38 = vmul.f32 %v2496_v6, %v7811_v19 }
 0x4e1   : > { %v2842_v25 = vmul.f32 %v2826_v51, %v7869_v37  ;;  %v2541_v2 = vmul.f32 %v2525_v30, %v7782_v12  ;;  %v2527_v9 = vadd.f32 0.6931472, %v2511_v1  ;;  %v2889_v29 = vmul.f32 %v2873_v10, %v7853_v14 }
 0x4e2   : > { %v2636_v34 = vmul.f32 %v9061_v7, %v2556_v22  ;;  %v2747_v40 = vmul.f32 %v2715_v28, %v7930_v46  ;;  %v2542_v0 = vmul.f32 %v2526_v33, %v7770_v44  ;;  %v2528_v18 = vadd.f32 0.6931472, %v2512_v38 }
 0x4e3   : > { %v2858_v63 = vsub.f32 2.0, %v2842_v25  ;;  %v2557_v47 = vadd.f32 1.0, %v2541_v2  ;;  %v2543_v42 = vmul.f32 %v2527_v9, %v7819_v60  ;;  %5883 = vmatprep.mubr.f32.mxu0 %v2889_v29  ;;  %v2481_v12 = vmul.f32 %v2465_v58, %v7877_v56 }
 0x4e4   : > { %v2652_v16 = vadd.f32 2.0, %v2636_v34  ;;  %v2763_v32 = vsub.f32 2.0, %v2747_v40  ;;  %v2558_v37 = vadd.f32 1.0, %v2542_v0  ;;  %v2544_v22 = vmul.f32 %v2528_v18, %v7811_v19 }
 0x4e5   : > { %v2874_v39 = vmul.f32 %v2858_v63, %v2826_v51  ;;  %v9062_v14 = vshll.u32 %v7796_v21, 23  ;;  %v2559_v44 = vadd.f32 1.0, %v2543_v42  ;;  %v9063_v1 = vshll.u32 %v7780_v55, 23 }
 0x4e6   : > { %v7945_v53 = vmul.f32 %v2652_v16, %v2636_v34  ;;  %v2779_v6 = vmul.f32 %v2763_v32, %v2715_v28  ;;  %v2560_v10 = vadd.f32 1.0, %v2544_v22  ;;  %v2497_v7 = vadd.f32 0.2402265, %v2481_v12 }
 0x4e7   : > { %v2637_v30 = vmul.f32 %v9062_v14, %v2557_v47  ;;  %v2638_v60 = vmul.f32 %v9063_v1, %v2558_v37  ;;  %v2890_v34 = vmul.f32 %v2874_v39, %v7864_v57  ;;  %v9064_v58 = vshll.u32 %v7834_v62, 23 }
 0x4e8   : > { %v7952_v38 = vadd.f32 2.0, %v7945_v53  ;;  %v2795_v19 = vmul.f32 %v2779_v6, %v7930_v46  ;;  %v9065_v25 = vshll.u32 %v7826_v17, 23  ;;  %v2513_v2 = vmul.f32 %v2497_v7, %v7877_v56 }
 0x4e9   : > { %v2653_v33 = vadd.f32 2.0, %v2637_v30  ;;  %v2639_v51 = vmul.f32 %v9064_v58, %v2559_v44  ;;  %v2654_v28 = vadd.f32 2.0, %v2638_v60  ;;  %5884 = vmatmul.mubr.f32.gmra.mrb[36].mxu0 %v2890_v34  ;;  %v2482_v57 = vmul.f32 %v7901_v24, %v7874_v36 }
 0x4ea   : > { %v2716_v21 = vsub.s32 2130706432, %v7952_v38  ;;  %v2640_v40 = vmul.f32 %v9065_v25, %v2560_v10  ;;  %v2811_v55 = vsub.f32 2.0, %v2795_v19  ;;  %v2529_v18 = vadd.f32 0.6931472, %v2513_v2 }
 0x4eb   : > { %v7964_v9 = vmul.f32 %v2653_v33, %v2637_v30  ;;  %v2655_v29 = vadd.f32 2.0, %v2639_v51  ;;  %v7969_v62 = vmul.f32 %v2654_v28, %v2638_v60  ;;  %v2498_v47 = vadd.f32 0.2402265, %v2482_v57 }
 0x4ec   : > { %v2748_v16 = vmul.f32 %v2716_v21, %v7952_v38  ;;  %v2656_v0 = vadd.f32 2.0, %v2640_v40  ;;  %v2827_v63 = vmul.f32 %v2811_v55, %v2779_v6  ;;  %v2545_v24 = vmul.f32 %v2529_v18, %v7877_v56 }
 0x4ed   : > { %v7972_v17 = vadd.f32 2.0, %v7964_v9  ;;  %v7974_v32 = vmul.f32 %v2655_v29, %v2639_v51  ;;  %v7977_v37 = vadd.f32 2.0, %v7969_v62  ;;  %v2514_v14 = vmul.f32 %v2498_v47, %v7874_v36 }
 0x4ee   : > { %v2764_v42 = vsub.f32 2.0, %v2748_v16  ;;  %v7979_v22 = vmul.f32 %v2656_v0, %v2640_v40  ;;  %v2843_v12 = vmul.f32 %v2827_v63, %v7930_v46  ;;  %v2561_v60 = vadd.f32 1.0, %v2545_v24 }
 0x4ef   : > { %v2717_v39 = vsub.s32 2130706432, %v7972_v17  ;;  %v7985_v6 = vadd.f32 2.0, %v7974_v32  ;;  %v2718_v44 = vsub.s32 2130706432, %v7977_v37  ;;  %v2530_v46 = vadd.f32 0.6931472, %v2514_v14 }
 0x4f0   : > { %v2780_v30 = vmul.f32 %v2764_v42, %v2716_v21  ;;  %v7990_v1 = vadd.f32 2.0, %v7979_v22  ;;  %v2859_v10 = vsub.f32 2.0, %v2843_v12  ;;  %v2641_v58 = vmul.f32 %v2609_v15, %v2561_v60 }
 0x4f1   : > { %v2749_v7 = vmul.f32 %v2717_v39, %v7972_v17  ;;  %v2719_v56 = vsub.s32 2130706432, %v7985_v6  ;;  %v2750_v19 = vmul.f32 %v2718_v44, %v7977_v37  ;;  %v2546_v25 = vmul.f32 %v2530_v46, %v7874_v36 }
 0x4f2   : > { %v2796_v34 = vmul.f32 %v2780_v30, %v7952_v38  ;;  %v2720_v33 = vsub.s32 2130706432, %v7990_v1  ;;  %v2875_v51 = vmul.f32 %v2859_v10, %v2827_v63  ;;  %v2657_v29 = vadd.f32 2.0, %v2641_v58 }
 0x4f3   : > { %v2765_v21 = vsub.f32 2.0, %v2749_v7  ;;  %v2751_v28 = vmul.f32 %v2719_v56, %v7985_v6  ;;  %v2766_v2 = vsub.f32 2.0, %v2750_v19  ;;  %v2562_v18 = vadd.f32 1.0, %v2546_v25 }
 0x4f4   : > { %v2812_v40 = vsub.f32 2.0, %v2796_v34  ;;  %v2752_v55 = vmul.f32 %v2720_v33, %v7990_v1  ;;  %v2891_v57 = vmul.f32 %v2875_v51, %v7921_v59  ;;  %v8003_v15 = vmul.f32 %v2657_v29, %v2641_v58 }
 0x4f5   : > { %v2781_v16 = vmul.f32 %v2765_v21, %v2717_v39  ;;  %v2767_v0 = vsub.f32 2.0, %v2751_v28  ;;  %v2782_v42 = vmul.f32 %v2766_v2, %v2718_v44  ;;  %v9066_v36 = vshll.u32 %v7881_v11, 23 }
 0x4f6   : > { %v2828_v47 = vmul.f32 %v2812_v40, %v2780_v30  ;;  %v2768_v26 = vsub.f32 2.0, %v2752_v55  ;;  %5886 = vmatprep.mubr.f32.mxu0 %v2891_v57  ;;  %v2483_v14 = vmul.f32 %v7916_v13, %v7889_v54  ;;  %v2689_v30 = vadd.f32 2.0, %v8003_v15 }
 0x4f7   : > { %v2797_v63 = vmul.f32 %v2781_v16, %v7972_v17  ;;  %v2783_v24 = vmul.f32 %v2767_v0, %v2719_v56  ;;  %v2642_v12 = vmul.f32 %v9066_v36, %v2562_v18  ;;  %v2798_v39 = vmul.f32 %v2782_v42, %v7977_v37 }
 0x4f8   : > { %v2844_v59 = vmul.f32 %v2828_v47, %v7952_v38  ;;  %v2784_v60 = vmul.f32 %v2768_v26, %v2720_v33  ;;  %v2499_v46 = vadd.f32 0.2402265, %v2483_v14  ;;  %v2721_v19 = vsub.s32 2130706432, %v2689_v30 }
 0x4f9   : > { %v2813_v44 = vsub.f32 2.0, %v2797_v63  ;;  %v2799_v10 = vmul.f32 %v2783_v24, %v7985_v6  ;;  %v2658_v7 = vadd.f32 2.0, %v2642_v12  ;;  %v2814_v56 = vsub.f32 2.0, %v2798_v39 }
 0x4fa   : > { %v2860_v34 = vsub.f32 2.0, %v2844_v59  ;;  %v2800_v11 = vmul.f32 %v2784_v60, %v7990_v1  ;;  %v2515_v38 = vmul.f32 %v2499_v46, %v7889_v54  ;;  %v2753_v25 = vmul.f32 %v2721_v19, %v2689_v30 }
 0x4fb   : > { %v2829_v58 = vmul.f32 %v2813_v44, %v2781_v16  ;;  %v2815_v51 = vsub.f32 2.0, %v2799_v10  ;;  %v8015_v13 = vmul.f32 %v2658_v7, %v2642_v12  ;;  %v2830_v33 = vmul.f32 %v2814_v56, %v2782_v42 }
 0x4fc   : > { %v2876_v21 = vmul.f32 %v2860_v34, %v2828_v47  ;;  %v2816_v28 = vsub.f32 2.0, %v2800_v11  ;;  %v2531_v29 = vadd.f32 0.6931472, %v2515_v38  ;;  %v2769_v18 = vsub.f32 2.0, %v2753_v25 }
 0x4fd   : > { %v2845_v40 = vmul.f32 %v2829_v58, %v7972_v17  ;;  %v2831_v2 = vmul.f32 %v2815_v51, %v2783_v24  ;;  %v2690_v55 = vadd.f32 2.0, %v8015_v13  ;;  %v2846_v0 = vmul.f32 %v2830_v33, %v7977_v37 }
 0x4fe   : > { %v2892_v57 = vmul.f32 %v2876_v21, %v7945_v53  ;;  %v2832_v16 = vmul.f32 %v2816_v28, %v2784_v60  ;;  %v2547_v47 = vmul.f32 %v2531_v29, %v7889_v54  ;;  %v2785_v24 = vmul.f32 %v2769_v18, %v2721_v19 }
 0x4ff   : > { %v2861_v26 = vsub.f32 2.0, %v2845_v40  ;;  %v2847_v63 = vmul.f32 %v2831_v2, %v7985_v6  ;;  %v2722_v36 = vsub.s32 2130706432, %v2690_v55  ;;  %v2862_v42 = vsub.f32 2.0, %v2846_v0 }
 0x500   : > { %5887 = vmatmul.mubr.f32.gmra.mrb[38].mxu0 %v2892_v57  ;;  %v2848_v17 = vmul.f32 %v2832_v16, %v7990_v1  ;;  %v2484_v12 = vmul.f32 %v7912_v61, %v7883_v3  ;;  %v2563_v37 = vadd.f32 1.0, %v2547_v47  ;;  %v2801_v44 = vmul.f32 %v2785_v24, %v2689_v30 }
 0x501   : > { %v2877_v14 = vmul.f32 %v2861_v26, %v2829_v58  ;;  %v2863_v53 = vsub.f32 2.0, %v2847_v63  ;;  %v2754_v59 = vmul.f32 %v2722_v36, %v2690_v55  ;;  %v2878_v39 = vmul.f32 %v2862_v42, %v2830_v33 }
 0x502   : > { %v2864_v60 = vsub.f32 2.0, %v2848_v17  ;;  %v2500_v10 = vadd.f32 0.2402265, %v2484_v12  ;;  %v9067_v46 = vshll.u32 %v7903_v41, 23  ;;  %v2817_v11 = vsub.f32 2.0, %v2801_v44 }
 0x503   : > { %v2893_v6 = vmul.f32 %v2877_v14, %v7964_v9  ;;  %v2879_v7 = vmul.f32 %v2863_v53, %v2831_v2  ;;  %v2770_v54 = vsub.f32 2.0, %v2754_v59  ;;  %v2894_v1 = vmul.f32 %v2878_v39, %v7969_v62 }
 0x504   : > { %v2643_v34 = vmul.f32 %v9067_v46, %v2563_v37  ;;  %v2880_v56 = vmul.f32 %v2864_v60, %v2832_v16  ;;  %v2516_v61 = vmul.f32 %v2500_v10, %v7883_v3  ;;  %v9068_v38 = vcvt.f32.s32 %v7885_v49 }
 0x505   : > { %5889 = vmatprep.mubr.f32.mxu0 %v2893_v6  ;;  %v2895_v19 = vmul.f32 %v2879_v7, %v7974_v32  ;;  %v2786_v58 = vmul.f32 %v2770_v54, %v2722_v36  ;;  %v2833_v9 = vmul.f32 %v2817_v11, %v2785_v24 }
 0x506   : > { %v2659_v51 = vadd.f32 2.0, %v2643_v34  ;;  %v2596_v21 = vadd.s32 127, %v9068_v38  ;;  %5890 = vmatmul.mubr.f32.gmra.mrb[40].mxu0 %v2894_v1  ;;  %v2532_v33 = vadd.f32 0.6931472, %v2516_v61  ;;  %v2896_v62 = vmul.f32 %v2880_v56, %v7979_v22  ;;  %v3680_v61 = vld [vmem:[#allocation3 + $0x100] sm:$0xff] }
 0x507   : > { %5892 = vmatprep.mubr.f32.mxu0 %v2895_v19  ;;  %v2802_v41 = vmul.f32 %v2786_v58, %v2690_v55  ;;  %v2849_v25 = vmul.f32 %v2833_v9, %v2689_v30  ;;  %v3681_v19 = vld [vmem:[#allocation3 + $0x108] sm:$0xff] }
 0x508   : > { %v2675_v28 = vmul.f32 %v2659_v51, %v2643_v34  ;;  %v2548_v40 = vmul.f32 %v2532_v33, %v7883_v3  ;;  %v2612_v57 = vshll.u32 %v2596_v21, 23  ;;  %v8042_v51 = vld [vmem:[%s8980_s6 + $0x1] ss:$0 sm:$0xff]  ;;  %v3682_v21 = vld [vmem:[#allocation3 + $0x110] sm:$0xff] }
 0x509   : > { %v2818_v2 = vsub.f32 2.0, %v2802_v41  ;;  %v2865_v32 = vsub.f32 2.0, %v2849_v25 }
 0x50a   : > { %v2691_v29 = vadd.f32 2.0, %v2675_v28  ;;  %5893 = vmatmul.mubr.f32.gmra.mrb[42].mxu0 %v2896_v62  ;;  %v2564_v0 = vadd.f32 1.0, %v2548_v40 }
 0x50b   : > { %v2834_v16 = vmul.f32 %v2818_v2, %v2786_v58  ;;  %v2881_v18 = vmul.f32 %v2865_v32, %v2833_v9  ;;  %v6145_v58 = vpack.c.bf16 %v3681_v19, %v3680_v61  ;;  %v3683_v9 = vld [vmem:[#allocation3 + $0x118] sm:$0xff]  ;;  %v3684_v2 = vld [vmem:[#allocation3 + $0x120] sm:$0xff] }
 0x50c   : > { %v2723_v49 = vsub.s32 2130706432, %v2691_v29  ;;  %v2644_v26 = vmul.f32 %v2612_v57, %v2564_v0 }
 0x50d   : > { %v2850_v63 = vmul.f32 %v2834_v16, %v2690_v55  ;;  %v2897_v47 = vmul.f32 %v2881_v18, %v8003_v15  ;;  %6146 = vmatprep.subr.bf16.mxu1 %v6145_v58  ;;  %v3686_v18 = vld [vmem:[#allocation3 + $0x130] sm:$0xff] }
 0x50e   : > { %v2755_v36 = vmul.f32 %v2723_v49, %v2691_v29  ;;  %v2660_v42 = vadd.f32 2.0, %v2644_v26  ;;  %6148 = vmatpush3.bf16.msra.mxu1 %v6145_v58 }
 0x50f   : > { %v2866_v17 = vsub.f32 2.0, %v2850_v63  ;;  %5895 = vmatprep.mubr.f32.mxu0 %v2897_v47  ;;  %v3688_v63 = vld [vmem:[#allocation3 + $0x140] sm:$0xff] }
 0x510   : > { %v2771_v22 = vsub.f32 2.0, %v2755_v36  ;;  %v2676_v30 = vmul.f32 %v2660_v42, %v2644_v26  ;;  %v3687_v26 = vld [vmem:[#allocation3 + $0x138] sm:$0xff]  ;;  %v3689_v42 = vld [vmem:[#allocation3 + $0x148] sm:$0xff] }
 0x511   : > { %v2882_v3 = vmul.f32 %v2866_v17, %v2834_v16  ;;  %v6157_v47 = vpack.c.bf16 %v3687_v26, %v3686_v18  ;;  %v6161_v17 = vpack.c.bf16 %v3689_v42, %v3688_v63 }
 0x512   : > { %v2787_v24 = vmul.f32 %v2771_v22, %v2723_v49  ;;  %v2692_v12 = vadd.f32 2.0, %v2676_v30  ;;  %v3690_v22 = vld [vmem:[#allocation3 + $0x150] sm:$0xff] }
 0x513   : > { %v2898_v14 = vmul.f32 %v2882_v3, %v8015_v13 }
 0x514   : > { %v2803_v53 = vmul.f32 %v2787_v24, %v2691_v29  ;;  %v2724_v59 = vsub.s32 2130706432, %v2692_v12 }
 0x515   : > { %5896 = vmatmul.mubr.f32.gmra.mrb[44].mxu0 %v2898_v14 }
 0x516   : > { %v2819_v37 = vsub.f32 2.0, %v2803_v53  ;;  %v2756_v39 = vmul.f32 %v2724_v59, %v2692_v12  ;;  %v3692_v53 = vld [vmem:[#allocation3 + $0x160] sm:$0xff] }
 0x518   : > { %v2835_v60 = vmul.f32 %v2819_v37, %v2787_v24  ;;  %v2772_v55 = vsub.f32 2.0, %v2756_v39 }
 0x51a   : > { %v2851_v44 = vmul.f32 %v2835_v60, %v2691_v29  ;;  %v2788_v10 = vmul.f32 %v2772_v55, %v2724_v59  ;;  %v3685_v29 = vld [vmem:[#allocation3 + $0x128] sm:$0xff] }
 0x51b   : > { %v6153_v32 = vpack.c.bf16 %v3685_v29, %v3684_v2  ;;  %v3693_v59 = vld [vmem:[#allocation3 + $0x168] sm:$0xff] }
 0x51c   : > { %v2867_v15 = vsub.f32 2.0, %v2851_v44  ;;  %v2804_v6 = vmul.f32 %v2788_v10, %v2692_v12  ;;  %v6169_v55 = vpack.c.bf16 %v3693_v59, %v3692_v53 }
 0x51e   : > { %v2883_v7 = vmul.f32 %v2867_v15, %v2835_v60  ;;  %v2820_v54 = vsub.f32 2.0, %v2804_v6  ;;  %v3695_v15 = vld [vmem:[#allocation3 + $0x178] sm:$0xff] }
 0x520   : > { %v2899_v46 = vmul.f32 %v2883_v7, %v2675_v28  ;;  %v2836_v34 = vmul.f32 %v2820_v54, %v2788_v10  ;;  %v6149_v28 = vpack.c.bf16 %v3683_v9, %v3682_v21  ;;  %v3694_v10 = vld [vmem:[#allocation3 + $0x170] sm:$0xff] }
 0x522   : > { %5898 = vmatprep.mubr.f32.mxu0 %v2899_v46  ;;  %v2852_v1 = vmul.f32 %v2836_v34, %v2692_v12  ;;  %6150 = vmatprep.subr.bf16.mxu1 %v6149_v28  ;;  %v6173_v46 = vpack.c.bf16 %v3695_v15, %v3694_v10 }
 0x523   : > { %6152 = vmatpush3.bf16.msra.mxu1 %v6149_v28 }
 0x524   : > { %v2868_v56 = vsub.f32 2.0, %v2852_v1  ;;  %6154 = vmatprep.subr.bf16.mxu1 %v6153_v32 }
 0x526   : > { %v2884_v11 = vmul.f32 %v2868_v56, %v2836_v34 }
 0x527   : > { %6156 = vmatpush3.bf16.msra.mxu1 %v6153_v32 }
 0x528   : > { %v2900_v13 = vmul.f32 %v2884_v11, %v2676_v30  ;;  %6158 = vmatprep.subr.bf16.mxu1 %v6157_v47 }
 0x52a   : > { %5899 = vmatmul.mubr.f32.gmra.mrb[46].mxu0 %v2900_v13 }
 0x52b   : > { %6160 = vmatpush3.bf16.msra.mxu1 %v6157_v47 }
 0x52c   : > { %6162 = vmatprep.subr.bf16.mxu1 %v6161_v17 }
 0x52f   : > { %6164 = vmatpush3.bf16.msra.mxu1 %v6161_v17 }
 0x588   : > { %v5879_v38 = vpop.f32.mrb[32].mxu0 }
 0x589   : > { %v2998_v33 = vadd.f32 %v5879_v38, %v8042_v51  ;;  %v2992_v41 = vpop.f32.mrb[33].mxu0 }
 0x58a   : > { %v2993_v62 = vadd.f32 %v8042_v51, %v2992_v41 }
 0x58b   : > { %v3072_v25 = vadd.f32 %v2998_v33, %v7468_v4 }
 0x58c   : > { %v3071_v40 = vadd.f32 %v2993_v62, %v7485_v43  ;;  %v3691_v43 = vld [vmem:[#allocation3 + $0x158] sm:$0xff] }
 0x58d   : > { %v3088_v57 = vmax.f32 %v3072_v25, -30.0  ;;  %v6165_v12 = vpack.c.bf16 %v3691_v43, %v3690_v22 }
 0x58e   : > { %v3087_v0 = vmax.f32 %v3071_v40, -30.0 }
 0x58f   : > { %v3104_v16 = vmin.f32 %v3088_v57, 20.0  ;;  %6166 = vmatprep.subr.bf16.mxu1 %v6165_v12 }
 0x590   : > { %v3103_v49 = vmin.f32 %v3087_v0, 20.0  ;;  %6168 = vmatpush3.bf16.msra.mxu1 %v6165_v12 }
 0x591   : > { %v3120_v36 = vmul.f32 1.442695, %v3104_v16  ;;  %6170 = vmatprep.subr.bf16.mxu1 %v6169_v55 }
 0x592   : > { %v3119_v4 = vmul.f32 1.442695, %v3103_v49 }
 0x593   : > { %v3136_v30 = vadd.f32 0.5, %v3120_v36 }
 0x594   : > { %v3135_v3 = vadd.f32 0.5, %v3119_v4  ;;  %6172 = vmatpush3.bf16.msra.mxu1 %v6169_v55 }
 0x595   : > { %v3152_v24 = vfloor.f32 %v3136_v30  ;;  %6174 = vmatprep.subr.bf16.mxu1 %v6173_v46 }
 0x596   : > { %v3151_v14 = vfloor.f32 %v3135_v3 }
 0x597   : > { %v3168_v37 = vsub.f32 %v3120_v36, %v3152_v24  ;;  %v6307_v56 = vtrunc.f32 %v3152_v24 }
 0x598   : > { %v3167_v39 = vsub.f32 %v3119_v4, %v3151_v14  ;;  %v6305_v11 = vtrunc.f32 %v3151_v14  ;;  %6176 = vmatpush3.bf16.msra.mxu1 %v6173_v46 }
 0x599   : > { %v3184_v60 = vmul.f32 0.0013333558, %v3168_v37  ;;  %v6308_v38 = vcvt.f32.s32 %v6307_v56 }
 0x59a   : > { %v3183_v44 = vmul.f32 0.0013333558, %v3167_v39  ;;  %v6306_v21 = vcvt.f32.s32 %v6305_v11 }
 0x59b   : > { %v3200_v6 = vadd.f32 0.009618129, %v3184_v60  ;;  %v3360_v62 = vadd.s32 127, %v6308_v38 }
 0x59c   : > { %v3199_v7 = vadd.f32 0.009618129, %v3183_v44  ;;  %v3359_v25 = vadd.s32 127, %v6306_v21 }
 0x59d   : > { %v3216_v54 = vmul.f32 %v3200_v6, %v3168_v37  ;;  %v3376_v32 = vshll.u32 %v3360_v62, 23 }
 0x59e   : > { %v3215_v34 = vmul.f32 %v3199_v7, %v3167_v39  ;;  %v3375_v26 = vshll.u32 %v3359_v25, 23 }
 0x59f   : > { %v3232_v1 = vadd.f32 0.05550411, %v3216_v54 }
 0x5a0   : > { %v3231_v13 = vadd.f32 0.05550411, %v3215_v34 }
 0x5a1   : > { %v3248_v61 = vmul.f32 %v3232_v1, %v3168_v37 }
 0x5a2   : > { %v3247_v19 = vmul.f32 %v3231_v13, %v3167_v39 }
 0x5a3   : > { %v3264_v58 = vadd.f32 0.2402265, %v3248_v61 }
 0x5a4   : > { %v3263_v9 = vadd.f32 0.2402265, %v3247_v19 }
 0x5a5   : > { %v3280_v33 = vmul.f32 %v3264_v58, %v3168_v37 }
 0x5a6   : > { %v3279_v41 = vmul.f32 %v3263_v9, %v3167_v39 }
 0x5a7   : > { %v3296_v28 = vadd.f32 0.6931472, %v3280_v33 }
 0x5a8   : > { %v3295_v40 = vadd.f32 0.6931472, %v3279_v41 }
 0x5a9   : > { %v3312_v2 = vmul.f32 %v3296_v28, %v3168_v37  ;;  %v5882_v0 = vpop.f32.mrb[34].mxu0 }
 0x5aa   : > { %v3311_v29 = vmul.f32 %v3295_v40, %v3167_v39  ;;  %v3008_v16 = vadd.f32 %v5882_v0, %v8042_v51  ;;  %v3002_v49 = vpop.f32.mrb[35].mxu0 }
 0x5ab   : > { %v3328_v57 = vadd.f32 1.0, %v3312_v2  ;;  %v3003_v36 = vadd.f32 %v8042_v51, %v3002_v49 }
 0x5ac   : > { %v3327_v18 = vadd.f32 1.0, %v3311_v29  ;;  %v3074_v47 = vadd.f32 %v3008_v16, %v7544_v23 }
 0x5ad   : > { %v3408_v63 = vmul.f32 %v3376_v32, %v3328_v57  ;;  %v3073_v17 = vadd.f32 %v3003_v36, %v7533_v52 }
 0x5ae   : > { %v3407_v42 = vmul.f32 %v3375_v26, %v3327_v18  ;;  %v3090_v22 = vmax.f32 %v3074_v47, -30.0 }
 0x5af   : > { %v3424_v4 = vadd.f32 2.0, %v3408_v63  ;;  %v3089_v30 = vmax.f32 %v3073_v17, -30.0 }
 0x5b0   : > { %v3423_v43 = vadd.f32 2.0, %v3407_v42  ;;  %v3106_v24 = vmin.f32 %v3090_v22, 20.0 }
 0x5b1   : > { %v8052_v3 = vmul.f32 %v3424_v4, %v3408_v63  ;;  %v3105_v14 = vmin.f32 %v3089_v30, 20.0 }
 0x5b2   : > { %v8054_v12 = vmul.f32 %v3423_v43, %v3407_v42  ;;  %v3122_v59 = vmul.f32 1.442695, %v3106_v24 }
 0x5b3   : > { %v3456_v53 = vadd.f32 2.0, %v8052_v3  ;;  %v3121_v39 = vmul.f32 1.442695, %v3105_v14 }
 0x5b4   : > { %v3455_v37 = vadd.f32 2.0, %v8054_v12  ;;  %v3138_v60 = vadd.f32 0.5, %v3122_v59 }
 0x5b5   : > { %v3488_v23 = vsub.s32 2130706432, %v3456_v53  ;;  %v3137_v44 = vadd.f32 0.5, %v3121_v39 }
 0x5b6   : > { %v3487_v55 = vsub.s32 2130706432, %v3455_v37  ;;  %v3154_v10 = vfloor.f32 %v3138_v60 }
 0x5b7   : > { %v3520_v52 = vmul.f32 %v3488_v23, %v3456_v53  ;;  %v3153_v6 = vfloor.f32 %v3137_v44 }
 0x5b8   : > { %v3519_v15 = vmul.f32 %v3487_v55, %v3455_v37  ;;  %v3170_v54 = vsub.f32 %v3122_v59, %v3154_v10  ;;  %v6311_v32 = vtrunc.f32 %v3154_v10 }
 0x5b9   : > { %v3536_v7 = vsub.f32 2.0, %v3520_v52  ;;  %v3169_v34 = vsub.f32 %v3121_v39, %v3153_v6  ;;  %v6309_v18 = vtrunc.f32 %v3153_v6 }
 0x5ba   : > { %v3535_v46 = vsub.f32 2.0, %v3519_v15  ;;  %v3186_v56 = vmul.f32 0.0013333558, %v3170_v54  ;;  %v6312_v43 = vcvt.f32.s32 %v6311_v32 }
 0x5bb   : > { %v3552_v1 = vmul.f32 %v3536_v7, %v3488_v23  ;;  %v3185_v13 = vmul.f32 0.0013333558, %v3169_v34  ;;  %v6310_v14 = vcvt.f32.s32 %v6309_v18 }
 0x5bc   : > { %v3551_v11 = vmul.f32 %v3535_v46, %v3487_v55  ;;  %v5885_v61 = vpop.f32.mrb[36].mxu0  ;;  %v3202_v58 = vadd.f32 0.009618129, %v3186_v56  ;;  %v3362_v10 = vadd.s32 127, %v6312_v43 }
 0x5bd   : > { %v3568_v19 = vmul.f32 %v3552_v1, %v3456_v53  ;;  %v3018_v38 = vadd.f32 %v5885_v61, %v8042_v51  ;;  %v3012_v21 = vpop.f32.mrb[37].mxu0  ;;  %v3201_v33 = vadd.f32 0.009618129, %v3185_v13  ;;  %v3361_v7 = vadd.s32 127, %v6310_v14 }
 0x5be   : > { %v3567_v9 = vmul.f32 %v3551_v11, %v3455_v37  ;;  %v3013_v41 = vadd.f32 %v8042_v51, %v3012_v21  ;;  %v3218_v40 = vmul.f32 %v3202_v58, %v3170_v54  ;;  %v3378_v21 = vshll.u32 %v3362_v10, 23 }
 0x5bf   : > { %v3584_v28 = vsub.f32 2.0, %v3568_v19  ;;  %v3076_v62 = vadd.f32 %v3018_v38, %v7607_v50  ;;  %v3217_v57 = vmul.f32 %v3201_v33, %v3169_v34 }
 0x5c0   : > { %v3583_v25 = vsub.f32 2.0, %v3567_v9  ;;  %v3075_v2 = vadd.f32 %v3013_v41, %v7584_v45  ;;  %v3234_v49 = vadd.f32 0.05550411, %v3218_v40  ;;  %v3377_v41 = vshll.u32 %v3361_v7, 23 }
 0x5c1   : > { %v3600_v29 = vmul.f32 %v3584_v28, %v3552_v1  ;;  %v3092_v0 = vmax.f32 %v3076_v62, -30.0  ;;  %v3233_v36 = vadd.f32 0.05550411, %v3217_v57 }
 0x5c2   : > { %v3599_v16 = vmul.f32 %v3583_v25, %v3551_v11  ;;  %v3091_v26 = vmax.f32 %v3075_v2, -30.0  ;;  %v3250_v4 = vmul.f32 %v3234_v49, %v3170_v54 }
 0x5c3   : > { %v3616_v63 = vmul.f32 %v3600_v29, %v3456_v53  ;;  %v3108_v47 = vmin.f32 %v3092_v0, 20.0  ;;  %v3249_v50 = vmul.f32 %v3233_v36, %v3169_v34 }
 0x5c4   : > { %v3615_v42 = vmul.f32 %v3599_v16, %v3455_v37  ;;  %v3107_v17 = vmin.f32 %v3091_v26, 20.0  ;;  %v3266_v45 = vadd.f32 0.2402265, %v3250_v4 }
 0x5c5   : > { %v3632_v22 = vsub.f32 2.0, %v3616_v63  ;;  %v3124_v30 = vmul.f32 1.442695, %v3108_v47  ;;  %v3265_v23 = vadd.f32 0.2402265, %v3249_v50 }
 0x5c6   : > { %v3631_v24 = vsub.f32 2.0, %v3615_v42  ;;  %v3123_v59 = vmul.f32 1.442695, %v3107_v17  ;;  %v3282_v44 = vmul.f32 %v3266_v45, %v3170_v54 }
 0x5c7   : > { %v3648_v39 = vmul.f32 %v3632_v22, %v3600_v29  ;;  %v3140_v60 = vadd.f32 0.5, %v3124_v30  ;;  %v3281_v53 = vmul.f32 %v3265_v23, %v3169_v34 }
 0x5c8   : > { %v3647_v55 = vmul.f32 %v3631_v24, %v3599_v16  ;;  %v3139_v52 = vadd.f32 0.5, %v3123_v59  ;;  %v3298_v6 = vadd.f32 0.6931472, %v3282_v44 }
 0x5c9   : > { %v3156_v15 = vfloor.f32 %v3140_v60  ;;  %v8066_v1 = vmul.f32 %v3648_v39, %v8052_v3  ;;  %v3297_v56 = vadd.f32 0.6931472, %v3281_v53 }
 0x5ca   : > { %v8063_v37 = vmul.f32 %v3647_v55, %v8054_v12  ;;  %v3155_v46 = vfloor.f32 %v3139_v52  ;;  %v3314_v61 = vmul.f32 %v3298_v6, %v3170_v54 }
 0x5cb   : > { %v8068_v11 = vsub.f32 %v3124_v30, %v3156_v15  ;;  %v6315_v13 = vtrunc.f32 %v3156_v15  ;;  %v3313_v58 = vmul.f32 %v3297_v56, %v3169_v34 }
 0x5cc   : > { %5933 = vmatprep.mubr.f32.mxu1 %v8063_v37  ;;  %v8071_v19 = vsub.f32 %v3123_v59, %v3155_v46  ;;  %v3330_v38 = vadd.f32 1.0, %v3314_v61  ;;  %v6313_v3 = vtrunc.f32 %v3155_v46 }
 0x5cd   : > { %5934 = vmatmul.mubr.f32.vlgmr.msra.gmra.mrb[32].mxu1 %v8066_v1  ;;  %v3188_v12 = vmul.f32 0.0013333558, %v8068_v11  ;;  %v3329_v33 = vadd.f32 1.0, %v3313_v58  ;;  %v6316_v62 = vcvt.f32.s32 %v6315_v13 }
 0x5ce   : > { %v3187_v9 = vmul.f32 0.0013333558, %v8071_v19  ;;  %v3410_v25 = vmul.f32 %v3378_v21, %v3330_v38  ;;  %v6314_v32 = vcvt.f32.s32 %v6313_v3 }
 0x5cf   : > { %v3204_v28 = vadd.f32 0.009618129, %v3188_v12  ;;  %v3409_v2 = vmul.f32 %v3377_v41, %v3329_v33  ;;  %v8079_v18 = vadd.s32 127, %v6316_v62 }
 0x5d0   : > { %v3203_v40 = vadd.f32 0.009618129, %v3187_v9  ;;  %v3426_v29 = vadd.f32 2.0, %v3410_v25  ;;  %v8092_v43 = vadd.s32 127, %v6314_v32 }
 0x5d1   : > { %v3220_v57 = vmul.f32 %v3204_v28, %v8068_v11  ;;  %v3425_v16 = vadd.f32 2.0, %v3409_v2 }
 0x5d2   : > { %v3219_v49 = vmul.f32 %v3203_v40, %v8071_v19  ;;  %v8082_v63 = vmul.f32 %v3426_v29, %v3410_v25  ;;  %v3379_v13 = vshll.u32 %v8092_v43, 23 }
 0x5d3   : > { %v5888_v54 = vpop.f32.mrb[38].mxu0  ;;  %v3236_v36 = vadd.f32 0.05550411, %v3220_v57  ;;  %v8085_v42 = vmul.f32 %v3425_v16, %v3409_v2 }
 0x5d4   : > { %v3028_v34 = vadd.f32 %v5888_v54, %v8042_v51  ;;  %v3022_v0 = vpop.f32.mrb[39].mxu0  ;;  %v3235_v4 = vadd.f32 0.05550411, %v3219_v49  ;;  %v8089_v22 = vadd.f32 2.0, %v8082_v63 }
 0x5d5   : > { %v3023_v26 = vadd.f32 %v8042_v51, %v3022_v0  ;;  %v3252_v50 = vmul.f32 %v3236_v36, %v8068_v11  ;;  %v8095_v24 = vadd.f32 2.0, %v8085_v42 }
 0x5d6   : > { %v3078_v47 = vadd.f32 %v3028_v34, %v7627_v27  ;;  %v3251_v45 = vmul.f32 %v3235_v4, %v8071_v19  ;;  %v3490_v59 = vsub.s32 2130706432, %v8089_v22 }
 0x5d7   : > { %v3077_v17 = vadd.f32 %v3023_v26, %v7616_v5  ;;  %v3268_v39 = vadd.f32 0.2402265, %v3252_v50  ;;  %v3380_v5 = vshll.u32 %v8079_v18, 23  ;;  %v3489_v44 = vsub.s32 2130706432, %v8095_v24 }
 0x5d8   : > { %v3094_v30 = vmax.f32 %v3078_v47, -30.0  ;;  %v3267_v52 = vadd.f32 0.2402265, %v3251_v45  ;;  %v3522_v15 = vmul.f32 %v3490_v59, %v8089_v22 }
 0x5d9   : > { %v3093_v14 = vmax.f32 %v3077_v17, -30.0  ;;  %v5891_v27 = vpop.f32.mrb[40].mxu0  ;;  %v3284_v6 = vmul.f32 %v3268_v39, %v8068_v11  ;;  %v3521_v56 = vmul.f32 %v3489_v44, %v8095_v24 }
 0x5da   : > { %v3110_v23 = vmin.f32 %v3094_v30, 20.0  ;;  %v3038_v60 = vadd.f32 %v5891_v27, %v8042_v51  ;;  %v3032_v55 = vpop.f32.mrb[41].mxu0  ;;  %v3538_v38 = vsub.f32 2.0, %v3522_v15  ;;  %v8110_v21 = vmul.f32 %v3267_v52, %v8071_v19 }
 0x5db   : > { %v3109_v53 = vmin.f32 %v3093_v14, 20.0  ;;  %v3033_v10 = vadd.f32 %v8042_v51, %v3032_v55  ;;  %v3537_v28 = vsub.f32 2.0, %v3521_v56  ;;  %v8114_v40 = vadd.f32 0.6931472, %v3284_v6 }
 0x5dc   : > { %v3126_v7 = vmul.f32 1.442695, %v3110_v23  ;;  %v3080_v46 = vadd.f32 %v3038_v60, %v7650_v48  ;;  %v8117_v29 = vmul.f32 %v3538_v38, %v3490_v59 }
 0x5dd   : > { %v3125_v61 = vmul.f32 1.442695, %v3109_v53  ;;  %v3079_v58 = vadd.f32 %v3033_v10, %v7638_v20  ;;  %v5894_v12 = vpop.f32.mrb[42].mxu0  ;;  %v8120_v0 = vmul.f32 %v3537_v28, %v3489_v44 }
 0x5de   : > { %v3142_v9 = vadd.f32 0.5, %v3126_v7  ;;  %v3096_v3 = vmax.f32 %v3080_v46, -30.0  ;;  %v3048_v33 = vadd.f32 %v5894_v12, %v8042_v51  ;;  %v3042_v41 = vpop.f32.mrb[43].mxu0  ;;  %v3570_v44 = vmul.f32 %v8117_v29, %v8089_v22 }
 0x5df   : > { %v3141_v62 = vadd.f32 0.5, %v3125_v61  ;;  %v3095_v48 = vmax.f32 %v3079_v58, -30.0  ;;  %v3043_v25 = vadd.f32 %v8042_v51, %v3042_v41 }
 0x5e0   : > { %v3158_v2 = vfloor.f32 %v3142_v9  ;;  %v3112_v54 = vmin.f32 %v3096_v3, 20.0  ;;  %v3082_v20 = vadd.f32 %v3048_v33, %v7676_v8 }
 0x5e1   : > { %v3157_v57 = vfloor.f32 %v3141_v62  ;;  %v3111_v32 = vmin.f32 %v3095_v48, 20.0  ;;  %v3081_v34 = vadd.f32 %v3043_v25, %v7672_v35 }
 0x5e2   : > { %v8122_v16 = vsub.f32 %v3126_v7, %v3158_v2  ;;  %v6319_v49 = vtrunc.f32 %v3158_v2  ;;  %v3128_v26 = vmul.f32 1.442695, %v3112_v54  ;;  %v3098_v36 = vmax.f32 %v3082_v20, -30.0 }
 0x5e3   : > { %v8124_v47 = vsub.f32 %v3125_v61, %v3157_v57  ;;  %v6317_v4 = vtrunc.f32 %v3157_v57  ;;  %v3127_v17 = vmul.f32 1.442695, %v3111_v32  ;;  %v3097_v50 = vmax.f32 %v3081_v34, -30.0 }
 0x5e4   : > { %v3190_v8 = vmul.f32 0.0013333558, %v8122_v16  ;;  %v6320_v30 = vcvt.f32.s32 %v6319_v49  ;;  %v3144_v45 = vadd.f32 0.5, %v3128_v26  ;;  %v3114_v14 = vmin.f32 %v3098_v36, 20.0 }
 0x5e5   : > { %v3189_v27 = vmul.f32 0.0013333558, %v8124_v47  ;;  %v6318_v35 = vcvt.f32.s32 %v6317_v4  ;;  %v3143_v59 = vadd.f32 0.5, %v3127_v17  ;;  %v3113_v39 = vmin.f32 %v3097_v50, 20.0 }
 0x5e6   : > { %v8128_v23 = vadd.f32 0.009618129, %v3190_v8  ;;  %v3160_v60 = vfloor.f32 %v3144_v45  ;;  %v3130_v55 = vmul.f32 1.442695, %v3114_v14  ;;  %v8132_v52 = vadd.s32 127, %v6320_v30  ;;  %v9069_v8 = vld [vmem:[#allocation14_spill] sm:$0xff] }
 0x5e7   : > { %v3205_v53 = vadd.f32 0.009618129, %v3189_v27  ;;  %v3159_v10 = vfloor.f32 %v3143_v59  ;;  %v3129_v15 = vmul.f32 1.442695, %v3113_v39  ;;  %v8134_v6 = vadd.s32 127, %v6318_v35 }
 0x5e8   : > { %v8136_v7 = vsub.f32 %v3128_v26, %v3160_v60  ;;  %v6323_v46 = vtrunc.f32 %v3160_v60  ;;  %v3146_v56 = vadd.f32 0.5, %v3130_v55  ;;  %v5897_v61 = vpop.f32.mrb[44].mxu0  ;;  %v3569_v54 = vmul.f32 %v8120_v0, %v8095_v24 }
 0x5e9   : > { %v8138_v58 = vsub.f32 %v3127_v17, %v3159_v10  ;;  %v6321_v12 = vtrunc.f32 %v3159_v10  ;;  %v3145_v38 = vadd.f32 0.5, %v3129_v15  ;;  %v3058_v9 = vadd.f32 %v5897_v61, %v8042_v51  ;;  %v3052_v3 = vpop.f32.mrb[45].mxu0 }
 0x5ea   : > { %v3192_v33 = vmul.f32 0.0013333558, %v8136_v7  ;;  %v6324_v41 = vcvt.f32.s32 %v6323_v46  ;;  %v3162_v28 = vfloor.f32 %v3146_v56  ;;  %v3053_v62 = vadd.f32 %v8042_v51, %v3052_v3 }
 0x5eb   : > { %v3191_v48 = vmul.f32 0.0013333558, %v8138_v58  ;;  %v3161_v25 = vfloor.f32 %v3145_v38  ;;  %v3084_v2 = vadd.f32 %v3058_v9, %v7683_v31  ;;  %v6322_v57 = vcvt.f32.s32 %v6321_v12 }
 0x5ec   : > { %v8147_v20 = vadd.f32 0.009618129, %v3192_v33  ;;  %v8149_v32 = vsub.f32 %v3130_v55, %v3162_v28  ;;  %v6327_v34 = vtrunc.f32 %v3162_v28  ;;  %v8151_v49 = vadd.s32 127, %v6324_v41 }
 0x5ed   : > { %v8153_v26 = vadd.f32 0.009618129, %v3191_v48  ;;  %v8155_v36 = vsub.f32 %v3129_v15, %v3161_v25  ;;  %v6325_v4 = vtrunc.f32 %v3161_v25  ;;  %v3100_v31 = vmax.f32 %v3084_v2, -30.0 }
 0x5ee   : > { %v3194_v17 = vmul.f32 0.0013333558, %v8149_v32  ;;  %v6328_v50 = vcvt.f32.s32 %v6327_v34  ;;  %v3083_v30 = vadd.f32 %v3053_v62, %v9069_v8  ;;  %v3585_v27 = vsub.f32 2.0, %v3569_v54 }
 0x5ef   : > { %v3193_v45 = vmul.f32 0.0013333558, %v8155_v36  ;;  %v6326_v14 = vcvt.f32.s32 %v6325_v4  ;;  %v3586_v35 = vsub.f32 2.0, %v3570_v44  ;;  %v8160_v59 = vadd.s32 127, %v6322_v57 }
 0x5f0   : > { %v8162_v39 = vadd.f32 0.009618129, %v3194_v17  ;;  %v3116_v60 = vmin.f32 %v3100_v31, 20.0  ;;  %v3099_v55 = vmax.f32 %v3083_v30, -30.0  ;;  %v8164_v10 = vadd.s32 127, %v6328_v50 }
 0x5f1   : > { %v8166_v15 = vadd.f32 0.009618129, %v3193_v45  ;;  %v3601_v46 = vmul.f32 %v3585_v27, %v8120_v0  ;;  %v3602_v56 = vmul.f32 %v3586_v35, %v8117_v29  ;;  %v3299_v38 = vadd.f32 0.6931472, %v8110_v21 }
 0x5f2   : > { %v3132_v61 = vmul.f32 1.442695, %v3116_v60  ;;  %v3115_v12 = vmin.f32 %v3099_v55, 20.0  ;;  %v3316_v44 = vmul.f32 %v8114_v40, %v8068_v11  ;;  %v8173_v9 = vadd.s32 127, %v6326_v14 }
 0x5f3   : > { %v3617_v3 = vmul.f32 %v3601_v46, %v8095_v24  ;;  %v3618_v33 = vmul.f32 %v3602_v56, %v8089_v22  ;;  %v3221_v41 = vmul.f32 %v3205_v53, %v8124_v47  ;;  %v3315_v0 = vmul.f32 %v3299_v38, %v8071_v19 }
 0x5f4   : > { %v3148_v28 = vadd.f32 0.5, %v3132_v61  ;;  %v3131_v62 = vmul.f32 1.442695, %v3115_v12  ;;  %v3332_v29 = vadd.f32 1.0, %v3316_v44  ;;  %v3222_v21 = vmul.f32 %v8128_v23, %v8122_v16 }
 0x5f5   : > { %v3633_v48 = vsub.f32 2.0, %v3617_v3  ;;  %v3634_v25 = vsub.f32 2.0, %v3618_v33  ;;  %v3237_v2 = vadd.f32 0.05550411, %v3221_v41  ;;  %v3331_v54 = vadd.f32 1.0, %v3315_v0 }
 0x5f6   : > { %v3164_v11 = vfloor.f32 %v3148_v28  ;;  %v3147_v40 = vadd.f32 0.5, %v3131_v62  ;;  %v3412_v24 = vmul.f32 %v3380_v5, %v3332_v29  ;;  %v3238_v34 = vadd.f32 0.05550411, %v3222_v21 }
 0x5f7   : > { %v3649_v22 = vmul.f32 %v3633_v48, %v3601_v46  ;;  %v3650_v57 = vmul.f32 %v3634_v25, %v3602_v56  ;;  %v3253_v53 = vmul.f32 %v3237_v2, %v8124_v47  ;;  %v3411_v50 = vmul.f32 %v3379_v13, %v3331_v54  ;;  %v9070_v48 = vld [vmem:[#allocation16_spill] sm:$0xff] }
 0x5f8   : > { %v8184_v4 = vsub.f32 %v3132_v61, %v3164_v11  ;;  %v6331_v19 = vtrunc.f32 %v3164_v11  ;;  %v3163_v17 = vfloor.f32 %v3147_v40  ;;  %v3428_v18 = vadd.f32 2.0, %v3412_v24  ;;  %v9071_v40 = vld [vmem:[#allocation15_spill] sm:$0xff] }
 0x5f9   : > { %v8189_v23 = vmul.f32 %v3649_v22, %v8085_v42  ;;  %v8192_v31 = vmul.f32 %v3650_v57, %v8082_v63  ;;  %v3269_v5 = vadd.f32 0.2402265, %v3253_v53  ;;  %v3427_v27 = vadd.f32 2.0, %v3411_v50 }
 0x5fa   : > { %v3196_v8 = vmul.f32 0.0013333558, %v8184_v4  ;;  %v6332_v30 = vcvt.f32.s32 %v6331_v19  ;;  %v8195_v45 = vsub.f32 %v3131_v62, %v3163_v17  ;;  %v6329_v14 = vtrunc.f32 %v3163_v17 }
 0x5fb   : > { %5936 = vmatprep.mubr.f32.mxu1 %v8189_v23  ;;  %v8198_v35 = vmul.f32 %v3428_v18, %v3412_v24  ;;  %v3285_v43 = vmul.f32 %v3269_v5, %v8124_v47  ;;  %v3254_v42 = vmul.f32 %v3238_v34, %v8122_v16  ;;  %v3381_v55 = vshll.u32 %v8134_v6, 23 }
 0x5fc   : > { %v8202_v13 = vadd.f32 0.009618129, %v3196_v8  ;;  %v3195_v63 = vmul.f32 0.0013333558, %v8195_v45  ;;  %v6330_v60 = vcvt.f32.s32 %v6329_v14  ;;  %5937 = vmatmul.mubr.f32.gmra.mrb[34].mxu1 %v8192_v31  ;;  %v8207_v56 = vmul.f32 %v3427_v27, %v3411_v50 }
 0x5fd   : > { %v5900_v46 = vpop.f32.mrb[46].mxu0  ;;  %v8210_v61 = vadd.f32 2.0, %v8198_v35  ;;  %v3301_v12 = vadd.f32 0.6931472, %v3285_v43  ;;  %v3270_v38 = vadd.f32 0.2402265, %v3254_v42  ;;  %v3223_v11 = vmul.f32 %v8153_v26, %v8138_v58 }
 0x5fe   : > { %v8212_v44 = vadd.s32 127, %v6332_v30  ;;  %v8214_v3 = vadd.f32 0.009618129, %v3195_v63  ;;  %v8216_v33 = vadd.s32 127, %v6330_v60  ;;  %v3068_v41 = vadd.f32 %v5900_v46, %v8042_v51  ;;  %v3062_v28 = vpop.f32.mrb[47].mxu0 }
 0x5ff   : > { %v3063_v62 = vadd.f32 %v8042_v51, %v3062_v28  ;;  %v8221_v6 = vadd.f32 2.0, %v8207_v56  ;;  %v3492_v0 = vsub.s32 2130706432, %v8210_v61  ;;  %v3317_v29 = vmul.f32 %v3301_v12, %v8124_v47 }
 0x600   : > { %v3086_v25 = vadd.f32 %v3068_v41, %v9070_v48  ;;  %v3286_v2 = vmul.f32 %v3270_v38, %v8122_v16  ;;  %v3382_v21 = vshll.u32 %v8132_v52, 23  ;;  %v3239_v34 = vadd.f32 0.05550411, %v3223_v11 }
 0x601   : > { %v3085_v54 = vadd.f32 %v3063_v62, %v9071_v40  ;;  %v3491_v51 = vsub.s32 2130706432, %v8221_v6  ;;  %v3524_v24 = vmul.f32 %v3492_v0, %v8210_v61  ;;  %v3333_v22 = vadd.f32 1.0, %v3317_v29 }
 0x602   : > { %v3102_v57 = vmax.f32 %v3086_v25, -30.0  ;;  %v3302_v53 = vadd.f32 0.6931472, %v3286_v2  ;;  %v3224_v47 = vmul.f32 %v8147_v20, %v8136_v7  ;;  %v3255_v5 = vmul.f32 %v3239_v34, %v8138_v58 }
 0x603   : > { %v3101_v19 = vmax.f32 %v3085_v54, -30.0  ;;  %v3523_v17 = vmul.f32 %v3491_v51, %v8221_v6  ;;  %v3540_v52 = vsub.f32 2.0, %v3524_v24  ;;  %v3413_v50 = vmul.f32 %v3381_v55, %v3333_v22 }
 0x604   : > { %v3118_v18 = vmin.f32 %v3102_v57, 20.0  ;;  %v3318_v26 = vmul.f32 %v3302_v53, %v8122_v16  ;;  %v3240_v8 = vadd.f32 0.05550411, %v3224_v47  ;;  %v3271_v60 = vadd.f32 0.2402265, %v3255_v5 }
 0x605   : > { %v3117_v30 = vmin.f32 %v3101_v19, 20.0  ;;  %v3539_v14 = vsub.f32 2.0, %v3523_v17  ;;  %v3556_v27 = vmul.f32 %v3540_v52, %v3492_v0  ;;  %v3429_v43 = vadd.f32 2.0, %v3413_v50 }
 0x606   : > { %v3134_v42 = vmul.f32 1.442695, %v3118_v18  ;;  %v3334_v63 = vadd.f32 1.0, %v3318_v26  ;;  %v3256_v20 = vmul.f32 %v3240_v8, %v8136_v7  ;;  %v3287_v28 = vmul.f32 %v3271_v60, %v8138_v58 }
 0x607   : > { %v3133_v46 = vmul.f32 1.442695, %v3117_v30  ;;  %v3555_v12 = vmul.f32 %v3539_v14, %v3491_v51  ;;  %v3572_v38 = vmul.f32 %v3556_v27, %v8210_v61  ;;  %v8240_v55 = vmul.f32 %v3429_v43, %v3413_v50 }
 0x608   : > { %v3150_v41 = vadd.f32 0.5, %v3134_v42  ;;  %v3414_v16 = vmul.f32 %v3382_v21, %v3334_v63  ;;  %v3272_v62 = vadd.f32 0.2402265, %v3256_v20  ;;  %v3303_v40 = vadd.f32 0.6931472, %v3287_v28 }
 0x609   : > { %v3149_v29 = vadd.f32 0.5, %v3133_v46  ;;  %v3571_v0 = vmul.f32 %v3555_v12, %v8221_v6  ;;  %v3588_v48 = vsub.f32 2.0, %v3572_v38  ;;  %v8245_v25 = vadd.f32 2.0, %v8240_v55 }
 0x60a   : > { %v3166_v2 = vfloor.f32 %v3150_v41  ;;  %v3430_v11 = vadd.f32 2.0, %v3414_v16  ;;  %v3288_v54 = vmul.f32 %v3272_v62, %v8136_v7  ;;  %v3319_v47 = vmul.f32 %v3303_v40, %v8138_v58 }
 0x60b   : > { %v3165_v51 = vfloor.f32 %v3149_v29  ;;  %v3587_v24 = vsub.f32 2.0, %v3571_v0  ;;  %v3604_v22 = vmul.f32 %v3588_v48, %v3556_v27  ;;  %v3493_v21 = vsub.s32 2130706432, %v8245_v25 }
 0x60c   : > { %v8249_v57 = vsub.f32 %v3134_v42, %v3166_v2  ;;  %v6335_v53 = vtrunc.f32 %v3166_v2  ;;  %v8251_v34 = vmul.f32 %v3430_v11, %v3414_v16  ;;  %v3335_v16 = vadd.f32 1.0, %v3319_v47 }
 0x60d   : > { %v8254_v19 = vsub.f32 %v3133_v46, %v3165_v51  ;;  %v6333_v17 = vtrunc.f32 %v3165_v51  ;;  %v3603_v52 = vmul.f32 %v3587_v24, %v3555_v12  ;;  %v3620_v50 = vmul.f32 %v3604_v22, %v8210_v61 }
 0x60e   : > { %v3198_v18 = vmul.f32 0.0013333558, %v8249_v57  ;;  %v6336_v26 = vcvt.f32.s32 %v6335_v53  ;;  %v3525_v5 = vmul.f32 %v3493_v21, %v8245_v25  ;;  %v8260_v8 = vadd.f32 2.0, %v8251_v34 }
 0x60f   : > { %v3197_v30 = vmul.f32 0.0013333558, %v8254_v19  ;;  %v6334_v14 = vcvt.f32.s32 %v6333_v17  ;;  %v3619_v27 = vmul.f32 %v3603_v52, %v8221_v6  ;;  %v3636_v58 = vsub.f32 2.0, %v3620_v50 }
 0x610   : > { %v8264_v43 = vadd.f32 0.009618129, %v3198_v18  ;;  %v3541_v42 = vsub.f32 2.0, %v3525_v5  ;;  %v3494_v63 = vsub.s32 2130706432, %v8260_v8  ;;  %v3383_v61 = vshll.u32 %v8160_v59, 23 }
 0x611   : > { %v8268_v60 = vadd.s32 127, %v6336_v26  ;;  %v8270_v20 = vadd.f32 0.009618129, %v3197_v30  ;;  %v3635_v46 = vsub.f32 2.0, %v3619_v27  ;;  %v3652_v12 = vmul.f32 %v3636_v58, %v3604_v22 }
 0x612   : > { %v3557_v38 = vmul.f32 %v3541_v42, %v3493_v21  ;;  %v3526_v41 = vmul.f32 %v3494_v63, %v8260_v8  ;;  %v3304_v28 = vadd.f32 0.6931472, %v3288_v54  ;;  %v8273_v6 = vadd.s32 127, %v6334_v14 }
 0x613   : > { %v3651_v62 = vmul.f32 %v3635_v46, %v3603_v52  ;;  %v8276_v29 = vmul.f32 %v3652_v12, %v8198_v35  ;;  %v3225_v59 = vmul.f32 %v8166_v15, %v8155_v36  ;;  %v3415_v2 = vmul.f32 %v3383_v61, %v3335_v16 }
 0x614   : > { %v3573_v0 = vmul.f32 %v3557_v38, %v8245_v25  ;;  %v3542_v48 = vsub.f32 2.0, %v3526_v41  ;;  %v3320_v11 = vmul.f32 %v3304_v28, %v8136_v7  ;;  %v3384_v54 = vshll.u32 %v8151_v49, 23 }
 0x615   : > { %v8283_v40 = vmul.f32 %v3651_v62, %v8207_v56  ;;  %v3241_v51 = vadd.f32 0.05550411, %v3225_v59  ;;  %v3226_v24 = vmul.f32 %v8162_v39, %v8149_v32  ;;  %v3431_v21 = vadd.f32 2.0, %v3415_v2 }
 0x616   : > { %v3589_v35 = vsub.f32 2.0, %v3573_v0  ;;  %v3558_v22 = vmul.f32 %v3542_v48, %v3494_v63  ;;  %v3336_v53 = vadd.f32 1.0, %v3320_v11  ;;  %v3385_v47 = vshll.u32 %v8173_v9, 23 }
 0x617   : > { %5939 = vmatprep.mubr.f32.mxu1 %v8283_v40  ;;  %v3257_v15 = vmul.f32 %v3241_v51, %v8155_v36  ;;  %v3242_v7 = vadd.f32 0.05550411, %v3226_v24  ;;  %v3227_v56 = vmul.f32 %v8214_v3, %v8195_v45  ;;  %v8295_v39 = vmul.f32 %v3431_v21, %v3415_v2 }
 0x618   : > { %5940 = vmatmul.mubr.f32.gmra.mrb[36].mxu1 %v8276_v29  ;;  %v3605_v49 = vmul.f32 %v3589_v35, %v3557_v38  ;;  %v3574_v17 = vmul.f32 %v3558_v22, %v8260_v8  ;;  %v3416_v52 = vmul.f32 %v3384_v54, %v3336_v53  ;;  %v3386_v26 = vshll.u32 %v8164_v10, 23 }
 0x619   : > { %v3273_v50 = vadd.f32 0.2402265, %v3257_v15  ;;  %v3258_v18 = vmul.f32 %v3242_v7, %v8149_v32  ;;  %v3243_v5 = vadd.f32 0.05550411, %v3227_v56  ;;  %v8301_v14 = vadd.f32 2.0, %v8295_v39 }
 0x61a   : > { %v3621_v9 = vmul.f32 %v3605_v49, %v8245_v25  ;;  %v3590_v30 = vsub.f32 2.0, %v3574_v17  ;;  %v3432_v3 = vadd.f32 2.0, %v3416_v52  ;;  %v3228_v63 = vmul.f32 %v8202_v13, %v8184_v4 }
 0x61b   : > { %v3289_v27 = vmul.f32 %v3273_v50, %v8155_v36  ;;  %v3274_v58 = vadd.f32 0.2402265, %v3258_v18  ;;  %v3259_v42 = vmul.f32 %v3243_v5, %v8195_v45  ;;  %v3495_v10 = vsub.s32 2130706432, %v8301_v14 }
 0x61c   : > { %v3637_v61 = vsub.f32 2.0, %v3621_v9  ;;  %v3606_v46 = vmul.f32 %v3590_v30, %v3558_v22  ;;  %v8308_v12 = vmul.f32 %v3432_v3, %v3416_v52  ;;  %v3244_v16 = vadd.f32 0.05550411, %v3228_v63 }
 0x61d   : > { %v3305_v25 = vadd.f32 0.6931472, %v3289_v27  ;;  %v3290_v38 = vmul.f32 %v3274_v58, %v8149_v32  ;;  %v3275_v41 = vadd.f32 0.2402265, %v3259_v42  ;;  %v3527_v59 = vmul.f32 %v3495_v10, %v8301_v14 }
 0x61e   : > { %v3653_v28 = vmul.f32 %v3637_v61, %v3605_v49  ;;  %v3622_v62 = vmul.f32 %v3606_v46, %v8260_v8  ;;  %v8314_v0 = vadd.f32 2.0, %v8308_v12  ;;  %v3260_v11 = vmul.f32 %v3244_v16, %v8184_v4 }
 0x61f   : > { %v3321_v13 = vmul.f32 %v3305_v25, %v8155_v36  ;;  %v3306_v48 = vadd.f32 0.6931472, %v3290_v38  ;;  %v3291_v2 = vmul.f32 %v3275_v41, %v8195_v45  ;;  %v3543_v24 = vsub.f32 2.0, %v3527_v59 }
 0x620   : > { %v8320_v54 = vmul.f32 %v3653_v28, %v8240_v55  ;;  %v3638_v51 = vsub.f32 2.0, %v3622_v62  ;;  %v3496_v35 = vsub.s32 2130706432, %v8314_v0  ;;  %v3276_v53 = vadd.f32 0.2402265, %v3260_v11 }
 0x621   : > { %v3337_v8 = vadd.f32 1.0, %v3321_v13  ;;  %v3322_v22 = vmul.f32 %v3306_v48, %v8149_v32  ;;  %v3307_v21 = vadd.f32 0.6931472, %v3291_v2  ;;  %v3559_v15 = vmul.f32 %v3543_v24, %v3495_v10 }
 0x622   : > { %5942 = vmatprep.mubr.f32.mxu1 %v8320_v54  ;;  %v3654_v36 = vmul.f32 %v3638_v51, %v3606_v46  ;;  %v3528_v7 = vmul.f32 %v3496_v35, %v8314_v0  ;;  %v3387_v56 = vshll.u32 %v8216_v33, 23  ;;  %v3292_v52 = vmul.f32 %v3276_v53, %v8184_v4 }
 0x623   : > { %v3417_v49 = vmul.f32 %v3385_v47, %v3337_v8  ;;  %v3338_v55 = vadd.f32 1.0, %v3322_v22  ;;  %v3323_v17 = vmul.f32 %v3307_v21, %v8195_v45  ;;  %v3575_v32 = vmul.f32 %v3559_v15, %v8301_v14 }
 0x624   : > { %v8330_v50 = vmul.f32 %v3654_v36, %v8251_v34  ;;  %v3544_v18 = vsub.f32 2.0, %v3528_v7  ;;  %v3229_v5 = vmul.f32 %v8270_v20, %v8254_v19  ;;  %v3308_v27 = vadd.f32 0.6931472, %v3292_v52 }
 0x625   : > { %v3433_v9 = vadd.f32 2.0, %v3417_v49  ;;  %v3418_v30 = vmul.f32 %v3386_v26, %v3338_v55  ;;  %v3339_v3 = vadd.f32 1.0, %v3323_v17  ;;  %v3591_v33 = vsub.f32 2.0, %v3575_v32 }
 0x626   : > { %5943 = vmatmul.mubr.f32.gmra.mrb[38].mxu1 %v8330_v50  ;;  %v3560_v47 = vmul.f32 %v3544_v18, %v3496_v35  ;;  %v3388_v45 = vshll.u32 %v8212_v44, 23  ;;  %v3245_v58 = vadd.f32 0.05550411, %v3229_v5  ;;  %v3324_v61 = vmul.f32 %v3308_v27, %v8184_v4 }
 0x627   : > { %v8337_v42 = vmul.f32 %v3433_v9, %v3417_v49  ;;  %v3434_v34 = vadd.f32 2.0, %v3418_v30  ;;  %v3419_v63 = vmul.f32 %v3387_v56, %v3339_v3  ;;  %v3607_v46 = vmul.f32 %v3591_v33, %v3559_v15 }
 0x628   : > { %v3576_v20 = vmul.f32 %v3560_v47, %v8314_v0  ;;  %v3261_v26 = vmul.f32 %v3245_v58, %v8254_v19  ;;  %v3230_v10 = vmul.f32 %v8264_v43, %v8249_v57  ;;  %v3340_v41 = vadd.f32 1.0, %v3324_v61 }
 0x629   : > { %v3465_v25 = vadd.f32 2.0, %v8337_v42  ;;  %v8345_v38 = vmul.f32 %v3434_v34, %v3418_v30  ;;  %v3435_v44 = vadd.f32 2.0, %v3419_v63  ;;  %v3623_v16 = vmul.f32 %v3607_v46, %v8301_v14 }
 0x62a   : > { %v3592_v28 = vsub.f32 2.0, %v3576_v20  ;;  %v3277_v62 = vadd.f32 0.2402265, %v3261_v26  ;;  %v3246_v59 = vadd.f32 0.05550411, %v3230_v10  ;;  %v3420_v2 = vmul.f32 %v3388_v45, %v3340_v41 }
 0x62b   : > { %v3497_v4 = vsub.s32 2130706432, %v3465_v25  ;;  %v3466_v13 = vadd.f32 2.0, %v8345_v38  ;;  %v8349_v48 = vmul.f32 %v3435_v44, %v3419_v63  ;;  %v3639_v11 = vsub.f32 2.0, %v3623_v16 }
 0x62c   : > { %v3608_v51 = vmul.f32 %v3592_v28, %v3560_v47  ;;  %v3293_v43 = vmul.f32 %v3277_v62, %v8254_v19  ;;  %v3262_v24 = vmul.f32 %v3246_v59, %v8249_v57  ;;  %v3436_v14 = vadd.f32 2.0, %v3420_v2 }
 0x62d   : > { %v3529_v35 = vmul.f32 %v3497_v4, %v3465_v25  ;;  %v3498_v8 = vsub.s32 2130706432, %v3466_v13  ;;  %v3467_v22 = vadd.f32 2.0, %v8349_v48  ;;  %v3655_v21 = vmul.f32 %v3639_v11, %v3607_v46 }
 0x62e   : > { %v3624_v53 = vmul.f32 %v3608_v51, %v8314_v0  ;;  %v3309_v36 = vadd.f32 0.6931472, %v3293_v43  ;;  %v3278_v15 = vadd.f32 0.2402265, %v3262_v24  ;;  %v8355_v55 = vmul.f32 %v3436_v14, %v3420_v2 }
 0x62f   : > { %v3545_v7 = vsub.f32 2.0, %v3529_v35  ;;  %v3530_v56 = vmul.f32 %v3498_v8, %v3466_v13  ;;  %v3499_v49 = vsub.s32 2130706432, %v3467_v22  ;;  %v8358_v17 = vmul.f32 %v3655_v21, %v8295_v39 }
 0x630   : > { %v3640_v52 = vsub.f32 2.0, %v3624_v53  ;;  %v3325_v32 = vmul.f32 %v3309_v36, %v8254_v19  ;;  %v3294_v18 = vmul.f32 %v3278_v15, %v8249_v57  ;;  %v3468_v0 = vadd.f32 2.0, %v8355_v55 }
 0x631   : > { %v3561_v5 = vmul.f32 %v3545_v7, %v3497_v4  ;;  %v3546_v9 = vsub.f32 2.0, %v3530_v56  ;;  %v3531_v30 = vmul.f32 %v3499_v49, %v3467_v22  ;;  %5945 = vmatprep.mubr.f32.mxu1 %v8358_v17  ;;  %v3389_v33 = vshll.u32 %v8273_v6, 23 }
 0x632   : > { %v3656_v3 = vmul.f32 %v3640_v52, %v3608_v51  ;;  %v3341_v27 = vadd.f32 1.0, %v3325_v32  ;;  %v3310_v47 = vadd.f32 0.6931472, %v3294_v18  ;;  %v3500_v34 = vsub.s32 2130706432, %v3468_v0 }
 0x633   : > { %v3577_v45 = vmul.f32 %v3561_v5, %v3465_v25  ;;  %v3562_v39 = vmul.f32 %v3546_v9, %v3498_v8  ;;  %v3547_v58 = vsub.f32 2.0, %v3531_v30  ;;  %v3390_v6 = vshll.u32 %v8268_v60, 23 }
 0x634   : > { %v8366_v19 = vmul.f32 %v3656_v3, %v8308_v12  ;;  %v3421_v63 = vmul.f32 %v3389_v33, %v3341_v27  ;;  %v3326_v61 = vmul.f32 %v3310_v47, %v8249_v57  ;;  %v3532_v10 = vmul.f32 %v3500_v34, %v3468_v0 }
 0x635   : > { %v3593_v46 = vsub.f32 2.0, %v3577_v45  ;;  %v3578_v20 = vmul.f32 %v3562_v39, %v3466_v13  ;;  %v3563_v26 = vmul.f32 %v3547_v58, %v3499_v49 }
 0x636   : > { %5946 = vmatmul.mubr.f32.gmra.mrb[40].mxu1 %v8366_v19  ;;  %v3437_v44 = vadd.f32 2.0, %v3421_v63  ;;  %v3342_v41 = vadd.f32 1.0, %v3326_v61  ;;  %v3548_v59 = vsub.f32 2.0, %v3532_v10 }
 0x637   : > { %v3609_v16 = vmul.f32 %v3593_v46, %v3561_v5  ;;  %v3594_v28 = vsub.f32 2.0, %v3578_v20  ;;  %v3579_v62 = vmul.f32 %v3563_v26, %v3467_v22 }
 0x638   : > { %v3453_v4 = vmul.f32 %v3437_v44, %v3421_v63  ;;  %v3422_v12 = vmul.f32 %v3390_v6, %v3342_v41  ;;  %v3564_v57 = vmul.f32 %v3548_v59, %v3500_v34 }
 0x639   : > { %v3625_v2 = vmul.f32 %v3609_v16, %v3465_v25  ;;  %v3610_v11 = vmul.f32 %v3594_v28, %v3562_v39  ;;  %v3595_v51 = vsub.f32 2.0, %v3579_v62 }
 0x63a   : > { %v3469_v43 = vadd.f32 2.0, %v3453_v4  ;;  %v3438_v24 = vadd.f32 2.0, %v3422_v12  ;;  %v3580_v21 = vmul.f32 %v3564_v57, %v3468_v0 }
 0x63b   : > { %v3641_v35 = vsub.f32 2.0, %v3625_v2  ;;  %v3626_v8 = vmul.f32 %v3610_v11, %v3466_v13  ;;  %v3611_v14 = vmul.f32 %v3595_v51, %v3563_v26 }
 0x63c   : > { %v3501_v53 = vsub.s32 2130706432, %v3469_v43  ;;  %v3454_v36 = vmul.f32 %v3438_v24, %v3422_v12  ;;  %v3596_v56 = vsub.f32 2.0, %v3580_v21 }
 0x63d   : > { %v3657_v15 = vmul.f32 %v3641_v35, %v3609_v16  ;;  %v3642_v60 = vsub.f32 2.0, %v3626_v8  ;;  %v3627_v7 = vmul.f32 %v3611_v14, %v3467_v22 }
 0x63e   : > { %v3533_v49 = vmul.f32 %v3501_v53, %v3469_v43  ;;  %v3470_v52 = vadd.f32 2.0, %v3454_v36  ;;  %v3612_v5 = vmul.f32 %v3596_v56, %v3564_v57 }
 0x63f   : > { %v8372_v32 = vmul.f32 %v3657_v15, %v8337_v42  ;;  %v3658_v25 = vmul.f32 %v3642_v60, %v3610_v11  ;;  %v3643_v18 = vsub.f32 2.0, %v3627_v7 }
 0x640   : > { %v3549_v9 = vsub.f32 2.0, %v3533_v49  ;;  %v3502_v30 = vsub.s32 2130706432, %v3470_v52  ;;  %v3628_v27 = vmul.f32 %v3612_v5, %v3468_v0 }
 0x641   : > { %5948 = vmatprep.mubr.f32.mxu1 %v8372_v32  ;;  %v8376_v13 = vmul.f32 %v3658_v25, %v8345_v38  ;;  %v3659_v3 = vmul.f32 %v3643_v18, %v3611_v14 }
 0x642   : > { %v3565_v33 = vmul.f32 %v3549_v9, %v3501_v53  ;;  %v3534_v22 = vmul.f32 %v3502_v30, %v3470_v52  ;;  %v3644_v42 = vsub.f32 2.0, %v3628_v27  ;;  %v4443_v27 = vld [vmem:[#allocation6 + $0x108] sm:$0xff] }
 0x643   : > { %5949 = vmatmul.mubr.f32.gmra.mrb[42].mxu1 %v8376_v13  ;;  %v8380_v47 = vmul.f32 %v3659_v3, %v8349_v48  ;;  %v4442_v3 = vld [vmem:[#allocation6 + $0x100] sm:$0xff] }
 0x644   : > { %v3581_v45 = vmul.f32 %v3565_v33, %v3469_v43  ;;  %v3550_v39 = vsub.f32 2.0, %v3534_v22  ;;  %v3660_v58 = vmul.f32 %v3644_v42, %v3612_v5 }
 0x645   : > { %5951 = vmatprep.mubr.f32.mxu1 %v8380_v47 }
 0x646   : > { %v3597_v34 = vsub.f32 2.0, %v3581_v45  ;;  %v3566_v63 = vmul.f32 %v3550_v39, %v3502_v30  ;;  %v8384_v38 = vmul.f32 %v3660_v58, %v8355_v55  ;;  %v8396_v55 = vld [vmem:[%s8978_s4 + $0x2] ss:$0 sm:$0xff]  ;;  %v6177_v45 = vpack.c.bf16 %v4443_v27, %v4442_v3 }
 0x648   : > { %v3613_v61 = vmul.f32 %v3597_v34, %v3565_v33  ;;  %v3582_v0 = vmul.f32 %v3566_v63, %v3470_v52  ;;  %5952 = vmatmul.mubr.f32.gmra.mrb[44].mxu1 %v8384_v38  ;;  %6178 = vmatprep.subr.bf16.mxu0 %v6177_v45 }
 0x649   : > { %6180 = vmatpush3.bf16.msra.mxu0 %v6177_v45 }
 0x64a   : > { %v3629_v46 = vmul.f32 %v3613_v61, %v3469_v43  ;;  %v3598_v20 = vsub.f32 2.0, %v3582_v0 }
 0x64c   : > { %v3645_v26 = vsub.f32 2.0, %v3629_v46  ;;  %v3614_v48 = vmul.f32 %v3598_v20, %v3566_v63  ;;  %v4444_v63 = vld [vmem:[#allocation6 + $0x110] sm:$0xff] }
 0x64e   : > { %v3661_v10 = vmul.f32 %v3645_v26, %v3613_v61  ;;  %v3630_v44 = vmul.f32 %v3614_v48, %v3470_v52  ;;  %v4445_v61 = vld [vmem:[#allocation6 + $0x118] sm:$0xff] }
 0x64f   : > { %v6181_v26 = vpack.c.bf16 %v4445_v61, %v4444_v63 }
 0x650   : > { %v8387_v41 = vmul.f32 %v3661_v10, %v3453_v4  ;;  %v3646_v6 = vsub.f32 2.0, %v3630_v44 }
 0x651   : > { %6182 = vmatprep.subr.bf16.mxu0 %v6181_v26 }
 0x652   : > { %5954 = vmatprep.mubr.f32.mxu1 %v8387_v41  ;;  %v3662_v16 = vmul.f32 %v3646_v6, %v3614_v48  ;;  %v4446_v6 = vld [vmem:[#allocation6 + $0x120] sm:$0xff]  ;;  %6184 = vmatpush3.bf16.msra.mxu0 %v6181_v26 }
 0x654   : > { %v8390_v28 = vmul.f32 %v3662_v16, %v3454_v36  ;;  %v4447_v16 = vld [vmem:[#allocation6 + $0x128] sm:$0xff] }
 0x656   : > { %5955 = vmatmul.mubr.f32.gmra.mrb[46].mxu1 %v8390_v28 }
 0x6a0   : > { %v5935_v62 = vpop.f32.mrb[32].mxu1 }
 0x6a1   : > { %v3776_v59 = vadd.f32 %v5935_v62, %v8396_v55  ;;  %v3770_v12 = vpop.f32.mrb[33].mxu1  ;;  %v4448_v62 = vld [vmem:[#allocation6 + $0x130] sm:$0xff] }
 0x6a2   : > { %v3771_v4 = vadd.f32 %v8396_v55, %v3770_v12  ;;  %v4449_v12 = vld [vmem:[#allocation6 + $0x138] sm:$0xff] }
 0x6a3   : > { %v3850_v2 = vmax.f32 %v3776_v59, -30.0  ;;  %v6185_v59 = vpack.c.bf16 %v4447_v16, %v4446_v6 }
 0x6a4   : > { %v3849_v11 = vmax.f32 %v3771_v4, -30.0 }
 0x6a5   : > { %v3866_v51 = vmin.f32 %v3850_v2, 20.0  ;;  %6186 = vmatprep.subr.bf16.mxu0 %v6185_v59 }
 0x6a6   : > { %v3865_v57 = vmin.f32 %v3849_v11, 20.0  ;;  %6188 = vmatpush3.bf16.msra.mxu0 %v6185_v59 }
 0x6a7   : > { %v3882_v43 = vmul.f32 1.442695, %v3866_v51  ;;  %v6189_v51 = vpack.c.bf16 %v4449_v12, %v4448_v62 }
 0x6a8   : > { %v3881_v24 = vmul.f32 1.442695, %v3865_v57 }
 0x6a9   : > { %v3898_v35 = vadd.f32 0.5, %v3882_v43  ;;  %6190 = vmatprep.subr.bf16.mxu0 %v6189_v51 }
 0x6aa   : > { %v3897_v8 = vadd.f32 0.5, %v3881_v24  ;;  %6192 = vmatpush3.bf16.msra.mxu0 %v6189_v51 }
 0x6ab   : > { %v3914_v14 = vfloor.f32 %v3898_v35 }
 0x6ac   : > { %v3913_v21 = vfloor.f32 %v3897_v8 }
 0x6ad   : > { %v3930_v53 = vsub.f32 %v3882_v43, %v3914_v14  ;;  %v6339_v18 = vtrunc.f32 %v3914_v14  ;;  %v4450_v43 = vld [vmem:[#allocation6 + $0x140] sm:$0xff] }
 0x6ae   : > { %v3929_v36 = vsub.f32 %v3881_v24, %v3913_v21  ;;  %v6337_v9 = vtrunc.f32 %v3913_v21  ;;  %v4451_v24 = vld [vmem:[#allocation6 + $0x148] sm:$0xff] }
 0x6af   : > { %v3946_v15 = vmul.f32 0.0013333558, %v3930_v53  ;;  %v6340_v42 = vcvt.f32.s32 %v6339_v18  ;;  %v4455_v18 = vld [vmem:[#allocation6 + $0x168] sm:$0xff] }
 0x6b0   : > { %v3945_v60 = vmul.f32 0.0013333558, %v3929_v36  ;;  %v6338_v39 = vcvt.f32.s32 %v6337_v9 }
 0x6b1   : > { %v3962_v7 = vadd.f32 0.009618129, %v3946_v15  ;;  %v4122_v20 = vadd.s32 127, %v6340_v42  ;;  %v4452_v15 = vld [vmem:[#allocation6 + $0x150] sm:$0xff]  ;;  %v4457_v42 = vld [vmem:[#allocation6 + $0x178] sm:$0xff] }
 0x6b2   : > { %v3961_v56 = vadd.f32 0.009618129, %v3945_v60  ;;  %v4121_v48 = vadd.s32 127, %v6338_v39  ;;  %v4453_v60 = vld [vmem:[#allocation6 + $0x158] sm:$0xff] }
 0x6b3   : > { %v3978_v49 = vmul.f32 %v3962_v7, %v3930_v53  ;;  %v4138_v11 = vshll.u32 %v4122_v20, 23 }
 0x6b4   : > { %v3977_v52 = vmul.f32 %v3961_v56, %v3929_v36  ;;  %v4137_v57 = vshll.u32 %v4121_v48, 23 }
 0x6b5   : > { %v3994_v25 = vadd.f32 0.05550411, %v3978_v49 }
 0x6b6   : > { %v3993_v5 = vadd.f32 0.05550411, %v3977_v52  ;;  %v6197_v52 = vpack.c.bf16 %v4453_v60, %v4452_v15 }
 0x6b7   : > { %v4010_v30 = vmul.f32 %v3994_v25, %v3930_v53  ;;  %v4454_v25 = vld [vmem:[#allocation6 + $0x160] sm:$0xff] }
 0x6b8   : > { %v4009_v33 = vmul.f32 %v3993_v5, %v3929_v36  ;;  %v6201_v3 = vpack.c.bf16 %v4455_v18, %v4454_v25 }
 0x6b9   : > { %v4026_v22 = vadd.f32 0.2402265, %v4010_v30 }
 0x6ba   : > { %v4025_v58 = vadd.f32 0.2402265, %v4009_v33 }
 0x6bb   : > { %v4042_v34 = vmul.f32 %v4026_v22, %v3930_v53  ;;  %v4456_v22 = vld [vmem:[#allocation6 + $0x170] sm:$0xff] }
 0x6bc   : > { %v4041_v0 = vmul.f32 %v4025_v58, %v3929_v36 }
 0x6bd   : > { %v4058_v46 = vadd.f32 0.6931472, %v4042_v34 }
 0x6be   : > { %v4057_v10 = vadd.f32 0.6931472, %v4041_v0 }
 0x6bf   : > { %v4074_v44 = vmul.f32 %v4058_v46, %v3930_v53  ;;  %v6193_v53 = vpack.c.bf16 %v4451_v24, %v4450_v43  ;;  %v6205_v46 = vpack.c.bf16 %v4457_v42, %v4456_v22 }
 0x6c0   : > { %v4073_v4 = vmul.f32 %v4057_v10, %v3929_v36 }
 0x6c1   : > { %v4090_v2 = vadd.f32 1.0, %v4074_v44  ;;  %6194 = vmatprep.subr.bf16.mxu0 %v6193_v53 }
 0x6c2   : > { %v4089_v35 = vadd.f32 1.0, %v4073_v4  ;;  %6196 = vmatpush3.bf16.msra.mxu0 %v6193_v53 }
 0x6c3   : > { %v4170_v8 = vmul.f32 %v4138_v11, %v4090_v2  ;;  %6198 = vmatprep.subr.bf16.mxu0 %v6197_v52 }
 0x6c4   : > { %v4169_v14 = vmul.f32 %v4137_v57, %v4089_v35 }
 0x6c5   : > { %v4186_v21 = vadd.f32 2.0, %v4170_v8 }
 0x6c6   : > { %v4185_v7 = vadd.f32 2.0, %v4169_v14  ;;  %6200 = vmatpush3.bf16.msra.mxu0 %v6197_v52 }
 0x6c7   : > { %v4202_v56 = vmul.f32 %v4186_v21, %v4170_v8  ;;  %6202 = vmatprep.subr.bf16.mxu0 %v6201_v3 }
 0x6c8   : > { %v4201_v36 = vmul.f32 %v4185_v7, %v4169_v14 }
 0x6c9   : > { %v4218_v49 = vadd.f32 2.0, %v4202_v56 }
 0x6ca   : > { %v4217_v5 = vadd.f32 2.0, %v4201_v36  ;;  %6204 = vmatpush3.bf16.msra.mxu0 %v6201_v3 }
 0x6cb   : > { %v4250_v9 = vsub.s32 2130706432, %v4218_v49  ;;  %6206 = vmatprep.subr.bf16.mxu0 %v6205_v46 }
 0x6cc   : > { %v4249_v30 = vsub.s32 2130706432, %v4217_v5 }
 0x6cd   : > { %v4282_v27 = vmul.f32 %v4250_v9, %v4218_v49 }
 0x6ce   : > { %v4281_v45 = vmul.f32 %v4249_v30, %v4217_v5  ;;  %6208 = vmatpush3.bf16.msra.mxu0 %v6205_v46 }
 0x6cf   : > { %v5938_v33 = vpop.f32.mrb[34].mxu1  ;;  %v4298_v34 = vsub.f32 2.0, %v4282_v27 }
 0x6d0   : > { %v3786_v39 = vadd.f32 %v5938_v33, %v8396_v55  ;;  %v3780_v58 = vpop.f32.mrb[35].mxu1  ;;  %v4297_v61 = vsub.f32 2.0, %v4281_v45 }
 0x6d1   : > { %v3781_v63 = vadd.f32 %v8396_v55, %v3780_v58  ;;  %v4314_v20 = vmul.f32 %v4298_v34, %v4250_v9 }
 0x6d2   : > { %v3852_v0 = vmax.f32 %v3786_v39, -30.0  ;;  %v4313_v48 = vmul.f32 %v4297_v61, %v4249_v30 }
 0x6d3   : > { %v3851_v26 = vmax.f32 %v3781_v63, -30.0  ;;  %v4330_v44 = vmul.f32 %v4314_v20, %v4218_v49 }
 0x6d4   : > { %v3868_v10 = vmin.f32 %v3852_v0, 20.0  ;;  %v4329_v16 = vmul.f32 %v4313_v48, %v4217_v5 }
 0x6d5   : > { %v3867_v6 = vmin.f32 %v3851_v26, 20.0  ;;  %v4346_v59 = vsub.f32 2.0, %v4330_v44 }
 0x6d6   : > { %v3884_v62 = vmul.f32 1.442695, %v3868_v10  ;;  %v4345_v4 = vsub.f32 2.0, %v4329_v16 }
 0x6d7   : > { %v3883_v12 = vmul.f32 1.442695, %v3867_v6  ;;  %v4362_v11 = vmul.f32 %v4346_v59, %v4314_v20 }
 0x6d8   : > { %v3900_v2 = vadd.f32 0.5, %v3884_v62  ;;  %v4361_v57 = vmul.f32 %v4345_v4, %v4313_v48 }
 0x6d9   : > { %v3899_v51 = vadd.f32 0.5, %v3883_v12  ;;  %v4378_v24 = vmul.f32 %v4362_v11, %v4218_v49 }
 0x6da   : > { %v3916_v43 = vfloor.f32 %v3900_v2  ;;  %v4377_v8 = vmul.f32 %v4361_v57, %v4217_v5 }
 0x6db   : > { %v3915_v35 = vfloor.f32 %v3899_v51  ;;  %v4394_v21 = vsub.f32 2.0, %v4378_v24 }
 0x6dc   : > { %v3932_v14 = vsub.f32 %v3884_v62, %v3916_v43  ;;  %v4393_v15 = vsub.f32 2.0, %v4377_v8  ;;  %v6343_v42 = vtrunc.f32 %v3916_v43 }
 0x6dd   : > { %v3931_v53 = vsub.f32 %v3883_v12, %v3915_v35  ;;  %v4410_v7 = vmul.f32 %v4394_v21, %v4362_v11  ;;  %v6341_v5 = vtrunc.f32 %v3915_v35 }
 0x6de   : > { %v3948_v60 = vmul.f32 0.0013333558, %v3932_v14  ;;  %v4409_v25 = vmul.f32 %v4393_v15, %v4361_v57  ;;  %v6344_v58 = vcvt.f32.s32 %v6343_v42 }
 0x6df   : > { %v3947_v52 = vmul.f32 0.0013333558, %v3931_v53  ;;  %v4426_v27 = vmul.f32 %v4410_v7, %v4202_v56  ;;  %v6342_v63 = vcvt.f32.s32 %v6341_v5 }
 0x6e0   : > { %v3964_v18 = vadd.f32 0.009618129, %v3948_v60  ;;  %v4425_v30 = vmul.f32 %v4409_v25, %v4201_v36  ;;  %v4124_v26 = vadd.s32 127, %v6344_v58 }
 0x6e1   : > { %v3963_v9 = vadd.f32 0.009618129, %v3947_v52  ;;  %v4123_v10 = vadd.s32 127, %v6342_v63 }
 0x6e2   : > { %v3980_v3 = vmul.f32 %v3964_v18, %v3932_v14  ;;  %5989 = vmatprep.mubr.f32.mxu0 %v4425_v30  ;;  %v4140_v4 = vshll.u32 %v4124_v26, 23 }
 0x6e3   : > { %v3979_v33 = vmul.f32 %v3963_v9, %v3931_v53  ;;  %5990 = vmatmul.mubr.f32.vlgmr.msra.gmra.mrb[48].mxu0 %v4426_v27  ;;  %v4139_v51 = vshll.u32 %v4123_v10, 23 }
 0x6e4   : > { %v3996_v22 = vadd.f32 0.05550411, %v3980_v3 }
 0x6e5   : > { %v3995_v49 = vadd.f32 0.05550411, %v3979_v33 }
 0x6e6   : > { %v4012_v45 = vmul.f32 %v3996_v22, %v3932_v14 }
 0x6e7   : > { %v4011_v39 = vmul.f32 %v3995_v49, %v3931_v53 }
 0x6e8   : > { %v4028_v34 = vadd.f32 0.2402265, %v4012_v45 }
 0x6e9   : > { %v4027_v61 = vadd.f32 0.2402265, %v4011_v39 }
 0x6ea   : > { %v4044_v0 = vmul.f32 %v4028_v34, %v3932_v14 }
 0x6eb   : > { %v5941_v46 = vpop.f32.mrb[36].mxu1  ;;  %v4043_v20 = vmul.f32 %v4027_v61, %v3931_v53 }
 0x6ec   : > { %v3796_v36 = vadd.f32 %v5941_v46, %v8396_v55  ;;  %v3790_v56 = vpop.f32.mrb[37].mxu1  ;;  %v4060_v48 = vadd.f32 0.6931472, %v4044_v0 }
 0x6ed   : > { %v3791_v44 = vadd.f32 %v8396_v55, %v3790_v56  ;;  %v4059_v6 = vadd.f32 0.6931472, %v4043_v20 }
 0x6ee   : > { %v3854_v16 = vmax.f32 %v3796_v36, -30.0  ;;  %v4076_v62 = vmul.f32 %v4060_v48, %v3932_v14 }
 0x6ef   : > { %v3853_v59 = vmax.f32 %v3791_v44, -30.0  ;;  %v4075_v12 = vmul.f32 %v4059_v6, %v3931_v53 }
 0x6f0   : > { %v3870_v2 = vmin.f32 %v3854_v16, 20.0  ;;  %v4092_v11 = vadd.f32 1.0, %v4076_v62 }
 0x6f1   : > { %v3869_v57 = vmin.f32 %v3853_v59, 20.0  ;;  %v4091_v43 = vadd.f32 1.0, %v4075_v12 }
 0x6f2   : > { %v3886_v24 = vmul.f32 1.442695, %v3870_v2  ;;  %v4172_v35 = vmul.f32 %v4140_v4, %v4092_v11 }
 0x6f3   : > { %v3885_v8 = vmul.f32 1.442695, %v3869_v57  ;;  %v4171_v21 = vmul.f32 %v4139_v51, %v4091_v43 }
 0x6f4   : > { %v3902_v15 = vadd.f32 0.5, %v3886_v24  ;;  %v4188_v60 = vadd.f32 2.0, %v4172_v35 }
 0x6f5   : > { %v3901_v7 = vadd.f32 0.5, %v3885_v8  ;;  %v4187_v52 = vadd.f32 2.0, %v4171_v21 }
 0x6f6   : > { %v3918_v25 = vfloor.f32 %v3902_v15  ;;  %v8404_v18 = vmul.f32 %v4188_v60, %v4172_v35 }
 0x6f7   : > { %v3917_v14 = vfloor.f32 %v3901_v7  ;;  %v8406_v9 = vmul.f32 %v4187_v52, %v4171_v21 }
 0x6f8   : > { %v8408_v53 = vsub.f32 %v3886_v24, %v3918_v25  ;;  %v4220_v30 = vadd.f32 2.0, %v8404_v18  ;;  %v6347_v63 = vtrunc.f32 %v3918_v25 }
 0x6f9   : > { %v8411_v3 = vsub.f32 %v3885_v8, %v3917_v14  ;;  %v5944_v27 = vpop.f32.mrb[38].mxu1  ;;  %v4219_v33 = vadd.f32 2.0, %v8406_v9  ;;  %v6345_v44 = vtrunc.f32 %v3917_v14 }
 0x6fa   : > { %v3950_v22 = vmul.f32 0.0013333558, %v8408_v53  ;;  %v3806_v42 = vadd.f32 %v5944_v27, %v8396_v55  ;;  %v3800_v49 = vpop.f32.mrb[39].mxu1  ;;  %v4252_v5 = vsub.s32 2130706432, %v4220_v30  ;;  %v6348_v59 = vcvt.f32.s32 %v6347_v63 }
 0x6fb   : > { %v3949_v45 = vmul.f32 0.0013333558, %v8411_v3  ;;  %v3801_v39 = vadd.f32 %v8396_v55, %v3800_v49  ;;  %v4251_v58 = vsub.s32 2130706432, %v4219_v33  ;;  %v6346_v35 = vcvt.f32.s32 %v6345_v44 }
 0x6fc   : > { %v3966_v34 = vadd.f32 0.009618129, %v3950_v22  ;;  %v3856_v61 = vmax.f32 %v3806_v42, -30.0  ;;  %v4284_v0 = vmul.f32 %v4252_v5, %v4220_v30  ;;  %v8422_v60 = vadd.s32 127, %v6348_v59 }
 0x6fd   : > { %v3965_v46 = vadd.f32 0.009618129, %v3949_v45  ;;  %v3855_v20 = vmax.f32 %v3801_v39, -30.0  ;;  %v4283_v26 = vmul.f32 %v4251_v58, %v4219_v33 }
 0x6fe   : > { %v3982_v36 = vmul.f32 %v3966_v34, %v8408_v53  ;;  %v3872_v56 = vmin.f32 %v3856_v61, 20.0  ;;  %v4300_v48 = vsub.f32 2.0, %v4284_v0  ;;  %v4142_v63 = vshll.u32 %v8422_v60, 23 }
 0x6ff   : > { %v3981_v10 = vmul.f32 %v3965_v46, %v8411_v3  ;;  %v3871_v6 = vmin.f32 %v3855_v20, 20.0  ;;  %v4299_v16 = vsub.f32 2.0, %v4283_v26  ;;  %v4125_v61 = vadd.s32 127, %v6346_v35 }
 0x700   : > { %v3998_v62 = vadd.f32 0.05550411, %v3982_v36  ;;  %v3888_v12 = vmul.f32 1.442695, %v3872_v56  ;;  %v4316_v4 = vmul.f32 %v4300_v48, %v4252_v5 }
 0x701   : > { %v3997_v2 = vadd.f32 0.05550411, %v3981_v10  ;;  %v3887_v11 = vmul.f32 1.442695, %v3871_v6  ;;  %v4315_v51 = vmul.f32 %v4299_v16, %v4251_v58 }
 0x702   : > { %v3904_v57 = vadd.f32 0.5, %v3888_v12  ;;  %v4332_v43 = vmul.f32 %v4316_v4, %v4220_v30  ;;  %v4014_v24 = vmul.f32 %v3998_v62, %v8408_v53 }
 0x703   : > { %v3903_v8 = vadd.f32 0.5, %v3887_v11  ;;  %v4331_v21 = vmul.f32 %v4315_v51, %v4219_v33  ;;  %v4013_v15 = vmul.f32 %v3997_v2, %v8411_v3 }
 0x704   : > { %v3920_v7 = vfloor.f32 %v3904_v57  ;;  %v4348_v52 = vsub.f32 2.0, %v4332_v43  ;;  %v4030_v25 = vadd.f32 0.2402265, %v4014_v24 }
 0x705   : > { %v3919_v14 = vfloor.f32 %v3903_v8  ;;  %v4347_v27 = vsub.f32 2.0, %v4331_v21  ;;  %v4029_v22 = vadd.f32 0.2402265, %v4013_v15 }
 0x706   : > { %v8424_v42 = vsub.f32 %v3888_v12, %v3920_v7  ;;  %v6351_v49 = vtrunc.f32 %v3920_v7  ;;  %v4364_v5 = vmul.f32 %v4348_v52, %v4316_v4  ;;  %v4046_v34 = vmul.f32 %v4030_v25, %v8408_v53 }
 0x707   : > { %v8426_v45 = vsub.f32 %v3887_v11, %v3919_v14  ;;  %v4363_v39 = vmul.f32 %v4347_v27, %v4315_v51  ;;  %v4045_v58 = vmul.f32 %v4029_v22, %v8411_v3  ;;  %v6349_v36 = vtrunc.f32 %v3919_v14 }
 0x708   : > { %v3952_v0 = vmul.f32 0.0013333558, %v8424_v42  ;;  %v4380_v46 = vmul.f32 %v4364_v5, %v4220_v30  ;;  %v6352_v20 = vcvt.f32.s32 %v6351_v49  ;;  %v4062_v2 = vadd.f32 0.6931472, %v4046_v34 }
 0x709   : > { %v3951_v26 = vmul.f32 0.0013333558, %v8426_v45  ;;  %v5947_v56 = vpop.f32.mrb[40].mxu1  ;;  %v4379_v48 = vmul.f32 %v4363_v39, %v4219_v33  ;;  %v4061_v62 = vadd.f32 0.6931472, %v4045_v58  ;;  %v4141_v11 = vshll.u32 %v4125_v61, 23 }
 0x70a   : > { %v3968_v10 = vadd.f32 0.009618129, %v3952_v0  ;;  %v3816_v44 = vadd.f32 %v5947_v56, %v8396_v55  ;;  %v3810_v6 = vpop.f32.mrb[41].mxu1  ;;  %v4396_v16 = vsub.f32 2.0, %v4380_v46  ;;  %v6350_v24 = vcvt.f32.s32 %v6349_v36 }
 0x70b   : > { %v3967_v59 = vadd.f32 0.009618129, %v3951_v26  ;;  %v3811_v12 = vadd.f32 %v8396_v55, %v3810_v6  ;;  %v4395_v4 = vsub.f32 2.0, %v4379_v48  ;;  %v8437_v21 = vadd.s32 127, %v6352_v20 }
 0x70c   : > { %v3984_v30 = vmul.f32 %v3968_v10, %v8424_v42  ;;  %v3858_v51 = vmax.f32 %v3816_v44, -30.0  ;;  %v4412_v57 = vmul.f32 %v4396_v16, %v4364_v5  ;;  %v4077_v60 = vmul.f32 %v4061_v62, %v8411_v3 }
 0x70d   : > { %v3983_v43 = vmul.f32 %v3967_v59, %v8426_v45  ;;  %v3857_v33 = vmax.f32 %v3811_v12, -30.0  ;;  %v4411_v35 = vmul.f32 %v4395_v4, %v4363_v39  ;;  %v4078_v14 = vmul.f32 %v4062_v2, %v8408_v53 }
 0x70e   : > { %v4000_v8 = vadd.f32 0.05550411, %v3984_v30  ;;  %v3874_v15 = vmin.f32 %v3858_v51, 20.0  ;;  %v4428_v22 = vmul.f32 %v4412_v57, %v8404_v18  ;;  %v4093_v49 = vadd.f32 1.0, %v4077_v60 }
 0x70f   : > { %v3999_v7 = vadd.f32 0.05550411, %v3983_v43  ;;  %v3873_v52 = vmin.f32 %v3857_v33, 20.0  ;;  %v4427_v25 = vmul.f32 %v4411_v35, %v8406_v9  ;;  %v8444_v58 = vadd.s32 127, %v6350_v24 }
 0x710   : > { %v3890_v27 = vmul.f32 1.442695, %v3874_v15  ;;  %v4016_v5 = vmul.f32 %v4000_v8, %v8424_v42  ;;  %v4094_v34 = vadd.f32 1.0, %v4078_v14  ;;  %v4173_v0 = vmul.f32 %v4141_v11, %v4093_v49 }
 0x711   : > { %v3889_v39 = vmul.f32 1.442695, %v3873_v52  ;;  %5992 = vmatprep.mubr.f32.mxu0 %v4427_v25  ;;  %v4015_v61 = vmul.f32 %v3999_v7, %v8426_v45  ;;  %v4144_v26 = vshll.u32 %v8437_v21, 23  ;;  %v4143_v48 = vshll.u32 %v8444_v58, 23 }
 0x712   : > { %v3906_v3 = vadd.f32 0.5, %v3890_v27  ;;  %5993 = vmatmul.mubr.f32.gmra.mrb[50].mxu0 %v4428_v22  ;;  %v4032_v46 = vadd.f32 0.2402265, %v4016_v5  ;;  %v4174_v20 = vmul.f32 %v4142_v63, %v4094_v34  ;;  %v4189_v36 = vadd.f32 2.0, %v4173_v0 }
 0x713   : > { %v3905_v9 = vadd.f32 0.5, %v3889_v39  ;;  %v4031_v53 = vadd.f32 0.2402265, %v4015_v61 }
 0x714   : > { %v3922_v18 = vfloor.f32 %v3906_v3  ;;  %v4048_v56 = vmul.f32 %v4032_v46, %v8424_v42  ;;  %v4190_v44 = vadd.f32 2.0, %v4174_v20  ;;  %v8453_v12 = vmul.f32 %v4189_v36, %v4173_v0 }
 0x715   : > { %v3921_v10 = vfloor.f32 %v3905_v9  ;;  %v4047_v6 = vmul.f32 %v4031_v53, %v8426_v45 }
 0x716   : > { %v8451_v16 = vsub.f32 %v3890_v27, %v3922_v18  ;;  %v6355_v62 = vtrunc.f32 %v3922_v18  ;;  %v5950_v59 = vpop.f32.mrb[42].mxu1  ;;  %v4064_v63 = vadd.f32 0.6931472, %v4048_v56  ;;  %v8458_v51 = vmul.f32 %v4190_v44, %v4174_v20 }
 0x717   : > { %v8455_v4 = vsub.f32 %v3889_v39, %v3921_v10  ;;  %v6353_v2 = vtrunc.f32 %v3921_v10  ;;  %v3826_v11 = vadd.f32 %v5950_v59, %v8396_v55  ;;  %v3820_v30 = vpop.f32.mrb[43].mxu1  ;;  %v8463_v33 = vadd.f32 2.0, %v8453_v12 }
 0x718   : > { %v3954_v57 = vmul.f32 0.0013333558, %v8451_v16  ;;  %v6356_v43 = vcvt.f32.s32 %v6355_v62  ;;  %v3821_v24 = vadd.f32 %v8396_v55, %v3820_v30  ;;  %v8467_v60 = vadd.f32 2.0, %v8458_v51 }
 0x719   : > { %v3953_v35 = vmul.f32 0.0013333558, %v8455_v4  ;;  %v6354_v8 = vcvt.f32.s32 %v6353_v2  ;;  %v3860_v15 = vmax.f32 %v3826_v11, -30.0  ;;  %v4253_v14 = vsub.s32 2130706432, %v8463_v33 }
 0x71a   : > { %v3970_v7 = vadd.f32 0.009618129, %v3954_v57  ;;  %v8469_v52 = vadd.s32 127, %v6356_v43  ;;  %v3859_v25 = vmax.f32 %v3821_v24, -30.0  ;;  %v4254_v5 = vsub.s32 2130706432, %v8467_v60 }
 0x71b   : > { %v3969_v27 = vadd.f32 0.009618129, %v3953_v35  ;;  %v8472_v22 = vadd.s32 127, %v6354_v8  ;;  %v3876_v49 = vmin.f32 %v3860_v15, 20.0  ;;  %v5953_v3 = vpop.f32.mrb[44].mxu1  ;;  %v4285_v0 = vmul.f32 %v4253_v14, %v8463_v33 }
 0x71c   : > { %v3986_v39 = vmul.f32 %v3970_v7, %v8451_v16  ;;  %v3875_v61 = vmin.f32 %v3859_v25, 20.0  ;;  %v3836_v53 = vadd.f32 %v5953_v3, %v8396_v55  ;;  %v3830_v18 = vpop.f32.mrb[45].mxu1  ;;  %v4286_v11 = vmul.f32 %v4254_v5, %v8467_v60 }
 0x71d   : > { %v3985_v46 = vmul.f32 %v3969_v27, %v8455_v4  ;;  %v3892_v20 = vmul.f32 1.442695, %v3876_v49  ;;  %v3831_v10 = vadd.f32 %v8396_v55, %v3830_v18  ;;  %v4301_v44 = vsub.f32 2.0, %v4285_v0 }
 0x71e   : > { %v8481_v36 = vadd.f32 0.05550411, %v3986_v39  ;;  %v3891_v56 = vmul.f32 1.442695, %v3875_v61  ;;  %v3862_v2 = vmax.f32 %v3836_v53, -30.0  ;;  %v4302_v15 = vsub.f32 2.0, %v4286_v11 }
 0x71f   : > { %v8484_v62 = vadd.f32 0.05550411, %v3985_v46  ;;  %v3908_v59 = vadd.f32 0.5, %v3892_v20  ;;  %v3861_v57 = vmax.f32 %v3831_v10, -30.0  ;;  %v4317_v43 = vmul.f32 %v4301_v44, %v4253_v14 }
 0x720   : > { %v3907_v30 = vadd.f32 0.5, %v3891_v56  ;;  %v4063_v24 = vadd.f32 0.6931472, %v4047_v6  ;;  %v3878_v8 = vmin.f32 %v3862_v2, 20.0  ;;  %v8488_v7 = vmul.f32 %v4064_v63, %v8424_v42 }
 0x721   : > { %v3924_v35 = vfloor.f32 %v3908_v59  ;;  %v3877_v27 = vmin.f32 %v3861_v57, 20.0  ;;  %v4333_v49 = vmul.f32 %v4317_v43, %v8463_v33  ;;  %v4318_v46 = vmul.f32 %v4302_v15, %v4254_v5 }
 0x722   : > { %v3923_v25 = vfloor.f32 %v3907_v30  ;;  %v4079_v39 = vmul.f32 %v4063_v24, %v8426_v45  ;;  %v3894_v0 = vmul.f32 1.442695, %v3878_v8 }
 0x723   : > { %v8492_v61 = vsub.f32 %v3892_v20, %v3924_v35  ;;  %v6359_v3 = vtrunc.f32 %v3924_v35  ;;  %v3893_v14 = vmul.f32 1.442695, %v3877_v27  ;;  %v4349_v18 = vsub.f32 2.0, %v4333_v49 }
 0x724   : > { %v8494_v53 = vsub.f32 %v3891_v56, %v3923_v25  ;;  %v6357_v6 = vtrunc.f32 %v3923_v25  ;;  %v3910_v63 = vadd.f32 0.5, %v3894_v0  ;;  %v4334_v44 = vmul.f32 %v4318_v46, %v8467_v60 }
 0x725   : > { %v3956_v10 = vmul.f32 0.0013333558, %v8492_v61  ;;  %v6360_v42 = vcvt.f32.s32 %v6359_v3  ;;  %v3909_v45 = vadd.f32 0.5, %v3893_v14  ;;  %v4365_v20 = vmul.f32 %v4349_v18, %v4317_v43 }
 0x726   : > { %v3955_v59 = vmul.f32 0.0013333558, %v8494_v53  ;;  %v6358_v2 = vcvt.f32.s32 %v6357_v6  ;;  %v3926_v5 = vfloor.f32 %v3910_v63  ;;  %v4350_v56 = vsub.f32 2.0, %v4334_v44 }
 0x727   : > { %v3972_v11 = vadd.f32 0.009618129, %v3956_v10  ;;  %v8499_v30 = vadd.s32 127, %v6360_v42  ;;  %v3925_v35 = vfloor.f32 %v3909_v45  ;;  %v4381_v8 = vmul.f32 %v4365_v20, %v8463_v33 }
 0x728   : > { %v3971_v57 = vadd.f32 0.009618129, %v3955_v59  ;;  %v8501_v24 = vadd.s32 127, %v6358_v2  ;;  %v8506_v27 = vsub.f32 %v3894_v0, %v3926_v5  ;;  %v6363_v49 = vtrunc.f32 %v3926_v5 }
 0x729   : > { %v3988_v15 = vmul.f32 %v3972_v11, %v8492_v61  ;;  %v5956_v3 = vpop.f32.mrb[46].mxu1  ;;  %v8510_v18 = vsub.f32 %v3893_v14, %v3925_v35  ;;  %v6361_v10 = vtrunc.f32 %v3925_v35  ;;  %v4397_v25 = vsub.f32 2.0, %v4381_v8 }
 0x72a   : > { %v3987_v43 = vmul.f32 %v3971_v57, %v8494_v53  ;;  %v3840_v42 = vpop.f32.mrb[47].mxu1  ;;  %v3958_v33 = vmul.f32 0.0013333558, %v8506_v27  ;;  %v6364_v44 = vcvt.f32.s32 %v6363_v49  ;;  %v3846_v59 = vadd.f32 %v5956_v3, %v8396_v55 }
 0x72b   : > { %v8512_v63 = vadd.f32 0.05550411, %v3988_v15  ;;  %v3957_v0 = vmul.f32 0.0013333558, %v8510_v18  ;;  %v6362_v45 = vcvt.f32.s32 %v6361_v10  ;;  %v3841_v11 = vadd.f32 %v8396_v55, %v3840_v42 }
 0x72c   : > { %v4003_v2 = vadd.f32 0.05550411, %v3987_v43  ;;  %v3974_v5 = vadd.f32 0.009618129, %v3958_v33  ;;  %v8518_v57 = vadd.s32 127, %v6364_v44  ;;  %v3864_v14 = vmax.f32 %v3846_v59, -30.0 }
 0x72d   : > { %v3973_v35 = vadd.f32 0.009618129, %v3957_v0  ;;  %v8520_v6 = vadd.s32 127, %v6362_v45  ;;  %v3863_v15 = vmax.f32 %v3841_v11, -30.0  ;;  %v4366_v34 = vmul.f32 %v4350_v56, %v4318_v46 }
 0x72e   : > { %v3990_v49 = vmul.f32 %v3974_v5, %v8506_v27  ;;  %v4150_v3 = vshll.u32 %v8518_v57, 23  ;;  %v3880_v43 = vmin.f32 %v3864_v14, 20.0  ;;  %v4413_v9 = vmul.f32 %v4397_v25, %v4365_v20 }
 0x72f   : > { %v3989_v10 = vmul.f32 %v3973_v35, %v8510_v18  ;;  %v4149_v55 = vshll.u32 %v8520_v6, 23  ;;  %v3879_v42 = vmin.f32 %v3863_v15, 20.0  ;;  %v4382_v33 = vmul.f32 %v4366_v34, %v8467_v60 }
 0x730   : > { %v8527_v44 = vadd.f32 0.05550411, %v3990_v49  ;;  %v3896_v8 = vmul.f32 1.442695, %v3880_v43  ;;  %v4429_v59 = vmul.f32 %v4413_v9, %v8453_v12  ;;  %v4095_v0 = vadd.f32 1.0, %v4079_v39 }
 0x731   : > { %v8530_v46 = vadd.f32 0.05550411, %v3989_v10  ;;  %v3895_v56 = vmul.f32 1.442695, %v3879_v42  ;;  %v4398_v45 = vsub.f32 2.0, %v4382_v33  ;;  %v4096_v11 = vadd.f32 1.0, %v8488_v7 }
 0x732   : > { %v3912_v20 = vadd.f32 0.5, %v3896_v8  ;;  %5995 = vmatprep.mubr.f32.mxu0 %v4429_v59  ;;  %v4175_v25 = vmul.f32 %v4143_v48, %v4095_v0  ;;  %v4017_v60 = vmul.f32 %v8484_v62, %v8455_v4  ;;  %v4018_v5 = vmul.f32 %v8481_v36, %v8451_v16 }
 0x733   : > { %v3911_v14 = vadd.f32 0.5, %v3895_v56  ;;  %v4414_v12 = vmul.f32 %v4398_v45, %v4366_v34  ;;  %v4176_v9 = vmul.f32 %v4144_v26, %v4096_v11  ;;  %v4019_v39 = vmul.f32 %v4003_v2, %v8494_v53 }
 0x734   : > { %v3928_v35 = vfloor.f32 %v3912_v20  ;;  %v4191_v7 = vadd.f32 2.0, %v4175_v25  ;;  %v4033_v15 = vadd.f32 0.2402265, %v4017_v60  ;;  %v4034_v49 = vadd.f32 0.2402265, %v4018_v5 }
 0x735   : > { %v3927_v43 = vfloor.f32 %v3911_v14  ;;  %v4430_v58 = vmul.f32 %v4414_v12, %v8458_v51  ;;  %v4192_v48 = vadd.f32 2.0, %v4176_v9  ;;  %v4035_v10 = vadd.f32 0.2402265, %v4019_v39 }
 0x736   : > { %v8543_v62 = vsub.f32 %v3896_v8, %v3928_v35  ;;  %v6367_v42 = vtrunc.f32 %v3928_v35  ;;  %v8545_v36 = vmul.f32 %v4191_v7, %v4175_v25  ;;  %v4049_v34 = vmul.f32 %v4033_v15, %v8455_v4 }
 0x737   : > { %v8548_v21 = vsub.f32 %v3895_v56, %v3927_v43  ;;  %v6365_v26 = vtrunc.f32 %v3927_v43  ;;  %5996 = vmatmul.mubr.f32.gmra.mrb[52].mxu0 %v4430_v58  ;;  %v8550_v2 = vmul.f32 %v4192_v48, %v4176_v9  ;;  %v4050_v33 = vmul.f32 %v4034_v49, %v8451_v16 }
 0x738   : > { %v3960_v59 = vmul.f32 0.0013333558, %v8543_v62  ;;  %v6368_v51 = vcvt.f32.s32 %v6367_v42  ;;  %v4223_v0 = vadd.f32 2.0, %v8545_v36  ;;  %v4065_v8 = vadd.f32 0.6931472, %v4049_v34 }
 0x739   : > { %v3959_v45 = vmul.f32 0.0013333558, %v8548_v21  ;;  %v6366_v11 = vcvt.f32.s32 %v6365_v26  ;;  %v4224_v20 = vadd.f32 2.0, %v8550_v2  ;;  %v4066_v25 = vadd.f32 0.6931472, %v4050_v33 }
 0x73a   : > { %v3976_v56 = vadd.f32 0.009618129, %v3960_v59  ;;  %v8557_v60 = vadd.s32 127, %v6368_v51  ;;  %v4255_v5 = vsub.s32 2130706432, %v4223_v0  ;;  %v4081_v14 = vmul.f32 %v4065_v8, %v8455_v4 }
 0x73b   : > { %v3975_v12 = vadd.f32 0.009618129, %v3959_v45  ;;  %v8560_v9 = vadd.s32 127, %v6366_v11  ;;  %v4256_v39 = vsub.s32 2130706432, %v4224_v20  ;;  %v4082_v35 = vmul.f32 %v4066_v25, %v8451_v16 }
 0x73c   : > { %v3992_v7 = vmul.f32 %v3976_v56, %v8543_v62  ;;  %v4287_v49 = vmul.f32 %v4255_v5, %v4223_v0  ;;  %v4097_v43 = vadd.f32 1.0, %v4081_v14  ;;  %v9072_v33 = vshll.u32 %v8472_v22, 23 }
 0x73d   : > { %v3991_v58 = vmul.f32 %v3975_v12, %v8548_v21  ;;  %v4151_v48 = vshll.u32 %v8560_v9, 23  ;;  %v4288_v42 = vmul.f32 %v4256_v39, %v4224_v20  ;;  %v4098_v34 = vadd.f32 1.0, %v4082_v35 }
 0x73e   : > { %v8567_v26 = vadd.f32 0.05550411, %v3992_v7  ;;  %v4303_v4 = vsub.f32 2.0, %v4287_v49  ;;  %v4177_v59 = vmul.f32 %v9072_v33, %v4097_v43  ;;  %v4051_v16 = vmul.f32 %v4035_v10, %v8494_v53 }
 0x73f   : > { %v8572_v51 = vadd.f32 0.05550411, %v3991_v58  ;;  %v4304_v8 = vsub.f32 2.0, %v4288_v42  ;;  %v9073_v45 = vshll.u32 %v8469_v52, 23  ;;  %v4020_v25 = vmul.f32 %v8512_v63, %v8492_v61 }
 0x740   : > { %v4319_v56 = vmul.f32 %v4303_v4, %v4255_v5  ;;  %v4193_v14 = vadd.f32 2.0, %v4177_v59  ;;  %v4067_v12 = vadd.f32 0.6931472, %v4051_v16  ;;  %v4021_v35 = vmul.f32 %v8530_v46, %v8510_v18 }
 0x741   : > { %v4178_v11 = vmul.f32 %v9073_v45, %v4098_v34  ;;  %v4320_v7 = vmul.f32 %v4304_v8, %v4256_v39  ;;  %v4036_v49 = vadd.f32 0.2402265, %v4020_v25  ;;  %v4022_v10 = vmul.f32 %v8527_v44, %v8506_v27 }
 0x742   : > { %v4335_v43 = vmul.f32 %v4319_v56, %v4223_v0  ;;  %v8582_v58 = vmul.f32 %v4193_v14, %v4177_v59  ;;  %v4083_v52 = vmul.f32 %v4067_v12, %v8494_v53  ;;  %v4037_v42 = vadd.f32 0.2402265, %v4021_v35 }
 0x743   : > { %v4194_v22 = vadd.f32 2.0, %v4178_v11  ;;  %v4336_v34 = vmul.f32 %v4320_v7, %v4224_v20  ;;  %v4052_v5 = vmul.f32 %v4036_v49, %v8492_v61  ;;  %v4038_v4 = vadd.f32 0.2402265, %v4022_v10 }
 0x744   : > { %v4351_v33 = vsub.f32 2.0, %v4335_v43  ;;  %v8589_v46 = vadd.f32 2.0, %v8582_v58  ;;  %v4099_v39 = vadd.f32 1.0, %v4083_v52  ;;  %v4053_v16 = vmul.f32 %v4037_v42, %v8510_v18 }
 0x745   : > { %v8585_v63 = vmul.f32 %v4194_v22, %v4178_v11  ;;  %v4352_v44 = vsub.f32 2.0, %v4336_v34  ;;  %v4068_v8 = vadd.f32 0.6931472, %v4052_v5  ;;  %v4054_v53 = vmul.f32 %v4038_v4, %v8506_v27 }
 0x746   : > { %v4367_v45 = vmul.f32 %v4351_v33, %v4319_v56  ;;  %v4257_v11 = vsub.s32 2130706432, %v8589_v46  ;;  %v9074_v25 = vshll.u32 %v8501_v24, 23  ;;  %v4069_v12 = vadd.f32 0.6931472, %v4053_v16 }
 0x747   : > { %v8593_v59 = vadd.f32 2.0, %v8585_v63  ;;  %v4368_v35 = vmul.f32 %v4352_v44, %v4320_v7  ;;  %v4084_v49 = vmul.f32 %v4068_v8, %v8492_v61  ;;  %v4070_v10 = vadd.f32 0.6931472, %v4054_v53 }
 0x748   : > { %v4179_v14 = vmul.f32 %v9074_v25, %v4099_v39  ;;  %v4383_v43 = vmul.f32 %v4367_v45, %v4223_v0  ;;  %v4289_v52 = vmul.f32 %v4257_v11, %v8589_v46  ;;  %v4085_v34 = vmul.f32 %v4069_v12, %v8510_v18 }
 0x749   : > { %v4258_v22 = vsub.s32 2130706432, %v8593_v59  ;;  %v4384_v5 = vmul.f32 %v4368_v35, %v4224_v20  ;;  %v4100_v4 = vadd.f32 1.0, %v4084_v49  ;;  %v4086_v24 = vmul.f32 %v4070_v10, %v8506_v27 }
 0x74a   : > { %v4195_v42 = vadd.f32 2.0, %v4179_v14  ;;  %v4399_v33 = vsub.f32 2.0, %v4383_v43  ;;  %v4305_v39 = vsub.f32 2.0, %v4289_v52  ;;  %v4101_v16 = vadd.f32 1.0, %v4085_v34 }
 0x74b   : > { %v4290_v56 = vmul.f32 %v4258_v22, %v8593_v59  ;;  %v4400_v44 = vsub.f32 2.0, %v4384_v5  ;;  %v9075_v0 = vshll.u32 %v8499_v30, 23  ;;  %v4102_v53 = vadd.f32 1.0, %v4086_v24 }
 0x74c   : > { %v8605_v7 = vmul.f32 %v4195_v42, %v4179_v14  ;;  %v4415_v25 = vmul.f32 %v4399_v33, %v4367_v45  ;;  %v4321_v15 = vmul.f32 %v4305_v39, %v4257_v11  ;;  %v4181_v20 = vmul.f32 %v4149_v55, %v4101_v16 }
 0x74d   : > { %v4306_v61 = vsub.f32 2.0, %v4290_v56  ;;  %v4180_v8 = vmul.f32 %v9075_v0, %v4100_v4  ;;  %v4416_v27 = vmul.f32 %v4400_v44, %v4368_v35  ;;  %v4182_v14 = vmul.f32 %v4150_v3, %v4102_v53 }
 0x74e   : > { %v8610_v18 = vadd.f32 2.0, %v8605_v7  ;;  %v4431_v10 = vmul.f32 %v4415_v25, %v8545_v36  ;;  %v4337_v30 = vmul.f32 %v4321_v15, %v8589_v46  ;;  %v4197_v45 = vadd.f32 2.0, %v4181_v20 }
 0x74f   : > { %v4322_v12 = vmul.f32 %v4306_v61, %v4258_v22  ;;  %v4196_v49 = vadd.f32 2.0, %v4180_v8  ;;  %v4432_v11 = vmul.f32 %v4416_v27, %v8550_v2  ;;  %v4198_v6 = vadd.f32 2.0, %v4182_v14 }
 0x750   : > { %v4259_v43 = vsub.s32 2130706432, %v8610_v18  ;;  %5998 = vmatprep.mubr.f32.mxu0 %v4431_v10  ;;  %v4353_v55 = vsub.f32 2.0, %v4337_v30  ;;  %v8624_v57 = vmul.f32 %v4197_v45, %v4181_v20  ;;  %v4023_v3 = vmul.f32 %v8572_v51, %v8548_v21 }
 0x751   : > { %v4338_v52 = vmul.f32 %v4322_v12, %v8593_v59  ;;  %v8621_v42 = vmul.f32 %v4196_v49, %v4180_v8  ;;  %5999 = vmatmul.mubr.f32.gmra.mrb[54].mxu0 %v4432_v11  ;;  %v8629_v34 = vmul.f32 %v4198_v6, %v4182_v14  ;;  %v4024_v2 = vmul.f32 %v8567_v26, %v8543_v62 }
 0x752   : > { %v4291_v35 = vmul.f32 %v4259_v43, %v8610_v18  ;;  %v4369_v5 = vmul.f32 %v4353_v55, %v4321_v15  ;;  %v4229_v4 = vadd.f32 2.0, %v8624_v57  ;;  %v4039_v24 = vadd.f32 0.2402265, %v4023_v3 }
 0x753   : > { %v4354_v36 = vsub.f32 2.0, %v4338_v52  ;;  %v4228_v22 = vadd.f32 2.0, %v8621_v42  ;;  %v4230_v16 = vadd.f32 2.0, %v8629_v34  ;;  %v4040_v44 = vadd.f32 0.2402265, %v4024_v2 }
 0x754   : > { %v4307_v56 = vsub.f32 2.0, %v4291_v35  ;;  %v4385_v51 = vmul.f32 %v4369_v5, %v8589_v46  ;;  %v4261_v0 = vsub.s32 2130706432, %v4229_v4  ;;  %v4055_v8 = vmul.f32 %v4039_v24, %v8548_v21 }
 0x755   : > { %v4370_v33 = vmul.f32 %v4354_v36, %v4322_v12  ;;  %v4260_v39 = vsub.s32 2130706432, %v4228_v22  ;;  %v4262_v26 = vsub.s32 2130706432, %v4230_v16  ;;  %v4056_v15 = vmul.f32 %v4040_v44, %v8543_v62 }
 0x756   : > { %v4323_v61 = vmul.f32 %v4307_v56, %v4259_v43  ;;  %v4401_v20 = vsub.f32 2.0, %v4385_v51  ;;  %v4293_v12 = vmul.f32 %v4261_v0, %v4229_v4  ;;  %v4071_v49 = vadd.f32 0.6931472, %v4055_v8 }
 0x757   : > { %v4386_v53 = vmul.f32 %v4370_v33, %v8593_v59  ;;  %v4292_v25 = vmul.f32 %v4260_v39, %v4228_v22  ;;  %v4294_v30 = vmul.f32 %v4262_v26, %v4230_v16  ;;  %v4072_v45 = vadd.f32 0.6931472, %v4056_v15 }
 0x758   : > { %v4339_v27 = vmul.f32 %v4323_v61, %v8610_v18  ;;  %v4417_v46 = vmul.f32 %v4401_v20, %v4369_v5  ;;  %v4309_v11 = vsub.f32 2.0, %v4293_v12  ;;  %v4087_v52 = vmul.f32 %v4071_v49, %v8548_v21 }
 0x759   : > { %v4402_v14 = vsub.f32 2.0, %v4386_v53  ;;  %v4308_v10 = vsub.f32 2.0, %v4292_v25  ;;  %v4310_v55 = vsub.f32 2.0, %v4294_v30  ;;  %v4088_v35 = vmul.f32 %v4072_v45, %v8543_v62 }
 0x75a   : > { %v4355_v43 = vsub.f32 2.0, %v4339_v27  ;;  %v4433_v3 = vmul.f32 %v4417_v46, %v8582_v58  ;;  %v4325_v2 = vmul.f32 %v4309_v11, %v4261_v0  ;;  %v4103_v56 = vadd.f32 1.0, %v4087_v52 }
 0x75b   : > { %v4418_v6 = vmul.f32 %v4402_v14, %v4370_v33  ;;  %v4324_v59 = vmul.f32 %v4308_v10, %v4260_v39  ;;  %v4326_v51 = vmul.f32 %v4310_v55, %v4262_v26  ;;  %v4104_v8 = vadd.f32 1.0, %v4088_v35 }
 0x75c   : > { %v4371_v36 = vmul.f32 %v4355_v43, %v4323_v61  ;;  %6001 = vmatprep.mubr.f32.mxu0 %v4433_v3  ;;  %v4341_v53 = vmul.f32 %v4325_v2, %v4229_v4  ;;  %v4183_v21 = vmul.f32 %v4151_v48, %v4103_v56  ;;  %v9076_v58 = vshll.u32 %v8557_v60, 23 }
 0x75d   : > { %v4434_v24 = vmul.f32 %v4418_v6, %v8585_v63  ;;  %v4340_v44 = vmul.f32 %v4324_v59, %v4228_v22  ;;  %v4342_v62 = vmul.f32 %v4326_v51, %v4230_v16 }
 0x75e   : > { %v4387_v5 = vmul.f32 %v4371_v36, %v8610_v18  ;;  %v4184_v39 = vmul.f32 %v9076_v58, %v4104_v8  ;;  %v4357_v0 = vsub.f32 2.0, %v4341_v53  ;;  %v4199_v25 = vadd.f32 2.0, %v4183_v21 }
 0x75f   : > { %6002 = vmatmul.mubr.f32.gmra.mrb[56].mxu0 %v4434_v24  ;;  %v4356_v33 = vsub.f32 2.0, %v4340_v44  ;;  %v4358_v15 = vsub.f32 2.0, %v4342_v62 }
 0x760   : > { %v4403_v61 = vsub.f32 2.0, %v4387_v5  ;;  %v4200_v26 = vadd.f32 2.0, %v4184_v39  ;;  %v4373_v27 = vmul.f32 %v4357_v0, %v4325_v2  ;;  %v4215_v12 = vmul.f32 %v4199_v25, %v4183_v21 }
 0x761   : > { %v4372_v63 = vmul.f32 %v4356_v33, %v4324_v59  ;;  %v4374_v49 = vmul.f32 %v4358_v15, %v4326_v51 }
 0x762   : > { %v4419_v20 = vmul.f32 %v4403_v61, %v4371_v36  ;;  %v4216_v14 = vmul.f32 %v4200_v26, %v4184_v39  ;;  %v4389_v48 = vmul.f32 %v4373_v27, %v4229_v4  ;;  %v4231_v10 = vadd.f32 2.0, %v4215_v12 }
 0x763   : > { %v4388_v18 = vmul.f32 %v4372_v63, %v4228_v22  ;;  %v4390_v45 = vmul.f32 %v4374_v49, %v4230_v16 }
 0x764   : > { %v4435_v9 = vmul.f32 %v4419_v20, %v8605_v7  ;;  %v4232_v60 = vadd.f32 2.0, %v4216_v14  ;;  %v4405_v46 = vsub.f32 2.0, %v4389_v48  ;;  %v4263_v43 = vsub.s32 2130706432, %v4231_v10 }
 0x765   : > { %v4404_v30 = vsub.f32 2.0, %v4388_v18  ;;  %v4406_v52 = vsub.f32 2.0, %v4390_v45 }
 0x766   : > { %6004 = vmatprep.mubr.f32.mxu0 %v4435_v9  ;;  %v4264_v6 = vsub.s32 2130706432, %v4232_v60  ;;  %v4421_v59 = vmul.f32 %v4405_v46, %v4373_v27  ;;  %v4295_v55 = vmul.f32 %v4263_v43, %v4231_v10 }
 0x767   : > { %v4420_v11 = vmul.f32 %v4404_v30, %v4372_v63  ;;  %v4422_v22 = vmul.f32 %v4406_v52, %v4374_v49 }
 0x768   : > { %v4296_v3 = vmul.f32 %v4264_v6, %v4232_v60  ;;  %v4437_v36 = vmul.f32 %v4421_v59, %v8624_v57  ;;  %v4311_v7 = vsub.f32 2.0, %v4295_v55 }
 0x769   : > { %v4436_v35 = vmul.f32 %v4420_v11, %v8621_v42  ;;  %v4438_v2 = vmul.f32 %v4422_v22, %v8629_v34  ;;  %v8656_v34 = vld [vmem:[%s8980_s6 + $0x2] ss:$0 sm:$0xff] }
 0x76a   : > { %v4312_v4 = vsub.f32 2.0, %v4296_v3  ;;  %v4327_v16 = vmul.f32 %v4311_v7, %v4263_v43 }
 0x76b   : > { %6005 = vmatmul.mubr.f32.gmra.mrb[58].mxu0 %v4436_v35 }
 0x76c   : > { %6007 = vmatprep.mubr.f32.mxu0 %v4437_v36  ;;  %v4328_v56 = vmul.f32 %v4312_v4, %v4264_v6  ;;  %v4343_v24 = vmul.f32 %v4327_v16, %v4231_v10 }
 0x76e   : > { %v4344_v44 = vmul.f32 %v4328_v56, %v4232_v60  ;;  %v4359_v51 = vsub.f32 2.0, %v4343_v24 }
 0x76f   : > { %6008 = vmatmul.mubr.f32.gmra.mrb[60].mxu0 %v4438_v2 }
 0x770   : > { %v4360_v8 = vsub.f32 2.0, %v4344_v44  ;;  %v4375_v5 = vmul.f32 %v4359_v51, %v4327_v16 }
 0x772   : > { %v4376_v53 = vmul.f32 %v4360_v8, %v4328_v56  ;;  %v4391_v42 = vmul.f32 %v4375_v5, %v4231_v10 }
 0x774   : > { %v4392_v21 = vmul.f32 %v4376_v53, %v4232_v60  ;;  %v4407_v33 = vsub.f32 2.0, %v4391_v42 }
 0x776   : > { %v4408_v62 = vsub.f32 2.0, %v4392_v21  ;;  %v4423_v57 = vmul.f32 %v4407_v33, %v4375_v5 }
 0x778   : > { %v4424_v58 = vmul.f32 %v4408_v62, %v4376_v53  ;;  %v4439_v39 = vmul.f32 %v4423_v57, %v4215_v12 }
 0x77a   : > { %v4440_v61 = vmul.f32 %v4424_v58, %v4216_v14  ;;  %6010 = vmatprep.mubr.f32.mxu0 %v4439_v39 }
 0x77c   : > { %6011 = vmatmul.mubr.f32.gmra.mrb[62].mxu0 %v4440_v61 }
 0x7b6   : > { %v5991_v0 = vpop.f32.mrb[48].mxu0 }
 0x7b7   : > { %v4538_v25 = vadd.f32 %v5991_v0, %v8656_v34  ;;  %v4532_v63 = vpop.f32.mrb[49].mxu0 }
 0x7b8   : > { %v4533_v15 = vadd.f32 %v8656_v34, %v4532_v63 }
 0x7b9   : > { %v4612_v26 = vadd.f32 %v4538_v25, %v8066_v1 }
 0x7ba   : > { %v4611_v20 = vadd.f32 %v4533_v15, %v8063_v37 }
 0x7bb   : > { %v4628_v27 = vmax.f32 %v4612_v26, -30.0 }
 0x7bc   : > { %v4627_v12 = vmax.f32 %v4611_v20, -30.0 }
 0x7bd   : > { %v4644_v18 = vmin.f32 %v4628_v27, 20.0 }
 0x7be   : > { %v4643_v49 = vmin.f32 %v4627_v12, 20.0 }
 0x7bf   : > { %v4660_v14 = vmul.f32 1.442695, %v4644_v18 }
 0x7c0   : > { %v4659_v9 = vmul.f32 1.442695, %v4643_v49 }
 0x7c1   : > { %v4676_v48 = vadd.f32 0.5, %v4660_v14 }
 0x7c2   : > { %v4675_v10 = vadd.f32 0.5, %v4659_v9 }
 0x7c3   : > { %v4692_v30 = vfloor.f32 %v4676_v48 }
 0x7c4   : > { %v4691_v45 = vfloor.f32 %v4675_v10 }
 0x7c5   : > { %v4708_v60 = vsub.f32 %v4660_v14, %v4692_v30  ;;  %v6371_v55 = vtrunc.f32 %v4692_v30 }
 0x7c6   : > { %v4707_v46 = vsub.f32 %v4659_v9, %v4691_v45  ;;  %v6369_v35 = vtrunc.f32 %v4691_v45 }
 0x7c7   : > { %v4724_v43 = vmul.f32 0.0013333558, %v4708_v60  ;;  %v6372_v7 = vcvt.f32.s32 %v6371_v55 }
 0x7c8   : > { %v4723_v11 = vmul.f32 0.0013333558, %v4707_v46  ;;  %v6370_v2 = vcvt.f32.s32 %v6369_v35 }
 0x7c9   : > { %v4740_v52 = vadd.f32 0.009618129, %v4724_v43  ;;  %v4900_v44 = vadd.s32 127, %v6372_v7 }
 0x7ca   : > { %v4739_v6 = vadd.f32 0.009618129, %v4723_v11  ;;  %v4899_v5 = vadd.s32 127, %v6370_v2 }
 0x7cb   : > { %v4756_v59 = vmul.f32 %v4740_v52, %v4708_v60  ;;  %v4916_v33 = vshll.u32 %v4900_v44, 23 }
 0x7cc   : > { %v4755_v1 = vmul.f32 %v4739_v6, %v4707_v46  ;;  %v4915_v57 = vshll.u32 %v4899_v5, 23 }
 0x7cd   : > { %v4772_v37 = vadd.f32 0.05550411, %v4756_v59 }
 0x7ce   : > { %v4771_v22 = vadd.f32 0.05550411, %v4755_v1 }
 0x7cf   : > { %v4788_v3 = vmul.f32 %v4772_v37, %v4708_v60 }
 0x7d0   : > { %v4787_v36 = vmul.f32 %v4771_v22, %v4707_v46 }
 0x7d1   : > { %v4804_v4 = vadd.f32 0.2402265, %v4788_v3 }
 0x7d2   : > { %v4803_v16 = vadd.f32 0.2402265, %v4787_v36 }
 0x7d3   : > { %v4820_v56 = vmul.f32 %v4804_v4, %v4708_v60 }
 0x7d4   : > { %v4819_v24 = vmul.f32 %v4803_v16, %v4707_v46 }
 0x7d5   : > { %v4836_v51 = vadd.f32 0.6931472, %v4820_v56 }
 0x7d6   : > { %v4835_v8 = vadd.f32 0.6931472, %v4819_v24 }
 0x7d7   : > { %v4852_v53 = vmul.f32 %v4836_v51, %v4708_v60 }
 0x7d8   : > { %v4851_v42 = vmul.f32 %v4835_v8, %v4707_v46 }
 0x7d9   : > { %v4868_v21 = vadd.f32 1.0, %v4852_v53 }
 0x7da   : > { %v4867_v62 = vadd.f32 1.0, %v4851_v42 }
 0x7db   : > { %v4948_v58 = vmul.f32 %v4916_v33, %v4868_v21 }
 0x7dc   : > { %v4947_v39 = vmul.f32 %v4915_v57, %v4867_v62  ;;  %v8669_v62 = vld [vmem:[%s8981_s7] ss:$0 sm:$0xff] }
 0x7dd   : > { %v4964_v61 = vadd.f32 2.0, %v4948_v58 }
 0x7de   : > { %v4963_v0 = vadd.f32 2.0, %v4947_v39 }
 0x7df   : > { %v4980_v25 = vmul.f32 %v4964_v61, %v4948_v58 }
 0x7e0   : > { %v4979_v63 = vmul.f32 %v4963_v0, %v4947_v39 }
 0x7e1   : > { %v4996_v15 = vadd.f32 2.0, %v4980_v25 }
 0x7e2   : > { %v4995_v26 = vadd.f32 2.0, %v4979_v63 }
 0x7e3   : > { %v5028_v20 = vsub.s32 2130706432, %v4996_v15 }
 0x7e4   : > { %v5027_v12 = vsub.s32 2130706432, %v4995_v26 }
 0x7e5   : > { %v5994_v27 = vpop.f32.mrb[50].mxu0  ;;  %v5060_v14 = vmul.f32 %v5028_v20, %v4996_v15 }
 0x7e6   : > { %v4548_v18 = vadd.f32 %v5994_v27, %v8656_v34  ;;  %v4542_v49 = vpop.f32.mrb[51].mxu0  ;;  %v5059_v48 = vmul.f32 %v5027_v12, %v4995_v26 }
 0x7e7   : > { %v4543_v9 = vadd.f32 %v8656_v34, %v4542_v49  ;;  %v5076_v30 = vsub.f32 2.0, %v5060_v14 }
 0x7e8   : > { %v4614_v10 = vadd.f32 %v4548_v18, %v8192_v31  ;;  %v5075_v60 = vsub.f32 2.0, %v5059_v48 }
 0x7e9   : > { %v4613_v45 = vadd.f32 %v4543_v9, %v8189_v23  ;;  %v5092_v43 = vmul.f32 %v5076_v30, %v5028_v20 }
 0x7ea   : > { %v4630_v46 = vmax.f32 %v4614_v10, -30.0  ;;  %v5091_v52 = vmul.f32 %v5075_v60, %v5027_v12 }
 0x7eb   : > { %v4629_v11 = vmax.f32 %v4613_v45, -30.0  ;;  %v5108_v59 = vmul.f32 %v5092_v43, %v4996_v15 }
 0x7ec   : > { %v4646_v6 = vmin.f32 %v4630_v46, 20.0  ;;  %v5107_v55 = vmul.f32 %v5091_v52, %v4995_v26 }
 0x7ed   : > { %v4645_v1 = vmin.f32 %v4629_v11, 20.0  ;;  %v5124_v35 = vsub.f32 2.0, %v5108_v59 }
 0x7ee   : > { %v4662_v37 = vmul.f32 1.442695, %v4646_v6  ;;  %v5123_v3 = vsub.f32 2.0, %v5107_v55 }
 0x7ef   : > { %v4661_v22 = vmul.f32 1.442695, %v4645_v1  ;;  %v5140_v7 = vmul.f32 %v5124_v35, %v5092_v43 }
 0x7f0   : > { %v4678_v36 = vadd.f32 0.5, %v4662_v37  ;;  %v5139_v31 = vmul.f32 %v5123_v3, %v5091_v52 }
 0x7f1   : > { %v4677_v4 = vadd.f32 0.5, %v4661_v22  ;;  %v5156_v2 = vmul.f32 %v5140_v7, %v4996_v15 }
 0x7f2   : > { %v4694_v16 = vfloor.f32 %v4678_v36  ;;  %v5155_v56 = vmul.f32 %v5139_v31, %v4995_v26 }
 0x7f3   : > { %v4693_v23 = vfloor.f32 %v4677_v4  ;;  %v5172_v44 = vsub.f32 2.0, %v5156_v2 }
 0x7f4   : > { %v4710_v24 = vsub.f32 %v4662_v37, %v4694_v16  ;;  %v5171_v8 = vsub.f32 2.0, %v5155_v56  ;;  %v6375_v26 = vtrunc.f32 %v4694_v16 }
 0x7f5   : > { %v4709_v51 = vsub.f32 %v4661_v22, %v4693_v23  ;;  %v5188_v21 = vmul.f32 %v5172_v44, %v5140_v7  ;;  %v6373_v27 = vtrunc.f32 %v4693_v23 }
 0x7f6   : > { %v4726_v5 = vmul.f32 0.0013333558, %v4710_v24  ;;  %v5187_v42 = vmul.f32 %v5171_v8, %v5139_v31  ;;  %v6376_v9 = vcvt.f32.s32 %v6375_v26 }
 0x7f7   : > { %v4725_v53 = vmul.f32 0.0013333558, %v4709_v51  ;;  %v5204_v0 = vmul.f32 %v5188_v21, %v4980_v25  ;;  %v6374_v10 = vcvt.f32.s32 %v6373_v27 }
 0x7f8   : > { %v4742_v33 = vadd.f32 0.009618129, %v4726_v5  ;;  %v5203_v58 = vmul.f32 %v5187_v42, %v4979_v63  ;;  %v4902_v60 = vadd.s32 127, %v6376_v9 }
 0x7f9   : > { %v4741_v57 = vadd.f32 0.009618129, %v4725_v53  ;;  %v5227_v49 = vmul.f32 %v8669_v62, %v5204_v0  ;;  %v4901_v25 = vadd.s32 127, %v6374_v10 }
 0x7fa   : > { %v4758_v39 = vmul.f32 %v4742_v33, %v4710_v24  ;;  %v5226_v61 = vmul.f32 %v8669_v62, %v5203_v58  ;;  %v4918_v59 = vshll.u32 %v4902_v60, 23 }
 0x7fb   : > { %v4757_v15 = vmul.f32 %v4741_v57, %v4709_v51  ;;  %v4917_v55 = vshll.u32 %v4901_v25, 23 }
 0x7fc   : > { %v4774_v20 = vadd.f32 0.05550411, %v4758_v39  ;;  %5242 = vxpose.xlu0.b32.start [1/16] %v5226_v61, 128 }
 0x7fd   : > { %v4773_v12 = vadd.f32 0.05550411, %v4757_v15 }
 0x7fe   : > { %v4790_v18 = vmul.f32 %v4774_v20, %v4710_v24 }
 0x7ff   : > { %v4789_v14 = vmul.f32 %v4773_v12, %v4709_v51 }
 0x800   : > { %v4806_v48 = vadd.f32 0.2402265, %v4790_v18  ;;  %5243 = vxpose.xlu0.b32.cont [2/16] %v5227_v49, 128 }
 0x801   : > { %v4805_v30 = vadd.f32 0.2402265, %v4789_v14 }
 0x802   : > { %v4822_v63 = vmul.f32 %v4806_v48, %v4710_v24 }
 0x803   : > { %v4821_v45 = vmul.f32 %v4805_v30, %v4709_v51 }
 0x804   : > { %v4838_v46 = vadd.f32 0.6931472, %v4822_v63 }
 0x805   : > { %v4837_v43 = vadd.f32 0.6931472, %v4821_v45 }
 0x806   : > { %v4854_v11 = vmul.f32 %v4838_v46, %v4710_v24 }
 0x807   : > { %v4853_v52 = vmul.f32 %v4837_v43, %v4709_v51 }
 0x808   : > { %v4870_v6 = vadd.f32 1.0, %v4854_v11 }
 0x809   : > { %v4869_v1 = vadd.f32 1.0, %v4853_v52 }
 0x80a   : > { %v4950_v37 = vmul.f32 %v4918_v59, %v4870_v6  ;;  %v5997_v35 = vpop.f32.mrb[52].mxu0 }
 0x80b   : > { %v4949_v22 = vmul.f32 %v4917_v55, %v4869_v1  ;;  %v4558_v3 = vadd.f32 %v5997_v35, %v8656_v34  ;;  %v4552_v36 = vpop.f32.mrb[53].mxu0 }
 0x80c   : > { %v4966_v7 = vadd.f32 2.0, %v4950_v37  ;;  %v4553_v4 = vadd.f32 %v8656_v34, %v4552_v36 }
 0x80d   : > { %v4965_v31 = vadd.f32 2.0, %v4949_v22  ;;  %v4616_v16 = vadd.f32 %v4558_v3, %v8276_v29 }
 0x80e   : > { %v4982_v2 = vmul.f32 %v4966_v7, %v4950_v37  ;;  %v4615_v23 = vadd.f32 %v4553_v4, %v8283_v40 }
 0x80f   : > { %v4981_v56 = vmul.f32 %v4965_v31, %v4949_v22  ;;  %v4632_v24 = vmax.f32 %v4616_v16, -30.0 }
 0x810   : > { %v4998_v44 = vadd.f32 2.0, %v4982_v2  ;;  %v4631_v51 = vmax.f32 %v4615_v23, -30.0 }
 0x811   : > { %v4997_v8 = vadd.f32 2.0, %v4981_v56  ;;  %v4648_v5 = vmin.f32 %v4632_v24, 20.0 }
 0x812   : > { %v5030_v53 = vsub.s32 2130706432, %v4998_v44  ;;  %v4647_v42 = vmin.f32 %v4631_v51, 20.0 }
 0x813   : > { %v5029_v21 = vsub.s32 2130706432, %v4997_v8  ;;  %v4664_v33 = vmul.f32 1.442695, %v4648_v5 }
 0x814   : > { %v5062_v57 = vmul.f32 %v5030_v53, %v4998_v44  ;;  %v4663_v58 = vmul.f32 1.442695, %v4647_v42 }
 0x815   : > { %v5061_v39 = vmul.f32 %v5029_v21, %v4997_v8  ;;  %v4680_v61 = vadd.f32 0.5, %v4664_v33 }
 0x816   : > { %v5078_v0 = vsub.f32 2.0, %v5062_v57  ;;  %v4679_v15 = vadd.f32 0.5, %v4663_v58 }
 0x817   : > { %v5077_v29 = vsub.f32 2.0, %v5061_v39  ;;  %v4696_v26 = vfloor.f32 %v4680_v61 }
 0x818   : > { %v5094_v20 = vmul.f32 %v5078_v0, %v5030_v53  ;;  %v4695_v40 = vfloor.f32 %v4679_v15 }
 0x819   : > { %v5093_v27 = vmul.f32 %v5077_v29, %v5029_v21  ;;  %v4712_v12 = vsub.f32 %v4664_v33, %v4696_v26  ;;  %v6379_v6 = vtrunc.f32 %v4696_v26 }
 0x81a   : > { %v5110_v18 = vmul.f32 %v5094_v20, %v4998_v44  ;;  %v4711_v49 = vsub.f32 %v4663_v58, %v4695_v40  ;;  %v6377_v59 = vtrunc.f32 %v4695_v40 }
 0x81b   : > { %v5109_v14 = vmul.f32 %v5093_v27, %v4997_v8  ;;  %v4728_v9 = vmul.f32 0.0013333558, %v4712_v12  ;;  %v6380_v31 = vcvt.f32.s32 %v6379_v6 }
 0x81c   : > { %v5126_v48 = vsub.f32 2.0, %v5110_v18  ;;  %v4727_v10 = vmul.f32 0.0013333558, %v4711_v49  ;;  %v6378_v16 = vcvt.f32.s32 %v6377_v59 }
 0x81d   : > { %v5125_v30 = vsub.f32 2.0, %v5109_v14  ;;  %v4744_v63 = vadd.f32 0.009618129, %v4728_v9  ;;  %v4904_v39 = vadd.s32 127, %v6380_v31 }
 0x81e   : > { %v5142_v45 = vmul.f32 %v5126_v48, %v5094_v20  ;;  %v4743_v60 = vadd.f32 0.009618129, %v4727_v10  ;;  %v4903_v61 = vadd.s32 127, %v6378_v16  ;;  %v5295_v10 = vld [vmem:[#allocation2] sm:$0x1] }
 0x81f   : > { %v5141_v46 = vmul.f32 %v5125_v30, %v5093_v27  ;;  %v4760_v43 = vmul.f32 %v4744_v63, %v4712_v12  ;;  %v4920_v9 = vshll.u32 %v4904_v39, 23 }
 0x820   : > { %v5158_v25 = vmul.f32 %v5142_v45, %v4998_v44  ;;  %v4759_v52 = vmul.f32 %v4743_v60, %v4711_v49  ;;  %v4919_v14 = vshll.u32 %v4903_v61, 23 }
 0x821   : > { %v5157_v11 = vmul.f32 %v5141_v46, %v4997_v8  ;;  %v4776_v55 = vadd.f32 0.05550411, %v4760_v43 }
 0x822   : > { %v5174_v1 = vsub.f32 2.0, %v5158_v25  ;;  %v4775_v35 = vadd.f32 0.05550411, %v4759_v52 }
 0x823   : > { %v5173_v37 = vsub.f32 2.0, %v5157_v11  ;;  %v4792_v22 = vmul.f32 %v4776_v55, %v4712_v12 }
 0x824   : > { %v6000_v3 = vpop.f32.mrb[54].mxu0  ;;  %v5190_v7 = vmul.f32 %v5174_v1, %v5142_v45  ;;  %v4791_v4 = vmul.f32 %v4775_v35, %v4711_v49  ;;  %v6601_v45 = vmov 0  }
 0x825   : > { %v5189_v36 = vmul.f32 %v5173_v37, %v5141_v46  ;;  %v4568_v23 = vadd.f32 %v6000_v3, %v8656_v34  ;;  %v4562_v24 = vpop.f32.mrb[55].mxu0  ;;  %v4808_v44 = vadd.f32 0.2402265, %v4792_v22  ;;  %6464 = vset.pattern.permute.xlu1 %v6601_v45 }
 0x826   : > { %v4563_v51 = vadd.f32 %v8656_v34, %v4562_v24  ;;  %v4807_v5 = vadd.f32 0.2402265, %v4791_v4  ;;  %v5206_v57 = vmul.f32 %v5190_v7, %v4982_v2  ;;  %5298 = vperm.xlu1 %6464, %v5295_v10  }
 0x827   : > { %v5205_v8 = vmul.f32 %v5189_v36, %v4981_v56  ;;  %v4618_v53 = vadd.f32 %v4568_v23, %v8330_v50  ;;  %v4824_v42 = vmul.f32 %v4808_v44, %v4712_v12 }
 0x828   : > { %v4617_v21 = vadd.f32 %v4563_v51, %v8320_v54  ;;  %v4823_v58 = vmul.f32 %v4807_v5, %v4711_v49  ;;  %v5229_v27 = vmul.f32 %v8669_v62, %v5206_v57 }
 0x829   : > { %v5228_v33 = vmul.f32 %v8669_v62, %v5205_v8  ;;  %v4634_v0 = vmax.f32 %v4618_v53, -30.0  ;;  %v4840_v15 = vadd.f32 0.6931472, %v4824_v42 }
 0x82a   : > { %v4633_v29 = vmax.f32 %v4617_v21, -30.0  ;;  %v4839_v26 = vadd.f32 0.6931472, %v4823_v58 }
 0x82b   : > { %5244 = vxpose.xlu0.b32.cont [3/16] %v5228_v33, 128  ;;  %v4650_v20 = vmin.f32 %v4634_v0, 20.0  ;;  %v4856_v40 = vmul.f32 %v4840_v15, %v4712_v12 }
 0x82c   : > { %v4649_v56 = vmin.f32 %v4633_v29, 20.0  ;;  %v4855_v50 = vmul.f32 %v4839_v26, %v4711_v49 }
 0x82d   : > { %v4666_v18 = vmul.f32 1.442695, %v4650_v20  ;;  %v4872_v54 = vadd.f32 1.0, %v4856_v40 }
 0x82e   : > { %v4665_v48 = vmul.f32 1.442695, %v4649_v56  ;;  %v4871_v2 = vadd.f32 1.0, %v4855_v50 }
 0x82f   : > { %5245 = vxpose.xlu0.b32.cont [4/16] %v5229_v27, 128  ;;  %v4682_v30 = vadd.f32 0.5, %v4666_v18  ;;  %v4952_v63 = vmul.f32 %v4920_v9, %v4872_v54 }
 0x830   : > { %v4681_v60 = vadd.f32 0.5, %v4665_v48  ;;  %v4951_v12 = vmul.f32 %v4919_v14, %v4871_v2 }
 0x831   : > { %v4698_v25 = vfloor.f32 %v4682_v30  ;;  %v4968_v11 = vadd.f32 2.0, %v4952_v63 }
 0x832   : > { %v6003_v46 = vpop.f32.mrb[56].mxu0  ;;  %v4697_v52 = vfloor.f32 %v4681_v60  ;;  %v4967_v59 = vadd.f32 2.0, %v4951_v12 }
 0x833   : > { %v4578_v49 = vadd.f32 %v6003_v46, %v8656_v34  ;;  %v4572_v43 = vpop.f32.mrb[57].mxu0  ;;  %v8686_v1 = vsub.f32 %v4666_v18, %v4698_v25  ;;  %v6383_v55 = vtrunc.f32 %v4698_v25  ;;  %v8689_v35 = vmul.f32 %v4968_v11, %v4952_v63 }
 0x834   : > { %v4573_v6 = vadd.f32 %v8656_v34, %v4572_v43  ;;  %v8691_v22 = vsub.f32 %v4665_v48, %v4697_v52  ;;  %v6381_v3 = vtrunc.f32 %v4697_v52  ;;  %v8694_v7 = vmul.f32 %v4967_v59, %v4951_v12 }
 0x835   : > { %v4620_v37 = vadd.f32 %v4578_v49, %v8366_v19  ;;  %v4730_v4 = vmul.f32 0.0013333558, %v8686_v1  ;;  %v6384_v31 = vcvt.f32.s32 %v6383_v55  ;;  %v8698_v23 = vadd.f32 2.0, %v8689_v35 }
 0x836   : > { %v4619_v36 = vadd.f32 %v4573_v6, %v8358_v17  ;;  %v4729_v24 = vmul.f32 0.0013333558, %v8691_v22  ;;  %v8702_v19 = vadd.f32 2.0, %v8694_v7  ;;  %v6382_v53 = vcvt.f32.s32 %v6381_v3 }
 0x837   : > { %v4636_v16 = vmax.f32 %v4620_v37, -30.0  ;;  %v4746_v51 = vadd.f32 0.009618129, %v4730_v4  ;;  %v5032_v5 = vsub.s32 2130706432, %v8698_v23  ;;  %v8706_v33 = vadd.s32 127, %v6384_v31 }
 0x838   : > { %v4635_v44 = vmax.f32 %v4619_v36, -30.0  ;;  %v4745_v17 = vadd.f32 0.009618129, %v4729_v24  ;;  %v5031_v21 = vsub.s32 2130706432, %v8702_v19  ;;  %v8712_v20 = vadd.s32 127, %v6382_v53 }
 0x839   : > { %v4652_v8 = vmin.f32 %v4636_v16, 20.0  ;;  %v5064_v58 = vmul.f32 %v5032_v5, %v8698_v23  ;;  %v4762_v26 = vmul.f32 %v4746_v51, %v8686_v1  ;;  %v4922_v9 = vshll.u32 %v8706_v33, 23 }
 0x83a   : > { %v4651_v42 = vmin.f32 %v4635_v44, 20.0  ;;  %v5063_v61 = vmul.f32 %v5031_v21, %v8702_v19  ;;  %v4761_v0 = vmul.f32 %v4745_v17, %v8691_v22  ;;  %v4921_v52 = vshll.u32 %v8712_v20, 23 }
 0x83b   : > { %v4668_v57 = vmul.f32 1.442695, %v4652_v8  ;;  %v5080_v29 = vsub.f32 2.0, %v5064_v58  ;;  %v4778_v12 = vadd.f32 0.05550411, %v4762_v26 }
 0x83c   : > { %v4667_v39 = vmul.f32 1.442695, %v4651_v42  ;;  %v5079_v27 = vsub.f32 2.0, %v5063_v61  ;;  %v4777_v30 = vadd.f32 0.05550411, %v4761_v0 }
 0x83d   : > { %v4684_v15 = vadd.f32 0.5, %v4668_v57  ;;  %v5096_v54 = vmul.f32 %v5080_v29, %v5032_v5  ;;  %v4794_v44 = vmul.f32 %v4778_v12, %v8686_v1 }
 0x83e   : > { %v4683_v40 = vadd.f32 0.5, %v4667_v39  ;;  %v6006_v56 = vpop.f32.mrb[58].mxu0  ;;  %v5095_v10 = vmul.f32 %v5079_v27, %v5031_v21  ;;  %v4793_v31 = vmul.f32 %v4777_v30, %v8691_v22 }
 0x83f   : > { %v4700_v50 = vfloor.f32 %v4684_v15  ;;  %v4588_v18 = vadd.f32 %v6006_v56, %v8656_v34  ;;  %v4582_v14 = vpop.f32.mrb[59].mxu0  ;;  %v5112_v11 = vmul.f32 %v5096_v54, %v8698_v23 }
 0x840   : > { %v4699_v48 = vfloor.f32 %v4683_v40  ;;  %v4583_v2 = vadd.f32 %v8656_v34, %v4582_v14  ;;  %v5111_v3 = vmul.f32 %v5095_v10, %v8702_v19  ;;  %v4809_v0 = vadd.f32 0.2402265, %v4793_v31 }
 0x841   : > { %v8717_v63 = vsub.f32 %v4668_v57, %v4700_v50  ;;  %v6387_v60 = vtrunc.f32 %v4700_v50  ;;  %v4622_v46 = vadd.f32 %v4588_v18, %v8376_v13  ;;  %v5128_v57 = vsub.f32 2.0, %v5112_v11 }
 0x842   : > { %v8720_v25 = vsub.f32 %v4667_v39, %v4699_v48  ;;  %v4621_v49 = vadd.f32 %v4583_v2, %v8372_v32  ;;  %v6009_v43 = vpop.f32.mrb[60].mxu0  ;;  %v6385_v36 = vtrunc.f32 %v4699_v48  ;;  %v5127_v21 = vsub.f32 2.0, %v5111_v3 }
 0x843   : > { %v4732_v6 = vmul.f32 0.0013333558, %v8717_v63  ;;  %v4638_v59 = vmax.f32 %v4622_v46, -30.0  ;;  %v4598_v55 = vadd.f32 %v6009_v43, %v8656_v34  ;;  %v4592_v37 = vpop.f32.mrb[61].mxu0  ;;  %v6388_v32 = vcvt.f32.s32 %v6387_v60 }
 0x844   : > { %v4637_v13 = vmax.f32 %v4621_v49, -30.0  ;;  %v4593_v4 = vadd.f32 %v8656_v34, %v4592_v37  ;;  %v4731_v8 = vmul.f32 0.0013333558, %v8720_v25  ;;  %v6386_v58 = vcvt.f32.s32 %v6385_v36 }
 0x845   : > { %v4654_v16 = vmin.f32 %v4638_v59, 20.0  ;;  %v4624_v24 = vadd.f32 %v4598_v55, %v8384_v38  ;;  %v8732_v51 = vadd.f32 0.009618129, %v4732_v6  ;;  %v5143_v38 = vmul.f32 %v5127_v21, %v5095_v10 }
 0x846   : > { %v4653_v5 = vmin.f32 %v4637_v13, 20.0  ;;  %v4623_v17 = vadd.f32 %v4593_v4, %v8380_v47  ;;  %v5144_v26 = vmul.f32 %v5128_v57, %v5096_v54  ;;  %v8736_v40 = vadd.s32 127, %v6388_v32 }
 0x847   : > { %v4670_v53 = vmul.f32 1.442695, %v4654_v16  ;;  %v4640_v42 = vmax.f32 %v4624_v24, -30.0  ;;  %v4747_v56 = vadd.f32 0.009618129, %v4731_v8  ;;  %v5159_v47 = vmul.f32 %v5143_v38, %v8702_v19 }
 0x848   : > { %v4669_v39 = vmul.f32 1.442695, %v4653_v5  ;;  %v4639_v61 = vmax.f32 %v4623_v17, -30.0  ;;  %v5160_v48 = vmul.f32 %v5144_v26, %v8698_v23  ;;  %v4825_v60 = vmul.f32 %v4809_v0, %v8691_v22 }
 0x849   : > { %v4686_v15 = vadd.f32 0.5, %v4670_v53  ;;  %v4656_v29 = vmin.f32 %v4640_v42, 20.0  ;;  %v4810_v46 = vadd.f32 0.2402265, %v4794_v44  ;;  %v5175_v49 = vsub.f32 2.0, %v5159_v47 }
 0x84a   : > { %v4685_v27 = vadd.f32 0.5, %v4669_v39  ;;  %v4655_v50 = vmin.f32 %v4639_v61, 20.0  ;;  %v5176_v59 = vsub.f32 2.0, %v5160_v48  ;;  %v8745_v55 = vadd.s32 127, %v6386_v58 }
 0x84b   : > { %v4702_v18 = vfloor.f32 %v4686_v15  ;;  %v4672_v14 = vmul.f32 1.442695, %v4656_v29  ;;  %v4763_v37 = vmul.f32 %v4747_v56, %v8720_v25  ;;  %v5191_v4 = vmul.f32 %v5175_v49, %v5143_v38 }
 0x84c   : > { %v4701_v2 = vfloor.f32 %v4685_v27  ;;  %v4671_v30 = vmul.f32 1.442695, %v4655_v50  ;;  %v4841_v31 = vadd.f32 0.6931472, %v4825_v60  ;;  %v4826_v42 = vmul.f32 %v4810_v46, %v8686_v1 }
 0x84d   : > { %v8741_v12 = vsub.f32 %v4670_v53, %v4702_v18  ;;  %v6391_v10 = vtrunc.f32 %v4702_v18  ;;  %v4688_v54 = vadd.f32 0.5, %v4672_v14  ;;  %v5192_v53 = vmul.f32 %v5176_v59, %v5144_v26 }
 0x84e   : > { %v8743_v43 = vsub.f32 %v4669_v39, %v4701_v2  ;;  %v6389_v11 = vtrunc.f32 %v4701_v2  ;;  %v4687_v6 = vadd.f32 0.5, %v4671_v30  ;;  %v5207_v29 = vmul.f32 %v5191_v4, %v8694_v7 }
 0x84f   : > { %v4734_v19 = vmul.f32 0.0013333558, %v8741_v12  ;;  %v4704_v23 = vfloor.f32 %v4688_v54  ;;  %v6392_v3 = vcvt.f32.s32 %v6391_v10  ;;  %v6012_v13 = vpop.f32.mrb[62].mxu0  ;;  %v4857_v2 = vmul.f32 %v4841_v31, %v8691_v22 }
 0x850   : > { %v4703_v36 = vfloor.f32 %v4687_v6  ;;  %v4733_v32 = vmul.f32 0.0013333558, %v8743_v43  ;;  %v6390_v16 = vcvt.f32.s32 %v6389_v11  ;;  %v4602_v8 = vpop.f32.mrb[63].mxu0  ;;  %v4608_v58 = vadd.f32 %v6012_v13, %v8656_v34 }
 0x851   : > { %v8750_v24 = vsub.f32 %v4672_v14, %v4704_v23  ;;  %v6395_v44 = vtrunc.f32 %v4704_v23  ;;  %v4750_v21 = vadd.f32 0.009618129, %v4734_v19  ;;  %v4603_v39 = vadd.f32 %v8656_v34, %v4602_v8 }
 0x852   : > { %v8752_v5 = vsub.f32 %v4671_v30, %v4703_v36  ;;  %v6393_v17 = vtrunc.f32 %v4703_v36  ;;  %v8758_v61 = vadd.s32 127, %v6392_v3  ;;  %v4749_v38 = vadd.f32 0.009618129, %v4733_v32 }
 0x853   : > { %v4736_v57 = vmul.f32 0.0013333558, %v8750_v24  ;;  %v6396_v0 = vcvt.f32.s32 %v6395_v44  ;;  %v8762_v56 = vadd.s32 127, %v6390_v16  ;;  %v4626_v26 = vadd.f32 %v4608_v58, %v8390_v28 }
 0x854   : > { %v4735_v15 = vmul.f32 0.0013333558, %v8752_v5  ;;  %v4625_v27 = vadd.f32 %v4603_v39, %v8387_v41  ;;  %v6394_v18 = vcvt.f32.s32 %v6393_v17  ;;  %v5230_v14 = vmul.f32 %v8669_v62, %v5207_v29 }
 0x855   : > { %v8766_v50 = vadd.f32 0.009618129, %v4736_v57  ;;  %v5208_v34 = vmul.f32 %v5192_v53, %v8689_v35  ;;  %v4642_v47 = vmax.f32 %v4626_v26, -30.0  ;;  %v4842_v30 = vadd.f32 0.6931472, %v4826_v42 }
 0x856   : > { %v4641_v48 = vmax.f32 %v4625_v27, -30.0  ;;  %v8771_v7 = vadd.s32 127, %v6396_v0  ;;  %v8773_v60 = vadd.f32 0.009618129, %v4735_v15  ;;  %5246 = vxpose.xlu0.b32.cont [5/16] %v5230_v14, 128  ;;  %v4779_v28 = vadd.f32 0.05550411, %v4763_v37 }
 0x857   : > { %v4764_v41 = vmul.f32 %v8732_v51, %v8717_v63  ;;  %v4658_v46 = vmin.f32 %v4642_v47, 20.0  ;;  %v4873_v54 = vadd.f32 1.0, %v4857_v2  ;;  %v4858_v49 = vmul.f32 %v4842_v30, %v8686_v1 }
 0x858   : > { %v4657_v10 = vmin.f32 %v4641_v48, 20.0  ;;  %v5231_v35 = vmul.f32 %v8669_v62, %v5208_v34  ;;  %v4795_v11 = vmul.f32 %v4779_v28, %v8720_v25  ;;  %v4765_v6 = vmul.f32 %v4749_v38, %v8743_v43 }
 0x859   : > { %v4780_v22 = vadd.f32 0.05550411, %v4764_v41  ;;  %v4674_v59 = vmul.f32 1.442695, %v4658_v46  ;;  %v4953_v23 = vmul.f32 %v4921_v52, %v4873_v54  ;;  %v4874_v37 = vadd.f32 1.0, %v4858_v49 }
 0x85a   : > { %v4673_v19 = vmul.f32 1.442695, %v4657_v10  ;;  %5247 = vxpose.xlu0.b32.cont [6/16] %v5231_v35, 128  ;;  %v4811_v51 = vadd.f32 0.2402265, %v4795_v11  ;;  %v4781_v36 = vadd.f32 0.05550411, %v4765_v6  ;;  %v4766_v1 = vmul.f32 %v4750_v21, %v8741_v12 }
 0x85b   : > { %v4796_v3 = vmul.f32 %v4780_v22, %v8717_v63  ;;  %v4690_v13 = vadd.f32 0.5, %v4674_v59  ;;  %v4969_v31 = vadd.f32 2.0, %v4953_v23  ;;  %v4954_v32 = vmul.f32 %v4922_v9, %v4874_v37 }
 0x85c   : > { %v4689_v4 = vadd.f32 0.5, %v4673_v19  ;;  %v4827_v16 = vmul.f32 %v4811_v51, %v8720_v25  ;;  %v4797_v20 = vmul.f32 %v4781_v36, %v8743_v43  ;;  %v4782_v52 = vadd.f32 0.05550411, %v4766_v1 }
 0x85d   : > { %v4812_v44 = vadd.f32 0.2402265, %v4796_v3  ;;  %v4706_v8 = vfloor.f32 %v4690_v13  ;;  %v8789_v53 = vmul.f32 %v4969_v31, %v4953_v23  ;;  %v4970_v42 = vadd.f32 2.0, %v4954_v32 }
 0x85e   : > { %v4705_v17 = vfloor.f32 %v4689_v4  ;;  %v8791_v57 = vadd.s32 127, %v6394_v18  ;;  %v4843_v21 = vadd.f32 0.6931472, %v4827_v16  ;;  %v4923_v58 = vshll.u32 %v8745_v55, 23 }
 0x85f   : > { %v4828_v39 = vmul.f32 %v4812_v44, %v8717_v63  ;;  %v8795_v33 = vsub.f32 %v4674_v59, %v4706_v8  ;;  %v4924_v15 = vshll.u32 %v8736_v40, 23  ;;  %v8803_v29 = vadd.f32 2.0, %v8789_v53 }
 0x860   : > { %v8797_v9 = vsub.f32 %v4673_v19, %v4705_v17  ;;  %v8799_v0 = vtrunc.f32 %v4705_v17  ;;  %v8805_v38 = vmul.f32 %v4970_v42, %v4954_v32  ;;  %v4859_v26 = vmul.f32 %v4843_v21, %v8720_v25 }
 0x861   : > { %v4844_v27 = vadd.f32 0.6931472, %v4828_v39  ;;  %v4813_v18 = vadd.f32 0.2402265, %v4797_v20  ;;  %v4925_v14 = vshll.u32 %v8762_v56, 23  ;;  %v4798_v34 = vmul.f32 %v4782_v52, %v8741_v12 }
 0x862   : > { %v4737_v55 = vmul.f32 0.0013333558, %v8797_v9  ;;  %v5033_v47 = vsub.s32 2130706432, %v8803_v29  ;;  %v8813_v48 = vadd.f32 2.0, %v8805_v38  ;;  %v4875_v40 = vadd.f32 1.0, %v4859_v26 }
 0x863   : > { %v4860_v2 = vmul.f32 %v4844_v27, %v8717_v63  ;;  %v8817_v30 = vmul.f32 0.0013333558, %v8795_v33  ;;  %v8819_v25 = vtrunc.f32 %v4706_v8  ;;  %v6398_v41 = vcvt.f32.s32 %v8799_v0 }
 0x864   : > { %v8821_v28 = vadd.f32 0.009618129, %v4737_v55  ;;  %v5065_v56 = vmul.f32 %v5033_v47, %v8803_v29  ;;  %v5034_v46 = vsub.s32 2130706432, %v8813_v48  ;;  %v4955_v10 = vmul.f32 %v4923_v58, %v4875_v40 }
 0x865   : > { %v4876_v54 = vadd.f32 1.0, %v4860_v2  ;;  %v4829_v49 = vmul.f32 %v4813_v18, %v8743_v43  ;;  %v4814_v35 = vadd.f32 0.2402265, %v4798_v34  ;;  %v4926_v63 = vshll.u32 %v8758_v61, 23 }
 0x866   : > { %v4767_v11 = vmul.f32 %v8773_v60, %v8752_v5  ;;  %v5081_v22 = vsub.f32 2.0, %v5065_v56  ;;  %v5066_v6 = vmul.f32 %v5034_v46, %v8813_v48  ;;  %v4971_v59 = vadd.f32 2.0, %v4955_v10 }
 0x867   : > { %v4956_v19 = vmul.f32 %v4924_v15, %v4876_v54  ;;  %v4845_v23 = vadd.f32 0.6931472, %v4829_v49  ;;  %v4830_v37 = vmul.f32 %v4814_v35, %v8741_v12  ;;  %v4927_v3 = vshll.u32 %v8791_v57, 23 }
 0x868   : > { %v4783_v51 = vadd.f32 0.05550411, %v4767_v11  ;;  %v5097_v36 = vmul.f32 %v5081_v22, %v5033_v47  ;;  %v5082_v1 = vsub.f32 2.0, %v5066_v6  ;;  %v8833_v13 = vmul.f32 %v4971_v59, %v4955_v10 }
 0x869   : > { %v4972_v4 = vadd.f32 2.0, %v4956_v19  ;;  %v4861_v61 = vmul.f32 %v4845_v23, %v8743_v43  ;;  %v4846_v31 = vadd.f32 0.6931472, %v4830_v37  ;;  %v4768_v32 = vmul.f32 %v8766_v50, %v8750_v24 }
 0x86a   : > { %v4799_v60 = vmul.f32 %v4783_v51, %v8752_v5  ;;  %v5113_v16 = vmul.f32 %v5097_v36, %v8803_v29  ;;  %v5098_v44 = vmul.f32 %v5082_v1, %v5034_v46  ;;  %v8841_v20 = vadd.f32 2.0, %v8833_v13 }
 0x86b   : > { %v8843_v52 = vmul.f32 %v4972_v4, %v4956_v19  ;;  %v4877_v8 = vadd.f32 1.0, %v4861_v61  ;;  %v4862_v17 = vmul.f32 %v4846_v31, %v8741_v12  ;;  %v4784_v57 = vadd.f32 0.05550411, %v4768_v32 }
 0x86c   : > { %v4815_v42 = vadd.f32 0.2402265, %v4799_v60  ;;  %v5129_v43 = vsub.f32 2.0, %v5113_v16  ;;  %v5114_v21 = vmul.f32 %v5098_v44, %v8813_v48  ;;  %v5035_v58 = vsub.s32 2130706432, %v8841_v20 }
 0x86d   : > { %v8849_v50 = vadd.f32 2.0, %v8843_v52  ;;  %v4957_v39 = vmul.f32 %v4925_v14, %v4877_v8  ;;  %v4878_v15 = vadd.f32 1.0, %v4862_v17  ;;  %v4800_v27 = vmul.f32 %v4784_v57, %v8750_v24 }
 0x86e   : > { %v4831_v26 = vmul.f32 %v4815_v42, %v8752_v5  ;;  %v5145_v55 = vmul.f32 %v5129_v43, %v5097_v36  ;;  %v5130_v18 = vsub.f32 2.0, %v5114_v21  ;;  %v5067_v12 = vmul.f32 %v5035_v58, %v8841_v20 }
 0x86f   : > { %v5036_v34 = vsub.s32 2130706432, %v8849_v50  ;;  %v4973_v47 = vadd.f32 2.0, %v4957_v39  ;;  %v4958_v40 = vmul.f32 %v4926_v63, %v4878_v15  ;;  %v4816_v56 = vadd.f32 0.2402265, %v4800_v27 }
 0x870   : > { %v4847_v2 = vadd.f32 0.6931472, %v4831_v26  ;;  %v5161_v46 = vmul.f32 %v5145_v55, %v8803_v29  ;;  %v5146_v10 = vmul.f32 %v5130_v18, %v5098_v44  ;;  %v5083_v54 = vsub.f32 2.0, %v5067_v12 }
 0x871   : > { %v5068_v14 = vmul.f32 %v5036_v34, %v8849_v50  ;;  %v8857_v49 = vmul.f32 %v4973_v47, %v4957_v39  ;;  %v4974_v35 = vadd.f32 2.0, %v4958_v40  ;;  %v4832_v22 = vmul.f32 %v4816_v56, %v8750_v24 }
 0x872   : > { %v4863_v11 = vmul.f32 %v4847_v2, %v8752_v5  ;;  %v5177_v6 = vsub.f32 2.0, %v5161_v46  ;;  %v5162_v59 = vmul.f32 %v5146_v10, %v8813_v48  ;;  %v5099_v19 = vmul.f32 %v5083_v54, %v5035_v58 }
 0x873   : > { %v5084_v63 = vsub.f32 2.0, %v5068_v14  ;;  %v8863_v23 = vadd.f32 2.0, %v8857_v49  ;;  %v8865_v29 = vmul.f32 %v4974_v35, %v4958_v40  ;;  %v4848_v51 = vadd.f32 0.6931472, %v4832_v22 }
 0x874   : > { %v4879_v37 = vadd.f32 1.0, %v4863_v11  ;;  %v5193_v36 = vmul.f32 %v5177_v6, %v5145_v55  ;;  %v5178_v1 = vsub.f32 2.0, %v5162_v59  ;;  %v5115_v4 = vmul.f32 %v5099_v19, %v8841_v20 }
 0x875   : > { %v5100_v61 = vmul.f32 %v5084_v63, %v5036_v34  ;;  %v5037_v5 = vsub.s32 2130706432, %v8863_v23  ;;  %v8870_v31 = vadd.f32 2.0, %v8865_v29  ;;  %v4864_v60 = vmul.f32 %v4848_v51, %v8750_v24 }
 0x876   : > { %v4959_v48 = vmul.f32 %v4927_v3, %v4879_v37  ;;  %v5209_v32 = vmul.f32 %v5193_v36, %v8789_v53  ;;  %v5194_v16 = vmul.f32 %v5178_v1, %v5146_v10  ;;  %v5131_v44 = vsub.f32 2.0, %v5115_v4 }
 0x877   : > { %v5116_v8 = vmul.f32 %v5100_v61, %v8849_v50  ;;  %v5069_v17 = vmul.f32 %v5037_v5, %v8863_v23  ;;  %v5038_v42 = vsub.s32 2130706432, %v8870_v31  ;;  %v4880_v43 = vadd.f32 1.0, %v4864_v60 }
 0x878   : > { %v4975_v57 = vadd.f32 2.0, %v4959_v48  ;;  %v5232_v21 = vmul.f32 %v8669_v62, %v5209_v32  ;;  %v5210_v58 = vmul.f32 %v5194_v16, %v8805_v38  ;;  %v5147_v39 = vmul.f32 %v5131_v44, %v5099_v19 }
 0x879   : > { %v5132_v3 = vsub.f32 2.0, %v5116_v8  ;;  %v5085_v15 = vsub.f32 2.0, %v5069_v17  ;;  %v5070_v24 = vmul.f32 %v5038_v42, %v8870_v31  ;;  %v4928_v26 = vshll.u32 %v8771_v7, 23 }
 0x87a   : > { %v8880_v53 = vmul.f32 %v4975_v57, %v4959_v48  ;;  %v4754_v27 = vadd.f32 0.009618129, %v8817_v30  ;;  %5248 = vxpose.xlu0.b32.cont [7/16] %v5232_v21, 128  ;;  %v5163_v55 = vmul.f32 %v5147_v39, %v8841_v20  ;;  %v4769_v12 = vmul.f32 %v8821_v28, %v8797_v9 }
 0x87b   : > { %v5148_v18 = vmul.f32 %v5132_v3, %v5100_v61  ;;  %v5101_v34 = vmul.f32 %v5085_v15, %v5037_v5  ;;  %v5086_v38 = vsub.f32 2.0, %v5070_v24  ;;  %v4960_v40 = vmul.f32 %v4928_v26, %v4880_v43 }
 0x87c   : > { %v8888_v47 = vadd.f32 2.0, %v8880_v53  ;;  %v5233_v2 = vmul.f32 %v8669_v62, %v5210_v58  ;;  %v5179_v56 = vsub.f32 2.0, %v5163_v55  ;;  %v4785_v46 = vadd.f32 0.05550411, %v4769_v12 }
 0x87d   : > { %v5164_v7 = vmul.f32 %v5148_v18, %v8849_v50  ;;  %v5117_v30 = vmul.f32 %v5101_v34, %v8863_v23  ;;  %v5102_v10 = vmul.f32 %v5086_v38, %v5038_v42  ;;  %v4976_v54 = vadd.f32 2.0, %v4960_v40 }
 0x87e   : > { %v5039_v20 = vsub.s32 2130706432, %v8888_v47  ;;  %5249 = vxpose.xlu0.b32.cont [8/16] %v5233_v2, 128  ;;  %v5195_v28 = vmul.f32 %v5179_v56, %v5147_v39  ;;  %v4801_v35 = vmul.f32 %v4785_v46, %v8797_v9  ;;  %v4770_v11 = vmul.f32 %v4754_v27, %v8795_v33 }
 0x87f   : > { %v5180_v14 = vsub.f32 2.0, %v5164_v7  ;;  %v5133_v22 = vsub.f32 2.0, %v5117_v30  ;;  %v5118_v6 = vmul.f32 %v5102_v10, %v8870_v31  ;;  %v8898_v50 = vmul.f32 %v4976_v54, %v4960_v40 }
 0x880   : > { %v5071_v59 = vmul.f32 %v5039_v20, %v8888_v47  ;;  %v5211_v19 = vmul.f32 %v5195_v28, %v8833_v13  ;;  %v4817_v37 = vadd.f32 0.2402265, %v4801_v35  ;;  %v4786_v51 = vadd.f32 0.05550411, %v4770_v11 }
 0x881   : > { %v5196_v63 = vmul.f32 %v5180_v14, %v5148_v18  ;;  %v5149_v36 = vmul.f32 %v5133_v22, %v5101_v34  ;;  %v5134_v1 = vsub.f32 2.0, %v5118_v6  ;;  %v5008_v61 = vadd.f32 2.0, %v8898_v50 }
 0x882   : > { %v5087_v4 = vsub.f32 2.0, %v5071_v59  ;;  %v5234_v5 = vmul.f32 %v8669_v62, %v5211_v19  ;;  %v4833_v60 = vmul.f32 %v4817_v37, %v8797_v9  ;;  %v4802_v32 = vmul.f32 %v4786_v51, %v8795_v33 }
 0x883   : > { %v5212_v48 = vmul.f32 %v5196_v63, %v8843_v52  ;;  %v5165_v16 = vmul.f32 %v5149_v36, %v8863_v23  ;;  %v5150_v44 = vmul.f32 %v5134_v1, %v5102_v10  ;;  %v5040_v8 = vsub.s32 2130706432, %v5008_v61  ;;  %v6468_v63 = vld [vmem:[%s8981_s7] ss:$0 sm:$0xff] }
 0x884   : > { %v5103_v13 = vmul.f32 %v5087_v4, %v5039_v20  ;;  %v6400_v17 = vcvt.f32.s32 %v8819_v25  ;;  %v4913_v42 = vadd.s32 127, %v6398_v41  ;;  %5250 = vxpose.xlu0.b32.cont [9/16] %v5234_v5, 128  ;;  %v4849_v57 = vadd.f32 0.6931472, %v4833_v60 }
 0x885   : > { %v4818_v43 = vadd.f32 0.2402265, %v4802_v32  ;;  %v5181_v21 = vsub.f32 2.0, %v5165_v16  ;;  %v5166_v52 = vmul.f32 %v5150_v44, %v8870_v31  ;;  %v5072_v39 = vmul.f32 %v5040_v8, %v5008_v61 }
 0x886   : > { %v5119_v58 = vmul.f32 %v5103_v13, %v8888_v47  ;;  %v5235_v3 = vmul.f32 %v8669_v62, %v5212_v48  ;;  %v4865_v23 = vmul.f32 %v4849_v57, %v8797_v9  ;;  %v4914_v41 = vadd.s32 127, %v6400_v17 }
 0x887   : > { %v4834_v15 = vmul.f32 %v4818_v43, %v8795_v33  ;;  %v5197_v24 = vmul.f32 %v5181_v21, %v5149_v36  ;;  %v5182_v25 = vsub.f32 2.0, %v5166_v52  ;;  %v5088_v0 = vsub.f32 2.0, %v5072_v39 }
 0x888   : > { %v5135_v26 = vsub.f32 2.0, %v5119_v58  ;;  %5251 = vxpose.xlu0.b32.cont [10/16] %v5235_v3, 128  ;;  %v4881_v27 = vadd.f32 1.0, %v4865_v23  ;;  %v4929_v55 = vshll.u32 %v4913_v42, 23  ;;  %v4930_v20 = vshll.u32 %v4914_v41, 23 }
 0x889   : > { %v4850_v18 = vadd.f32 0.6931472, %v4834_v15  ;;  %v5213_v31 = vmul.f32 %v5197_v24, %v8857_v49  ;;  %v5198_v12 = vmul.f32 %v5182_v25, %v5150_v44  ;;  %v5104_v38 = vmul.f32 %v5088_v0, %v5040_v8 }
 0x88a   : > { %v5151_v34 = vmul.f32 %v5135_v26, %v5103_v13  ;;  %v4961_v40 = vmul.f32 %v4929_v55, %v4881_v27 }
 0x88b   : > { %v4866_v2 = vmul.f32 %v4850_v18, %v8795_v33  ;;  %v5236_v9 = vmul.f32 %v8669_v62, %v5213_v31  ;;  %v5214_v56 = vmul.f32 %v5198_v12, %v8865_v29  ;;  %v5120_v46 = vmul.f32 %v5104_v38, %v5008_v61 }
 0x88c   : > { %v5167_v7 = vmul.f32 %v5151_v34, %v8888_v47  ;;  %v4977_v30 = vadd.f32 2.0, %v4961_v40 }
 0x88d   : > { %v4882_v10 = vadd.f32 1.0, %v4866_v2  ;;  %5252 = vxpose.xlu0.b32.cont [11/16] %v5236_v9, 128  ;;  %v5136_v28 = vsub.f32 2.0, %v5120_v46  ;;  %v5237_v35 = vmul.f32 %v8669_v62, %v5214_v56 }
 0x88e   : > { %v5183_v54 = vsub.f32 2.0, %v5167_v7  ;;  %v4993_v49 = vmul.f32 %v4977_v30, %v4961_v40 }
 0x88f   : > { %v4962_v14 = vmul.f32 %v4930_v20, %v4882_v10  ;;  %v5152_v22 = vmul.f32 %v5136_v28, %v5104_v38 }
 0x890   : > { %v5199_v11 = vmul.f32 %v5183_v54, %v5151_v34  ;;  %v5009_v33 = vadd.f32 2.0, %v4993_v49 }
 0x891   : > { %v4978_v6 = vadd.f32 2.0, %v4962_v14  ;;  %5253 = vxpose.xlu0.b32.cont [12/16] %v5237_v35, 128  ;;  %v5168_v59 = vmul.f32 %v5152_v22, %v5008_v61 }
 0x892   : > { %v5215_v29 = vmul.f32 %v5199_v11, %v8880_v53  ;;  %v5041_v47 = vsub.s32 2130706432, %v5009_v33 }
 0x893   : > { %v4994_v19 = vmul.f32 %v4978_v6, %v4962_v14  ;;  %v5184_v51 = vsub.f32 2.0, %v5168_v59  ;;  %v5301_v6 = vlaneseq }
 0x894   : > { %v5238_v37 = vmul.f32 %v6468_v63, %v5215_v29  ;;  %v5073_v36 = vmul.f32 %v5041_v47, %v5009_v33 }
 0x895   : > { %v5010_v1 = vadd.f32 2.0, %v4994_v19  ;;  %v5200_v62 = vmul.f32 %v5184_v51, %v5152_v22 }
 0x896   : > { %5254 = vxpose.xlu0.b32.cont [13/16] %v5238_v37, 128  ;;  %v5089_v4 = vsub.f32 2.0, %v5073_v36 }
 0x897   : > { %v5042_v5 = vsub.s32 2130706432, %v5010_v1  ;;  %v5216_v48 = vmul.f32 %v5200_v62, %v8898_v50 }
 0x898   : > { %v5105_v60 = vmul.f32 %v5089_v4, %v5041_v47 }
 0x899   : > { %v5074_v32 = vmul.f32 %v5042_v5, %v5010_v1  ;;  %v5239_v53 = vmul.f32 %v6468_v63, %v5216_v48 }
 0x89a   : > { %v5121_v61 = vmul.f32 %v5105_v60, %v5009_v33 }
 0x89b   : > { %v5090_v16 = vsub.f32 2.0, %v5074_v32  ;;  %5255 = vxpose.xlu0.b32.cont [14/16] %v5239_v53, 128 }
 0x89c   : > { %v5137_v44 = vsub.f32 2.0, %v5121_v61 }
 0x89d   : > { %v5106_v13 = vmul.f32 %v5090_v16, %v5042_v5 }
 0x89e   : > { %v5153_v8 = vmul.f32 %v5137_v44, %v5105_v60 }
 0x89f   : > { %v5122_v17 = vmul.f32 %v5106_v13, %v5010_v1 }
 0x8a0   : > { %v5169_v42 = vmul.f32 %v5153_v8, %v5009_v33 }
 0x8a1   : > { %v5138_v57 = vsub.f32 2.0, %v5122_v17 }
 0x8a2   : > { %v5185_v43 = vsub.f32 2.0, %v5169_v42 }
 0x8a3   : > { %v5154_v21 = vmul.f32 %v5138_v57, %v5106_v13 }
 0x8a4   : > { %v5201_v52 = vmul.f32 %v5185_v43, %v5153_v8 }
 0x8a5   : > { %v5170_v58 = vmul.f32 %v5154_v21, %v5010_v1  ;;  %v5299_v36 = vpop.permute.xlu1 %5298 }
 0x8a6   : > { %v5217_v39 = vmul.f32 %v5201_v52, %v4993_v49 }
 0x8a7   : > { %v5186_v3 = vsub.f32 2.0, %v5170_v58 }
 0x8a8   : > { %v5240_v23 = vmul.f32 %v6468_v63, %v5217_v39 }
 0x8a9   : > { %v5202_v50 = vmul.f32 %v5186_v3, %v5154_v21 }
 0x8aa   : > { %5256 = vxpose.xlu0.b32.cont [15/16] %v5240_v23, 128 }
 0x8ab   : > { %v5218_v15 = vmul.f32 %v5202_v50, %v4994_v19  ;;  %v5302_v19 = vshrl.u32 %v5301_v6, 7 }
 0x8ad   : > { %v5241_v24 = vmul.f32 %v6468_v63, %v5218_v15  ;;  %v5303_v51 = vsub.s32 0, %v5302_v19 }
 0x8af   : > { %5257 = vxpose.xlu0.b32.end [16/16] %v5241_v24, 128  ;;  %v5304_v4 = vrot.slane %v5299_v36, %v5303_v51 }
 0x8d8   : > { %6465 = vset.pattern.permute.xlu0 %v6601_v45 }
 0x8f3   : > { %v5258_v25 = vpop.trf.xlu0 }
 0x8f7   : > { %v5259_v26 = vpop.trf.xlu0 }
 0x8f8   : > { %v5274_v34 = vadd.f32 %v5259_v26, %v5258_v25 }
 0x8fb   : > { %v5260_v0 = vpop.trf.xlu0 }
 0x8fc   : > { %v5275_v38 = vadd.f32 %v5274_v34, %v5260_v0 }
 0x8ff   : > { %v5261_v41 = vpop.trf.xlu0 }
 0x900   : > { %v5276_v2 = vadd.f32 %v5275_v38, %v5261_v41 }
 0x903   : > { %v5262_v27 = vpop.trf.xlu0 }
 0x904   : > { %v5277_v9 = vadd.f32 %v5276_v2, %v5262_v27 }
 0x907   : > { %v5263_v55 = vpop.trf.xlu0 }
 0x908   : > { %v5278_v7 = vadd.f32 %v5277_v9, %v5263_v55 }
 0x90b   : > { %v5264_v18 = vpop.trf.xlu0 }
 0x90c   : > { %v5279_v46 = vadd.f32 %v5278_v7, %v5264_v18 }
 0x90f   : > { %v5265_v31 = vpop.trf.xlu0 }
 0x910   : > { %v5280_v10 = vadd.f32 %v5279_v46, %v5265_v31 }
 0x913   : > { %v5266_v12 = vpop.trf.xlu0 }
 0x914   : > { %v5281_v45 = vadd.f32 %v5280_v10, %v5266_v12 }
 0x917   : > { %v5267_v40 = vpop.trf.xlu0 }
 0x918   : > { %v5282_v54 = vadd.f32 %v5281_v45, %v5267_v40 }
 0x91b   : > { %v5268_v56 = vpop.trf.xlu0 }
 0x91c   : > { %v5283_v28 = vadd.f32 %v5282_v54, %v5268_v56 }
 0x91f   : > { %v5269_v30 = vpop.trf.xlu0 }
 0x920   : > { %v5284_v14 = vadd.f32 %v5283_v28, %v5269_v30 }
 0x923   : > { %v5270_v20 = vpop.trf.xlu0 }
 0x924   : > { %v5285_v35 = vadd.f32 %v5284_v14, %v5270_v20 }
 0x927   : > { %v5271_v49 = vpop.trf.xlu0 }
 0x928   : > { %v5286_v22 = vadd.f32 %v5285_v35, %v5271_v49 }
 0x92b   : > { %v5272_v11 = vpop.trf.xlu0 }
 0x92c   : > { %v5287_v33 = vadd.f32 %v5286_v22, %v5272_v11 }
 0x92f   : > { %v5273_v29 = vpop.trf.xlu0 }
 0x930   : > { %v5288_v59 = vadd.f32 %v5287_v33, %v5273_v29 }
 0x932   : > { %v5289_v47 = vrot.slane %v5288_v59, 4 }
 0x934   : > { %v5290_v63 = vadd.f32 %v5289_v47, %v5288_v59 }
 0x936   : > { %v5291_v37 = vrot.slane %v5290_v63, 2 }
 0x938   : > { %v5292_v1 = vadd.f32 %v5291_v37, %v5290_v63 }
 0x93a   : > { %v5293_v62 = vrot.slane %v5292_v1, 1 }
 0x93c   : > { %v5294_v5 = vadd.f32 %v5293_v62, %v5292_v1 }
 0x93e   : > { %v5305_v48 = vadd.f32 %v5304_v4, %v5294_v5 }
 0x940   : > { %6466 = vtanh.f32 %v5305_v48 }
 0x94a   : > { %v6467_v60 = vpop.eup %6466 }
 0x94b   : > { %5307 = vst [vmem:[%s369_s13] sm:$0x1] %v6467_v60 }
 0x94c   : > { %6538 = shalt.err (!%p6535_p11)
}
 0x94d   : > { %s6539_s25 = scalar_lea.hbm %s8932_s26, 16  ;;  %s6543_s18 = scalar_lea.hbm %s8983_s9, 32 }
 0x94e   : > { %p6540_p13 = scmp.ne.s32.totalorder %s8932_s26, %s6539_s25  ;;  %p6544_p6 = scmp.lt.u32.totalorder %s8932_s26, %s8983_s9 }
 0x94f   : > { %p6545_p9 = scmp.lt.u32.totalorder %s6543_s18, %s6539_s25  ;;  %p6547_p10 = scmp.lt.u32.totalorder %s6539_s25, %s8932_s26 }
 0x950   : > { %p6541_p5 = pnand %p6540_p13, %p9077_p1 }
 0x951   : > { %p6546_p12 = por %p6545_p9, %p6544_p6 }
 0x952   : > { %p6542_p0 = pneg %p6541_p5 }
 0x953   : > { %p6548_p2 = por %p6547_p10, %p6546_p12 }
 0x955   : > { %p6549_p3 = pnand %p6548_p2, %p6542_p0 }
 0x957   : > { %6552 = shalt.err (!%p6549_p3)
}
 0x958   : > { %6409 = dma.vmem_to_hbm [thread:$0]  (%p9077_p1), %s8934_s19, 16, %s8932_s26, %s5309_s28  }
 0x959 PF: > { %p6426_p4 = scmp.ge.s32.totalorder %s6595_s14, 2  ;;  %s5333_s13 = sand.u32 1, %s6583_s11  }
 0x95a   : > { %p9078_p7 = scmp.ne.s32.totalorder %s9007_s21, 0  ;;  %s5334_s22 = scalar_lea.sflag [#allocation5], %s5333_s13 }
 0x95c   : > { %p6419_p8 = pnand %p6426_p4, %p9078_p7 }
 0x95e   : > { %6578 = dma.done.wait (!%p6419_p8), %s5334_s22, 16  }
 0x95f   : > { %6580 = vsyncadd (!%p6419_p8), %s5334_s22, 4294967280  ;;  %s9079_s27 = sld [smem:[#allocation12_spill]]  ;;  %s9080_s13 = sld [smem:[#allocation13_spill]] }
 0x960   : > { %p23_p11 = scmp.ge.s32.totalorder %s6681_s16, 4   ;;  %s9081_s11 = smov %s6587_s12 }
 0x961   : > { %s9083_s14 = smov %s6681_s16 }
 0x962   :  { %25 = sbr.rel (!%p23_p11) target bundleno = 8 (0x8), region = 108 }
 0x965   : > { %s9082_s12 = smov %s9079_s27 }
 0x969   :  { %5338 = vsyncpa [#allocation4], 1 }
 0x96a   :  { %5340 = vsyncpa [#allocation4 + $0x1], 1 }
 0x96b   :  { %5341 = vsyncpa [#allocation7], 1 }
 0x96c   :  { %5342 = vsyncpa [#allocation5], 1 }
 0x96d   :  { %5344 = vsyncpa [#allocation5 + $0x1], 1 }

</bundles_post_ra>
